<compile_context>
chip_gen: v5e
topology: v5e:2x2
jax: 0.10.0
libtpu: 0.0.40
codegen_flags: <defaults>
</compile_context>

<pallas_src>
import numpy as np
import jax
import jax.numpy as jnp
from jax.experimental import pallas as pl
from jax.experimental.pallas import tpu as pltpu

LN_EPS = 1e-3
MATMUL_DTYPE = jnp.bfloat16     # projection / FFN weights + activation operands on the MXU
SLAB_LANES_QUANTUM = 128        # slab lane width is a multiple of 128 (lane-dense loads)
WROW_QUANTUM = 16               # bf16 sublane packing -> 16-row-aligned weight offsets
VROW_QUANTUM = 8                # f32 sublane packing


# ----------------------------- in-kernel helpers -----------------------------

def _read_w(w_ref, entry):
    """Static slice of one packed weight from the bf16 slab (lane offset always 0)."""
    off, rows, cols = entry
    return w_ref[off:off + rows, 0:cols]


def _read_v(v_ref, entry):
    """Static slice of one packed 1-D parameter (gamma/beta/bias) as a (1, n) f32 row."""
    row, n = entry
    return v_ref[row:row + 1, 0:n]


def _layer_norm(z, gamma, beta, seq_len):
    # Mirrors LayerNormalization.forward: unbiased std, eps added to sigma.
    if seq_len == 1:              # PyTorch: if z.shape[1] == 1: return z
        return z
    d = z.shape[-1]
    mu = jnp.mean(z, axis=-1, keepdims=True)
    var = jnp.sum((z - mu) ** 2, axis=-1, keepdims=True) * (1.0 / (d - 1))
    sigma = jnp.sqrt(var)
    return (z - mu) / (sigma + LN_EPS) * gamma + beta


def _attend(q_src, q_base, kv_src, k_base, v_base, attn_ref, cfg, B, T):
    """Multi-head scaled-dot-product attention with batch folded into rows.

    q_src:  (B*T, *) f32 value holding Q columns starting at q_base.
    kv_src: (B*T, *) f32 value holding K / V columns starting at k_base / v_base.
    Per-head results are stored into attn_ref (B*T, H*dk) at static offsets
    (no lane-axis concatenation).  Score / P@V matmuls stay in f32.
    """
    H, dk = cfg["n_head"], cfg["dk"]
    inv_temper = 1.0 / cfg["temper"]
    for b in range(B):                                  # static unroll: B*H tiny attentions
        r = slice(b * T, (b + 1) * T)
        for h in range(H):
            qh = q_src[r, q_base + h * dk: q_base + (h + 1) * dk]
            kh = kv_src[r, k_base + h * dk: k_base + (h + 1) * dk]
            vh = kv_src[r, v_base + h * dk: v_base + (h + 1) * dk]
            s = jax.lax.dot_general(                     # (T, T), contract dk
                qh, kh, dimension_numbers=(((1,), (1,)), ((), ())),
                preferred_element_type=jnp.float32) * inv_temper
            m = jnp.max(s, axis=-1, keepdims=True)
            e = jnp.exp(s - m)
            p = e / jnp.sum(e, axis=-1, keepdims=True)   # exact divide (parity w/ PyTorch)
            o = jnp.dot(p, vh, preferred_element_type=jnp.float32)
            attn_ref[r, h * dk:(h + 1) * dk] = o


def _self_attn_block(x, sm, cfg, w_ref, v_ref, attn_ref, B, T):
    """DecoderBlock: fused-QKV self attention + residual + LayerNorm."""
    D = cfg["d_hid"]
    w_qkv = _read_w(w_ref, sm["w_qkv"])                                 # (D, 3D) bf16
    qkv = jnp.dot(x.astype(MATMUL_DTYPE), w_qkv,
                  preferred_element_type=jnp.float32)                   # (M, 3D) f32
    _attend(qkv, 0, qkv, D, 2 * D, attn_ref, cfg, B, T)
    a = attn_ref[...]
    return _layer_norm(a + x, _read_v(v_ref, sm["sa_g"]),
                       _read_v(v_ref, sm["sa_b"]), T)


def _cross_ffn_block(x, ctx, sm, cfg, w_ref, v_ref, attn_ref, B, T):
    """CrossAttentionBlock: cross attention (Q from x, fused KV from ctx) + FFN."""
    D = cfg["d_hid"]
    q = jnp.dot(x.astype(MATMUL_DTYPE), _read_w(w_ref, sm["w_q"]),
                preferred_element_type=jnp.float32)                     # (M, D)
    kv = jnp.dot(ctx.astype(MATMUL_DTYPE), _read_w(w_ref, sm["w_kv"]),
                 preferred_element_type=jnp.float32)                    # (M, 2D)
    _attend(q, 0, kv, 0, D, attn_ref, cfg, B, T)
    a = attn_ref[...]
    x = _layer_norm(a + x, _read_v(v_ref, sm["ca_g"]),
                    _read_v(v_ref, sm["ca_b"]), T)

    # Positionwise FFN: Conv1d(k=1) == pointwise matmul.
    h = jnp.dot(x.astype(MATMUL_DTYPE), _read_w(w_ref, sm["w1"]),
                preferred_element_type=jnp.float32) + _read_v(v_ref, sm["b1"])
    h = jnp.maximum(h, 0.0)                                             # ReLU
    y = jnp.dot(h.astype(MATMUL_DTYPE), _read_w(w_ref, sm["w2"]),
                preferred_element_type=jnp.float32) + _read_v(v_ref, sm["b2"])
    return _layer_norm(y + x, _read_v(v_ref, sm["ffn_g"]),
                       _read_v(v_ref, sm["ffn_b"]), T)


# ----------------------------- fused Pallas kernel -----------------------------

def make_kernel(meta, layer_cfgs, B, T):
    def kernel(x1_ref, x2_ref, pos_ref, w_ref, v_ref, o1_ref, o2_ref,
               attn1_ref, attn2_ref):
        pos = pos_ref[...]                     # (B*T, D), already tiled over batch
        x1 = x1_ref[...] + pos
        x2 = x2_ref[...] + pos
        for lm, cfg in zip(meta, layer_cfgs):  # static unroll over the 2 layers
            # Both self-attentions depend only on the layer inputs -> compute them
            # back-to-back (independent MXU work, separate scratch buffers).
            a1 = _self_attn_block(x1, lm["s1"], cfg, w_ref, v_ref, attn1_ref, B, T)
            a2 = _self_attn_block(x2, lm["s2"], cfg, w_ref, v_ref, attn2_ref, B, T)
            # stream1 cross-attn uses the LAYER-INPUT x2 as context,
            # stream2 cross-attn uses the UPDATED x1 (matches the PyTorch ordering).
            x1n = _cross_ffn_block(a1, x2, lm["s1"], cfg, w_ref, v_ref, attn1_ref, B, T)
            x2n = _cross_ffn_block(a2, x1n, lm["s2"], cfg, w_ref, v_ref, attn2_ref, B, T)
            x1, x2 = x1n, x2n
        o1_ref[...] = x1
        o2_ref[...] = x2
    return kernel


def _flop_estimate(B, T, layer_cfgs):
    M = B * T
    flops = 0
    trans = 0
    for cfg in layer_cfgs:
        D, din, H, dk = cfg["d_hid"], cfg["d_inner"], cfg["n_head"], cfg["dk"]
        proj = 2 * M * D * (3 * D) + 2 * M * D * D + 2 * M * D * (2 * D)
        ffn = 2 * M * D * din + 2 * M * din * D
        attn = 2 * (2 * B * H * T * T * dk * 2)   # self + cross: QK^T and P@V
        flops += 2 * (proj + ffn + attn)          # two streams
        trans += 2 * 2 * B * H * T * T            # exp() elements
    return flops, trans


def stream_cross_attention_forward(x1, x2, pos_table, w_slab, v_slab, meta, layer_cfgs):
    B, T, D = x1.shape
    M = B * T
    pos = jnp.tile(pos_table[:T], (B, 1))          # PositionEncoding, tiled over batch rows
    x1f = x1.reshape(M, D).astype(jnp.float32)     # fold batch into matmul rows
    x2f = x2.reshape(M, D).astype(jnp.float32)

    kernel = make_kernel(meta, layer_cfgs, B, T)
    flops, trans = _flop_estimate(B, T, layer_cfgs)
    bytes_accessed = int(4 * (4 * M * D + pos.size) + 2 * w_slab.size + 4 * v_slab.size)

    vmem_spec = pl.BlockSpec(memory_space=pltpu.MemorySpace.VMEM)   # whole-array, VMEM-resident
    y1, y2 = pl.pallas_call(
        kernel,
        out_shape=(jax.ShapeDtypeStruct((M, D), jnp.float32),
                   jax.ShapeDtypeStruct((M, D), jnp.float32)),
        in_specs=[vmem_spec] * 5,
        out_specs=(vmem_spec, vmem_spec),
        scratch_shapes=[pltpu.VMEM((M, D), jnp.float32),   # per-stream attention scratch
                        pltpu.VMEM((M, D), jnp.float32)],
        compiler_params=pltpu.CompilerParams(
            # all weights resident once (no double buffering, no grid); budget well under
            # v7x's 64 MiB physical VMEM.
            vmem_limit_bytes=48 * 1024 * 1024,
        ),
        cost_estimate=pl.CostEstimate(flops=int(flops), transcendentals=int(trans),
                                      bytes_accessed=bytes_accessed),
    )(x1f, x2f, pos, w_slab, v_slab)
    return y1.reshape(B, T, D), y2.reshape(B, T, D)


# ----------------------------- parameter init & packing -----------------------------

def _xavier_heads(key, shape):
    # mimics nn.init.xavier_normal_ fan computation for 3-D (H, D_in, d_k) tensors
    fan_in = shape[1] * shape[2]
    fan_out = shape[0] * shape[2]
    std = (2.0 / (fan_in + fan_out)) ** 0.5
    return std * jax.random.normal(key, shape, jnp.float32)


def _fuse_heads(w):
    # (H, D, dk) -> (D, H*dk); column block h == head h (matches PyTorch concat order)
    H, D, dk = w.shape
    return jnp.moveaxis(w, 0, 1).reshape(D, H * dk)


def init_params(key, input_size, hidden_size, n_heads, inner_hidden_factor):
    input_sizes = [hidden_size] * len(n_heads)
    input_sizes[0] = input_size
    layers, layer_cfgs = [], []
    for d_in, H in zip(input_sizes, n_heads):
        d_hid = hidden_size
        # residual add + (d_in,) LayerNorm require H*dk == d_in, as in the PyTorch config
        assert d_in == d_hid and d_hid % H == 0
        dk = d_hid // H
        d_inner = d_hid * inner_hidden_factor
        layer_cfgs.append(dict(n_head=H, dk=dk, d_hid=d_hid, d_inner=d_inner,
                               temper=float(np.sqrt(d_in))))   # sqrt(d_model), not sqrt(d_k)

        layer = {}
        for stream in ("s1", "s2"):
            key, *ks = jax.random.split(key, 11)
            ones = jnp.ones((d_in,), jnp.float32)
            zeros = jnp.zeros((d_in,), jnp.float32)
            sa = dict(wq=_fuse_heads(_xavier_heads(ks[0], (H, d_in, dk))),
                      wk=_fuse_heads(_xavier_heads(ks[1], (H, d_in, dk))),
                      wv=_fuse_heads(_xavier_heads(ks[2], (H, d_in, dk))),
                      g=ones, b=zeros)
            ca = dict(wq=_fuse_heads(_xavier_heads(ks[3], (H, d_in, dk))),
                      wk=_fuse_heads(_xavier_heads(ks[4], (H, d_in, dk))),
                      wv=_fuse_heads(_xavier_heads(ks[5], (H, d_in, dk))),
                      g=ones, b=zeros)
            # TODO(synk): PyTorch Conv1d default (kaiming-uniform) init not reproduced;
            # synthetic gaussian weights are used (forward math is identical).
            ffn = dict(w1=0.1 * jax.random.normal(ks[6], (d_hid, d_inner), jnp.float32),
                       b1=0.1 * jax.random.normal(ks[7], (d_inner,), jnp.float32),
                       w2=0.1 * jax.random.normal(ks[8], (d_inner, d_hid), jnp.float32),
                       b2=0.1 * jax.random.normal(ks[9], (d_hid,), jnp.float32),
                       g=jnp.ones((d_hid,), jnp.float32), b=jnp.zeros((d_hid,), jnp.float32))
            layer[stream] = dict(sa=sa, ca=ca, ffn=ffn)
        layers.append(layer)
    return layers, layer_cfgs


def pack_params(layers, layer_cfgs):
    """Pack all parameter leaves into one bf16 weight slab + one f32 vector slab.

    Every weight occupies [row_off : row_off+rows, 0:cols] (row_off multiple of 16,
    lane offset 0 -> aligned static slices in-kernel).  Every 1-D parameter occupies
    one padded row of the vector slab.  Returns (w_slab, v_slab, meta).
    """
    widths = []
    for cfg in layer_cfgs:
        D, din = cfg["d_hid"], cfg["d_inner"]
        widths += [3 * D, D, 2 * D, din, D]
    lanes = int(-(-max(widths) // SLAB_LANES_QUANTUM) * SLAB_LANES_QUANTUM)

    w_blocks, v_rows = [], []
    meta = []
    w_off, v_off = [0], [0]

    def put_w(a):
        a = np.asarray(a, np.float32)
        r, c = a.shape
        assert c <= lanes
        r_pad = (-r) % WROW_QUANTUM
        w_blocks.append(np.pad(a, ((0, r_pad), (0, lanes - c))))
        entry = (w_off[0], r, c)
        w_off[0] += r + r_pad
        return entry

    def put_v(a):
        a = np.asarray(a, np.float32).reshape(-1)
        n = a.shape[0]
        assert n <= lanes
        v_rows.append(np.pad(a, (0, lanes - n)))
        entry = (v_off[0], n)
        v_off[0] += 1
        return entry

    for lp in layers:
        lm = {}
        for stream in ("s1", "s2"):
            sp = lp[stream]
            lm[stream] = {
                "w_qkv": put_w(np.concatenate(
                    [np.asarray(sp["sa"]["wq"]), np.asarray(sp["sa"]["wk"]),
                     np.asarray(sp["sa"]["wv"])], axis=1)),
                "w_q": put_w(sp["ca"]["wq"]),
                "w_kv": put_w(np.concatenate(
                    [np.asarray(sp["ca"]["wk"]), np.asarray(sp["ca"]["wv"])], axis=1)),
                "w1": put_w(sp["ffn"]["w1"]),
                "w2": put_w(sp["ffn"]["w2"]),
                "sa_g": put_v(sp["sa"]["g"]), "sa_b": put_v(sp["sa"]["b"]),
                "ca_g": put_v(sp["ca"]["g"]), "ca_b": put_v(sp["ca"]["b"]),
                "ffn_g": put_v(sp["ffn"]["g"]), "ffn_b": put_v(sp["ffn"]["b"]),
                "b1": put_v(sp["ffn"]["b1"]), "b2": put_v(sp["ffn"]["b2"]),
            }
        meta.append(lm)

    w_slab = np.concatenate(w_blocks, axis=0)
    pad = (-w_slab.shape[0]) % WROW_QUANTUM
    if pad:
        w_slab = np.pad(w_slab, ((0, pad), (0, 0)))
    v_slab = np.stack(v_rows, axis=0)
    pad = (-v_slab.shape[0]) % VROW_QUANTUM
    if pad:
        v_slab = np.pad(v_slab, ((0, pad), (0, 0)))
    return (jnp.asarray(w_slab, MATMUL_DTYPE),
            jnp.asarray(v_slab, jnp.float32),
            meta)


def make_pos_table(n_positions, hidden_size):
    pos = np.arange(n_positions)[:, None].astype(np.float64)
    j = np.arange(hidden_size)[None, :]
    angle = pos / np.power(10000.0, 2 * (j // 2) / hidden_size)
    table = angle.copy()
    table[0, :] = 0.0
    table[1:, 0::2] = np.sin(angle[1:, 0::2])
    table[1:, 1::2] = np.cos(angle[1:, 1::2])
    return jnp.asarray(table, jnp.float32)


# ----------------------------- main -----------------------------

if __name__ == "__main__":
    # small config: batch=2, seq=8, input_size=hidden_size=32, n_heads=(2, 2)
    B, S, D = 2, 8, 32
    INPUT_SIZE, HIDDEN_SIZE = D, D
    N_HEADS = (2, 2)
    SEQUENCE_SIZE = S
    INNER_FACTOR = 2

    key = jax.random.PRNGKey(0)
    k1, k2 = jax.random.split(key)
    x1 = jax.random.normal(k1, (B, S, INPUT_SIZE), jnp.float32)
    x2 = jax.random.normal(k2, (B, S, INPUT_SIZE), jnp.float32)

    layers, layer_cfgs = init_params(jax.random.PRNGKey(1234), INPUT_SIZE, HIDDEN_SIZE,
                                     N_HEADS, INNER_FACTOR)
    w_slab, v_slab, meta = pack_params(layers, layer_cfgs)
    pos_table = make_pos_table(SEQUENCE_SIZE, HIDDEN_SIZE)

    y1, y2 = stream_cross_attention_forward(x1, x2, pos_table, w_slab, v_slab,
                                            meta, layer_cfgs)
    jax.block_until_ready((y1, y2))
    assert y1.shape == (B, S, HIDDEN_SIZE) and y2.shape == (B, S, HIDDEN_SIZE)
    assert bool(jnp.all(jnp.isfinite(y1))) and bool(jnp.all(jnp.isfinite(y2)))
    print("KERNEL_OK")
</pallas_src>

<mosaic_0001>
module attributes {stable_mosaic.version = 11 : i64} {
  func.func @kernel(%arg0: memref<16x32xf32, #tpu.memory_space<vmem>>, %arg1: memref<16x32xf32, #tpu.memory_space<vmem>>, %arg2: memref<16x32xf32, #tpu.memory_space<vmem>>, %arg3: memref<768x128xbf16, #tpu.memory_space<vmem>>, %arg4: memref<32x128xf32, #tpu.memory_space<vmem>>, %arg5: memref<16x32xf32, #tpu.memory_space<vmem>>, %arg6: memref<16x32xf32, #tpu.memory_space<vmem>>, %arg7: memref<16x32xf32, #tpu.memory_space<vmem>>, %arg8: memref<16x32xf32, #tpu.memory_space<vmem>>) attributes {dimension_semantics = [], scalar_prefetch = 0 : i64, scratch_operands = 2 : i64, tpu.core_type = #tpu.core_type<tc>} {
    %c0 = arith.constant 0 : index
    %c0_0 = arith.constant 0 : index
    %0 = vector.load %arg2[%c0, %c0_0] : memref<16x32xf32, #tpu.memory_space<vmem>>, vector<16x32xf32>
    %c0_1 = arith.constant 0 : index
    %c0_2 = arith.constant 0 : index
    %1 = vector.load %arg0[%c0_1, %c0_2] : memref<16x32xf32, #tpu.memory_space<vmem>>, vector<16x32xf32>
    %2 = arith.addf %1, %0 : vector<16x32xf32>
    %c0_3 = arith.constant 0 : index
    %c0_4 = arith.constant 0 : index
    %3 = vector.load %arg1[%c0_3, %c0_4] : memref<16x32xf32, #tpu.memory_space<vmem>>, vector<16x32xf32>
    %4 = arith.addf %3, %0 : vector<16x32xf32>
    %c0_5 = arith.constant 0 : index
    %c0_6 = arith.constant 0 : index
    %5 = vector.load %arg3[%c0_5, %c0_6] : memref<768x128xbf16, #tpu.memory_space<vmem>>, vector<32x96xbf16>
    %6 = arith.truncf %2 : vector<16x32xf32> to vector<16x32xbf16>
    %cst = arith.constant dense<0.000000e+00> : vector<16x96xf32>
    %7 = tpu.matmul %6, %5, %cst {dimension_numbers = #tpu.dot_dimension_numbers<[1], [0], [0], [1], [0, 0, 1, 1], [], []>} : vector<16x32xbf16>, vector<32x96xbf16>, vector<16x96xf32> -> vector<16x96xf32>
    %8 = vector.extract_strided_slice %7 {offsets = [0, 0], sizes = [8, 16], strides = [1, 1]} : vector<16x96xf32> to vector<8x16xf32>
    %9 = vector.extract_strided_slice %7 {offsets = [0, 32], sizes = [8, 16], strides = [1, 1]} : vector<16x96xf32> to vector<8x16xf32>
    %10 = vector.extract_strided_slice %7 {offsets = [0, 64], sizes = [8, 16], strides = [1, 1]} : vector<16x96xf32> to vector<8x16xf32>
    %cst_7 = arith.constant dense<0.000000e+00> : vector<8x8xf32>
    %11 = tpu.matmul %8, %9, %cst_7 {dimension_numbers = #tpu.dot_dimension_numbers<[1], [1], [0], [0], [0, 0, 1, 0], [], []>} : vector<8x16xf32>, vector<8x16xf32>, vector<8x8xf32> -> vector<8x8xf32>
    %cst_8 = arith.constant 0.176776692 : f32
    %12 = vector.broadcast %cst_8 : f32 to vector<8x8xf32>
    %13 = arith.mulf %11, %12 : vector<8x8xf32>
    %cst_9 = arith.constant dense<0xFF800000> : vector<8xf32>
    %14 = vector.multi_reduction <maximumf>, %13, %cst_9 [1] : vector<8x8xf32> to vector<8xf32>
    %15 = vector.shape_cast %14 : vector<8xf32> to vector<8x1xf32>
    %16 = vector.broadcast %15 : vector<8x1xf32> to vector<8x8xf32>
    %17 = arith.subf %13, %16 : vector<8x8xf32>
    %18 = math.exp %17 : vector<8x8xf32>
    %cst_10 = arith.constant dense<0.000000e+00> : vector<8xf32>
    %19 = vector.multi_reduction <add>, %18, %cst_10 [1] : vector<8x8xf32> to vector<8xf32>
    %20 = vector.shape_cast %19 : vector<8xf32> to vector<8x1xf32>
    %21 = vector.broadcast %20 : vector<8x1xf32> to vector<8x8xf32>
    %22 = arith.divf %18, %21 : vector<8x8xf32>
    %cst_11 = arith.constant dense<0.000000e+00> : vector<8x16xf32>
    %23 = tpu.matmul %22, %10, %cst_11 {dimension_numbers = #tpu.dot_dimension_numbers<[1], [0], [0], [1], [0, 0, 1, 1], [], []>} : vector<8x8xf32>, vector<8x16xf32>, vector<8x16xf32> -> vector<8x16xf32>
    %c0_12 = arith.constant 0 : index
    %c0_13 = arith.constant 0 : index
    %24 = vector.load %arg7[%c0_12, %c0_13] : memref<16x32xf32, #tpu.memory_space<vmem>>, vector<8x16xf32>
    tpu.vector_store %arg7[%c0_12, %c0_13], %23 {strides = array<i32>} : memref<16x32xf32, #tpu.memory_space<vmem>>, vector<8x16xf32>,
    %25 = vector.extract_strided_slice %7 {offsets = [0, 16], sizes = [8, 16], strides = [1, 1]} : vector<16x96xf32> to vector<8x16xf32>
    %26 = vector.extract_strided_slice %7 {offsets = [0, 48], sizes = [8, 16], strides = [1, 1]} : vector<16x96xf32> to vector<8x16xf32>
    %27 = vector.extract_strided_slice %7 {offsets = [0, 80], sizes = [8, 16], strides = [1, 1]} : vector<16x96xf32> to vector<8x16xf32>
    %cst_14 = arith.constant dense<0.000000e+00> : vector<8x8xf32>
    %28 = tpu.matmul %25, %26, %cst_14 {dimension_numbers = #tpu.dot_dimension_numbers<[1], [1], [0], [0], [0, 0, 1, 0], [], []>} : vector<8x16xf32>, vector<8x16xf32>, vector<8x8xf32> -> vector<8x8xf32>
    %cst_15 = arith.constant 0.176776692 : f32
    %29 = vector.broadcast %cst_15 : f32 to vector<8x8xf32>
    %30 = arith.mulf %28, %29 : vector<8x8xf32>
    %cst_16 = arith.constant dense<0xFF800000> : vector<8xf32>
    %31 = vector.multi_reduction <maximumf>, %30, %cst_16 [1] : vector<8x8xf32> to vector<8xf32>
    %32 = vector.shape_cast %31 : vector<8xf32> to vector<8x1xf32>
    %33 = vector.broadcast %32 : vector<8x1xf32> to vector<8x8xf32>
    %34 = arith.subf %30, %33 : vector<8x8xf32>
    %35 = math.exp %34 : vector<8x8xf32>
    %cst_17 = arith.constant dense<0.000000e+00> : vector<8xf32>
    %36 = vector.multi_reduction <add>, %35, %cst_17 [1] : vector<8x8xf32> to vector<8xf32>
    %37 = vector.shape_cast %36 : vector<8xf32> to vector<8x1xf32>
    %38 = vector.broadcast %37 : vector<8x1xf32> to vector<8x8xf32>
    %39 = arith.divf %35, %38 : vector<8x8xf32>
    %cst_18 = arith.constant dense<0.000000e+00> : vector<8x16xf32>
    %40 = tpu.matmul %39, %27, %cst_18 {dimension_numbers = #tpu.dot_dimension_numbers<[1], [0], [0], [1], [0, 0, 1, 1], [], []>} : vector<8x8xf32>, vector<8x16xf32>, vector<8x16xf32> -> vector<8x16xf32>
    %c0_19 = arith.constant 0 : index
    %c16 = arith.constant 16 : index
    %41 = vector.load %arg7[%c0_19, %c16] : memref<16x32xf32, #tpu.memory_space<vmem>>, vector<8x16xf32>
    tpu.vector_store %arg7[%c0_19, %c16], %40 {strides = array<i32>} : memref<16x32xf32, #tpu.memory_space<vmem>>, vector<8x16xf32>,
    %42 = vector.extract_strided_slice %7 {offsets = [8, 0], sizes = [8, 16], strides = [1, 1]} : vector<16x96xf32> to vector<8x16xf32>
    %43 = vector.extract_strided_slice %7 {offsets = [8, 32], sizes = [8, 16], strides = [1, 1]} : vector<16x96xf32> to vector<8x16xf32>
    %44 = vector.extract_strided_slice %7 {offsets = [8, 64], sizes = [8, 16], strides = [1, 1]} : vector<16x96xf32> to vector<8x16xf32>
    %cst_20 = arith.constant dense<0.000000e+00> : vector<8x8xf32>
    %45 = tpu.matmul %42, %43, %cst_20 {dimension_numbers = #tpu.dot_dimension_numbers<[1], [1], [0], [0], [0, 0, 1, 0], [], []>} : vector<8x16xf32>, vector<8x16xf32>, vector<8x8xf32> -> vector<8x8xf32>
    %cst_21 = arith.constant 0.176776692 : f32
    %46 = vector.broadcast %cst_21 : f32 to vector<8x8xf32>
    %47 = arith.mulf %45, %46 : vector<8x8xf32>
    %cst_22 = arith.constant dense<0xFF800000> : vector<8xf32>
    %48 = vector.multi_reduction <maximumf>, %47, %cst_22 [1] : vector<8x8xf32> to vector<8xf32>
    %49 = vector.shape_cast %48 : vector<8xf32> to vector<8x1xf32>
    %50 = vector.broadcast %49 : vector<8x1xf32> to vector<8x8xf32>
    %51 = arith.subf %47, %50 : vector<8x8xf32>
    %52 = math.exp %51 : vector<8x8xf32>
    %cst_23 = arith.constant dense<0.000000e+00> : vector<8xf32>
    %53 = vector.multi_reduction <add>, %52, %cst_23 [1] : vector<8x8xf32> to vector<8xf32>
    %54 = vector.shape_cast %53 : vector<8xf32> to vector<8x1xf32>
    %55 = vector.broadcast %54 : vector<8x1xf32> to vector<8x8xf32>
    %56 = arith.divf %52, %55 : vector<8x8xf32>
    %cst_24 = arith.constant dense<0.000000e+00> : vector<8x16xf32>
    %57 = tpu.matmul %56, %44, %cst_24 {dimension_numbers = #tpu.dot_dimension_numbers<[1], [0], [0], [1], [0, 0, 1, 1], [], []>} : vector<8x8xf32>, vector<8x16xf32>, vector<8x16xf32> -> vector<8x16xf32>
    %c8 = arith.constant 8 : index
    %c0_25 = arith.constant 0 : index
    %58 = vector.load %arg7[%c8, %c0_25] : memref<16x32xf32, #tpu.memory_space<vmem>>, vector<8x16xf32>
    tpu.vector_store %arg7[%c8, %c0_25], %57 {strides = array<i32>} : memref<16x32xf32, #tpu.memory_space<vmem>>, vector<8x16xf32>,
    %59 = vector.extract_strided_slice %7 {offsets = [8, 16], sizes = [8, 16], strides = [1, 1]} : vector<16x96xf32> to vector<8x16xf32>
    %60 = vector.extract_strided_slice %7 {offsets = [8, 48], sizes = [8, 16], strides = [1, 1]} : vector<16x96xf32> to vector<8x16xf32>
    %61 = vector.extract_strided_slice %7 {offsets = [8, 80], sizes = [8, 16], strides = [1, 1]} : vector<16x96xf32> to vector<8x16xf32>
    %cst_26 = arith.constant dense<0.000000e+00> : vector<8x8xf32>
    %62 = tpu.matmul %59, %60, %cst_26 {dimension_numbers = #tpu.dot_dimension_numbers<[1], [1], [0], [0], [0, 0, 1, 0], [], []>} : vector<8x16xf32>, vector<8x16xf32>, vector<8x8xf32> -> vector<8x8xf32>
    %cst_27 = arith.constant 0.176776692 : f32
    %63 = vector.broadcast %cst_27 : f32 to vector<8x8xf32>
    %64 = arith.mulf %62, %63 : vector<8x8xf32>
    %cst_28 = arith.constant dense<0xFF800000> : vector<8xf32>
    %65 = vector.multi_reduction <maximumf>, %64, %cst_28 [1] : vector<8x8xf32> to vector<8xf32>
    %66 = vector.shape_cast %65 : vector<8xf32> to vector<8x1xf32>
    %67 = vector.broadcast %66 : vector<8x1xf32> to vector<8x8xf32>
    %68 = arith.subf %64, %67 : vector<8x8xf32>
    %69 = math.exp %68 : vector<8x8xf32>
    %cst_29 = arith.constant dense<0.000000e+00> : vector<8xf32>
    %70 = vector.multi_reduction <add>, %69, %cst_29 [1] : vector<8x8xf32> to vector<8xf32>
    %71 = vector.shape_cast %70 : vector<8xf32> to vector<8x1xf32>
    %72 = vector.broadcast %71 : vector<8x1xf32> to vector<8x8xf32>
    %73 = arith.divf %69, %72 : vector<8x8xf32>
    %cst_30 = arith.constant dense<0.000000e+00> : vector<8x16xf32>
    %74 = tpu.matmul %73, %61, %cst_30 {dimension_numbers = #tpu.dot_dimension_numbers<[1], [0], [0], [1], [0, 0, 1, 1], [], []>} : vector<8x8xf32>, vector<8x16xf32>, vector<8x16xf32> -> vector<8x16xf32>
    %c8_31 = arith.constant 8 : index
    %c16_32 = arith.constant 16 : index
    %75 = vector.load %arg7[%c8_31, %c16_32] : memref<16x32xf32, #tpu.memory_space<vmem>>, vector<8x16xf32>
    tpu.vector_store %arg7[%c8_31, %c16_32], %74 {strides = array<i32>} : memref<16x32xf32, #tpu.memory_space<vmem>>, vector<8x16xf32>,
    %c0_33 = arith.constant 0 : index
    %c0_34 = arith.constant 0 : index
    %76 = vector.load %arg7[%c0_33, %c0_34] : memref<16x32xf32, #tpu.memory_space<vmem>>, vector<16x32xf32>
    %77 = arith.addf %76, %2 : vector<16x32xf32>
    %c0_35 = arith.constant 0 : index
    %c0_36 = arith.constant 0 : index
    %78 = vector.load %arg4[%c0_35, %c0_36] : memref<32x128xf32, #tpu.memory_space<vmem>>, vector<1x32xf32>
    %c1 = arith.constant 1 : index
    %c0_37 = arith.constant 0 : index
    %79 = vector.load %arg4[%c1, %c0_37] : memref<32x128xf32, #tpu.memory_space<vmem>>, vector<1x32xf32>
    %cst_38 = arith.constant dense<0.000000e+00> : vector<16xf32>
    %80 = vector.multi_reduction <add>, %77, %cst_38 [1] : vector<16x32xf32> to vector<16xf32>
    %81 = vector.shape_cast %80 : vector<16xf32> to vector<16x1xf32>
    %cst_39 = arith.constant 3.200000e+01 : f32
    %82 = vector.broadcast %cst_39 : f32 to vector<16x1xf32>
    %83 = arith.divf %81, %82 : vector<16x1xf32>
    %84 = vector.broadcast %83 : vector<16x1xf32> to vector<16x32xf32>
    %85 = arith.subf %77, %84 : vector<16x32xf32>
    %86 = arith.mulf %85, %85 : vector<16x32xf32>
    %cst_40 = arith.constant dense<0.000000e+00> : vector<16xf32>
    %87 = vector.multi_reduction <add>, %86, %cst_40 [1] : vector<16x32xf32> to vector<16xf32>
    %88 = vector.shape_cast %87 : vector<16xf32> to vector<16x1xf32>
    %cst_41 = arith.constant 0.0322580636 : f32
    %89 = vector.broadcast %cst_41 : f32 to vector<16x1xf32>
    %90 = arith.mulf %88, %89 : vector<16x1xf32>
    %91 = math.sqrt %90 : vector<16x1xf32>
    %92 = vector.broadcast %83 : vector<16x1xf32> to vector<16x32xf32>
    %93 = arith.subf %77, %92 : vector<16x32xf32>
    %cst_42 = arith.constant 1.000000e-03 : f32
    %94 = vector.broadcast %cst_42 : f32 to vector<16x1xf32>
    %95 = arith.addf %91, %94 : vector<16x1xf32>
    %96 = vector.broadcast %95 : vector<16x1xf32> to vector<16x32xf32>
    %97 = arith.divf %93, %96 : vector<16x32xf32>
    %98 = vector.broadcast %78 : vector<1x32xf32> to vector<16x32xf32>
    %99 = arith.mulf %97, %98 : vector<16x32xf32>
    %100 = vector.broadcast %79 : vector<1x32xf32> to vector<16x32xf32>
    %101 = arith.addf %99, %100 : vector<16x32xf32>
    %c192 = arith.constant 192 : index
    %c0_43 = arith.constant 0 : index
    %102 = vector.load %arg3[%c192, %c0_43] : memref<768x128xbf16, #tpu.memory_space<vmem>>, vector<32x96xbf16>
    %103 = arith.truncf %4 : vector<16x32xf32> to vector<16x32xbf16>
    %cst_44 = arith.constant dense<0.000000e+00> : vector<16x96xf32>
    %104 = tpu.matmul %103, %102, %cst_44 {dimension_numbers = #tpu.dot_dimension_numbers<[1], [0], [0], [1], [0, 0, 1, 1], [], []>} : vector<16x32xbf16>, vector<32x96xbf16>, vector<16x96xf32> -> vector<16x96xf32>
    %105 = vector.extract_strided_slice %104 {offsets = [0, 0], sizes = [8, 16], strides = [1, 1]} : vector<16x96xf32> to vector<8x16xf32>
    %106 = vector.extract_strided_slice %104 {offsets = [0, 32], sizes = [8, 16], strides = [1, 1]} : vector<16x96xf32> to vector<8x16xf32>
    %107 = vector.extract_strided_slice %104 {offsets = [0, 64], sizes = [8, 16], strides = [1, 1]} : vector<16x96xf32> to vector<8x16xf32>
    %cst_45 = arith.constant dense<0.000000e+00> : vector<8x8xf32>
    %108 = tpu.matmul %105, %106, %cst_45 {dimension_numbers = #tpu.dot_dimension_numbers<[1], [1], [0], [0], [0, 0, 1, 0], [], []>} : vector<8x16xf32>, vector<8x16xf32>, vector<8x8xf32> -> vector<8x8xf32>
    %cst_46 = arith.constant 0.176776692 : f32
    %109 = vector.broadcast %cst_46 : f32 to vector<8x8xf32>
    %110 = arith.mulf %108, %109 : vector<8x8xf32>
    %cst_47 = arith.constant dense<0xFF800000> : vector<8xf32>
    %111 = vector.multi_reduction <maximumf>, %110, %cst_47 [1] : vector<8x8xf32> to vector<8xf32>
    %112 = vector.shape_cast %111 : vector<8xf32> to vector<8x1xf32>
    %113 = vector.broadcast %112 : vector<8x1xf32> to vector<8x8xf32>
    %114 = arith.subf %110, %113 : vector<8x8xf32>
    %115 = math.exp %114 : vector<8x8xf32>
    %cst_48 = arith.constant dense<0.000000e+00> : vector<8xf32>
    %116 = vector.multi_reduction <add>, %115, %cst_48 [1] : vector<8x8xf32> to vector<8xf32>
    %117 = vector.shape_cast %116 : vector<8xf32> to vector<8x1xf32>
    %118 = vector.broadcast %117 : vector<8x1xf32> to vector<8x8xf32>
    %119 = arith.divf %115, %118 : vector<8x8xf32>
    %cst_49 = arith.constant dense<0.000000e+00> : vector<8x16xf32>
    %120 = tpu.matmul %119, %107, %cst_49 {dimension_numbers = #tpu.dot_dimension_numbers<[1], [0], [0], [1], [0, 0, 1, 1], [], []>} : vector<8x8xf32>, vector<8x16xf32>, vector<8x16xf32> -> vector<8x16xf32>
    %c0_50 = arith.constant 0 : index
    %c0_51 = arith.constant 0 : index
    %121 = vector.load %arg8[%c0_50, %c0_51] : memref<16x32xf32, #tpu.memory_space<vmem>>, vector<8x16xf32>
    tpu.vector_store %arg8[%c0_50, %c0_51], %120 {strides = array<i32>} : memref<16x32xf32, #tpu.memory_space<vmem>>, vector<8x16xf32>,
    %122 = vector.extract_strided_slice %104 {offsets = [0, 16], sizes = [8, 16], strides = [1, 1]} : vector<16x96xf32> to vector<8x16xf32>
    %123 = vector.extract_strided_slice %104 {offsets = [0, 48], sizes = [8, 16], strides = [1, 1]} : vector<16x96xf32> to vector<8x16xf32>
    %124 = vector.extract_strided_slice %104 {offsets = [0, 80], sizes = [8, 16], strides = [1, 1]} : vector<16x96xf32> to vector<8x16xf32>
    %cst_52 = arith.constant dense<0.000000e+00> : vector<8x8xf32>
    %125 = tpu.matmul %122, %123, %cst_52 {dimension_numbers = #tpu.dot_dimension_numbers<[1], [1], [0], [0], [0, 0, 1, 0], [], []>} : vector<8x16xf32>, vector<8x16xf32>, vector<8x8xf32> -> vector<8x8xf32>
    %cst_53 = arith.constant 0.176776692 : f32
    %126 = vector.broadcast %cst_53 : f32 to vector<8x8xf32>
    %127 = arith.mulf %125, %126 : vector<8x8xf32>
    %cst_54 = arith.constant dense<0xFF800000> : vector<8xf32>
    %128 = vector.multi_reduction <maximumf>, %127, %cst_54 [1] : vector<8x8xf32> to vector<8xf32>
    %129 = vector.shape_cast %128 : vector<8xf32> to vector<8x1xf32>
    %130 = vector.broadcast %129 : vector<8x1xf32> to vector<8x8xf32>
    %131 = arith.subf %127, %130 : vector<8x8xf32>
    %132 = math.exp %131 : vector<8x8xf32>
    %cst_55 = arith.constant dense<0.000000e+00> : vector<8xf32>
    %133 = vector.multi_reduction <add>, %132, %cst_55 [1] : vector<8x8xf32> to vector<8xf32>
    %134 = vector.shape_cast %133 : vector<8xf32> to vector<8x1xf32>
    %135 = vector.broadcast %134 : vector<8x1xf32> to vector<8x8xf32>
    %136 = arith.divf %132, %135 : vector<8x8xf32>
    %cst_56 = arith.constant dense<0.000000e+00> : vector<8x16xf32>
    %137 = tpu.matmul %136, %124, %cst_56 {dimension_numbers = #tpu.dot_dimension_numbers<[1], [0], [0], [1], [0, 0, 1, 1], [], []>} : vector<8x8xf32>, vector<8x16xf32>, vector<8x16xf32> -> vector<8x16xf32>
    %c0_57 = arith.constant 0 : index
    %c16_58 = arith.constant 16 : index
    %138 = vector.load %arg8[%c0_57, %c16_58] : memref<16x32xf32, #tpu.memory_space<vmem>>, vector<8x16xf32>
    tpu.vector_store %arg8[%c0_57, %c16_58], %137 {strides = array<i32>} : memref<16x32xf32, #tpu.memory_space<vmem>>, vector<8x16xf32>,
    %139 = vector.extract_strided_slice %104 {offsets = [8, 0], sizes = [8, 16], strides = [1, 1]} : vector<16x96xf32> to vector<8x16xf32>
    %140 = vector.extract_strided_slice %104 {offsets = [8, 32], sizes = [8, 16], strides = [1, 1]} : vector<16x96xf32> to vector<8x16xf32>
    %141 = vector.extract_strided_slice %104 {offsets = [8, 64], sizes = [8, 16], strides = [1, 1]} : vector<16x96xf32> to vector<8x16xf32>
    %cst_59 = arith.constant dense<0.000000e+00> : vector<8x8xf32>
    %142 = tpu.matmul %139, %140, %cst_59 {dimension_numbers = #tpu.dot_dimension_numbers<[1], [1], [0], [0], [0, 0, 1, 0], [], []>} : vector<8x16xf32>, vector<8x16xf32>, vector<8x8xf32> -> vector<8x8xf32>
    %cst_60 = arith.constant 0.176776692 : f32
    %143 = vector.broadcast %cst_60 : f32 to vector<8x8xf32>
    %144 = arith.mulf %142, %143 : vector<8x8xf32>
    %cst_61 = arith.constant dense<0xFF800000> : vector<8xf32>
    %145 = vector.multi_reduction <maximumf>, %144, %cst_61 [1] : vector<8x8xf32> to vector<8xf32>
    %146 = vector.shape_cast %145 : vector<8xf32> to vector<8x1xf32>
    %147 = vector.broadcast %146 : vector<8x1xf32> to vector<8x8xf32>
    %148 = arith.subf %144, %147 : vector<8x8xf32>
    %149 = math.exp %148 : vector<8x8xf32>
    %cst_62 = arith.constant dense<0.000000e+00> : vector<8xf32>
    %150 = vector.multi_reduction <add>, %149, %cst_62 [1] : vector<8x8xf32> to vector<8xf32>
    %151 = vector.shape_cast %150 : vector<8xf32> to vector<8x1xf32>
    %152 = vector.broadcast %151 : vector<8x1xf32> to vector<8x8xf32>
    %153 = arith.divf %149, %152 : vector<8x8xf32>
    %cst_63 = arith.constant dense<0.000000e+00> : vector<8x16xf32>
    %154 = tpu.matmul %153, %141, %cst_63 {dimension_numbers = #tpu.dot_dimension_numbers<[1], [0], [0], [1], [0, 0, 1, 1], [], []>} : vector<8x8xf32>, vector<8x16xf32>, vector<8x16xf32> -> vector<8x16xf32>
    %c8_64 = arith.constant 8 : index
    %c0_65 = arith.constant 0 : index
    %155 = vector.load %arg8[%c8_64, %c0_65] : memref<16x32xf32, #tpu.memory_space<vmem>>, vector<8x16xf32>
    tpu.vector_store %arg8[%c8_64, %c0_65], %154 {strides = array<i32>} : memref<16x32xf32, #tpu.memory_space<vmem>>, vector<8x16xf32>,
    %156 = vector.extract_strided_slice %104 {offsets = [8, 16], sizes = [8, 16], strides = [1, 1]} : vector<16x96xf32> to vector<8x16xf32>
    %157 = vector.extract_strided_slice %104 {offsets = [8, 48], sizes = [8, 16], strides = [1, 1]} : vector<16x96xf32> to vector<8x16xf32>
    %158 = vector.extract_strided_slice %104 {offsets = [8, 80], sizes = [8, 16], strides = [1, 1]} : vector<16x96xf32> to vector<8x16xf32>
    %cst_66 = arith.constant dense<0.000000e+00> : vector<8x8xf32>
    %159 = tpu.matmul %156, %157, %cst_66 {dimension_numbers = #tpu.dot_dimension_numbers<[1], [1], [0], [0], [0, 0, 1, 0], [], []>} : vector<8x16xf32>, vector<8x16xf32>, vector<8x8xf32> -> vector<8x8xf32>
    %cst_67 = arith.constant 0.176776692 : f32
    %160 = vector.broadcast %cst_67 : f32 to vector<8x8xf32>
    %161 = arith.mulf %159, %160 : vector<8x8xf32>
    %cst_68 = arith.constant dense<0xFF800000> : vector<8xf32>
    %162 = vector.multi_reduction <maximumf>, %161, %cst_68 [1] : vector<8x8xf32> to vector<8xf32>
    %163 = vector.shape_cast %162 : vector<8xf32> to vector<8x1xf32>
    %164 = vector.broadcast %163 : vector<8x1xf32> to vector<8x8xf32>
    %165 = arith.subf %161, %164 : vector<8x8xf32>
    %166 = math.exp %165 : vector<8x8xf32>
    %cst_69 = arith.constant dense<0.000000e+00> : vector<8xf32>
    %167 = vector.multi_reduction <add>, %166, %cst_69 [1] : vector<8x8xf32> to vector<8xf32>
    %168 = vector.shape_cast %167 : vector<8xf32> to vector<8x1xf32>
    %169 = vector.broadcast %168 : vector<8x1xf32> to vector<8x8xf32>
    %170 = arith.divf %166, %169 : vector<8x8xf32>
    %cst_70 = arith.constant dense<0.000000e+00> : vector<8x16xf32>
    %171 = tpu.matmul %170, %158, %cst_70 {dimension_numbers = #tpu.dot_dimension_numbers<[1], [0], [0], [1], [0, 0, 1, 1], [], []>} : vector<8x8xf32>, vector<8x16xf32>, vector<8x16xf32> -> vector<8x16xf32>
    %c8_71 = arith.constant 8 : index
    %c16_72 = arith.constant 16 : index
    %172 = vector.load %arg8[%c8_71, %c16_72] : memref<16x32xf32, #tpu.memory_space<vmem>>, vector<8x16xf32>
    tpu.vector_store %arg8[%c8_71, %c16_72], %171 {strides = array<i32>} : memref<16x32xf32, #tpu.memory_space<vmem>>, vector<8x16xf32>,
    %c0_73 = arith.constant 0 : index
    %c0_74 = arith.constant 0 : index
    %173 = vector.load %arg8[%c0_73, %c0_74] : memref<16x32xf32, #tpu.memory_space<vmem>>, vector<16x32xf32>
    %174 = arith.addf %173, %4 : vector<16x32xf32>
    %c8_75 = arith.constant 8 : index
    %c0_76 = arith.constant 0 : index
    %175 = vector.load %arg4[%c8_75, %c0_76] : memref<32x128xf32, #tpu.memory_space<vmem>>, vector<1x32xf32>
    %c9 = arith.constant 9 : index
    %c0_77 = arith.constant 0 : index
    %176 = vector.load %arg4[%c9, %c0_77] : memref<32x128xf32, #tpu.memory_space<vmem>>, vector<1x32xf32>
    %cst_78 = arith.constant dense<0.000000e+00> : vector<16xf32>
    %177 = vector.multi_reduction <add>, %174, %cst_78 [1] : vector<16x32xf32> to vector<16xf32>
    %178 = vector.shape_cast %177 : vector<16xf32> to vector<16x1xf32>
    %cst_79 = arith.constant 3.200000e+01 : f32
    %179 = vector.broadcast %cst_79 : f32 to vector<16x1xf32>
    %180 = arith.divf %178, %179 : vector<16x1xf32>
    %181 = vector.broadcast %180 : vector<16x1xf32> to vector<16x32xf32>
    %182 = arith.subf %174, %181 : vector<16x32xf32>
    %183 = arith.mulf %182, %182 : vector<16x32xf32>
    %cst_80 = arith.constant dense<0.000000e+00> : vector<16xf32>
    %184 = vector.multi_reduction <add>, %183, %cst_80 [1] : vector<16x32xf32> to vector<16xf32>
    %185 = vector.shape_cast %184 : vector<16xf32> to vector<16x1xf32>
    %cst_81 = arith.constant 0.0322580636 : f32
    %186 = vector.broadcast %cst_81 : f32 to vector<16x1xf32>
    %187 = arith.mulf %185, %186 : vector<16x1xf32>
    %188 = math.sqrt %187 : vector<16x1xf32>
    %189 = vector.broadcast %180 : vector<16x1xf32> to vector<16x32xf32>
    %190 = arith.subf %174, %189 : vector<16x32xf32>
    %cst_82 = arith.constant 1.000000e-03 : f32
    %191 = vector.broadcast %cst_82 : f32 to vector<16x1xf32>
    %192 = arith.addf %188, %191 : vector<16x1xf32>
    %193 = vector.broadcast %192 : vector<16x1xf32> to vector<16x32xf32>
    %194 = arith.divf %190, %193 : vector<16x32xf32>
    %195 = vector.broadcast %175 : vector<1x32xf32> to vector<16x32xf32>
    %196 = arith.mulf %194, %195 : vector<16x32xf32>
    %197 = vector.broadcast %176 : vector<1x32xf32> to vector<16x32xf32>
    %198 = arith.addf %196, %197 : vector<16x32xf32>
    %199 = arith.truncf %101 : vector<16x32xf32> to vector<16x32xbf16>
    %c32 = arith.constant 32 : index
    %c0_83 = arith.constant 0 : index
    %200 = vector.load %arg3[%c32, %c0_83] : memref<768x128xbf16, #tpu.memory_space<vmem>>, vector<32x32xbf16>
    %cst_84 = arith.constant dense<0.000000e+00> : vector<16x32xf32>
    %201 = tpu.matmul %199, %200, %cst_84 {dimension_numbers = #tpu.dot_dimension_numbers<[1], [0], [0], [1], [0, 0, 1, 1], [], []>} : vector<16x32xbf16>, vector<32x32xbf16>, vector<16x32xf32> -> vector<16x32xf32>
    %202 = arith.truncf %4 : vector<16x32xf32> to vector<16x32xbf16>
    %c64 = arith.constant 64 : index
    %c0_85 = arith.constant 0 : index
    %203 = vector.load %arg3[%c64, %c0_85] : memref<768x128xbf16, #tpu.memory_space<vmem>>, vector<32x64xbf16>
    %cst_86 = arith.constant dense<0.000000e+00> : vector<16x64xf32>
    %204 = tpu.matmul %202, %203, %cst_86 {dimension_numbers = #tpu.dot_dimension_numbers<[1], [0], [0], [1], [0, 0, 1, 1], [], []>} : vector<16x32xbf16>, vector<32x64xbf16>, vector<16x64xf32> -> vector<16x64xf32>
    %205 = vector.extract_strided_slice %201 {offsets = [0, 0], sizes = [8, 16], strides = [1, 1]} : vector<16x32xf32> to vector<8x16xf32>
    %206 = vector.extract_strided_slice %204 {offsets = [0, 0], sizes = [8, 16], strides = [1, 1]} : vector<16x64xf32> to vector<8x16xf32>
    %207 = vector.extract_strided_slice %204 {offsets = [0, 32], sizes = [8, 16], strides = [1, 1]} : vector<16x64xf32> to vector<8x16xf32>
    %cst_87 = arith.constant dense<0.000000e+00> : vector<8x8xf32>
    %208 = tpu.matmul %205, %206, %cst_87 {dimension_numbers = #tpu.dot_dimension_numbers<[1], [1], [0], [0], [0, 0, 1, 0], [], []>} : vector<8x16xf32>, vector<8x16xf32>, vector<8x8xf32> -> vector<8x8xf32>
    %cst_88 = arith.constant 0.176776692 : f32
    %209 = vector.broadcast %cst_88 : f32 to vector<8x8xf32>
    %210 = arith.mulf %208, %209 : vector<8x8xf32>
    %cst_89 = arith.constant dense<0xFF800000> : vector<8xf32>
    %211 = vector.multi_reduction <maximumf>, %210, %cst_89 [1] : vector<8x8xf32> to vector<8xf32>
    %212 = vector.shape_cast %211 : vector<8xf32> to vector<8x1xf32>
    %213 = vector.broadcast %212 : vector<8x1xf32> to vector<8x8xf32>
    %214 = arith.subf %210, %213 : vector<8x8xf32>
    %215 = math.exp %214 : vector<8x8xf32>
    %cst_90 = arith.constant dense<0.000000e+00> : vector<8xf32>
    %216 = vector.multi_reduction <add>, %215, %cst_90 [1] : vector<8x8xf32> to vector<8xf32>
    %217 = vector.shape_cast %216 : vector<8xf32> to vector<8x1xf32>
    %218 = vector.broadcast %217 : vector<8x1xf32> to vector<8x8xf32>
    %219 = arith.divf %215, %218 : vector<8x8xf32>
    %cst_91 = arith.constant dense<0.000000e+00> : vector<8x16xf32>
    %220 = tpu.matmul %219, %207, %cst_91 {dimension_numbers = #tpu.dot_dimension_numbers<[1], [0], [0], [1], [0, 0, 1, 1], [], []>} : vector<8x8xf32>, vector<8x16xf32>, vector<8x16xf32> -> vector<8x16xf32>
    %c0_92 = arith.constant 0 : index
    %c0_93 = arith.constant 0 : index
    %221 = vector.load %arg7[%c0_92, %c0_93] : memref<16x32xf32, #tpu.memory_space<vmem>>, vector<8x16xf32>
    tpu.vector_store %arg7[%c0_92, %c0_93], %220 {strides = array<i32>} : memref<16x32xf32, #tpu.memory_space<vmem>>, vector<8x16xf32>,
    %222 = vector.extract_strided_slice %201 {offsets = [0, 16], sizes = [8, 16], strides = [1, 1]} : vector<16x32xf32> to vector<8x16xf32>
    %223 = vector.extract_strided_slice %204 {offsets = [0, 16], sizes = [8, 16], strides = [1, 1]} : vector<16x64xf32> to vector<8x16xf32>
    %224 = vector.extract_strided_slice %204 {offsets = [0, 48], sizes = [8, 16], strides = [1, 1]} : vector<16x64xf32> to vector<8x16xf32>
    %cst_94 = arith.constant dense<0.000000e+00> : vector<8x8xf32>
    %225 = tpu.matmul %222, %223, %cst_94 {dimension_numbers = #tpu.dot_dimension_numbers<[1], [1], [0], [0], [0, 0, 1, 0], [], []>} : vector<8x16xf32>, vector<8x16xf32>, vector<8x8xf32> -> vector<8x8xf32>
    %cst_95 = arith.constant 0.176776692 : f32
    %226 = vector.broadcast %cst_95 : f32 to vector<8x8xf32>
    %227 = arith.mulf %225, %226 : vector<8x8xf32>
    %cst_96 = arith.constant dense<0xFF800000> : vector<8xf32>
    %228 = vector.multi_reduction <maximumf>, %227, %cst_96 [1] : vector<8x8xf32> to vector<8xf32>
    %229 = vector.shape_cast %228 : vector<8xf32> to vector<8x1xf32>
    %230 = vector.broadcast %229 : vector<8x1xf32> to vector<8x8xf32>
    %231 = arith.subf %227, %230 : vector<8x8xf32>
    %232 = math.exp %231 : vector<8x8xf32>
    %cst_97 = arith.constant dense<0.000000e+00> : vector<8xf32>
    %233 = vector.multi_reduction <add>, %232, %cst_97 [1] : vector<8x8xf32> to vector<8xf32>
    %234 = vector.shape_cast %233 : vector<8xf32> to vector<8x1xf32>
    %235 = vector.broadcast %234 : vector<8x1xf32> to vector<8x8xf32>
    %236 = arith.divf %232, %235 : vector<8x8xf32>
    %cst_98 = arith.constant dense<0.000000e+00> : vector<8x16xf32>
    %237 = tpu.matmul %236, %224, %cst_98 {dimension_numbers = #tpu.dot_dimension_numbers<[1], [0], [0], [1], [0, 0, 1, 1], [], []>} : vector<8x8xf32>, vector<8x16xf32>, vector<8x16xf32> -> vector<8x16xf32>
    %c0_99 = arith.constant 0 : index
    %c16_100 = arith.constant 16 : index
    %238 = vector.load %arg7[%c0_99, %c16_100] : memref<16x32xf32, #tpu.memory_space<vmem>>, vector<8x16xf32>
    tpu.vector_store %arg7[%c0_99, %c16_100], %237 {strides = array<i32>} : memref<16x32xf32, #tpu.memory_space<vmem>>, vector<8x16xf32>,
    %239 = vector.extract_strided_slice %201 {offsets = [8, 0], sizes = [8, 16], strides = [1, 1]} : vector<16x32xf32> to vector<8x16xf32>
    %240 = vector.extract_strided_slice %204 {offsets = [8, 0], sizes = [8, 16], strides = [1, 1]} : vector<16x64xf32> to vector<8x16xf32>
    %241 = vector.extract_strided_slice %204 {offsets = [8, 32], sizes = [8, 16], strides = [1, 1]} : vector<16x64xf32> to vector<8x16xf32>
    %cst_101 = arith.constant dense<0.000000e+00> : vector<8x8xf32>
    %242 = tpu.matmul %239, %240, %cst_101 {dimension_numbers = #tpu.dot_dimension_numbers<[1], [1], [0], [0], [0, 0, 1, 0], [], []>} : vector<8x16xf32>, vector<8x16xf32>, vector<8x8xf32> -> vector<8x8xf32>
    %cst_102 = arith.constant 0.176776692 : f32
    %243 = vector.broadcast %cst_102 : f32 to vector<8x8xf32>
    %244 = arith.mulf %242, %243 : vector<8x8xf32>
    %cst_103 = arith.constant dense<0xFF800000> : vector<8xf32>
    %245 = vector.multi_reduction <maximumf>, %244, %cst_103 [1] : vector<8x8xf32> to vector<8xf32>
    %246 = vector.shape_cast %245 : vector<8xf32> to vector<8x1xf32>
    %247 = vector.broadcast %246 : vector<8x1xf32> to vector<8x8xf32>
    %248 = arith.subf %244, %247 : vector<8x8xf32>
    %249 = math.exp %248 : vector<8x8xf32>
    %cst_104 = arith.constant dense<0.000000e+00> : vector<8xf32>
    %250 = vector.multi_reduction <add>, %249, %cst_104 [1] : vector<8x8xf32> to vector<8xf32>
    %251 = vector.shape_cast %250 : vector<8xf32> to vector<8x1xf32>
    %252 = vector.broadcast %251 : vector<8x1xf32> to vector<8x8xf32>
    %253 = arith.divf %249, %252 : vector<8x8xf32>
    %cst_105 = arith.constant dense<0.000000e+00> : vector<8x16xf32>
    %254 = tpu.matmul %253, %241, %cst_105 {dimension_numbers = #tpu.dot_dimension_numbers<[1], [0], [0], [1], [0, 0, 1, 1], [], []>} : vector<8x8xf32>, vector<8x16xf32>, vector<8x16xf32> -> vector<8x16xf32>
    %c8_106 = arith.constant 8 : index
    %c0_107 = arith.constant 0 : index
    %255 = vector.load %arg7[%c8_106, %c0_107] : memref<16x32xf32, #tpu.memory_space<vmem>>, vector<8x16xf32>
    tpu.vector_store %arg7[%c8_106, %c0_107], %254 {strides = array<i32>} : memref<16x32xf32, #tpu.memory_space<vmem>>, vector<8x16xf32>,
    %256 = vector.extract_strided_slice %201 {offsets = [8, 16], sizes = [8, 16], strides = [1, 1]} : vector<16x32xf32> to vector<8x16xf32>
    %257 = vector.extract_strided_slice %204 {offsets = [8, 16], sizes = [8, 16], strides = [1, 1]} : vector<16x64xf32> to vector<8x16xf32>
    %258 = vector.extract_strided_slice %204 {offsets = [8, 48], sizes = [8, 16], strides = [1, 1]} : vector<16x64xf32> to vector<8x16xf32>
    %cst_108 = arith.constant dense<0.000000e+00> : vector<8x8xf32>
    %259 = tpu.matmul %256, %257, %cst_108 {dimension_numbers = #tpu.dot_dimension_numbers<[1], [1], [0], [0], [0, 0, 1, 0], [], []>} : vector<8x16xf32>, vector<8x16xf32>, vector<8x8xf32> -> vector<8x8xf32>
    %cst_109 = arith.constant 0.176776692 : f32
    %260 = vector.broadcast %cst_109 : f32 to vector<8x8xf32>
    %261 = arith.mulf %259, %260 : vector<8x8xf32>
    %cst_110 = arith.constant dense<0xFF800000> : vector<8xf32>
    %262 = vector.multi_reduction <maximumf>, %261, %cst_110 [1] : vector<8x8xf32> to vector<8xf32>
    %263 = vector.shape_cast %262 : vector<8xf32> to vector<8x1xf32>
    %264 = vector.broadcast %263 : vector<8x1xf32> to vector<8x8xf32>
    %265 = arith.subf %261, %264 : vector<8x8xf32>
    %266 = math.exp %265 : vector<8x8xf32>
    %cst_111 = arith.constant dense<0.000000e+00> : vector<8xf32>
    %267 = vector.multi_reduction <add>, %266, %cst_111 [1] : vector<8x8xf32> to vector<8xf32>
    %268 = vector.shape_cast %267 : vector<8xf32> to vector<8x1xf32>
    %269 = vector.broadcast %268 : vector<8x1xf32> to vector<8x8xf32>
    %270 = arith.divf %266, %269 : vector<8x8xf32>
    %cst_112 = arith.constant dense<0.000000e+00> : vector<8x16xf32>
    %271 = tpu.matmul %270, %258, %cst_112 {dimension_numbers = #tpu.dot_dimension_numbers<[1], [0], [0], [1], [0, 0, 1, 1], [], []>} : vector<8x8xf32>, vector<8x16xf32>, vector<8x16xf32> -> vector<8x16xf32>
    %c8_113 = arith.constant 8 : index
    %c16_114 = arith.constant 16 : index
    %272 = vector.load %arg7[%c8_113, %c16_114] : memref<16x32xf32, #tpu.memory_space<vmem>>, vector<8x16xf32>
    tpu.vector_store %arg7[%c8_113, %c16_114], %271 {strides = array<i32>} : memref<16x32xf32, #tpu.memory_space<vmem>>, vector<8x16xf32>,
    %c0_115 = arith.constant 0 : index
    %c0_116 = arith.constant 0 : index
    %273 = vector.load %arg7[%c0_115, %c0_116] : memref<16x32xf32, #tpu.memory_space<vmem>>, vector<16x32xf32>
    %274 = arith.addf %273, %101 : vector<16x32xf32>
    %c2 = arith.constant 2 : index
    %c0_117 = arith.constant 0 : index
    %275 = vector.load %arg4[%c2, %c0_117] : memref<32x128xf32, #tpu.memory_space<vmem>>, vector<1x32xf32>
    %c3 = arith.constant 3 : index
    %c0_118 = arith.constant 0 : index
    %276 = vector.load %arg4[%c3, %c0_118] : memref<32x128xf32, #tpu.memory_space<vmem>>, vector<1x32xf32>
    %cst_119 = arith.constant dense<0.000000e+00> : vector<16xf32>
    %277 = vector.multi_reduction <add>, %274, %cst_119 [1] : vector<16x32xf32> to vector<16xf32>
    %278 = vector.shape_cast %277 : vector<16xf32> to vector<16x1xf32>
    %cst_120 = arith.constant 3.200000e+01 : f32
    %279 = vector.broadcast %cst_120 : f32 to vector<16x1xf32>
    %280 = arith.divf %278, %279 : vector<16x1xf32>
    %281 = vector.broadcast %280 : vector<16x1xf32> to vector<16x32xf32>
    %282 = arith.subf %274, %281 : vector<16x32xf32>
    %283 = arith.mulf %282, %282 : vector<16x32xf32>
    %cst_121 = arith.constant dense<0.000000e+00> : vector<16xf32>
    %284 = vector.multi_reduction <add>, %283, %cst_121 [1] : vector<16x32xf32> to vector<16xf32>
    %285 = vector.shape_cast %284 : vector<16xf32> to vector<16x1xf32>
    %cst_122 = arith.constant 0.0322580636 : f32
    %286 = vector.broadcast %cst_122 : f32 to vector<16x1xf32>
    %287 = arith.mulf %285, %286 : vector<16x1xf32>
    %288 = math.sqrt %287 : vector<16x1xf32>
    %289 = vector.broadcast %280 : vector<16x1xf32> to vector<16x32xf32>
    %290 = arith.subf %274, %289 : vector<16x32xf32>
    %cst_123 = arith.constant 1.000000e-03 : f32
    %291 = vector.broadcast %cst_123 : f32 to vector<16x1xf32>
    %292 = arith.addf %288, %291 : vector<16x1xf32>
    %293 = vector.broadcast %292 : vector<16x1xf32> to vector<16x32xf32>
    %294 = arith.divf %290, %293 : vector<16x32xf32>
    %295 = vector.broadcast %275 : vector<1x32xf32> to vector<16x32xf32>
    %296 = arith.mulf %294, %295 : vector<16x32xf32>
    %297 = vector.broadcast %276 : vector<1x32xf32> to vector<16x32xf32>
    %298 = arith.addf %296, %297 : vector<16x32xf32>
    %299 = arith.truncf %298 : vector<16x32xf32> to vector<16x32xbf16>
    %c96 = arith.constant 96 : index
    %c0_124 = arith.constant 0 : index
    %300 = vector.load %arg3[%c96, %c0_124] : memref<768x128xbf16, #tpu.memory_space<vmem>>, vector<32x64xbf16>
    %cst_125 = arith.constant dense<0.000000e+00> : vector<16x64xf32>
    %301 = tpu.matmul %299, %300, %cst_125 {dimension_numbers = #tpu.dot_dimension_numbers<[1], [0], [0], [1], [0, 0, 1, 1], [], []>} : vector<16x32xbf16>, vector<32x64xbf16>, vector<16x64xf32> -> vector<16x64xf32>
    %c6 = arith.constant 6 : index
    %c0_126 = arith.constant 0 : index
    %302 = vector.load %arg4[%c6, %c0_126] : memref<32x128xf32, #tpu.memory_space<vmem>>, vector<1x64xf32>
    %303 = vector.broadcast %302 : vector<1x64xf32> to vector<16x64xf32>
    %304 = arith.addf %301, %303 : vector<16x64xf32>
    %cst_127 = arith.constant 0.000000e+00 : f32
    %305 = vector.broadcast %cst_127 : f32 to vector<16x64xf32>
    %306 = arith.maximumf %304, %305 : vector<16x64xf32>
    %307 = arith.truncf %306 : vector<16x64xf32> to vector<16x64xbf16>
    %c128 = arith.constant 128 : index
    %c0_128 = arith.constant 0 : index
    %308 = vector.load %arg3[%c128, %c0_128] : memref<768x128xbf16, #tpu.memory_space<vmem>>, vector<64x32xbf16>
    %cst_129 = arith.constant dense<0.000000e+00> : vector<16x32xf32>
    %309 = tpu.matmul %307, %308, %cst_129 {dimension_numbers = #tpu.dot_dimension_numbers<[1], [0], [0], [1], [0, 0, 1, 1], [], []>} : vector<16x64xbf16>, vector<64x32xbf16>, vector<16x32xf32> -> vector<16x32xf32>
    %c7 = arith.constant 7 : index
    %c0_130 = arith.constant 0 : index
    %310 = vector.load %arg4[%c7, %c0_130] : memref<32x128xf32, #tpu.memory_space<vmem>>, vector<1x32xf32>
    %311 = vector.broadcast %310 : vector<1x32xf32> to vector<16x32xf32>
    %312 = arith.addf %309, %311 : vector<16x32xf32>
    %313 = arith.addf %312, %298 : vector<16x32xf32>
    %c4 = arith.constant 4 : index
    %c0_131 = arith.constant 0 : index
    %314 = vector.load %arg4[%c4, %c0_131] : memref<32x128xf32, #tpu.memory_space<vmem>>, vector<1x32xf32>
    %c5 = arith.constant 5 : index
    %c0_132 = arith.constant 0 : index
    %315 = vector.load %arg4[%c5, %c0_132] : memref<32x128xf32, #tpu.memory_space<vmem>>, vector<1x32xf32>
    %cst_133 = arith.constant dense<0.000000e+00> : vector<16xf32>
    %316 = vector.multi_reduction <add>, %313, %cst_133 [1] : vector<16x32xf32> to vector<16xf32>
    %317 = vector.shape_cast %316 : vector<16xf32> to vector<16x1xf32>
    %cst_134 = arith.constant 3.200000e+01 : f32
    %318 = vector.broadcast %cst_134 : f32 to vector<16x1xf32>
    %319 = arith.divf %317, %318 : vector<16x1xf32>
    %320 = vector.broadcast %319 : vector<16x1xf32> to vector<16x32xf32>
    %321 = arith.subf %313, %320 : vector<16x32xf32>
    %322 = arith.mulf %321, %321 : vector<16x32xf32>
    %cst_135 = arith.constant dense<0.000000e+00> : vector<16xf32>
    %323 = vector.multi_reduction <add>, %322, %cst_135 [1] : vector<16x32xf32> to vector<16xf32>
    %324 = vector.shape_cast %323 : vector<16xf32> to vector<16x1xf32>
    %cst_136 = arith.constant 0.0322580636 : f32
    %325 = vector.broadcast %cst_136 : f32 to vector<16x1xf32>
    %326 = arith.mulf %324, %325 : vector<16x1xf32>
    %327 = math.sqrt %326 : vector<16x1xf32>
    %328 = vector.broadcast %319 : vector<16x1xf32> to vector<16x32xf32>
    %329 = arith.subf %313, %328 : vector<16x32xf32>
    %cst_137 = arith.constant 1.000000e-03 : f32
    %330 = vector.broadcast %cst_137 : f32 to vector<16x1xf32>
    %331 = arith.addf %327, %330 : vector<16x1xf32>
    %332 = vector.broadcast %331 : vector<16x1xf32> to vector<16x32xf32>
    %333 = arith.divf %329, %332 : vector<16x32xf32>
    %334 = vector.broadcast %314 : vector<1x32xf32> to vector<16x32xf32>
    %335 = arith.mulf %333, %334 : vector<16x32xf32>
    %336 = vector.broadcast %315 : vector<1x32xf32> to vector<16x32xf32>
    %337 = arith.addf %335, %336 : vector<16x32xf32>
    %338 = arith.truncf %198 : vector<16x32xf32> to vector<16x32xbf16>
    %c224 = arith.constant 224 : index
    %c0_138 = arith.constant 0 : index
    %339 = vector.load %arg3[%c224, %c0_138] : memref<768x128xbf16, #tpu.memory_space<vmem>>, vector<32x32xbf16>
    %cst_139 = arith.constant dense<0.000000e+00> : vector<16x32xf32>
    %340 = tpu.matmul %338, %339, %cst_139 {dimension_numbers = #tpu.dot_dimension_numbers<[1], [0], [0], [1], [0, 0, 1, 1], [], []>} : vector<16x32xbf16>, vector<32x32xbf16>, vector<16x32xf32> -> vector<16x32xf32>
    %341 = arith.truncf %337 : vector<16x32xf32> to vector<16x32xbf16>
    %c256 = arith.constant 256 : index
    %c0_140 = arith.constant 0 : index
    %342 = vector.load %arg3[%c256, %c0_140] : memref<768x128xbf16, #tpu.memory_space<vmem>>, vector<32x64xbf16>
    %cst_141 = arith.constant dense<0.000000e+00> : vector<16x64xf32>
    %343 = tpu.matmul %341, %342, %cst_141 {dimension_numbers = #tpu.dot_dimension_numbers<[1], [0], [0], [1], [0, 0, 1, 1], [], []>} : vector<16x32xbf16>, vector<32x64xbf16>, vector<16x64xf32> -> vector<16x64xf32>
    %344 = vector.extract_strided_slice %340 {offsets = [0, 0], sizes = [8, 16], strides = [1, 1]} : vector<16x32xf32> to vector<8x16xf32>
    %345 = vector.extract_strided_slice %343 {offsets = [0, 0], sizes = [8, 16], strides = [1, 1]} : vector<16x64xf32> to vector<8x16xf32>
    %346 = vector.extract_strided_slice %343 {offsets = [0, 32], sizes = [8, 16], strides = [1, 1]} : vector<16x64xf32> to vector<8x16xf32>
    %cst_142 = arith.constant dense<0.000000e+00> : vector<8x8xf32>
    %347 = tpu.matmul %344, %345, %cst_142 {dimension_numbers = #tpu.dot_dimension_numbers<[1], [1], [0], [0], [0, 0, 1, 0], [], []>} : vector<8x16xf32>, vector<8x16xf32>, vector<8x8xf32> -> vector<8x8xf32>
    %cst_143 = arith.constant 0.176776692 : f32
    %348 = vector.broadcast %cst_143 : f32 to vector<8x8xf32>
    %349 = arith.mulf %347, %348 : vector<8x8xf32>
    %cst_144 = arith.constant dense<0xFF800000> : vector<8xf32>
    %350 = vector.multi_reduction <maximumf>, %349, %cst_144 [1] : vector<8x8xf32> to vector<8xf32>
    %351 = vector.shape_cast %350 : vector<8xf32> to vector<8x1xf32>
    %352 = vector.broadcast %351 : vector<8x1xf32> to vector<8x8xf32>
    %353 = arith.subf %349, %352 : vector<8x8xf32>
    %354 = math.exp %353 : vector<8x8xf32>
    %cst_145 = arith.constant dense<0.000000e+00> : vector<8xf32>
    %355 = vector.multi_reduction <add>, %354, %cst_145 [1] : vector<8x8xf32> to vector<8xf32>
    %356 = vector.shape_cast %355 : vector<8xf32> to vector<8x1xf32>
    %357 = vector.broadcast %356 : vector<8x1xf32> to vector<8x8xf32>
    %358 = arith.divf %354, %357 : vector<8x8xf32>
    %cst_146 = arith.constant dense<0.000000e+00> : vector<8x16xf32>
    %359 = tpu.matmul %358, %346, %cst_146 {dimension_numbers = #tpu.dot_dimension_numbers<[1], [0], [0], [1], [0, 0, 1, 1], [], []>} : vector<8x8xf32>, vector<8x16xf32>, vector<8x16xf32> -> vector<8x16xf32>
    %c0_147 = arith.constant 0 : index
    %c0_148 = arith.constant 0 : index
    %360 = vector.load %arg8[%c0_147, %c0_148] : memref<16x32xf32, #tpu.memory_space<vmem>>, vector<8x16xf32>
    tpu.vector_store %arg8[%c0_147, %c0_148], %359 {strides = array<i32>} : memref<16x32xf32, #tpu.memory_space<vmem>>, vector<8x16xf32>,
    %361 = vector.extract_strided_slice %340 {offsets = [0, 16], sizes = [8, 16], strides = [1, 1]} : vector<16x32xf32> to vector<8x16xf32>
    %362 = vector.extract_strided_slice %343 {offsets = [0, 16], sizes = [8, 16], strides = [1, 1]} : vector<16x64xf32> to vector<8x16xf32>
    %363 = vector.extract_strided_slice %343 {offsets = [0, 48], sizes = [8, 16], strides = [1, 1]} : vector<16x64xf32> to vector<8x16xf32>
    %cst_149 = arith.constant dense<0.000000e+00> : vector<8x8xf32>
    %364 = tpu.matmul %361, %362, %cst_149 {dimension_numbers = #tpu.dot_dimension_numbers<[1], [1], [0], [0], [0, 0, 1, 0], [], []>} : vector<8x16xf32>, vector<8x16xf32>, vector<8x8xf32> -> vector<8x8xf32>
    %cst_150 = arith.constant 0.176776692 : f32
    %365 = vector.broadcast %cst_150 : f32 to vector<8x8xf32>
    %366 = arith.mulf %364, %365 : vector<8x8xf32>
    %cst_151 = arith.constant dense<0xFF800000> : vector<8xf32>
    %367 = vector.multi_reduction <maximumf>, %366, %cst_151 [1] : vector<8x8xf32> to vector<8xf32>
    %368 = vector.shape_cast %367 : vector<8xf32> to vector<8x1xf32>
    %369 = vector.broadcast %368 : vector<8x1xf32> to vector<8x8xf32>
    %370 = arith.subf %366, %369 : vector<8x8xf32>
    %371 = math.exp %370 : vector<8x8xf32>
    %cst_152 = arith.constant dense<0.000000e+00> : vector<8xf32>
    %372 = vector.multi_reduction <add>, %371, %cst_152 [1] : vector<8x8xf32> to vector<8xf32>
    %373 = vector.shape_cast %372 : vector<8xf32> to vector<8x1xf32>
    %374 = vector.broadcast %373 : vector<8x1xf32> to vector<8x8xf32>
    %375 = arith.divf %371, %374 : vector<8x8xf32>
    %cst_153 = arith.constant dense<0.000000e+00> : vector<8x16xf32>
    %376 = tpu.matmul %375, %363, %cst_153 {dimension_numbers = #tpu.dot_dimension_numbers<[1], [0], [0], [1], [0, 0, 1, 1], [], []>} : vector<8x8xf32>, vector<8x16xf32>, vector<8x16xf32> -> vector<8x16xf32>
    %c0_154 = arith.constant 0 : index
    %c16_155 = arith.constant 16 : index
    %377 = vector.load %arg8[%c0_154, %c16_155] : memref<16x32xf32, #tpu.memory_space<vmem>>, vector<8x16xf32>
    tpu.vector_store %arg8[%c0_154, %c16_155], %376 {strides = array<i32>} : memref<16x32xf32, #tpu.memory_space<vmem>>, vector<8x16xf32>,
    %378 = vector.extract_strided_slice %340 {offsets = [8, 0], sizes = [8, 16], strides = [1, 1]} : vector<16x32xf32> to vector<8x16xf32>
    %379 = vector.extract_strided_slice %343 {offsets = [8, 0], sizes = [8, 16], strides = [1, 1]} : vector<16x64xf32> to vector<8x16xf32>
    %380 = vector.extract_strided_slice %343 {offsets = [8, 32], sizes = [8, 16], strides = [1, 1]} : vector<16x64xf32> to vector<8x16xf32>
    %cst_156 = arith.constant dense<0.000000e+00> : vector<8x8xf32>
    %381 = tpu.matmul %378, %379, %cst_156 {dimension_numbers = #tpu.dot_dimension_numbers<[1], [1], [0], [0], [0, 0, 1, 0], [], []>} : vector<8x16xf32>, vector<8x16xf32>, vector<8x8xf32> -> vector<8x8xf32>
    %cst_157 = arith.constant 0.176776692 : f32
    %382 = vector.broadcast %cst_157 : f32 to vector<8x8xf32>
    %383 = arith.mulf %381, %382 : vector<8x8xf32>
    %cst_158 = arith.constant dense<0xFF800000> : vector<8xf32>
    %384 = vector.multi_reduction <maximumf>, %383, %cst_158 [1] : vector<8x8xf32> to vector<8xf32>
    %385 = vector.shape_cast %384 : vector<8xf32> to vector<8x1xf32>
    %386 = vector.broadcast %385 : vector<8x1xf32> to vector<8x8xf32>
    %387 = arith.subf %383, %386 : vector<8x8xf32>
    %388 = math.exp %387 : vector<8x8xf32>
    %cst_159 = arith.constant dense<0.000000e+00> : vector<8xf32>
    %389 = vector.multi_reduction <add>, %388, %cst_159 [1] : vector<8x8xf32> to vector<8xf32>
    %390 = vector.shape_cast %389 : vector<8xf32> to vector<8x1xf32>
    %391 = vector.broadcast %390 : vector<8x1xf32> to vector<8x8xf32>
    %392 = arith.divf %388, %391 : vector<8x8xf32>
    %cst_160 = arith.constant dense<0.000000e+00> : vector<8x16xf32>
    %393 = tpu.matmul %392, %380, %cst_160 {dimension_numbers = #tpu.dot_dimension_numbers<[1], [0], [0], [1], [0, 0, 1, 1], [], []>} : vector<8x8xf32>, vector<8x16xf32>, vector<8x16xf32> -> vector<8x16xf32>
    %c8_161 = arith.constant 8 : index
    %c0_162 = arith.constant 0 : index
    %394 = vector.load %arg8[%c8_161, %c0_162] : memref<16x32xf32, #tpu.memory_space<vmem>>, vector<8x16xf32>
    tpu.vector_store %arg8[%c8_161, %c0_162], %393 {strides = array<i32>} : memref<16x32xf32, #tpu.memory_space<vmem>>, vector<8x16xf32>,
    %395 = vector.extract_strided_slice %340 {offsets = [8, 16], sizes = [8, 16], strides = [1, 1]} : vector<16x32xf32> to vector<8x16xf32>
    %396 = vector.extract_strided_slice %343 {offsets = [8, 16], sizes = [8, 16], strides = [1, 1]} : vector<16x64xf32> to vector<8x16xf32>
    %397 = vector.extract_strided_slice %343 {offsets = [8, 48], sizes = [8, 16], strides = [1, 1]} : vector<16x64xf32> to vector<8x16xf32>
    %cst_163 = arith.constant dense<0.000000e+00> : vector<8x8xf32>
    %398 = tpu.matmul %395, %396, %cst_163 {dimension_numbers = #tpu.dot_dimension_numbers<[1], [1], [0], [0], [0, 0, 1, 0], [], []>} : vector<8x16xf32>, vector<8x16xf32>, vector<8x8xf32> -> vector<8x8xf32>
    %cst_164 = arith.constant 0.176776692 : f32
    %399 = vector.broadcast %cst_164 : f32 to vector<8x8xf32>
    %400 = arith.mulf %398, %399 : vector<8x8xf32>
    %cst_165 = arith.constant dense<0xFF800000> : vector<8xf32>
    %401 = vector.multi_reduction <maximumf>, %400, %cst_165 [1] : vector<8x8xf32> to vector<8xf32>
    %402 = vector.shape_cast %401 : vector<8xf32> to vector<8x1xf32>
    %403 = vector.broadcast %402 : vector<8x1xf32> to vector<8x8xf32>
    %404 = arith.subf %400, %403 : vector<8x8xf32>
    %405 = math.exp %404 : vector<8x8xf32>
    %cst_166 = arith.constant dense<0.000000e+00> : vector<8xf32>
    %406 = vector.multi_reduction <add>, %405, %cst_166 [1] : vector<8x8xf32> to vector<8xf32>
    %407 = vector.shape_cast %406 : vector<8xf32> to vector<8x1xf32>
    %408 = vector.broadcast %407 : vector<8x1xf32> to vector<8x8xf32>
    %409 = arith.divf %405, %408 : vector<8x8xf32>
    %cst_167 = arith.constant dense<0.000000e+00> : vector<8x16xf32>
    %410 = tpu.matmul %409, %397, %cst_167 {dimension_numbers = #tpu.dot_dimension_numbers<[1], [0], [0], [1], [0, 0, 1, 1], [], []>} : vector<8x8xf32>, vector<8x16xf32>, vector<8x16xf32> -> vector<8x16xf32>
    %c8_168 = arith.constant 8 : index
    %c16_169 = arith.constant 16 : index
    %411 = vector.load %arg8[%c8_168, %c16_169] : memref<16x32xf32, #tpu.memory_space<vmem>>, vector<8x16xf32>
    tpu.vector_store %arg8[%c8_168, %c16_169], %410 {strides = array<i32>} : memref<16x32xf32, #tpu.memory_space<vmem>>, vector<8x16xf32>,
    %c0_170 = arith.constant 0 : index
    %c0_171 = arith.constant 0 : index
    %412 = vector.load %arg8[%c0_170, %c0_171] : memref<16x32xf32, #tpu.memory_space<vmem>>, vector<16x32xf32>
    %413 = arith.addf %412, %198 : vector<16x32xf32>
    %c10 = arith.constant 10 : index
    %c0_172 = arith.constant 0 : index
    %414 = vector.load %arg4[%c10, %c0_172] : memref<32x128xf32, #tpu.memory_space<vmem>>, vector<1x32xf32>
    %c11 = arith.constant 11 : index
    %c0_173 = arith.constant 0 : index
    %415 = vector.load %arg4[%c11, %c0_173] : memref<32x128xf32, #tpu.memory_space<vmem>>, vector<1x32xf32>
    %cst_174 = arith.constant dense<0.000000e+00> : vector<16xf32>
    %416 = vector.multi_reduction <add>, %413, %cst_174 [1] : vector<16x32xf32> to vector<16xf32>
    %417 = vector.shape_cast %416 : vector<16xf32> to vector<16x1xf32>
    %cst_175 = arith.constant 3.200000e+01 : f32
    %418 = vector.broadcast %cst_175 : f32 to vector<16x1xf32>
    %419 = arith.divf %417, %418 : vector<16x1xf32>
    %420 = vector.broadcast %419 : vector<16x1xf32> to vector<16x32xf32>
    %421 = arith.subf %413, %420 : vector<16x32xf32>
    %422 = arith.mulf %421, %421 : vector<16x32xf32>
    %cst_176 = arith.constant dense<0.000000e+00> : vector<16xf32>
    %423 = vector.multi_reduction <add>, %422, %cst_176 [1] : vector<16x32xf32> to vector<16xf32>
    %424 = vector.shape_cast %423 : vector<16xf32> to vector<16x1xf32>
    %cst_177 = arith.constant 0.0322580636 : f32
    %425 = vector.broadcast %cst_177 : f32 to vector<16x1xf32>
    %426 = arith.mulf %424, %425 : vector<16x1xf32>
    %427 = math.sqrt %426 : vector<16x1xf32>
    %428 = vector.broadcast %419 : vector<16x1xf32> to vector<16x32xf32>
    %429 = arith.subf %413, %428 : vector<16x32xf32>
    %cst_178 = arith.constant 1.000000e-03 : f32
    %430 = vector.broadcast %cst_178 : f32 to vector<16x1xf32>
    %431 = arith.addf %427, %430 : vector<16x1xf32>
    %432 = vector.broadcast %431 : vector<16x1xf32> to vector<16x32xf32>
    %433 = arith.divf %429, %432 : vector<16x32xf32>
    %434 = vector.broadcast %414 : vector<1x32xf32> to vector<16x32xf32>
    %435 = arith.mulf %433, %434 : vector<16x32xf32>
    %436 = vector.broadcast %415 : vector<1x32xf32> to vector<16x32xf32>
    %437 = arith.addf %435, %436 : vector<16x32xf32>
    %438 = arith.truncf %437 : vector<16x32xf32> to vector<16x32xbf16>
    %c288 = arith.constant 288 : index
    %c0_179 = arith.constant 0 : index
    %439 = vector.load %arg3[%c288, %c0_179] : memref<768x128xbf16, #tpu.memory_space<vmem>>, vector<32x64xbf16>
    %cst_180 = arith.constant dense<0.000000e+00> : vector<16x64xf32>
    %440 = tpu.matmul %438, %439, %cst_180 {dimension_numbers = #tpu.dot_dimension_numbers<[1], [0], [0], [1], [0, 0, 1, 1], [], []>} : vector<16x32xbf16>, vector<32x64xbf16>, vector<16x64xf32> -> vector<16x64xf32>
    %c14 = arith.constant 14 : index
    %c0_181 = arith.constant 0 : index
    %441 = vector.load %arg4[%c14, %c0_181] : memref<32x128xf32, #tpu.memory_space<vmem>>, vector<1x64xf32>
    %442 = vector.broadcast %441 : vector<1x64xf32> to vector<16x64xf32>
    %443 = arith.addf %440, %442 : vector<16x64xf32>
    %cst_182 = arith.constant 0.000000e+00 : f32
    %444 = vector.broadcast %cst_182 : f32 to vector<16x64xf32>
    %445 = arith.maximumf %443, %444 : vector<16x64xf32>
    %446 = arith.truncf %445 : vector<16x64xf32> to vector<16x64xbf16>
    %c320 = arith.constant 320 : index
    %c0_183 = arith.constant 0 : index
    %447 = vector.load %arg3[%c320, %c0_183] : memref<768x128xbf16, #tpu.memory_space<vmem>>, vector<64x32xbf16>
    %cst_184 = arith.constant dense<0.000000e+00> : vector<16x32xf32>
    %448 = tpu.matmul %446, %447, %cst_184 {dimension_numbers = #tpu.dot_dimension_numbers<[1], [0], [0], [1], [0, 0, 1, 1], [], []>} : vector<16x64xbf16>, vector<64x32xbf16>, vector<16x32xf32> -> vector<16x32xf32>
    %c15 = arith.constant 15 : index
    %c0_185 = arith.constant 0 : index
    %449 = vector.load %arg4[%c15, %c0_185] : memref<32x128xf32, #tpu.memory_space<vmem>>, vector<1x32xf32>
    %450 = vector.broadcast %449 : vector<1x32xf32> to vector<16x32xf32>
    %451 = arith.addf %448, %450 : vector<16x32xf32>
    %452 = arith.addf %451, %437 : vector<16x32xf32>
    %c12 = arith.constant 12 : index
    %c0_186 = arith.constant 0 : index
    %453 = vector.load %arg4[%c12, %c0_186] : memref<32x128xf32, #tpu.memory_space<vmem>>, vector<1x32xf32>
    %c13 = arith.constant 13 : index
    %c0_187 = arith.constant 0 : index
    %454 = vector.load %arg4[%c13, %c0_187] : memref<32x128xf32, #tpu.memory_space<vmem>>, vector<1x32xf32>
    %cst_188 = arith.constant dense<0.000000e+00> : vector<16xf32>
    %455 = vector.multi_reduction <add>, %452, %cst_188 [1] : vector<16x32xf32> to vector<16xf32>
    %456 = vector.shape_cast %455 : vector<16xf32> to vector<16x1xf32>
    %cst_189 = arith.constant 3.200000e+01 : f32
    %457 = vector.broadcast %cst_189 : f32 to vector<16x1xf32>
    %458 = arith.divf %456, %457 : vector<16x1xf32>
    %459 = vector.broadcast %458 : vector<16x1xf32> to vector<16x32xf32>
    %460 = arith.subf %452, %459 : vector<16x32xf32>
    %461 = arith.mulf %460, %460 : vector<16x32xf32>
    %cst_190 = arith.constant dense<0.000000e+00> : vector<16xf32>
    %462 = vector.multi_reduction <add>, %461, %cst_190 [1] : vector<16x32xf32> to vector<16xf32>
    %463 = vector.shape_cast %462 : vector<16xf32> to vector<16x1xf32>
    %cst_191 = arith.constant 0.0322580636 : f32
    %464 = vector.broadcast %cst_191 : f32 to vector<16x1xf32>
    %465 = arith.mulf %463, %464 : vector<16x1xf32>
    %466 = math.sqrt %465 : vector<16x1xf32>
    %467 = vector.broadcast %458 : vector<16x1xf32> to vector<16x32xf32>
    %468 = arith.subf %452, %467 : vector<16x32xf32>
    %cst_192 = arith.constant 1.000000e-03 : f32
    %469 = vector.broadcast %cst_192 : f32 to vector<16x1xf32>
    %470 = arith.addf %466, %469 : vector<16x1xf32>
    %471 = vector.broadcast %470 : vector<16x1xf32> to vector<16x32xf32>
    %472 = arith.divf %468, %471 : vector<16x32xf32>
    %473 = vector.broadcast %453 : vector<1x32xf32> to vector<16x32xf32>
    %474 = arith.mulf %472, %473 : vector<16x32xf32>
    %475 = vector.broadcast %454 : vector<1x32xf32> to vector<16x32xf32>
    %476 = arith.addf %474, %475 : vector<16x32xf32>
    %c384 = arith.constant 384 : index
    %c0_193 = arith.constant 0 : index
    %477 = vector.load %arg3[%c384, %c0_193] : memref<768x128xbf16, #tpu.memory_space<vmem>>, vector<32x96xbf16>
    %478 = arith.truncf %337 : vector<16x32xf32> to vector<16x32xbf16>
    %cst_194 = arith.constant dense<0.000000e+00> : vector<16x96xf32>
    %479 = tpu.matmul %478, %477, %cst_194 {dimension_numbers = #tpu.dot_dimension_numbers<[1], [0], [0], [1], [0, 0, 1, 1], [], []>} : vector<16x32xbf16>, vector<32x96xbf16>, vector<16x96xf32> -> vector<16x96xf32>
    %480 = vector.extract_strided_slice %479 {offsets = [0, 0], sizes = [8, 16], strides = [1, 1]} : vector<16x96xf32> to vector<8x16xf32>
    %481 = vector.extract_strided_slice %479 {offsets = [0, 32], sizes = [8, 16], strides = [1, 1]} : vector<16x96xf32> to vector<8x16xf32>
    %482 = vector.extract_strided_slice %479 {offsets = [0, 64], sizes = [8, 16], strides = [1, 1]} : vector<16x96xf32> to vector<8x16xf32>
    %cst_195 = arith.constant dense<0.000000e+00> : vector<8x8xf32>
    %483 = tpu.matmul %480, %481, %cst_195 {dimension_numbers = #tpu.dot_dimension_numbers<[1], [1], [0], [0], [0, 0, 1, 0], [], []>} : vector<8x16xf32>, vector<8x16xf32>, vector<8x8xf32> -> vector<8x8xf32>
    %cst_196 = arith.constant 0.176776692 : f32
    %484 = vector.broadcast %cst_196 : f32 to vector<8x8xf32>
    %485 = arith.mulf %483, %484 : vector<8x8xf32>
    %cst_197 = arith.constant dense<0xFF800000> : vector<8xf32>
    %486 = vector.multi_reduction <maximumf>, %485, %cst_197 [1] : vector<8x8xf32> to vector<8xf32>
    %487 = vector.shape_cast %486 : vector<8xf32> to vector<8x1xf32>
    %488 = vector.broadcast %487 : vector<8x1xf32> to vector<8x8xf32>
    %489 = arith.subf %485, %488 : vector<8x8xf32>
    %490 = math.exp %489 : vector<8x8xf32>
    %cst_198 = arith.constant dense<0.000000e+00> : vector<8xf32>
    %491 = vector.multi_reduction <add>, %490, %cst_198 [1] : vector<8x8xf32> to vector<8xf32>
    %492 = vector.shape_cast %491 : vector<8xf32> to vector<8x1xf32>
    %493 = vector.broadcast %492 : vector<8x1xf32> to vector<8x8xf32>
    %494 = arith.divf %490, %493 : vector<8x8xf32>
    %cst_199 = arith.constant dense<0.000000e+00> : vector<8x16xf32>
    %495 = tpu.matmul %494, %482, %cst_199 {dimension_numbers = #tpu.dot_dimension_numbers<[1], [0], [0], [1], [0, 0, 1, 1], [], []>} : vector<8x8xf32>, vector<8x16xf32>, vector<8x16xf32> -> vector<8x16xf32>
    %c0_200 = arith.constant 0 : index
    %c0_201 = arith.constant 0 : index
    %496 = vector.load %arg7[%c0_200, %c0_201] : memref<16x32xf32, #tpu.memory_space<vmem>>, vector<8x16xf32>
    tpu.vector_store %arg7[%c0_200, %c0_201], %495 {strides = array<i32>} : memref<16x32xf32, #tpu.memory_space<vmem>>, vector<8x16xf32>,
    %497 = vector.extract_strided_slice %479 {offsets = [0, 16], sizes = [8, 16], strides = [1, 1]} : vector<16x96xf32> to vector<8x16xf32>
    %498 = vector.extract_strided_slice %479 {offsets = [0, 48], sizes = [8, 16], strides = [1, 1]} : vector<16x96xf32> to vector<8x16xf32>
    %499 = vector.extract_strided_slice %479 {offsets = [0, 80], sizes = [8, 16], strides = [1, 1]} : vector<16x96xf32> to vector<8x16xf32>
    %cst_202 = arith.constant dense<0.000000e+00> : vector<8x8xf32>
    %500 = tpu.matmul %497, %498, %cst_202 {dimension_numbers = #tpu.dot_dimension_numbers<[1], [1], [0], [0], [0, 0, 1, 0], [], []>} : vector<8x16xf32>, vector<8x16xf32>, vector<8x8xf32> -> vector<8x8xf32>
    %cst_203 = arith.constant 0.176776692 : f32
    %501 = vector.broadcast %cst_203 : f32 to vector<8x8xf32>
    %502 = arith.mulf %500, %501 : vector<8x8xf32>
    %cst_204 = arith.constant dense<0xFF800000> : vector<8xf32>
    %503 = vector.multi_reduction <maximumf>, %502, %cst_204 [1] : vector<8x8xf32> to vector<8xf32>
    %504 = vector.shape_cast %503 : vector<8xf32> to vector<8x1xf32>
    %505 = vector.broadcast %504 : vector<8x1xf32> to vector<8x8xf32>
    %506 = arith.subf %502, %505 : vector<8x8xf32>
    %507 = math.exp %506 : vector<8x8xf32>
    %cst_205 = arith.constant dense<0.000000e+00> : vector<8xf32>
    %508 = vector.multi_reduction <add>, %507, %cst_205 [1] : vector<8x8xf32> to vector<8xf32>
    %509 = vector.shape_cast %508 : vector<8xf32> to vector<8x1xf32>
    %510 = vector.broadcast %509 : vector<8x1xf32> to vector<8x8xf32>
    %511 = arith.divf %507, %510 : vector<8x8xf32>
    %cst_206 = arith.constant dense<0.000000e+00> : vector<8x16xf32>
    %512 = tpu.matmul %511, %499, %cst_206 {dimension_numbers = #tpu.dot_dimension_numbers<[1], [0], [0], [1], [0, 0, 1, 1], [], []>} : vector<8x8xf32>, vector<8x16xf32>, vector<8x16xf32> -> vector<8x16xf32>
    %c0_207 = arith.constant 0 : index
    %c16_208 = arith.constant 16 : index
    %513 = vector.load %arg7[%c0_207, %c16_208] : memref<16x32xf32, #tpu.memory_space<vmem>>, vector<8x16xf32>
    tpu.vector_store %arg7[%c0_207, %c16_208], %512 {strides = array<i32>} : memref<16x32xf32, #tpu.memory_space<vmem>>, vector<8x16xf32>,
    %514 = vector.extract_strided_slice %479 {offsets = [8, 0], sizes = [8, 16], strides = [1, 1]} : vector<16x96xf32> to vector<8x16xf32>
    %515 = vector.extract_strided_slice %479 {offsets = [8, 32], sizes = [8, 16], strides = [1, 1]} : vector<16x96xf32> to vector<8x16xf32>
    %516 = vector.extract_strided_slice %479 {offsets = [8, 64], sizes = [8, 16], strides = [1, 1]} : vector<16x96xf32> to vector<8x16xf32>
    %cst_209 = arith.constant dense<0.000000e+00> : vector<8x8xf32>
    %517 = tpu.matmul %514, %515, %cst_209 {dimension_numbers = #tpu.dot_dimension_numbers<[1], [1], [0], [0], [0, 0, 1, 0], [], []>} : vector<8x16xf32>, vector<8x16xf32>, vector<8x8xf32> -> vector<8x8xf32>
    %cst_210 = arith.constant 0.176776692 : f32
    %518 = vector.broadcast %cst_210 : f32 to vector<8x8xf32>
    %519 = arith.mulf %517, %518 : vector<8x8xf32>
    %cst_211 = arith.constant dense<0xFF800000> : vector<8xf32>
    %520 = vector.multi_reduction <maximumf>, %519, %cst_211 [1] : vector<8x8xf32> to vector<8xf32>
    %521 = vector.shape_cast %520 : vector<8xf32> to vector<8x1xf32>
    %522 = vector.broadcast %521 : vector<8x1xf32> to vector<8x8xf32>
    %523 = arith.subf %519, %522 : vector<8x8xf32>
    %524 = math.exp %523 : vector<8x8xf32>
    %cst_212 = arith.constant dense<0.000000e+00> : vector<8xf32>
    %525 = vector.multi_reduction <add>, %524, %cst_212 [1] : vector<8x8xf32> to vector<8xf32>
    %526 = vector.shape_cast %525 : vector<8xf32> to vector<8x1xf32>
    %527 = vector.broadcast %526 : vector<8x1xf32> to vector<8x8xf32>
    %528 = arith.divf %524, %527 : vector<8x8xf32>
    %cst_213 = arith.constant dense<0.000000e+00> : vector<8x16xf32>
    %529 = tpu.matmul %528, %516, %cst_213 {dimension_numbers = #tpu.dot_dimension_numbers<[1], [0], [0], [1], [0, 0, 1, 1], [], []>} : vector<8x8xf32>, vector<8x16xf32>, vector<8x16xf32> -> vector<8x16xf32>
    %c8_214 = arith.constant 8 : index
    %c0_215 = arith.constant 0 : index
    %530 = vector.load %arg7[%c8_214, %c0_215] : memref<16x32xf32, #tpu.memory_space<vmem>>, vector<8x16xf32>
    tpu.vector_store %arg7[%c8_214, %c0_215], %529 {strides = array<i32>} : memref<16x32xf32, #tpu.memory_space<vmem>>, vector<8x16xf32>,
    %531 = vector.extract_strided_slice %479 {offsets = [8, 16], sizes = [8, 16], strides = [1, 1]} : vector<16x96xf32> to vector<8x16xf32>
    %532 = vector.extract_strided_slice %479 {offsets = [8, 48], sizes = [8, 16], strides = [1, 1]} : vector<16x96xf32> to vector<8x16xf32>
    %533 = vector.extract_strided_slice %479 {offsets = [8, 80], sizes = [8, 16], strides = [1, 1]} : vector<16x96xf32> to vector<8x16xf32>
    %cst_216 = arith.constant dense<0.000000e+00> : vector<8x8xf32>
    %534 = tpu.matmul %531, %532, %cst_216 {dimension_numbers = #tpu.dot_dimension_numbers<[1], [1], [0], [0], [0, 0, 1, 0], [], []>} : vector<8x16xf32>, vector<8x16xf32>, vector<8x8xf32> -> vector<8x8xf32>
    %cst_217 = arith.constant 0.176776692 : f32
    %535 = vector.broadcast %cst_217 : f32 to vector<8x8xf32>
    %536 = arith.mulf %534, %535 : vector<8x8xf32>
    %cst_218 = arith.constant dense<0xFF800000> : vector<8xf32>
    %537 = vector.multi_reduction <maximumf>, %536, %cst_218 [1] : vector<8x8xf32> to vector<8xf32>
    %538 = vector.shape_cast %537 : vector<8xf32> to vector<8x1xf32>
    %539 = vector.broadcast %538 : vector<8x1xf32> to vector<8x8xf32>
    %540 = arith.subf %536, %539 : vector<8x8xf32>
    %541 = math.exp %540 : vector<8x8xf32>
    %cst_219 = arith.constant dense<0.000000e+00> : vector<8xf32>
    %542 = vector.multi_reduction <add>, %541, %cst_219 [1] : vector<8x8xf32> to vector<8xf32>
    %543 = vector.shape_cast %542 : vector<8xf32> to vector<8x1xf32>
    %544 = vector.broadcast %543 : vector<8x1xf32> to vector<8x8xf32>
    %545 = arith.divf %541, %544 : vector<8x8xf32>
    %cst_220 = arith.constant dense<0.000000e+00> : vector<8x16xf32>
    %546 = tpu.matmul %545, %533, %cst_220 {dimension_numbers = #tpu.dot_dimension_numbers<[1], [0], [0], [1], [0, 0, 1, 1], [], []>} : vector<8x8xf32>, vector<8x16xf32>, vector<8x16xf32> -> vector<8x16xf32>
    %c8_221 = arith.constant 8 : index
    %c16_222 = arith.constant 16 : index
    %547 = vector.load %arg7[%c8_221, %c16_222] : memref<16x32xf32, #tpu.memory_space<vmem>>, vector<8x16xf32>
    tpu.vector_store %arg7[%c8_221, %c16_222], %546 {strides = array<i32>} : memref<16x32xf32, #tpu.memory_space<vmem>>, vector<8x16xf32>,
    %c0_223 = arith.constant 0 : index
    %c0_224 = arith.constant 0 : index
    %548 = vector.load %arg7[%c0_223, %c0_224] : memref<16x32xf32, #tpu.memory_space<vmem>>, vector<16x32xf32>
    %549 = arith.addf %548, %337 : vector<16x32xf32>
    %c16_225 = arith.constant 16 : index
    %c0_226 = arith.constant 0 : index
    %550 = vector.load %arg4[%c16_225, %c0_226] : memref<32x128xf32, #tpu.memory_space<vmem>>, vector<1x32xf32>
    %c17 = arith.constant 17 : index
    %c0_227 = arith.constant 0 : index
    %551 = vector.load %arg4[%c17, %c0_227] : memref<32x128xf32, #tpu.memory_space<vmem>>, vector<1x32xf32>
    %cst_228 = arith.constant dense<0.000000e+00> : vector<16xf32>
    %552 = vector.multi_reduction <add>, %549, %cst_228 [1] : vector<16x32xf32> to vector<16xf32>
    %553 = vector.shape_cast %552 : vector<16xf32> to vector<16x1xf32>
    %cst_229 = arith.constant 3.200000e+01 : f32
    %554 = vector.broadcast %cst_229 : f32 to vector<16x1xf32>
    %555 = arith.divf %553, %554 : vector<16x1xf32>
    %556 = vector.broadcast %555 : vector<16x1xf32> to vector<16x32xf32>
    %557 = arith.subf %549, %556 : vector<16x32xf32>
    %558 = arith.mulf %557, %557 : vector<16x32xf32>
    %cst_230 = arith.constant dense<0.000000e+00> : vector<16xf32>
    %559 = vector.multi_reduction <add>, %558, %cst_230 [1] : vector<16x32xf32> to vector<16xf32>
    %560 = vector.shape_cast %559 : vector<16xf32> to vector<16x1xf32>
    %cst_231 = arith.constant 0.0322580636 : f32
    %561 = vector.broadcast %cst_231 : f32 to vector<16x1xf32>
    %562 = arith.mulf %560, %561 : vector<16x1xf32>
    %563 = math.sqrt %562 : vector<16x1xf32>
    %564 = vector.broadcast %555 : vector<16x1xf32> to vector<16x32xf32>
    %565 = arith.subf %549, %564 : vector<16x32xf32>
    %cst_232 = arith.constant 1.000000e-03 : f32
    %566 = vector.broadcast %cst_232 : f32 to vector<16x1xf32>
    %567 = arith.addf %563, %566 : vector<16x1xf32>
    %568 = vector.broadcast %567 : vector<16x1xf32> to vector<16x32xf32>
    %569 = arith.divf %565, %568 : vector<16x32xf32>
    %570 = vector.broadcast %550 : vector<1x32xf32> to vector<16x32xf32>
    %571 = arith.mulf %569, %570 : vector<16x32xf32>
    %572 = vector.broadcast %551 : vector<1x32xf32> to vector<16x32xf32>
    %573 = arith.addf %571, %572 : vector<16x32xf32>
    %c576 = arith.constant 576 : index
    %c0_233 = arith.constant 0 : index
    %574 = vector.load %arg3[%c576, %c0_233] : memref<768x128xbf16, #tpu.memory_space<vmem>>, vector<32x96xbf16>
    %575 = arith.truncf %476 : vector<16x32xf32> to vector<16x32xbf16>
    %cst_234 = arith.constant dense<0.000000e+00> : vector<16x96xf32>
    %576 = tpu.matmul %575, %574, %cst_234 {dimension_numbers = #tpu.dot_dimension_numbers<[1], [0], [0], [1], [0, 0, 1, 1], [], []>} : vector<16x32xbf16>, vector<32x96xbf16>, vector<16x96xf32> -> vector<16x96xf32>
    %577 = vector.extract_strided_slice %576 {offsets = [0, 0], sizes = [8, 16], strides = [1, 1]} : vector<16x96xf32> to vector<8x16xf32>
    %578 = vector.extract_strided_slice %576 {offsets = [0, 32], sizes = [8, 16], strides = [1, 1]} : vector<16x96xf32> to vector<8x16xf32>
    %579 = vector.extract_strided_slice %576 {offsets = [0, 64], sizes = [8, 16], strides = [1, 1]} : vector<16x96xf32> to vector<8x16xf32>
    %cst_235 = arith.constant dense<0.000000e+00> : vector<8x8xf32>
    %580 = tpu.matmul %577, %578, %cst_235 {dimension_numbers = #tpu.dot_dimension_numbers<[1], [1], [0], [0], [0, 0, 1, 0], [], []>} : vector<8x16xf32>, vector<8x16xf32>, vector<8x8xf32> -> vector<8x8xf32>
    %cst_236 = arith.constant 0.176776692 : f32
    %581 = vector.broadcast %cst_236 : f32 to vector<8x8xf32>
    %582 = arith.mulf %580, %581 : vector<8x8xf32>
    %cst_237 = arith.constant dense<0xFF800000> : vector<8xf32>
    %583 = vector.multi_reduction <maximumf>, %582, %cst_237 [1] : vector<8x8xf32> to vector<8xf32>
    %584 = vector.shape_cast %583 : vector<8xf32> to vector<8x1xf32>
    %585 = vector.broadcast %584 : vector<8x1xf32> to vector<8x8xf32>
    %586 = arith.subf %582, %585 : vector<8x8xf32>
    %587 = math.exp %586 : vector<8x8xf32>
    %cst_238 = arith.constant dense<0.000000e+00> : vector<8xf32>
    %588 = vector.multi_reduction <add>, %587, %cst_238 [1] : vector<8x8xf32> to vector<8xf32>
    %589 = vector.shape_cast %588 : vector<8xf32> to vector<8x1xf32>
    %590 = vector.broadcast %589 : vector<8x1xf32> to vector<8x8xf32>
    %591 = arith.divf %587, %590 : vector<8x8xf32>
    %cst_239 = arith.constant dense<0.000000e+00> : vector<8x16xf32>
    %592 = tpu.matmul %591, %579, %cst_239 {dimension_numbers = #tpu.dot_dimension_numbers<[1], [0], [0], [1], [0, 0, 1, 1], [], []>} : vector<8x8xf32>, vector<8x16xf32>, vector<8x16xf32> -> vector<8x16xf32>
    %c0_240 = arith.constant 0 : index
    %c0_241 = arith.constant 0 : index
    %593 = vector.load %arg8[%c0_240, %c0_241] : memref<16x32xf32, #tpu.memory_space<vmem>>, vector<8x16xf32>
    tpu.vector_store %arg8[%c0_240, %c0_241], %592 {strides = array<i32>} : memref<16x32xf32, #tpu.memory_space<vmem>>, vector<8x16xf32>,
    %594 = vector.extract_strided_slice %576 {offsets = [0, 16], sizes = [8, 16], strides = [1, 1]} : vector<16x96xf32> to vector<8x16xf32>
    %595 = vector.extract_strided_slice %576 {offsets = [0, 48], sizes = [8, 16], strides = [1, 1]} : vector<16x96xf32> to vector<8x16xf32>
    %596 = vector.extract_strided_slice %576 {offsets = [0, 80], sizes = [8, 16], strides = [1, 1]} : vector<16x96xf32> to vector<8x16xf32>
    %cst_242 = arith.constant dense<0.000000e+00> : vector<8x8xf32>
    %597 = tpu.matmul %594, %595, %cst_242 {dimension_numbers = #tpu.dot_dimension_numbers<[1], [1], [0], [0], [0, 0, 1, 0], [], []>} : vector<8x16xf32>, vector<8x16xf32>, vector<8x8xf32> -> vector<8x8xf32>
    %cst_243 = arith.constant 0.176776692 : f32
    %598 = vector.broadcast %cst_243 : f32 to vector<8x8xf32>
    %599 = arith.mulf %597, %598 : vector<8x8xf32>
    %cst_244 = arith.constant dense<0xFF800000> : vector<8xf32>
    %600 = vector.multi_reduction <maximumf>, %599, %cst_244 [1] : vector<8x8xf32> to vector<8xf32>
    %601 = vector.shape_cast %600 : vector<8xf32> to vector<8x1xf32>
    %602 = vector.broadcast %601 : vector<8x1xf32> to vector<8x8xf32>
    %603 = arith.subf %599, %602 : vector<8x8xf32>
    %604 = math.exp %603 : vector<8x8xf32>
    %cst_245 = arith.constant dense<0.000000e+00> : vector<8xf32>
    %605 = vector.multi_reduction <add>, %604, %cst_245 [1] : vector<8x8xf32> to vector<8xf32>
    %606 = vector.shape_cast %605 : vector<8xf32> to vector<8x1xf32>
    %607 = vector.broadcast %606 : vector<8x1xf32> to vector<8x8xf32>
    %608 = arith.divf %604, %607 : vector<8x8xf32>
    %cst_246 = arith.constant dense<0.000000e+00> : vector<8x16xf32>
    %609 = tpu.matmul %608, %596, %cst_246 {dimension_numbers = #tpu.dot_dimension_numbers<[1], [0], [0], [1], [0, 0, 1, 1], [], []>} : vector<8x8xf32>, vector<8x16xf32>, vector<8x16xf32> -> vector<8x16xf32>
    %c0_247 = arith.constant 0 : index
    %c16_248 = arith.constant 16 : index
    %610 = vector.load %arg8[%c0_247, %c16_248] : memref<16x32xf32, #tpu.memory_space<vmem>>, vector<8x16xf32>
    tpu.vector_store %arg8[%c0_247, %c16_248], %609 {strides = array<i32>} : memref<16x32xf32, #tpu.memory_space<vmem>>, vector<8x16xf32>,
    %611 = vector.extract_strided_slice %576 {offsets = [8, 0], sizes = [8, 16], strides = [1, 1]} : vector<16x96xf32> to vector<8x16xf32>
    %612 = vector.extract_strided_slice %576 {offsets = [8, 32], sizes = [8, 16], strides = [1, 1]} : vector<16x96xf32> to vector<8x16xf32>
    %613 = vector.extract_strided_slice %576 {offsets = [8, 64], sizes = [8, 16], strides = [1, 1]} : vector<16x96xf32> to vector<8x16xf32>
    %cst_249 = arith.constant dense<0.000000e+00> : vector<8x8xf32>
    %614 = tpu.matmul %611, %612, %cst_249 {dimension_numbers = #tpu.dot_dimension_numbers<[1], [1], [0], [0], [0, 0, 1, 0], [], []>} : vector<8x16xf32>, vector<8x16xf32>, vector<8x8xf32> -> vector<8x8xf32>
    %cst_250 = arith.constant 0.176776692 : f32
    %615 = vector.broadcast %cst_250 : f32 to vector<8x8xf32>
    %616 = arith.mulf %614, %615 : vector<8x8xf32>
    %cst_251 = arith.constant dense<0xFF800000> : vector<8xf32>
    %617 = vector.multi_reduction <maximumf>, %616, %cst_251 [1] : vector<8x8xf32> to vector<8xf32>
    %618 = vector.shape_cast %617 : vector<8xf32> to vector<8x1xf32>
    %619 = vector.broadcast %618 : vector<8x1xf32> to vector<8x8xf32>
    %620 = arith.subf %616, %619 : vector<8x8xf32>
    %621 = math.exp %620 : vector<8x8xf32>
    %cst_252 = arith.constant dense<0.000000e+00> : vector<8xf32>
    %622 = vector.multi_reduction <add>, %621, %cst_252 [1] : vector<8x8xf32> to vector<8xf32>
    %623 = vector.shape_cast %622 : vector<8xf32> to vector<8x1xf32>
    %624 = vector.broadcast %623 : vector<8x1xf32> to vector<8x8xf32>
    %625 = arith.divf %621, %624 : vector<8x8xf32>
    %cst_253 = arith.constant dense<0.000000e+00> : vector<8x16xf32>
    %626 = tpu.matmul %625, %613, %cst_253 {dimension_numbers = #tpu.dot_dimension_numbers<[1], [0], [0], [1], [0, 0, 1, 1], [], []>} : vector<8x8xf32>, vector<8x16xf32>, vector<8x16xf32> -> vector<8x16xf32>
    %c8_254 = arith.constant 8 : index
    %c0_255 = arith.constant 0 : index
    %627 = vector.load %arg8[%c8_254, %c0_255] : memref<16x32xf32, #tpu.memory_space<vmem>>, vector<8x16xf32>
    tpu.vector_store %arg8[%c8_254, %c0_255], %626 {strides = array<i32>} : memref<16x32xf32, #tpu.memory_space<vmem>>, vector<8x16xf32>,
    %628 = vector.extract_strided_slice %576 {offsets = [8, 16], sizes = [8, 16], strides = [1, 1]} : vector<16x96xf32> to vector<8x16xf32>
    %629 = vector.extract_strided_slice %576 {offsets = [8, 48], sizes = [8, 16], strides = [1, 1]} : vector<16x96xf32> to vector<8x16xf32>
    %630 = vector.extract_strided_slice %576 {offsets = [8, 80], sizes = [8, 16], strides = [1, 1]} : vector<16x96xf32> to vector<8x16xf32>
    %cst_256 = arith.constant dense<0.000000e+00> : vector<8x8xf32>
    %631 = tpu.matmul %628, %629, %cst_256 {dimension_numbers = #tpu.dot_dimension_numbers<[1], [1], [0], [0], [0, 0, 1, 0], [], []>} : vector<8x16xf32>, vector<8x16xf32>, vector<8x8xf32> -> vector<8x8xf32>
    %cst_257 = arith.constant 0.176776692 : f32
    %632 = vector.broadcast %cst_257 : f32 to vector<8x8xf32>
    %633 = arith.mulf %631, %632 : vector<8x8xf32>
    %cst_258 = arith.constant dense<0xFF800000> : vector<8xf32>
    %634 = vector.multi_reduction <maximumf>, %633, %cst_258 [1] : vector<8x8xf32> to vector<8xf32>
    %635 = vector.shape_cast %634 : vector<8xf32> to vector<8x1xf32>
    %636 = vector.broadcast %635 : vector<8x1xf32> to vector<8x8xf32>
    %637 = arith.subf %633, %636 : vector<8x8xf32>
    %638 = math.exp %637 : vector<8x8xf32>
    %cst_259 = arith.constant dense<0.000000e+00> : vector<8xf32>
    %639 = vector.multi_reduction <add>, %638, %cst_259 [1] : vector<8x8xf32> to vector<8xf32>
    %640 = vector.shape_cast %639 : vector<8xf32> to vector<8x1xf32>
    %641 = vector.broadcast %640 : vector<8x1xf32> to vector<8x8xf32>
    %642 = arith.divf %638, %641 : vector<8x8xf32>
    %cst_260 = arith.constant dense<0.000000e+00> : vector<8x16xf32>
    %643 = tpu.matmul %642, %630, %cst_260 {dimension_numbers = #tpu.dot_dimension_numbers<[1], [0], [0], [1], [0, 0, 1, 1], [], []>} : vector<8x8xf32>, vector<8x16xf32>, vector<8x16xf32> -> vector<8x16xf32>
    %c8_261 = arith.constant 8 : index
    %c16_262 = arith.constant 16 : index
    %644 = vector.load %arg8[%c8_261, %c16_262] : memref<16x32xf32, #tpu.memory_space<vmem>>, vector<8x16xf32>
    tpu.vector_store %arg8[%c8_261, %c16_262], %643 {strides = array<i32>} : memref<16x32xf32, #tpu.memory_space<vmem>>, vector<8x16xf32>,
    %c0_263 = arith.constant 0 : index
    %c0_264 = arith.constant 0 : index
    %645 = vector.load %arg8[%c0_263, %c0_264] : memref<16x32xf32, #tpu.memory_space<vmem>>, vector<16x32xf32>
    %646 = arith.addf %645, %476 : vector<16x32xf32>
    %c24 = arith.constant 24 : index
    %c0_265 = arith.constant 0 : index
    %647 = vector.load %arg4[%c24, %c0_265] : memref<32x128xf32, #tpu.memory_space<vmem>>, vector<1x32xf32>
    %c25 = arith.constant 25 : index
    %c0_266 = arith.constant 0 : index
    %648 = vector.load %arg4[%c25, %c0_266] : memref<32x128xf32, #tpu.memory_space<vmem>>, vector<1x32xf32>
    %cst_267 = arith.constant dense<0.000000e+00> : vector<16xf32>
    %649 = vector.multi_reduction <add>, %646, %cst_267 [1] : vector<16x32xf32> to vector<16xf32>
    %650 = vector.shape_cast %649 : vector<16xf32> to vector<16x1xf32>
    %cst_268 = arith.constant 3.200000e+01 : f32
    %651 = vector.broadcast %cst_268 : f32 to vector<16x1xf32>
    %652 = arith.divf %650, %651 : vector<16x1xf32>
    %653 = vector.broadcast %652 : vector<16x1xf32> to vector<16x32xf32>
    %654 = arith.subf %646, %653 : vector<16x32xf32>
    %655 = arith.mulf %654, %654 : vector<16x32xf32>
    %cst_269 = arith.constant dense<0.000000e+00> : vector<16xf32>
    %656 = vector.multi_reduction <add>, %655, %cst_269 [1] : vector<16x32xf32> to vector<16xf32>
    %657 = vector.shape_cast %656 : vector<16xf32> to vector<16x1xf32>
    %cst_270 = arith.constant 0.0322580636 : f32
    %658 = vector.broadcast %cst_270 : f32 to vector<16x1xf32>
    %659 = arith.mulf %657, %658 : vector<16x1xf32>
    %660 = math.sqrt %659 : vector<16x1xf32>
    %661 = vector.broadcast %652 : vector<16x1xf32> to vector<16x32xf32>
    %662 = arith.subf %646, %661 : vector<16x32xf32>
    %cst_271 = arith.constant 1.000000e-03 : f32
    %663 = vector.broadcast %cst_271 : f32 to vector<16x1xf32>
    %664 = arith.addf %660, %663 : vector<16x1xf32>
    %665 = vector.broadcast %664 : vector<16x1xf32> to vector<16x32xf32>
    %666 = arith.divf %662, %665 : vector<16x32xf32>
    %667 = vector.broadcast %647 : vector<1x32xf32> to vector<16x32xf32>
    %668 = arith.mulf %666, %667 : vector<16x32xf32>
    %669 = vector.broadcast %648 : vector<1x32xf32> to vector<16x32xf32>
    %670 = arith.addf %668, %669 : vector<16x32xf32>
    %671 = arith.truncf %573 : vector<16x32xf32> to vector<16x32xbf16>
    %c416 = arith.constant 416 : index
    %c0_272 = arith.constant 0 : index
    %672 = vector.load %arg3[%c416, %c0_272] : memref<768x128xbf16, #tpu.memory_space<vmem>>, vector<32x32xbf16>
    %cst_273 = arith.constant dense<0.000000e+00> : vector<16x32xf32>
    %673 = tpu.matmul %671, %672, %cst_273 {dimension_numbers = #tpu.dot_dimension_numbers<[1], [0], [0], [1], [0, 0, 1, 1], [], []>} : vector<16x32xbf16>, vector<32x32xbf16>, vector<16x32xf32> -> vector<16x32xf32>
    %674 = arith.truncf %476 : vector<16x32xf32> to vector<16x32xbf16>
    %c448 = arith.constant 448 : index
    %c0_274 = arith.constant 0 : index
    %675 = vector.load %arg3[%c448, %c0_274] : memref<768x128xbf16, #tpu.memory_space<vmem>>, vector<32x64xbf16>
    %cst_275 = arith.constant dense<0.000000e+00> : vector<16x64xf32>
    %676 = tpu.matmul %674, %675, %cst_275 {dimension_numbers = #tpu.dot_dimension_numbers<[1], [0], [0], [1], [0, 0, 1, 1], [], []>} : vector<16x32xbf16>, vector<32x64xbf16>, vector<16x64xf32> -> vector<16x64xf32>
    %677 = vector.extract_strided_slice %673 {offsets = [0, 0], sizes = [8, 16], strides = [1, 1]} : vector<16x32xf32> to vector<8x16xf32>
    %678 = vector.extract_strided_slice %676 {offsets = [0, 0], sizes = [8, 16], strides = [1, 1]} : vector<16x64xf32> to vector<8x16xf32>
    %679 = vector.extract_strided_slice %676 {offsets = [0, 32], sizes = [8, 16], strides = [1, 1]} : vector<16x64xf32> to vector<8x16xf32>
    %cst_276 = arith.constant dense<0.000000e+00> : vector<8x8xf32>
    %680 = tpu.matmul %677, %678, %cst_276 {dimension_numbers = #tpu.dot_dimension_numbers<[1], [1], [0], [0], [0, 0, 1, 0], [], []>} : vector<8x16xf32>, vector<8x16xf32>, vector<8x8xf32> -> vector<8x8xf32>
    %cst_277 = arith.constant 0.176776692 : f32
    %681 = vector.broadcast %cst_277 : f32 to vector<8x8xf32>
    %682 = arith.mulf %680, %681 : vector<8x8xf32>
    %cst_278 = arith.constant dense<0xFF800000> : vector<8xf32>
    %683 = vector.multi_reduction <maximumf>, %682, %cst_278 [1] : vector<8x8xf32> to vector<8xf32>
    %684 = vector.shape_cast %683 : vector<8xf32> to vector<8x1xf32>
    %685 = vector.broadcast %684 : vector<8x1xf32> to vector<8x8xf32>
    %686 = arith.subf %682, %685 : vector<8x8xf32>
    %687 = math.exp %686 : vector<8x8xf32>
    %cst_279 = arith.constant dense<0.000000e+00> : vector<8xf32>
    %688 = vector.multi_reduction <add>, %687, %cst_279 [1] : vector<8x8xf32> to vector<8xf32>
    %689 = vector.shape_cast %688 : vector<8xf32> to vector<8x1xf32>
    %690 = vector.broadcast %689 : vector<8x1xf32> to vector<8x8xf32>
    %691 = arith.divf %687, %690 : vector<8x8xf32>
    %cst_280 = arith.constant dense<0.000000e+00> : vector<8x16xf32>
    %692 = tpu.matmul %691, %679, %cst_280 {dimension_numbers = #tpu.dot_dimension_numbers<[1], [0], [0], [1], [0, 0, 1, 1], [], []>} : vector<8x8xf32>, vector<8x16xf32>, vector<8x16xf32> -> vector<8x16xf32>
    %c0_281 = arith.constant 0 : index
    %c0_282 = arith.constant 0 : index
    %693 = vector.load %arg7[%c0_281, %c0_282] : memref<16x32xf32, #tpu.memory_space<vmem>>, vector<8x16xf32>
    tpu.vector_store %arg7[%c0_281, %c0_282], %692 {strides = array<i32>} : memref<16x32xf32, #tpu.memory_space<vmem>>, vector<8x16xf32>,
    %694 = vector.extract_strided_slice %673 {offsets = [0, 16], sizes = [8, 16], strides = [1, 1]} : vector<16x32xf32> to vector<8x16xf32>
    %695 = vector.extract_strided_slice %676 {offsets = [0, 16], sizes = [8, 16], strides = [1, 1]} : vector<16x64xf32> to vector<8x16xf32>
    %696 = vector.extract_strided_slice %676 {offsets = [0, 48], sizes = [8, 16], strides = [1, 1]} : vector<16x64xf32> to vector<8x16xf32>
    %cst_283 = arith.constant dense<0.000000e+00> : vector<8x8xf32>
    %697 = tpu.matmul %694, %695, %cst_283 {dimension_numbers = #tpu.dot_dimension_numbers<[1], [1], [0], [0], [0, 0, 1, 0], [], []>} : vector<8x16xf32>, vector<8x16xf32>, vector<8x8xf32> -> vector<8x8xf32>
    %cst_284 = arith.constant 0.176776692 : f32
    %698 = vector.broadcast %cst_284 : f32 to vector<8x8xf32>
    %699 = arith.mulf %697, %698 : vector<8x8xf32>
    %cst_285 = arith.constant dense<0xFF800000> : vector<8xf32>
    %700 = vector.multi_reduction <maximumf>, %699, %cst_285 [1] : vector<8x8xf32> to vector<8xf32>
    %701 = vector.shape_cast %700 : vector<8xf32> to vector<8x1xf32>
    %702 = vector.broadcast %701 : vector<8x1xf32> to vector<8x8xf32>
    %703 = arith.subf %699, %702 : vector<8x8xf32>
    %704 = math.exp %703 : vector<8x8xf32>
    %cst_286 = arith.constant dense<0.000000e+00> : vector<8xf32>
    %705 = vector.multi_reduction <add>, %704, %cst_286 [1] : vector<8x8xf32> to vector<8xf32>
    %706 = vector.shape_cast %705 : vector<8xf32> to vector<8x1xf32>
    %707 = vector.broadcast %706 : vector<8x1xf32> to vector<8x8xf32>
    %708 = arith.divf %704, %707 : vector<8x8xf32>
    %cst_287 = arith.constant dense<0.000000e+00> : vector<8x16xf32>
    %709 = tpu.matmul %708, %696, %cst_287 {dimension_numbers = #tpu.dot_dimension_numbers<[1], [0], [0], [1], [0, 0, 1, 1], [], []>} : vector<8x8xf32>, vector<8x16xf32>, vector<8x16xf32> -> vector<8x16xf32>
    %c0_288 = arith.constant 0 : index
    %c16_289 = arith.constant 16 : index
    %710 = vector.load %arg7[%c0_288, %c16_289] : memref<16x32xf32, #tpu.memory_space<vmem>>, vector<8x16xf32>
    tpu.vector_store %arg7[%c0_288, %c16_289], %709 {strides = array<i32>} : memref<16x32xf32, #tpu.memory_space<vmem>>, vector<8x16xf32>,
    %711 = vector.extract_strided_slice %673 {offsets = [8, 0], sizes = [8, 16], strides = [1, 1]} : vector<16x32xf32> to vector<8x16xf32>
    %712 = vector.extract_strided_slice %676 {offsets = [8, 0], sizes = [8, 16], strides = [1, 1]} : vector<16x64xf32> to vector<8x16xf32>
    %713 = vector.extract_strided_slice %676 {offsets = [8, 32], sizes = [8, 16], strides = [1, 1]} : vector<16x64xf32> to vector<8x16xf32>
    %cst_290 = arith.constant dense<0.000000e+00> : vector<8x8xf32>
    %714 = tpu.matmul %711, %712, %cst_290 {dimension_numbers = #tpu.dot_dimension_numbers<[1], [1], [0], [0], [0, 0, 1, 0], [], []>} : vector<8x16xf32>, vector<8x16xf32>, vector<8x8xf32> -> vector<8x8xf32>
    %cst_291 = arith.constant 0.176776692 : f32
    %715 = vector.broadcast %cst_291 : f32 to vector<8x8xf32>
    %716 = arith.mulf %714, %715 : vector<8x8xf32>
    %cst_292 = arith.constant dense<0xFF800000> : vector<8xf32>
    %717 = vector.multi_reduction <maximumf>, %716, %cst_292 [1] : vector<8x8xf32> to vector<8xf32>
    %718 = vector.shape_cast %717 : vector<8xf32> to vector<8x1xf32>
    %719 = vector.broadcast %718 : vector<8x1xf32> to vector<8x8xf32>
    %720 = arith.subf %716, %719 : vector<8x8xf32>
    %721 = math.exp %720 : vector<8x8xf32>
    %cst_293 = arith.constant dense<0.000000e+00> : vector<8xf32>
    %722 = vector.multi_reduction <add>, %721, %cst_293 [1] : vector<8x8xf32> to vector<8xf32>
    %723 = vector.shape_cast %722 : vector<8xf32> to vector<8x1xf32>
    %724 = vector.broadcast %723 : vector<8x1xf32> to vector<8x8xf32>
    %725 = arith.divf %721, %724 : vector<8x8xf32>
    %cst_294 = arith.constant dense<0.000000e+00> : vector<8x16xf32>
    %726 = tpu.matmul %725, %713, %cst_294 {dimension_numbers = #tpu.dot_dimension_numbers<[1], [0], [0], [1], [0, 0, 1, 1], [], []>} : vector<8x8xf32>, vector<8x16xf32>, vector<8x16xf32> -> vector<8x16xf32>
    %c8_295 = arith.constant 8 : index
    %c0_296 = arith.constant 0 : index
    %727 = vector.load %arg7[%c8_295, %c0_296] : memref<16x32xf32, #tpu.memory_space<vmem>>, vector<8x16xf32>
    tpu.vector_store %arg7[%c8_295, %c0_296], %726 {strides = array<i32>} : memref<16x32xf32, #tpu.memory_space<vmem>>, vector<8x16xf32>,
    %728 = vector.extract_strided_slice %673 {offsets = [8, 16], sizes = [8, 16], strides = [1, 1]} : vector<16x32xf32> to vector<8x16xf32>
    %729 = vector.extract_strided_slice %676 {offsets = [8, 16], sizes = [8, 16], strides = [1, 1]} : vector<16x64xf32> to vector<8x16xf32>
    %730 = vector.extract_strided_slice %676 {offsets = [8, 48], sizes = [8, 16], strides = [1, 1]} : vector<16x64xf32> to vector<8x16xf32>
    %cst_297 = arith.constant dense<0.000000e+00> : vector<8x8xf32>
    %731 = tpu.matmul %728, %729, %cst_297 {dimension_numbers = #tpu.dot_dimension_numbers<[1], [1], [0], [0], [0, 0, 1, 0], [], []>} : vector<8x16xf32>, vector<8x16xf32>, vector<8x8xf32> -> vector<8x8xf32>
    %cst_298 = arith.constant 0.176776692 : f32
    %732 = vector.broadcast %cst_298 : f32 to vector<8x8xf32>
    %733 = arith.mulf %731, %732 : vector<8x8xf32>
    %cst_299 = arith.constant dense<0xFF800000> : vector<8xf32>
    %734 = vector.multi_reduction <maximumf>, %733, %cst_299 [1] : vector<8x8xf32> to vector<8xf32>
    %735 = vector.shape_cast %734 : vector<8xf32> to vector<8x1xf32>
    %736 = vector.broadcast %735 : vector<8x1xf32> to vector<8x8xf32>
    %737 = arith.subf %733, %736 : vector<8x8xf32>
    %738 = math.exp %737 : vector<8x8xf32>
    %cst_300 = arith.constant dense<0.000000e+00> : vector<8xf32>
    %739 = vector.multi_reduction <add>, %738, %cst_300 [1] : vector<8x8xf32> to vector<8xf32>
    %740 = vector.shape_cast %739 : vector<8xf32> to vector<8x1xf32>
    %741 = vector.broadcast %740 : vector<8x1xf32> to vector<8x8xf32>
    %742 = arith.divf %738, %741 : vector<8x8xf32>
    %cst_301 = arith.constant dense<0.000000e+00> : vector<8x16xf32>
    %743 = tpu.matmul %742, %730, %cst_301 {dimension_numbers = #tpu.dot_dimension_numbers<[1], [0], [0], [1], [0, 0, 1, 1], [], []>} : vector<8x8xf32>, vector<8x16xf32>, vector<8x16xf32> -> vector<8x16xf32>
    %c8_302 = arith.constant 8 : index
    %c16_303 = arith.constant 16 : index
    %744 = vector.load %arg7[%c8_302, %c16_303] : memref<16x32xf32, #tpu.memory_space<vmem>>, vector<8x16xf32>
    tpu.vector_store %arg7[%c8_302, %c16_303], %743 {strides = array<i32>} : memref<16x32xf32, #tpu.memory_space<vmem>>, vector<8x16xf32>,
    %c0_304 = arith.constant 0 : index
    %c0_305 = arith.constant 0 : index
    %745 = vector.load %arg7[%c0_304, %c0_305] : memref<16x32xf32, #tpu.memory_space<vmem>>, vector<16x32xf32>
    %746 = arith.addf %745, %573 : vector<16x32xf32>
    %c18 = arith.constant 18 : index
    %c0_306 = arith.constant 0 : index
    %747 = vector.load %arg4[%c18, %c0_306] : memref<32x128xf32, #tpu.memory_space<vmem>>, vector<1x32xf32>
    %c19 = arith.constant 19 : index
    %c0_307 = arith.constant 0 : index
    %748 = vector.load %arg4[%c19, %c0_307] : memref<32x128xf32, #tpu.memory_space<vmem>>, vector<1x32xf32>
    %cst_308 = arith.constant dense<0.000000e+00> : vector<16xf32>
    %749 = vector.multi_reduction <add>, %746, %cst_308 [1] : vector<16x32xf32> to vector<16xf32>
    %750 = vector.shape_cast %749 : vector<16xf32> to vector<16x1xf32>
    %cst_309 = arith.constant 3.200000e+01 : f32
    %751 = vector.broadcast %cst_309 : f32 to vector<16x1xf32>
    %752 = arith.divf %750, %751 : vector<16x1xf32>
    %753 = vector.broadcast %752 : vector<16x1xf32> to vector<16x32xf32>
    %754 = arith.subf %746, %753 : vector<16x32xf32>
    %755 = arith.mulf %754, %754 : vector<16x32xf32>
    %cst_310 = arith.constant dense<0.000000e+00> : vector<16xf32>
    %756 = vector.multi_reduction <add>, %755, %cst_310 [1] : vector<16x32xf32> to vector<16xf32>
    %757 = vector.shape_cast %756 : vector<16xf32> to vector<16x1xf32>
    %cst_311 = arith.constant 0.0322580636 : f32
    %758 = vector.broadcast %cst_311 : f32 to vector<16x1xf32>
    %759 = arith.mulf %757, %758 : vector<16x1xf32>
    %760 = math.sqrt %759 : vector<16x1xf32>
    %761 = vector.broadcast %752 : vector<16x1xf32> to vector<16x32xf32>
    %762 = arith.subf %746, %761 : vector<16x32xf32>
    %cst_312 = arith.constant 1.000000e-03 : f32
    %763 = vector.broadcast %cst_312 : f32 to vector<16x1xf32>
    %764 = arith.addf %760, %763 : vector<16x1xf32>
    %765 = vector.broadcast %764 : vector<16x1xf32> to vector<16x32xf32>
    %766 = arith.divf %762, %765 : vector<16x32xf32>
    %767 = vector.broadcast %747 : vector<1x32xf32> to vector<16x32xf32>
    %768 = arith.mulf %766, %767 : vector<16x32xf32>
    %769 = vector.broadcast %748 : vector<1x32xf32> to vector<16x32xf32>
    %770 = arith.addf %768, %769 : vector<16x32xf32>
    %771 = arith.truncf %770 : vector<16x32xf32> to vector<16x32xbf16>
    %c480 = arith.constant 480 : index
    %c0_313 = arith.constant 0 : index
    %772 = vector.load %arg3[%c480, %c0_313] : memref<768x128xbf16, #tpu.memory_space<vmem>>, vector<32x64xbf16>
    %cst_314 = arith.constant dense<0.000000e+00> : vector<16x64xf32>
    %773 = tpu.matmul %771, %772, %cst_314 {dimension_numbers = #tpu.dot_dimension_numbers<[1], [0], [0], [1], [0, 0, 1, 1], [], []>} : vector<16x32xbf16>, vector<32x64xbf16>, vector<16x64xf32> -> vector<16x64xf32>
    %c22 = arith.constant 22 : index
    %c0_315 = arith.constant 0 : index
    %774 = vector.load %arg4[%c22, %c0_315] : memref<32x128xf32, #tpu.memory_space<vmem>>, vector<1x64xf32>
    %775 = vector.broadcast %774 : vector<1x64xf32> to vector<16x64xf32>
    %776 = arith.addf %773, %775 : vector<16x64xf32>
    %cst_316 = arith.constant 0.000000e+00 : f32
    %777 = vector.broadcast %cst_316 : f32 to vector<16x64xf32>
    %778 = arith.maximumf %776, %777 : vector<16x64xf32>
    %779 = arith.truncf %778 : vector<16x64xf32> to vector<16x64xbf16>
    %c512 = arith.constant 512 : index
    %c0_317 = arith.constant 0 : index
    %780 = vector.load %arg3[%c512, %c0_317] : memref<768x128xbf16, #tpu.memory_space<vmem>>, vector<64x32xbf16>
    %cst_318 = arith.constant dense<0.000000e+00> : vector<16x32xf32>
    %781 = tpu.matmul %779, %780, %cst_318 {dimension_numbers = #tpu.dot_dimension_numbers<[1], [0], [0], [1], [0, 0, 1, 1], [], []>} : vector<16x64xbf16>, vector<64x32xbf16>, vector<16x32xf32> -> vector<16x32xf32>
    %c23 = arith.constant 23 : index
    %c0_319 = arith.constant 0 : index
    %782 = vector.load %arg4[%c23, %c0_319] : memref<32x128xf32, #tpu.memory_space<vmem>>, vector<1x32xf32>
    %783 = vector.broadcast %782 : vector<1x32xf32> to vector<16x32xf32>
    %784 = arith.addf %781, %783 : vector<16x32xf32>
    %785 = arith.addf %784, %770 : vector<16x32xf32>
    %c20 = arith.constant 20 : index
    %c0_320 = arith.constant 0 : index
    %786 = vector.load %arg4[%c20, %c0_320] : memref<32x128xf32, #tpu.memory_space<vmem>>, vector<1x32xf32>
    %c21 = arith.constant 21 : index
    %c0_321 = arith.constant 0 : index
    %787 = vector.load %arg4[%c21, %c0_321] : memref<32x128xf32, #tpu.memory_space<vmem>>, vector<1x32xf32>
    %cst_322 = arith.constant dense<0.000000e+00> : vector<16xf32>
    %788 = vector.multi_reduction <add>, %785, %cst_322 [1] : vector<16x32xf32> to vector<16xf32>
    %789 = vector.shape_cast %788 : vector<16xf32> to vector<16x1xf32>
    %cst_323 = arith.constant 3.200000e+01 : f32
    %790 = vector.broadcast %cst_323 : f32 to vector<16x1xf32>
    %791 = arith.divf %789, %790 : vector<16x1xf32>
    %792 = vector.broadcast %791 : vector<16x1xf32> to vector<16x32xf32>
    %793 = arith.subf %785, %792 : vector<16x32xf32>
    %794 = arith.mulf %793, %793 : vector<16x32xf32>
    %cst_324 = arith.constant dense<0.000000e+00> : vector<16xf32>
    %795 = vector.multi_reduction <add>, %794, %cst_324 [1] : vector<16x32xf32> to vector<16xf32>
    %796 = vector.shape_cast %795 : vector<16xf32> to vector<16x1xf32>
    %cst_325 = arith.constant 0.0322580636 : f32
    %797 = vector.broadcast %cst_325 : f32 to vector<16x1xf32>
    %798 = arith.mulf %796, %797 : vector<16x1xf32>
    %799 = math.sqrt %798 : vector<16x1xf32>
    %800 = vector.broadcast %791 : vector<16x1xf32> to vector<16x32xf32>
    %801 = arith.subf %785, %800 : vector<16x32xf32>
    %cst_326 = arith.constant 1.000000e-03 : f32
    %802 = vector.broadcast %cst_326 : f32 to vector<16x1xf32>
    %803 = arith.addf %799, %802 : vector<16x1xf32>
    %804 = vector.broadcast %803 : vector<16x1xf32> to vector<16x32xf32>
    %805 = arith.divf %801, %804 : vector<16x32xf32>
    %806 = vector.broadcast %786 : vector<1x32xf32> to vector<16x32xf32>
    %807 = arith.mulf %805, %806 : vector<16x32xf32>
    %808 = vector.broadcast %787 : vector<1x32xf32> to vector<16x32xf32>
    %809 = arith.addf %807, %808 : vector<16x32xf32>
    %810 = arith.truncf %670 : vector<16x32xf32> to vector<16x32xbf16>
    %c608 = arith.constant 608 : index
    %c0_327 = arith.constant 0 : index
    %811 = vector.load %arg3[%c608, %c0_327] : memref<768x128xbf16, #tpu.memory_space<vmem>>, vector<32x32xbf16>
    %cst_328 = arith.constant dense<0.000000e+00> : vector<16x32xf32>
    %812 = tpu.matmul %810, %811, %cst_328 {dimension_numbers = #tpu.dot_dimension_numbers<[1], [0], [0], [1], [0, 0, 1, 1], [], []>} : vector<16x32xbf16>, vector<32x32xbf16>, vector<16x32xf32> -> vector<16x32xf32>
    %813 = arith.truncf %809 : vector<16x32xf32> to vector<16x32xbf16>
    %c640 = arith.constant 640 : index
    %c0_329 = arith.constant 0 : index
    %814 = vector.load %arg3[%c640, %c0_329] : memref<768x128xbf16, #tpu.memory_space<vmem>>, vector<32x64xbf16>
    %cst_330 = arith.constant dense<0.000000e+00> : vector<16x64xf32>
    %815 = tpu.matmul %813, %814, %cst_330 {dimension_numbers = #tpu.dot_dimension_numbers<[1], [0], [0], [1], [0, 0, 1, 1], [], []>} : vector<16x32xbf16>, vector<32x64xbf16>, vector<16x64xf32> -> vector<16x64xf32>
    %816 = vector.extract_strided_slice %812 {offsets = [0, 0], sizes = [8, 16], strides = [1, 1]} : vector<16x32xf32> to vector<8x16xf32>
    %817 = vector.extract_strided_slice %815 {offsets = [0, 0], sizes = [8, 16], strides = [1, 1]} : vector<16x64xf32> to vector<8x16xf32>
    %818 = vector.extract_strided_slice %815 {offsets = [0, 32], sizes = [8, 16], strides = [1, 1]} : vector<16x64xf32> to vector<8x16xf32>
    %cst_331 = arith.constant dense<0.000000e+00> : vector<8x8xf32>
    %819 = tpu.matmul %816, %817, %cst_331 {dimension_numbers = #tpu.dot_dimension_numbers<[1], [1], [0], [0], [0, 0, 1, 0], [], []>} : vector<8x16xf32>, vector<8x16xf32>, vector<8x8xf32> -> vector<8x8xf32>
    %cst_332 = arith.constant 0.176776692 : f32
    %820 = vector.broadcast %cst_332 : f32 to vector<8x8xf32>
    %821 = arith.mulf %819, %820 : vector<8x8xf32>
    %cst_333 = arith.constant dense<0xFF800000> : vector<8xf32>
    %822 = vector.multi_reduction <maximumf>, %821, %cst_333 [1] : vector<8x8xf32> to vector<8xf32>
    %823 = vector.shape_cast %822 : vector<8xf32> to vector<8x1xf32>
    %824 = vector.broadcast %823 : vector<8x1xf32> to vector<8x8xf32>
    %825 = arith.subf %821, %824 : vector<8x8xf32>
    %826 = math.exp %825 : vector<8x8xf32>
    %cst_334 = arith.constant dense<0.000000e+00> : vector<8xf32>
    %827 = vector.multi_reduction <add>, %826, %cst_334 [1] : vector<8x8xf32> to vector<8xf32>
    %828 = vector.shape_cast %827 : vector<8xf32> to vector<8x1xf32>
    %829 = vector.broadcast %828 : vector<8x1xf32> to vector<8x8xf32>
    %830 = arith.divf %826, %829 : vector<8x8xf32>
    %cst_335 = arith.constant dense<0.000000e+00> : vector<8x16xf32>
    %831 = tpu.matmul %830, %818, %cst_335 {dimension_numbers = #tpu.dot_dimension_numbers<[1], [0], [0], [1], [0, 0, 1, 1], [], []>} : vector<8x8xf32>, vector<8x16xf32>, vector<8x16xf32> -> vector<8x16xf32>
    %c0_336 = arith.constant 0 : index
    %c0_337 = arith.constant 0 : index
    %832 = vector.load %arg8[%c0_336, %c0_337] : memref<16x32xf32, #tpu.memory_space<vmem>>, vector<8x16xf32>
    tpu.vector_store %arg8[%c0_336, %c0_337], %831 {strides = array<i32>} : memref<16x32xf32, #tpu.memory_space<vmem>>, vector<8x16xf32>,
    %833 = vector.extract_strided_slice %812 {offsets = [0, 16], sizes = [8, 16], strides = [1, 1]} : vector<16x32xf32> to vector<8x16xf32>
    %834 = vector.extract_strided_slice %815 {offsets = [0, 16], sizes = [8, 16], strides = [1, 1]} : vector<16x64xf32> to vector<8x16xf32>
    %835 = vector.extract_strided_slice %815 {offsets = [0, 48], sizes = [8, 16], strides = [1, 1]} : vector<16x64xf32> to vector<8x16xf32>
    %cst_338 = arith.constant dense<0.000000e+00> : vector<8x8xf32>
    %836 = tpu.matmul %833, %834, %cst_338 {dimension_numbers = #tpu.dot_dimension_numbers<[1], [1], [0], [0], [0, 0, 1, 0], [], []>} : vector<8x16xf32>, vector<8x16xf32>, vector<8x8xf32> -> vector<8x8xf32>
    %cst_339 = arith.constant 0.176776692 : f32
    %837 = vector.broadcast %cst_339 : f32 to vector<8x8xf32>
    %838 = arith.mulf %836, %837 : vector<8x8xf32>
    %cst_340 = arith.constant dense<0xFF800000> : vector<8xf32>
    %839 = vector.multi_reduction <maximumf>, %838, %cst_340 [1] : vector<8x8xf32> to vector<8xf32>
    %840 = vector.shape_cast %839 : vector<8xf32> to vector<8x1xf32>
    %841 = vector.broadcast %840 : vector<8x1xf32> to vector<8x8xf32>
    %842 = arith.subf %838, %841 : vector<8x8xf32>
    %843 = math.exp %842 : vector<8x8xf32>
    %cst_341 = arith.constant dense<0.000000e+00> : vector<8xf32>
    %844 = vector.multi_reduction <add>, %843, %cst_341 [1] : vector<8x8xf32> to vector<8xf32>
    %845 = vector.shape_cast %844 : vector<8xf32> to vector<8x1xf32>
    %846 = vector.broadcast %845 : vector<8x1xf32> to vector<8x8xf32>
    %847 = arith.divf %843, %846 : vector<8x8xf32>
    %cst_342 = arith.constant dense<0.000000e+00> : vector<8x16xf32>
    %848 = tpu.matmul %847, %835, %cst_342 {dimension_numbers = #tpu.dot_dimension_numbers<[1], [0], [0], [1], [0, 0, 1, 1], [], []>} : vector<8x8xf32>, vector<8x16xf32>, vector<8x16xf32> -> vector<8x16xf32>
    %c0_343 = arith.constant 0 : index
    %c16_344 = arith.constant 16 : index
    %849 = vector.load %arg8[%c0_343, %c16_344] : memref<16x32xf32, #tpu.memory_space<vmem>>, vector<8x16xf32>
    tpu.vector_store %arg8[%c0_343, %c16_344], %848 {strides = array<i32>} : memref<16x32xf32, #tpu.memory_space<vmem>>, vector<8x16xf32>,
    %850 = vector.extract_strided_slice %812 {offsets = [8, 0], sizes = [8, 16], strides = [1, 1]} : vector<16x32xf32> to vector<8x16xf32>
    %851 = vector.extract_strided_slice %815 {offsets = [8, 0], sizes = [8, 16], strides = [1, 1]} : vector<16x64xf32> to vector<8x16xf32>
    %852 = vector.extract_strided_slice %815 {offsets = [8, 32], sizes = [8, 16], strides = [1, 1]} : vector<16x64xf32> to vector<8x16xf32>
    %cst_345 = arith.constant dense<0.000000e+00> : vector<8x8xf32>
    %853 = tpu.matmul %850, %851, %cst_345 {dimension_numbers = #tpu.dot_dimension_numbers<[1], [1], [0], [0], [0, 0, 1, 0], [], []>} : vector<8x16xf32>, vector<8x16xf32>, vector<8x8xf32> -> vector<8x8xf32>
    %cst_346 = arith.constant 0.176776692 : f32
    %854 = vector.broadcast %cst_346 : f32 to vector<8x8xf32>
    %855 = arith.mulf %853, %854 : vector<8x8xf32>
    %cst_347 = arith.constant dense<0xFF800000> : vector<8xf32>
    %856 = vector.multi_reduction <maximumf>, %855, %cst_347 [1] : vector<8x8xf32> to vector<8xf32>
    %857 = vector.shape_cast %856 : vector<8xf32> to vector<8x1xf32>
    %858 = vector.broadcast %857 : vector<8x1xf32> to vector<8x8xf32>
    %859 = arith.subf %855, %858 : vector<8x8xf32>
    %860 = math.exp %859 : vector<8x8xf32>
    %cst_348 = arith.constant dense<0.000000e+00> : vector<8xf32>
    %861 = vector.multi_reduction <add>, %860, %cst_348 [1] : vector<8x8xf32> to vector<8xf32>
    %862 = vector.shape_cast %861 : vector<8xf32> to vector<8x1xf32>
    %863 = vector.broadcast %862 : vector<8x1xf32> to vector<8x8xf32>
    %864 = arith.divf %860, %863 : vector<8x8xf32>
    %cst_349 = arith.constant dense<0.000000e+00> : vector<8x16xf32>
    %865 = tpu.matmul %864, %852, %cst_349 {dimension_numbers = #tpu.dot_dimension_numbers<[1], [0], [0], [1], [0, 0, 1, 1], [], []>} : vector<8x8xf32>, vector<8x16xf32>, vector<8x16xf32> -> vector<8x16xf32>
    %c8_350 = arith.constant 8 : index
    %c0_351 = arith.constant 0 : index
    %866 = vector.load %arg8[%c8_350, %c0_351] : memref<16x32xf32, #tpu.memory_space<vmem>>, vector<8x16xf32>
    tpu.vector_store %arg8[%c8_350, %c0_351], %865 {strides = array<i32>} : memref<16x32xf32, #tpu.memory_space<vmem>>, vector<8x16xf32>,
    %867 = vector.extract_strided_slice %812 {offsets = [8, 16], sizes = [8, 16], strides = [1, 1]} : vector<16x32xf32> to vector<8x16xf32>
    %868 = vector.extract_strided_slice %815 {offsets = [8, 16], sizes = [8, 16], strides = [1, 1]} : vector<16x64xf32> to vector<8x16xf32>
    %869 = vector.extract_strided_slice %815 {offsets = [8, 48], sizes = [8, 16], strides = [1, 1]} : vector<16x64xf32> to vector<8x16xf32>
    %cst_352 = arith.constant dense<0.000000e+00> : vector<8x8xf32>
    %870 = tpu.matmul %867, %868, %cst_352 {dimension_numbers = #tpu.dot_dimension_numbers<[1], [1], [0], [0], [0, 0, 1, 0], [], []>} : vector<8x16xf32>, vector<8x16xf32>, vector<8x8xf32> -> vector<8x8xf32>
    %cst_353 = arith.constant 0.176776692 : f32
    %871 = vector.broadcast %cst_353 : f32 to vector<8x8xf32>
    %872 = arith.mulf %870, %871 : vector<8x8xf32>
    %cst_354 = arith.constant dense<0xFF800000> : vector<8xf32>
    %873 = vector.multi_reduction <maximumf>, %872, %cst_354 [1] : vector<8x8xf32> to vector<8xf32>
    %874 = vector.shape_cast %873 : vector<8xf32> to vector<8x1xf32>
    %875 = vector.broadcast %874 : vector<8x1xf32> to vector<8x8xf32>
    %876 = arith.subf %872, %875 : vector<8x8xf32>
    %877 = math.exp %876 : vector<8x8xf32>
    %cst_355 = arith.constant dense<0.000000e+00> : vector<8xf32>
    %878 = vector.multi_reduction <add>, %877, %cst_355 [1] : vector<8x8xf32> to vector<8xf32>
    %879 = vector.shape_cast %878 : vector<8xf32> to vector<8x1xf32>
    %880 = vector.broadcast %879 : vector<8x1xf32> to vector<8x8xf32>
    %881 = arith.divf %877, %880 : vector<8x8xf32>
    %cst_356 = arith.constant dense<0.000000e+00> : vector<8x16xf32>
    %882 = tpu.matmul %881, %869, %cst_356 {dimension_numbers = #tpu.dot_dimension_numbers<[1], [0], [0], [1], [0, 0, 1, 1], [], []>} : vector<8x8xf32>, vector<8x16xf32>, vector<8x16xf32> -> vector<8x16xf32>
    %c8_357 = arith.constant 8 : index
    %c16_358 = arith.constant 16 : index
    %883 = vector.load %arg8[%c8_357, %c16_358] : memref<16x32xf32, #tpu.memory_space<vmem>>, vector<8x16xf32>
    tpu.vector_store %arg8[%c8_357, %c16_358], %882 {strides = array<i32>} : memref<16x32xf32, #tpu.memory_space<vmem>>, vector<8x16xf32>,
    %c0_359 = arith.constant 0 : index
    %c0_360 = arith.constant 0 : index
    %884 = vector.load %arg8[%c0_359, %c0_360] : memref<16x32xf32, #tpu.memory_space<vmem>>, vector<16x32xf32>
    %885 = arith.addf %884, %670 : vector<16x32xf32>
    %c26 = arith.constant 26 : index
    %c0_361 = arith.constant 0 : index
    %886 = vector.load %arg4[%c26, %c0_361] : memref<32x128xf32, #tpu.memory_space<vmem>>, vector<1x32xf32>
    %c27 = arith.constant 27 : index
    %c0_362 = arith.constant 0 : index
    %887 = vector.load %arg4[%c27, %c0_362] : memref<32x128xf32, #tpu.memory_space<vmem>>, vector<1x32xf32>
    %cst_363 = arith.constant dense<0.000000e+00> : vector<16xf32>
    %888 = vector.multi_reduction <add>, %885, %cst_363 [1] : vector<16x32xf32> to vector<16xf32>
    %889 = vector.shape_cast %888 : vector<16xf32> to vector<16x1xf32>
    %cst_364 = arith.constant 3.200000e+01 : f32
    %890 = vector.broadcast %cst_364 : f32 to vector<16x1xf32>
    %891 = arith.divf %889, %890 : vector<16x1xf32>
    %892 = vector.broadcast %891 : vector<16x1xf32> to vector<16x32xf32>
    %893 = arith.subf %885, %892 : vector<16x32xf32>
    %894 = arith.mulf %893, %893 : vector<16x32xf32>
    %cst_365 = arith.constant dense<0.000000e+00> : vector<16xf32>
    %895 = vector.multi_reduction <add>, %894, %cst_365 [1] : vector<16x32xf32> to vector<16xf32>
    %896 = vector.shape_cast %895 : vector<16xf32> to vector<16x1xf32>
    %cst_366 = arith.constant 0.0322580636 : f32
    %897 = vector.broadcast %cst_366 : f32 to vector<16x1xf32>
    %898 = arith.mulf %896, %897 : vector<16x1xf32>
    %899 = math.sqrt %898 : vector<16x1xf32>
    %900 = vector.broadcast %891 : vector<16x1xf32> to vector<16x32xf32>
    %901 = arith.subf %885, %900 : vector<16x32xf32>
    %cst_367 = arith.constant 1.000000e-03 : f32
    %902 = vector.broadcast %cst_367 : f32 to vector<16x1xf32>
    %903 = arith.addf %899, %902 : vector<16x1xf32>
    %904 = vector.broadcast %903 : vector<16x1xf32> to vector<16x32xf32>
    %905 = arith.divf %901, %904 : vector<16x32xf32>
    %906 = vector.broadcast %886 : vector<1x32xf32> to vector<16x32xf32>
    %907 = arith.mulf %905, %906 : vector<16x32xf32>
    %908 = vector.broadcast %887 : vector<1x32xf32> to vector<16x32xf32>
    %909 = arith.addf %907, %908 : vector<16x32xf32>
    %910 = arith.truncf %909 : vector<16x32xf32> to vector<16x32xbf16>
    %c672 = arith.constant 672 : index
    %c0_368 = arith.constant 0 : index
    %911 = vector.load %arg3[%c672, %c0_368] : memref<768x128xbf16, #tpu.memory_space<vmem>>, vector<32x64xbf16>
    %cst_369 = arith.constant dense<0.000000e+00> : vector<16x64xf32>
    %912 = tpu.matmul %910, %911, %cst_369 {dimension_numbers = #tpu.dot_dimension_numbers<[1], [0], [0], [1], [0, 0, 1, 1], [], []>} : vector<16x32xbf16>, vector<32x64xbf16>, vector<16x64xf32> -> vector<16x64xf32>
    %c30 = arith.constant 30 : index
    %c0_370 = arith.constant 0 : index
    %913 = vector.load %arg4[%c30, %c0_370] : memref<32x128xf32, #tpu.memory_space<vmem>>, vector<1x64xf32>
    %914 = vector.broadcast %913 : vector<1x64xf32> to vector<16x64xf32>
    %915 = arith.addf %912, %914 : vector<16x64xf32>
    %cst_371 = arith.constant 0.000000e+00 : f32
    %916 = vector.broadcast %cst_371 : f32 to vector<16x64xf32>
    %917 = arith.maximumf %915, %916 : vector<16x64xf32>
    %918 = arith.truncf %917 : vector<16x64xf32> to vector<16x64xbf16>
    %c704 = arith.constant 704 : index
    %c0_372 = arith.constant 0 : index
    %919 = vector.load %arg3[%c704, %c0_372] : memref<768x128xbf16, #tpu.memory_space<vmem>>, vector<64x32xbf16>
    %cst_373 = arith.constant dense<0.000000e+00> : vector<16x32xf32>
    %920 = tpu.matmul %918, %919, %cst_373 {dimension_numbers = #tpu.dot_dimension_numbers<[1], [0], [0], [1], [0, 0, 1, 1], [], []>} : vector<16x64xbf16>, vector<64x32xbf16>, vector<16x32xf32> -> vector<16x32xf32>
    %c31 = arith.constant 31 : index
    %c0_374 = arith.constant 0 : index
    %921 = vector.load %arg4[%c31, %c0_374] : memref<32x128xf32, #tpu.memory_space<vmem>>, vector<1x32xf32>
    %922 = vector.broadcast %921 : vector<1x32xf32> to vector<16x32xf32>
    %923 = arith.addf %920, %922 : vector<16x32xf32>
    %924 = arith.addf %923, %909 : vector<16x32xf32>
    %c28 = arith.constant 28 : index
    %c0_375 = arith.constant 0 : index
    %925 = vector.load %arg4[%c28, %c0_375] : memref<32x128xf32, #tpu.memory_space<vmem>>, vector<1x32xf32>
    %c29 = arith.constant 29 : index
    %c0_376 = arith.constant 0 : index
    %926 = vector.load %arg4[%c29, %c0_376] : memref<32x128xf32, #tpu.memory_space<vmem>>, vector<1x32xf32>
    %cst_377 = arith.constant dense<0.000000e+00> : vector<16xf32>
    %927 = vector.multi_reduction <add>, %924, %cst_377 [1] : vector<16x32xf32> to vector<16xf32>
    %928 = vector.shape_cast %927 : vector<16xf32> to vector<16x1xf32>
    %cst_378 = arith.constant 3.200000e+01 : f32
    %929 = vector.broadcast %cst_378 : f32 to vector<16x1xf32>
    %930 = arith.divf %928, %929 : vector<16x1xf32>
    %931 = vector.broadcast %930 : vector<16x1xf32> to vector<16x32xf32>
    %932 = arith.subf %924, %931 : vector<16x32xf32>
    %933 = arith.mulf %932, %932 : vector<16x32xf32>
    %cst_379 = arith.constant dense<0.000000e+00> : vector<16xf32>
    %934 = vector.multi_reduction <add>, %933, %cst_379 [1] : vector<16x32xf32> to vector<16xf32>
    %935 = vector.shape_cast %934 : vector<16xf32> to vector<16x1xf32>
    %cst_380 = arith.constant 0.0322580636 : f32
    %936 = vector.broadcast %cst_380 : f32 to vector<16x1xf32>
    %937 = arith.mulf %935, %936 : vector<16x1xf32>
    %938 = math.sqrt %937 : vector<16x1xf32>
    %939 = vector.broadcast %930 : vector<16x1xf32> to vector<16x32xf32>
    %940 = arith.subf %924, %939 : vector<16x32xf32>
    %cst_381 = arith.constant 1.000000e-03 : f32
    %941 = vector.broadcast %cst_381 : f32 to vector<16x1xf32>
    %942 = arith.addf %938, %941 : vector<16x1xf32>
    %943 = vector.broadcast %942 : vector<16x1xf32> to vector<16x32xf32>
    %944 = arith.divf %940, %943 : vector<16x32xf32>
    %945 = vector.broadcast %925 : vector<1x32xf32> to vector<16x32xf32>
    %946 = arith.mulf %944, %945 : vector<16x32xf32>
    %947 = vector.broadcast %926 : vector<1x32xf32> to vector<16x32xf32>
    %948 = arith.addf %946, %947 : vector<16x32xf32>
    %c0_382 = arith.constant 0 : index
    %c0_383 = arith.constant 0 : index
    %949 = vector.load %arg5[%c0_382, %c0_383] : memref<16x32xf32, #tpu.memory_space<vmem>>, vector<16x32xf32>
    tpu.vector_store %arg5[%c0_382, %c0_383], %809 {strides = array<i32>} : memref<16x32xf32, #tpu.memory_space<vmem>>, vector<16x32xf32>,
    %c0_384 = arith.constant 0 : index
    %c0_385 = arith.constant 0 : index
    %950 = vector.load %arg6[%c0_384, %c0_385] : memref<16x32xf32, #tpu.memory_space<vmem>>, vector<16x32xf32>
    tpu.vector_store %arg6[%c0_384, %c0_385], %948 {strides = array<i32>} : memref<16x32xf32, #tpu.memory_space<vmem>>, vector<16x32xf32>,
    return
  }
}

</mosaic_0001>

<bundles_post_ra>
// kernel: tpu_custom_call.1
= control target key start
LH: loop header
LB: loop body
LE: loop exit
PB: predicated region body
PF: predicated region fallthrough
CT: control target
= control target key end

     0   :  { %12 = vsyncpa [#allocation5], 0  ;;  %s6265_s0 = inlined_call_operand.hbm [shape: f32[16,32], index: 0, kind: input, shape index: {}]   ;;  %s6266_s1 = inlined_call_operand.hbm [shape: f32[16,32], index: 1, kind: input, shape index: {}]   ;;  %s6267_s2 = inlined_call_operand.hbm [shape: f32[16,32], index: 2, kind: input, shape index: {}]   ;;  %s6268_s3 = inlined_call_operand.hbm [shape: bf16[768,128], index: 3, kind: input, shape index: {}]   ;;  %s6269_s4 = inlined_call_operand.hbm [shape: f32[32,128], index: 4, kind: input, shape index: {}]   ;;  %s6270_s5 = inlined_call_operand.hbm [shape: f32[16,32], index: 5, kind: output, shape index: {0}]   ;;  %s6271_s6 = inlined_call_operand.hbm [shape: f32[16,32], index: 6, kind: output, shape index: {1}]  }
   0x1   :  { %13 = vsyncpa [#allocation8], 0 }
   0x2   :  { %14 = vsyncpa [#allocation11], 0 }
   0x3   :  { %15 = vsyncpa [#allocation6], 0 }
   0x4   :  { %16 = vsyncpa [#allocation15], 0  ;;  %s34_s23 = sshll.u32 %s6266_s1, 4  ;;  %s5391_s24 = smov [#allocation7]   ;;  %s35_s23 = int_to_ptr.hbm [resolvable:$true] %s34_s23 }
   0x5   :  { %s36_s25 = sshll.u32 %s5391_s24, 4  ;;  %s60_s28 = sshll.u32 %s6268_s3, 4  ;;  %s37_s25 = int_to_ptr.vmem [resolvable:$true] %s36_s25  ;;  %s61_s28 = int_to_ptr.hbm [resolvable:$true] %s60_s28 }
   0x6   :  { %s5392_s29 = smov 128   ;;  %s5393_s30 = smov 8  }
   0x7   :  { %42 = dma.hbm_to_vmem [thread:$0]  %s35_s23, 256, %s37_s25, [#allocation8], %s5392_s29, %s5392_s29, %s5393_s30  }
   0x8   :  { %s5394_s7 = smov [#allocation10]   ;;  %s5395_s9 = smov 64  }
   0x9   :  { %s62_s8 = sshll.u32 %s5394_s7, 4  ;;  %s5396_s1 = smov 4   ;;  %s63_s8 = int_to_ptr.vmem [resolvable:$true] %s62_s8 }
   0xa   :  { %68 = dma.hbm_to_vmem [thread:$0]  %s61_s28, 6144, %s63_s8, [#allocation11], %s5395_s9, %s5395_s9, %s5396_s1  }
   0xb   :  { %s21_s12 = sshll.u32 %s6265_s0, 4  ;;  %s5397_s3 = smov [#allocation4]   ;;  %s22_s12 = int_to_ptr.hbm [resolvable:$true] %s21_s12 }
   0xc   :  { %s23_s13 = sshll.u32 %s5397_s3, 4  ;;  %s47_s16 = sshll.u32 %s6267_s2, 4  ;;  %s24_s13 = int_to_ptr.vmem [resolvable:$true] %s23_s13  ;;  %s48_s16 = int_to_ptr.hbm [resolvable:$true] %s47_s16 }
   0xd   :  { %29 = dma.hbm_to_vmem [thread:$0]  %s22_s12, 256, %s24_s13, [#allocation5], %s5392_s29, %s5392_s29, %s5393_s30  }
   0xe   :  { %s5398_s17 = smov [#allocation9]   ;;  %s73_s21 = sshll.u32 %s6269_s4, 4  ;;  %s74_s21 = int_to_ptr.hbm [resolvable:$true] %s73_s21 }
   0xf   :  { %s49_s18 = sshll.u32 %s5398_s17, 4  ;;  %s5399_s0 = smov [#allocation12]   ;;  %s50_s18 = int_to_ptr.vmem [resolvable:$true] %s49_s18 }
  0x10   :  { %55 = dma.hbm_to_vmem [thread:$0]  %s48_s16, 256, %s50_s18, [#allocation8], %s5392_s29, %s5392_s29, %s5393_s30  }
  0x11   :  { %s75_s22 = sshll.u32 %s5399_s0, 4  ;;  %s76_s22 = int_to_ptr.vmem [resolvable:$true] %s75_s22 }
  0x12   :  { %81 = dma.hbm_to_vmem [thread:$0]  %s74_s21, 512, %s76_s22, [#allocation11], %s5392_s29, %s5392_s29, %s5393_s30  }
  0x13   :  { %5381 = dma.done.wait [#allocation5], 256  }
  0x14   :  { %5382 = vsyncadd [#allocation5], 4294967040 }
  0x15   :  { %5383 = dma.done.wait [#allocation8], 512  }
  0x16   :  { %5384 = vsyncadd [#allocation8], 4294966784 }
  0x17   :  { %5385 = dma.done.wait [#allocation11], 6656  }
  0x18   :  { %5386 = vsyncadd [#allocation11], 4294960640  ;;  %v4881_v0 = vld [vmem:[#allocation10 + $0x8] sm:$0xff]  ;;  %v5472_v1 = vld [vmem:[#allocation9] sm:$0xff]  ;;  %vm130_vm0 = vcmask 261120   ;;  %s5400_s2 = smov 80  }
  0x19   :  { %v5474_v2 = vld [vmem:[#allocation9 + $0x8] sm:$0xff]  ;;  %v105_v3 = vld [vmem:[#allocation4] sm:$0xff]  ;;  %140 = vmatpush.bf16.msra.mxu0 %v4881_v0  ;;  %v4880_v5 = vld [vmem:[#allocation10] sm:$0xff]  ;;  %s5401_s4 = smov 96   ;;  %s5402_s23 = smov 112   ;;  %vm151_vm1 = vcmask 130048  }
  0x1a   :  { %v106_v4 = vld [vmem:[#allocation4 + $0x8] sm:$0xff]  ;;  %v5477_v6 = vadd.f32 %v105_v3, %v5472_v1  ;;  %vm177_vm2 = vcmask 64512   ;;  %v4883_v35 = vld [vmem:[#allocation10 + $0x68] sm:$0xff]  ;;  %v4882_v36 = vld [vmem:[#allocation10 + $0x60] sm:$0xff]  ;;  %s5403_s24 = smov 48   ;;  %s5404_s25 = smov 16  }
  0x1b   :  { %v5480_v7 = vadd.f32 %v106_v4, %v5474_v2  ;;  %v109_v50 = vld [vmem:[#allocation7] sm:$0xff]  ;;  %v110_v51 = vld [vmem:[#allocation7 + $0x8] sm:$0xff]  ;;  %vm312_vm15 = vcmask 261248   ;;  %s4539_s28 = sshll.u32 %s6270_s5, 4  ;;  %s5406_s7 = smov [#allocation13]   ;;  %s4540_s28 = int_to_ptr.hbm [resolvable:$true] %s4539_s28 }
  0x1c   :  { %v5518_v55 = vadd.f32 %v109_v50, %v5472_v1  ;;  %v5521_v56 = vadd.f32 %v110_v51, %v5474_v2  ;;  %s4537_s8 = sshll.u32 %s5406_s7, 4  ;;  %s5407_s5 = smov [#allocation14]   ;;  %s4538_s8 = int_to_ptr.vmem [resolvable:$true] %s4537_s8 }
  0x1d   :  { %v117_v8 = vpack.c.bf16 %v5480_v7, %v5477_v6  ;;  %141 = vmatpush.bf16.msra.mxu0 %v4880_v5  ;;  %s4552_s11 = sshll.u32 %s6271_s6, 4  ;;  %s4553_s11 = int_to_ptr.hbm [resolvable:$true] %s4552_s11 }
  0x1e   :  { %v5527_v58 = vpack.c.bf16 %v5521_v56, %v5518_v55 }
  0x20   :  { %4580 = vmatmul.msk.bf16.vlgmr.msra.gmra.mxu0 %vm130_vm0, %v117_v8 }
  0x9d   :  { %v5485_v9 = vpop.f32.mrf.mxu0 }
  0x9e   :  { %231 = vrot.lane.b32.xlu1 %v5485_v9, %s5400_s2  ;;  %149 = vrot.lane.b32.xlu0 %v5485_v9, %s5401_s4 }
  0xa5   :  { %v5491_v10 = vpop.f32.mrf.mxu0 }
  0xa6   :  { %229 = vrot.lane.b32.xlu1 %v5485_v9, %s5402_s23  ;;  %315 = vrot.lane.b32.xlu0 %v5491_v10, %s5401_s4 }
  0xae   :  { %366 = vrot.lane.b32.xlu0 %v5491_v10, %s5395_s9 }
 0x110   :  { %v232_v11 = vpop.permute.xlu1 %231  ;;  %v150_v12 = vpop.permute.xlu0 %149 }
 0x111   :  { %4581 = vmatpush.xpose.msk.msra.mxu1 %vm151_vm1, %v150_v12  ;;  %4584 = vmatpush.xpose.msk.msra.mxu3 %vm151_vm1, %v232_v11 }
 0x114   :  { %4582 = vmatmul.msk.f32.vlgmr.msra.gmra.mxu1 %vm151_vm1, %v5485_v9 }
 0x118   :  { %v230_v13 = vpop.permute.xlu1 %229  ;;  %v316_v14 = vpop.permute.xlu0 %315 }
 0x119   :  { %4585 = vmatmul.msk.f32.vlgmr.msra.gmra.mxu3 %vm151_vm1, %v230_v13  ;;  %4587 = vmatpush.xpose.msk.msrb.mxu1 %vm151_vm1, %v316_v14 }
 0x11c   :  { %4588 = vmatmul.msk.f32.vlgmr.msrb.gmra.mxu1 %vm151_vm1, %v5491_v10 }
 0x120   :  { %v367_v15 = vpop.permute.xlu0 %366 }
 0x121   :  { %387 = vmatpush.msrb.mxu3 %v367_v15 }
 0x123   :  { %598 = vmatpush.bf16.msra.mxu3 %v4883_v35 }
 0x127   :  { %599 = vmatpush.bf16.msra.mxu3 %v4882_v36 }
 0x191   :  { %v173_v16 = vpop.f32.mrf.mxu1 }
 0x192   :  { %v176_v17 = vmul.f32 0.17677669, %v173_v16 }
 0x194   :  { %v178_v18 = vsel %vm177_vm2, %v176_v17, -inf }
 0x195   :  { %179 = vmax.xlane.f32.xlu1 %v178_v18 }
 0x199   :  { %v338_v19 = vpop.f32.mrf.mxu1 }
 0x19a   :  { %v341_v20 = vmul.f32 0.17677669, %v338_v19 }
 0x19c   :  { %v342_v21 = vsel %vm177_vm2, %v341_v20, -inf  ;;  %v254_v32 = vpop.f32.mrf.mxu3 }
 0x19d   :  { %343 = vmax.xlane.f32.xlu2 %v342_v21  ;;  %v257_v33 = vmul.f32 0.17677669, %v254_v32 }
 0x19f   :  { %v258_v34 = vsel %vm177_vm2, %v257_v33, -inf }
 0x1ae   :  { %395 = vrot.lane.b32.xlu1 %v5491_v10, %s5400_s2 }
 0x208   :  { %v180_v22 = vpop.xlane.xlu1 %179 }
 0x209   :  { %v181_v23 = vsub.f32 %v176_v17, %v180_v22 }
 0x20b   :  { %v182_v24 = vmul.f32 1.442695, %v181_v23 }
 0x20d   :  { %4987 = vpow2.f32 %v182_v24 }
 0x210   :  { %v344_v25 = vpop.xlane.xlu2 %343 }
 0x211   :  { %v345_v26 = vsub.f32 %v341_v20, %v344_v25 }
 0x213   :  { %v5511_v27 = vpop.eup %4987  ;;  %v346_v28 = vmul.f32 1.442695, %v345_v26 }
 0x214   :  { %v184_v29 = vsel %vm177_vm2, %v5511_v27, 0.0 }
 0x215   :  { %4989 = vpow2.f32 %v346_v28  ;;  %185 = vadd.xlane.f32.xlu0 %v184_v29 }
 0x21b   :  { %v4990_v30 = vpop.eup %4989 }
 0x21c   :  { %v348_v31 = vsel %vm177_vm2, %v4990_v30, 0.0 }
 0x21d   :  { %349 = vadd.xlane.f32.xlu2 %v348_v31 }
 0x220   :  { %v396_v23 = vpop.permute.xlu1 %395 }
 0x225   :  { %259 = vmax.xlane.f32.xlu2 %v258_v34 }
 0x288   :  { %v186_v59 = vpop.xlane.xlu0 %185 }
 0x289   :  { %v198_v1 = vand.u32 2147483648, %v186_v59  ;;  %vm192_vm8 = vweird.f32 %v186_v59  ;;  %v196_v3 = vand.u32 2147483647, %v186_v59 }
 0x28b   :  { %v199_v5 = vor.u32 1.1754944e-38, %v198_v1  ;;  %vm197_vm10 = vcmp.eq.f32.partialorder %v196_v3, 8.507059e+37  ;;  %v5405_v3 = vmov 32.0  }
 0x290   :  { %v350_v37 = vpop.xlane.xlu2 %349 }
 0x291   :  { %4991 = vrcp.f32 %v350_v37  ;;  %v362_v43 = vand.u32 2147483648, %v350_v37  ;;  %v360_v46 = vand.u32 2147483647, %v350_v37  ;;  %vm356_vm4 = vweird.f32 %v350_v37 }
 0x293   :  { %v363_v48 = vor.u32 1.1754944e-38, %v362_v43  ;;  %vm361_vm6 = vcmp.eq.f32.partialorder %v360_v46, 8.507059e+37 }
 0x297   :  { %v4992_v38 = vpop.eup %4991 }
 0x298   :  { %v352_v39 = vmul.f32 %v4992_v38, %v350_v37  ;;  %v260_v40 = vpop.xlane.xlu2 %259  ;;  %vm357_vm3 = vweird.f32 %v4992_v38 }
 0x299   :  { %v261_v41 = vsub.f32 %v257_v33, %v260_v40  ;;  %vm358_vm5 = vmor %vm356_vm4, %vm357_vm3 }
 0x29a   :  { %v353_v42 = vsub.f32 1.0, %v352_v39 }
 0x29b   :  { %v262_v44 = vmul.f32 1.442695, %v261_v41 }
 0x29c   :  { %v354_v45 = vmul.f32 %v4992_v38, %v353_v42 }
 0x29d   :  { %4993 = vpow2.f32 %v262_v44 }
 0x29e   :  { %v355_v47 = vadd.f32 %v4992_v38, %v354_v45  ;;  %4995 = vrcp.f32 %v186_v59 }
 0x2a0   :  { %v359_v49 = vsel %vm358_vm5, %v4992_v38, %v355_v47 }
 0x2a1   :  { %v364_v52 = vsel %vm361_vm6, %v363_v48, %v359_v49 }
 0x2a2   :  { %v365_v53 = vmul.f32 %v4990_v30, %v364_v52 }
 0x2a3   :  { %v4994_v54 = vpop.eup %4993 }
 0x2a4   :  { %4589 = vmatmul.msk.f32.vlgmr.msrb.gmra.mxu3 %vm177_vm2, %v365_v53  ;;  %v264_v57 = vsel %vm177_vm2, %v4994_v54, 0.0  ;;  %v4996_v60 = vpop.eup %4995 }
 0x2a5   :  { %265 = vadd.xlane.f32.xlu2 %v264_v57  ;;  %v188_v61 = vmul.f32 %v4996_v60, %v186_v59  ;;  %vm193_vm7 = vweird.f32 %v4996_v60 }
 0x2a6   :  { %vm194_vm9 = vmor %vm192_vm8, %vm193_vm7 }
 0x2a7   :  { %v189_v62 = vsub.f32 1.0, %v188_v61 }
 0x2a9   :  { %v190_v63 = vmul.f32 %v4996_v60, %v189_v62 }
 0x2ab   :  { %v191_v0 = vadd.f32 %v4996_v60, %v190_v63 }
 0x2ac   :  { %4601 = vmatmul.msk.bf16.vlgmr.msra.gmra.mxu3 %vm130_vm0, %v5527_v58 }
 0x2ad   :  { %v195_v4 = vsel %vm194_vm9, %v4996_v60, %v191_v0 }
 0x2ae   :  { %v200_v8 = vsel %vm197_vm10, %v199_v5, %v195_v4 }
 0x2af   :  { %v201_v13 = vmul.f32 %v5511_v27, %v200_v8 }
 0x2bd   :  { %202 = vrot.lane.b32.xlu2 %v5485_v9, %s5395_s9 }
 0x2c5   :  { %282 = vrot.lane.b32.xlu2 %v5485_v9, %s5403_s24 }
 0x2cd   :  { %393 = vrot.lane.b32.xlu2 %v5491_v10, %s5402_s23 }
 0x318   :  { %v266_v2 = vpop.xlane.xlu2 %265 }
 0x319   :  { %4997 = vrcp.f32 %v266_v2  ;;  %v278_v15 = vand.u32 2147483648, %v266_v2  ;;  %v276_v17 = vand.u32 2147483647, %v266_v2  ;;  %vm272_vm12 = vweird.f32 %v266_v2 }
 0x31b   :  { %v279_v19 = vor.u32 1.1754944e-38, %v278_v15  ;;  %vm277_vm14 = vcmp.eq.f32.partialorder %v276_v17, 8.507059e+37 }
 0x31f   :  { %v4998_v9 = vpop.eup %4997 }
 0x320   :  { %v268_v11 = vmul.f32 %v4998_v9, %v266_v2  ;;  %v203_v12 = vpop.permute.xlu2 %202  ;;  %vm273_vm11 = vweird.f32 %v4998_v9 }
 0x321   :  { %223 = vmatpush.msra.mxu2 %v203_v12  ;;  %vm274_vm13 = vmor %vm272_vm12, %vm273_vm11 }
 0x322   :  { %v269_v14 = vsub.f32 1.0, %v268_v11  ;;  %4583 = vmatmul.msk.f32.vlgmr.msra.gmra.mxu2 %vm177_vm2, %v201_v13 }
 0x324   :  { %v270_v16 = vmul.f32 %v4998_v9, %v269_v14 }
 0x326   :  { %v271_v18 = vadd.f32 %v4998_v9, %v270_v16 }
 0x327   :  { %v389_v20 = vpop.f32.mrf.mxu3 }
 0x328   :  { %392 = vst.msk [vmem:[#allocation2 + $0x8] sm:$0xff] %vm151_vm1, %v389_v20  ;;  %v283_v21 = vpop.permute.xlu2 %282  ;;  %v275_v22 = vsel %vm274_vm13, %v4998_v9, %v271_v18 }
 0x329   :  { %303 = vmatpush.msrb.mxu2 %v283_v21  ;;  %v280_v24 = vsel %vm277_vm14, %v279_v19, %v275_v22 }
 0x32a   :  { %v281_v25 = vmul.f32 %v4994_v54, %v280_v24 }
 0x32b   :  { %4590 = vmatpush.xpose.msk.msra.mxu2 %vm151_vm1, %v396_v23 }
 0x32c   :  { %4586 = vmatmul.msk.f32.vlgmr.msrb.gmra.mxu2 %vm177_vm2, %v281_v25 }
 0x32f   :  { %v5542_v26 = vpop.f32.mrf.mxu3 }
 0x330   :  { %607 = vrot.lane.b32.xlu0 %v5542_v26, %s5401_s4  ;;  %v394_v27 = vpop.permute.xlu2 %393 }
 0x334   :  { %4591 = vmatmul.msk.f32.vlgmr.msra.gmra.mxu2 %vm151_vm1, %v394_v27 }
 0x337   :  { %v5555_v34 = vpop.f32.mrf.mxu3 }
 0x3a2   :  { %v608_v28 = vpop.permute.xlu0 %607 }
 0x3a3   :  { %4602 = vmatpush.xpose.msk.msrb.mxu3 %vm151_vm1, %v608_v28 }
 0x3a5   :  { %v225_v29 = vpop.f32.mrf.mxu2 }
 0x3a6   :  { %228 = vst.msk [vmem:[#allocation2] sm:$0xff] %vm151_vm1, %v225_v29  ;;  %4603 = vmatmul.msk.f32.vlgmr.msrb.gmra.mxu3 %vm151_vm1, %v5542_v26 }
 0x3af   :  { %v305_v30 = vpop.f32.mrf.mxu2 }
 0x3b7   :  { %v418_v31 = vpop.f32.mrf.mxu2 }
 0x3b8   :  { %v421_v32 = vmul.f32 0.17677669, %v418_v31 }
 0x3ba   :  { %v422_v33 = vsel %vm177_vm2, %v421_v32, -inf }
 0x3bb   :  { %423 = vmax.xlane.f32.xlu2 %v422_v33 }
 0x3d3   :  { %446 = vrot.lane.b32.xlu2 %v5491_v10, %s5403_s24 }
 0x3db   :  { %309 = vrot.lane.b32.xlu2 %v305_v30, %s5404_s25 }
 0x429   :  { %v630_v35 = vpop.f32.mrf.mxu3 }
 0x42a   :  { %v633_v36 = vmul.f32 0.17677669, %v630_v35 }
 0x42c   :  { %v634_v37 = vsel %vm177_vm2, %v633_v36, -inf }
 0x42d   :  { %635 = vmax.xlane.f32.xlu0 %v634_v37 }
 0x42e   :  { %v424_v38 = vpop.xlane.xlu2 %423 }
 0x42f   :  { %v425_v39 = vsub.f32 %v421_v32, %v424_v38 }
 0x431   :  { %v426_v40 = vmul.f32 1.442695, %v425_v39 }
 0x433   :  { %4999 = vpow2.f32 %v426_v40 }
 0x436   :  { %v447_v41 = vpop.permute.xlu2 %446 }
 0x437   :  { %467 = vmatpush.msra.mxu1 %v447_v41 }
 0x439   :  { %v5000_v42 = vpop.eup %4999 }
 0x43a   :  { %v428_v43 = vsel %vm177_vm2, %v5000_v42, 0.0 }
 0x43b   :  { %429 = vadd.xlane.f32.xlu1 %v428_v43 }
 0x43e   :  { %v310_v10 = vpop.permute.xlu2 %309 }
 0x43f   :  { %313 = vst.msk [vmem:[#allocation2] sm:$0xff] %vm312_vm15, %v310_v10 }
 0x441   :  { %658 = vrot.lane.b32.xlu0 %v5542_v26, %s5395_s9 }
 0x446   :  { %v477_v44 = vld [vmem:[#allocation2] sm:$0xff] }
 0x447   :  { %v479_v45 = vadd.f32 %v477_v44, %v5477_v6 }
 0x449   :  { %v483_v46 = vsel %vm130_vm0, %v479_v45, 0.0 }
 0x46b   :  { %484 = vadd.xlane.f32.xlu0 %v483_v46 }
 0x4a0   :  { %v636_v47 = vpop.xlane.xlu0 %635 }
 0x4a1   :  { %v637_v48 = vsub.f32 %v633_v36, %v636_v47 }
 0x4a3   :  { %v638_v49 = vmul.f32 1.442695, %v637_v48 }
 0x4a5   :  { %5001 = vpow2.f32 %v638_v49 }
 0x4ab   :  { %v5002_v50 = vpop.eup %5001 }
 0x4ac   :  { %v640_v51 = vsel %vm177_vm2, %v5002_v50, 0.0 }
 0x4ad   :  { %641 = vadd.xlane.f32.xlu1 %v640_v51 }
 0x4ae   :  { %v430_v52 = vpop.xlane.xlu1 %429 }
 0x4af   :  { %5003 = vrcp.f32 %v430_v52  ;;  %v442_v60 = vand.u32 2147483648, %v430_v52  ;;  %v440_v61 = vand.u32 2147483647, %v430_v52  ;;  %vm436_vm4 = vweird.f32 %v430_v52 }
 0x4b0   :  { %5005 = vrcp.f32 %v5405_v3 }
 0x4b1   :  { %v443_v63 = vor.u32 1.1754944e-38, %v442_v60  ;;  %vm441_vm6 = vcmp.eq.f32.partialorder %v440_v61, 8.507059e+37 }
 0x4b3   :  { %v659_v53 = vpop.permute.xlu0 %658 }
 0x4b4   :  { %679 = vmatpush.msrb.mxu2 %v659_v53 }
 0x4b5   :  { %v5004_v54 = vpop.eup %5003 }
 0x4b6   :  { %v432_v57 = vmul.f32 %v5004_v54, %v430_v52  ;;  %vm437_vm3 = vweird.f32 %v5004_v54  ;;  %v5006_v4 = vpop.eup %5005 }
 0x4b7   :  { %vm438_vm5 = vmor %vm436_vm4, %vm437_vm3  ;;  %v490_v5 = vmul.f32 32.0, %v5006_v4  ;;  %vm494_vm7 = vweird.f32 %v5006_v4 }
 0x4b8   :  { %v433_v59 = vsub.f32 1.0, %v432_v57 }
 0x4b9   :  { %v491_v8 = vsub.f32 1.0, %v490_v5 }
 0x4ba   :  { %v434_v6 = vmul.f32 %v5004_v54, %v433_v59 }
 0x4bb   :  { %v492_v9 = vmul.f32 %v5006_v4, %v491_v8 }
 0x4bc   :  { %v435_v62 = vadd.f32 %v5004_v54, %v434_v6 }
 0x4bd   :  { %v493_v11 = vadd.f32 %v5006_v4, %v492_v9 }
 0x4be   :  { %v439_v0 = vsel %vm438_vm5, %v5004_v54, %v435_v62 }
 0x4bf   :  { %v444_v1 = vsel %vm441_vm6, %v443_v63, %v439_v0  ;;  %v5568_v12 = vsel %vm494_vm7, %v5006_v4, %v493_v11  ;;  %v4885_v11 = vld [vmem:[#allocation10 + $0x18] sm:$0xff] }
 0x4c0   :  { %v445_v2 = vmul.f32 %v5000_v42, %v444_v1 }
 0x4c2   :  { %4592 = vmatmul.msk.f32.vlgmr.msra.gmra.mxu1 %vm177_vm2, %v445_v2 }
 0x4c6   :  { %770 = vrot.lane.b32.xlu1 %v5555_v34, %s5401_s4 }
 0x4de   :  { %v485_v13 = vpop.xlane.xlu0 %484 }
 0x4df   :  { %v496_v14 = vmul.f32 %v5568_v12, %v485_v13 }
 0x4e1   :  { %v5571_v15 = vsub.f32 %v479_v45, %v496_v14 }
 0x4e3   :  { %v500_v16 = vmul.f32 %v5571_v15, %v5571_v15 }
 0x4e5   :  { %v502_v17 = vsel %vm130_vm0, %v500_v16, 0.0  ;;  %v4884_v16 = vld [vmem:[#allocation10 + $0x10] sm:$0xff] }
 0x4e6   :  { %503 = vadd.xlane.f32.xlu0 %v502_v17 }
 0x520   :  { %v642_v18 = vpop.xlane.xlu1 %641 }
 0x521   :  { %5007 = vrcp.f32 %v642_v18  ;;  %v654_v22 = vand.u32 2147483648, %v642_v18  ;;  %v652_v24 = vand.u32 2147483647, %v642_v18  ;;  %vm648_vm9 = vweird.f32 %v642_v18 }
 0x523   :  { %v655_v27 = vor.u32 1.1754944e-38, %v654_v22  ;;  %vm653_vm11 = vcmp.eq.f32.partialorder %v652_v24, 8.507059e+37 }
 0x527   :  { %v5008_v19 = vpop.eup %5007 }
 0x528   :  { %v644_v20 = vmul.f32 %v5008_v19, %v642_v18  ;;  %vm649_vm8 = vweird.f32 %v5008_v19 }
 0x529   :  { %vm650_vm10 = vmor %vm648_vm9, %vm649_vm8 }
 0x52a   :  { %v645_v21 = vsub.f32 1.0, %v644_v20 }
 0x52c   :  { %v646_v23 = vmul.f32 %v5008_v19, %v645_v21 }
 0x52e   :  { %v647_v25 = vadd.f32 %v5008_v19, %v646_v23 }
 0x530   :  { %v651_v28 = vsel %vm650_vm10, %v5008_v19, %v647_v25 }
 0x531   :  { %v656_v29 = vsel %vm653_vm11, %v655_v27, %v651_v28 }
 0x532   :  { %v657_v30 = vmul.f32 %v5002_v50, %v656_v29 }
 0x534   :  { %4604 = vmatmul.msk.f32.vlgmr.msrb.gmra.mxu2 %vm177_vm2, %v657_v30 }
 0x538   :  { %v771_v31 = vpop.permute.xlu1 %770 }
 0x539   :  { %4608 = vmatpush.xpose.msk.msra.mxu2 %vm151_vm1, %v771_v31 }
 0x53c   :  { %4609 = vmatmul.msk.f32.vlgmr.msra.gmra.mxu2 %vm151_vm1, %v5555_v34 }
 0x53d   :  { %1046 = vmatpush.bf16.msrb.mxu2 %v4885_v11 }
 0x53f   :  { %v469_v32 = vpop.f32.mrf.mxu1 }
 0x540   :  { %473 = vrot.lane.b32.xlu2 %v469_v32, %s5404_s25 }
 0x541   :  { %1047 = vmatpush.bf16.msrb.mxu2 %v4884_v16 }
 0x559   :  { %v504_v52 = vpop.xlane.xlu0 %503 }
 0x55a   :  { %v508_v53 = vmul.f32 0.032258064, %v504_v52 }
 0x55c   :  { %vm517_vm12 = vcmp.eq.f32.partialorder %v508_v53, inf  ;;  %v520_v0 = vand.u32 2147483648, %v508_v53  ;;  %vm519_vm13 = vcmp.eq.f32.partialorder %v508_v53, 0.0 }
 0x59a   :  { %v474_v33 = vpop.permute.xlu2 %473 }
 0x59b   :  { %476 = vst.msk [vmem:[#allocation2 + $0x8] sm:$0xff] %vm312_vm15, %v474_v33 }
 0x5a2   :  { %v478_v35 = vld [vmem:[#allocation2 + $0x8] sm:$0xff] }
 0x5a3   :  { %v480_v36 = vadd.f32 %v478_v35, %v5480_v7 }
 0x5a5   :  { %v486_v37 = vsel %vm130_vm0, %v480_v36, 0.0 }
 0x5a6   :  { %487 = vadd.xlane.f32.xlu2 %v486_v37 }
 0x5b7   :  { %v681_v38 = vpop.f32.mrf.mxu2 }
 0x5b8   :  { %684 = vst.msk [vmem:[#allocation3] sm:$0xff] %vm151_vm1, %v681_v38 }
 0x5bf   :  { %v793_v39 = vpop.f32.mrf.mxu2 }
 0x5c0   :  { %v796_v40 = vmul.f32 0.17677669, %v793_v39 }
 0x5c2   :  { %v797_v41 = vsel %vm177_vm2, %v796_v40, -inf }
 0x5c3   :  { %798 = vmax.xlane.f32.xlu1 %v797_v41 }
 0x5dc   :  { %687 = vrot.lane.b32.xlu1 %v5542_v26, %s5400_s2 }
 0x5e4   :  { %850 = vrot.lane.b32.xlu1 %v5555_v34, %s5400_s2 }
 0x619   :  { %v488_v42 = vpop.xlane.xlu2 %487 }
 0x61a   :  { %v497_v7 = vmul.f32 %v5568_v12, %v488_v42 }
 0x61c   :  { %v5591_v43 = vsub.f32 %v480_v36, %v497_v7 }
 0x61e   :  { %v501_v10 = vmul.f32 %v5591_v43, %v5591_v43 }
 0x620   :  { %v505_v44 = vsel %vm130_vm0, %v501_v10, 0.0 }
 0x621   :  { %506 = vadd.xlane.f32.xlu2 %v505_v44  ;;  %v4955_v44 = vld [vmem:[#allocation12] ss:$0 sm:$0xff] }
 0x636   :  { %v799_v45 = vpop.xlane.xlu1 %798 }
 0x637   :  { %v800_v46 = vsub.f32 %v796_v40, %v799_v45 }
 0x639   :  { %v801_v47 = vmul.f32 1.442695, %v800_v46  ;;  %685 = vrot.lane.b32.xlu2 %v5542_v26, %s5402_s23 }
 0x63b   :  { %5009 = vpow2.f32 %v801_v47 }
 0x63c   :  { %5011 = vrsqrt.f32 %v508_v53 }
 0x641   :  { %v5598_v48 = vpop.eup %5009 }
 0x642   :  { %v803_v49 = vsel %vm177_vm2, %v5598_v48, 0.0  ;;  %v5012_v54 = vpop.eup %5011 }
 0x643   :  { %804 = vadd.xlane.f32.xlu0 %v803_v49  ;;  %v511_v57 = vmul.f32 %v5012_v54, %v508_v53 }
 0x645   :  { %v512_v59 = vmul.f32 %v5012_v54, %v511_v57 }
 0x647   :  { %v513_v60 = vmul.f32 0.5, %v512_v59 }
 0x649   :  { %v514_v6 = vsub.f32 1.5, %v513_v60 }
 0x64b   :  { %v515_v61 = vmul.f32 %v5012_v54, %v514_v6  ;;  %v4956_v54 = vld [vmem:[#allocation12 + $0x1] ss:$0 sm:$0xff] }
 0x64d   :  { %v516_v62 = vmul.f32 %v515_v61, %v508_v53 }
 0x64e   :  { %v688_v50 = vpop.permute.xlu1 %687 }
 0x64f   :  { %4605 = vmatpush.xpose.msk.msrb.mxu1 %vm151_vm1, %v688_v50  ;;  %v518_v63 = vsel %vm517_vm12, %v508_v53, %v516_v62 }
 0x650   :  { %v521_v3 = vsel %vm519_vm13, %v520_v0, %v518_v63 }
 0x651   :  { %v534_v4 = vadd.f32 0.001, %v521_v3  ;;  %v4887_v3 = vld [vmem:[#allocation10 + $0x28] sm:$0xff] }
 0x653   :  { %v547_v30 = vand.u32 2147483648, %v534_v4  ;;  %vm541_vm5 = vweird.f32 %v534_v4  ;;  %v545_v32 = vand.u32 2147483647, %v534_v4 }
 0x655   :  { %v548_v37 = vor.u32 1.1754944e-38, %v547_v30  ;;  %vm546_vm7 = vcmp.eq.f32.partialorder %v545_v32, 8.507059e+37 }
 0x656   :  { %v851_v51 = vpop.permute.xlu1 %850 }
 0x657   :  { %4611 = vmatpush.xpose.msk.msra.mxu3 %vm151_vm1, %v851_v51  ;;  %821 = vrot.lane.b32.xlu0 %v5555_v34, %s5395_s9 }
 0x65f   :  { %848 = vrot.lane.b32.xlu0 %v5555_v34, %s5402_s23 }
 0x694   :  { %v507_v1 = vpop.xlane.xlu2 %506 }
 0x695   :  { %v509_v2 = vmul.f32 0.032258064, %v507_v1 }
 0x697   :  { %5013 = vrsqrt.f32 %v509_v2  ;;  %vm529_vm14 = vcmp.eq.f32.partialorder %v509_v2, inf  ;;  %v532_v22 = vand.u32 2147483648, %v509_v2  ;;  %vm531_vm3 = vcmp.eq.f32.partialorder %v509_v2, 0.0 }
 0x698   :  { %5015 = vrcp.f32 %v534_v4 }
 0x69c   :  { %v686_v5 = vpop.permute.xlu2 %685 }
 0x69d   :  { %v5014_v8 = vpop.eup %5013  ;;  %4606 = vmatmul.msk.f32.vlgmr.msrb.gmra.mxu1 %vm151_vm1, %v686_v5  ;;  %v4886_v5 = vld [vmem:[#allocation10 + $0x20] sm:$0xff] }
 0x69e   :  { %v523_v9 = vmul.f32 %v5014_v8, %v509_v2  ;;  %v5016_v17 = vpop.eup %5015 }
 0x69f   :  { %v537_v20 = vmul.f32 %v5016_v17, %v534_v4  ;;  %vm542_vm4 = vweird.f32 %v5016_v17 }
 0x6a0   :  { %v524_v13 = vmul.f32 %v5014_v8, %v523_v9  ;;  %vm543_vm6 = vmor %vm541_vm5, %vm542_vm4 }
 0x6a1   :  { %v538_v24 = vsub.f32 1.0, %v537_v20 }
 0x6a2   :  { %v525_v14 = vmul.f32 0.5, %v524_v13 }
 0x6a3   :  { %v539_v28 = vmul.f32 %v5016_v17, %v538_v24 }
 0x6a4   :  { %v526_v18 = vsub.f32 1.5, %v525_v14 }
 0x6a5   :  { %v540_v29 = vadd.f32 %v5016_v17, %v539_v28 }
 0x6a6   :  { %v527_v19 = vmul.f32 %v5014_v8, %v526_v18 }
 0x6a7   :  { %v544_v36 = vsel %vm543_vm6, %v5016_v17, %v540_v29 }
 0x6a8   :  { %v528_v21 = vmul.f32 %v527_v19, %v509_v2  ;;  %v549_v39 = vsel %vm546_vm7, %v548_v37, %v544_v36 }
 0x6a9   :  { %v550_v7 = vmul.f32 %v549_v39, %v5571_v15 }
 0x6aa   :  { %v530_v23 = vsel %vm529_vm14, %v509_v2, %v528_v21 }
 0x6ab   :  { %v533_v25 = vsel %vm531_vm3, %v532_v22, %v530_v23  ;;  %v567_v53 = vmul.f32 %v4955_v44, %v550_v7 }
 0x6ac   :  { %v535_v27 = vadd.f32 0.001, %v533_v25 }
 0x6ad   :  { %v5611_v61 = vadd.f32 %v4956_v54, %v567_v53 }
 0x6ae   :  { %5017 = vrcp.f32 %v535_v27  ;;  %v562_v40 = vand.u32 2147483648, %v535_v27  ;;  %v560_v42 = vand.u32 2147483647, %v535_v27  ;;  %vm556_vm9 = vweird.f32 %v535_v27 }
 0x6b0   :  { %v563_v46 = vor.u32 1.1754944e-38, %v562_v40  ;;  %vm561_vm11 = vcmp.eq.f32.partialorder %v560_v42, 8.507059e+37 }
 0x6b4   :  { %v5018_v31 = vpop.eup %5017 }
 0x6b5   :  { %v552_v33 = vmul.f32 %v5018_v31, %v535_v27  ;;  %vm557_vm8 = vweird.f32 %v5018_v31 }
 0x6b6   :  { %v805_v35 = vpop.xlane.xlu0 %804  ;;  %vm558_vm10 = vmor %vm556_vm9, %vm557_vm8 }
 0x6b7   :  { %5019 = vrcp.f32 %v805_v35  ;;  %v553_v38 = vsub.f32 1.0, %v552_v33  ;;  %v817_v57 = vand.u32 2147483648, %v805_v35  ;;  %v815_v60 = vand.u32 2147483647, %v805_v35 }
 0x6b8   :  { %vm811_vm13 = vweird.f32 %v805_v35 }
 0x6b9   :  { %v554_v41 = vmul.f32 %v5018_v31, %v553_v38  ;;  %v818_v63 = vor.u32 1.1754944e-38, %v817_v57  ;;  %vm816_vm3 = vcmp.eq.f32.partialorder %v815_v60, 8.507059e+37 }
 0x6bb   :  { %v555_v10 = vadd.f32 %v5018_v31, %v554_v41 }
 0x6bd   :  { %v5020_v45 = vpop.eup %5019  ;;  %v559_v49 = vsel %vm558_vm10, %v5018_v31, %v555_v10 }
 0x6be   :  { %v807_v47 = vmul.f32 %v5020_v45, %v805_v35  ;;  %v564_v50 = vsel %vm561_vm11, %v563_v46, %v559_v49  ;;  %vm812_vm12 = vweird.f32 %v5020_v45 }
 0x6bf   :  { %v565_v52 = vmul.f32 %v564_v50, %v5591_v43  ;;  %vm813_vm14 = vmor %vm811_vm13, %vm812_vm12 }
 0x6c0   :  { %v808_v51 = vsub.f32 1.0, %v807_v47 }
 0x6c1   :  { %v568_v15 = vmul.f32 %v4955_v44, %v565_v52 }
 0x6c2   :  { %v809_v59 = vmul.f32 %v5020_v45, %v808_v51 }
 0x6c3   :  { %v5613_v62 = vadd.f32 %v4956_v54, %v568_v15  ;;  %v4945_v54 = vpack.i.bf16 %v5555_v34, %v5542_v26 }
 0x6c4   :  { %v810_v6 = vadd.f32 %v5020_v45, %v809_v59 }
 0x6c5   :  { %v1020_v43 = vpack.c.bf16 %v5613_v62, %v5611_v61 }
 0x6c6   :  { %v814_v0 = vsel %vm813_vm14, %v5020_v45, %v810_v6 }
 0x6c7   :  { %v819_v1 = vsel %vm816_vm3, %v818_v63, %v814_v0  ;;  %4622 = vmatmul.msk.bf16.vlgmr.msrb.gmra.mxu2 %vm130_vm0, %v1020_v43 }
 0x6c8   :  { %v820_v2 = vmul.f32 %v5598_v48, %v819_v1 }
 0x6c9   :  { %v822_v4 = vpop.permute.xlu0 %821 }
 0x6ca   :  { %842 = vmatpush.msra.mxu1 %v822_v4 }
 0x6cb   :  { %4610 = vmatmul.msk.f32.vlgmr.msra.gmra.mxu1 %vm177_vm2, %v820_v2 }
 0x6cc   :  { %1076 = vmatpush.bf16.msrb.mxu1 %v4887_v3 }
 0x6d0   :  { %1077 = vmatpush.bf16.msrb.mxu1 %v4886_v5 }
 0x6d1   :  { %v849_v8 = vpop.permute.xlu0 %848 }
 0x6d2   :  { %4612 = vmatmul.msk.f32.vlgmr.msra.gmra.mxu3 %vm151_vm1, %v849_v8 }
 0x6d3   :  { %4631 = vmatmul.msk.bf16.vlgmr.msrb.gmra.mxu1 %vm130_vm0, %v5527_v58 }
 0x71a   :  { %v710_v9 = vpop.f32.mrf.mxu1 }
 0x71b   :  { %v713_v58 = vmul.f32 0.17677669, %v710_v9 }
 0x71d   :  { %v714_v17 = vsel %vm177_vm2, %v713_v58, -inf }
 0x748   :  { %v844_v11 = vpop.f32.mrf.mxu1 }
 0x749   :  { %847 = vst.msk [vmem:[#allocation3 + $0x8] sm:$0xff] %vm151_vm1, %v844_v11 }
 0x74a   :  { %v1049_v13 = vpop.f32.mrf.mxu2 }
 0x74b   :  { %1162 = vrot.lane.b32.xlu1 %v1049_v13, %s5402_s23 }
 0x750   :  { %v5625_v48 = vpop.f32.mrf.mxu1 }
 0x751   :  { %1164 = vrot.lane.b32.xlu2 %v5625_v48, %s5402_s23  ;;  %4632 = vmatpush.xpose.msk.msrb.mxu3 %vm151_vm1, %v5625_v48 }
 0x752   :  { %v1051_v14 = vpop.f32.mrf.mxu2 }
 0x754   :  { %4633 = vmatmul.msk.f32.vlgmr.msrb.gmra.mxu3 %vm151_vm1, %v1049_v13 }
 0x755   :  { %v873_v18 = vpop.f32.mrf.mxu3 }
 0x756   :  { %v876_v19 = vmul.f32 0.17677669, %v873_v18 }
 0x758   :  { %v5632_v16 = vpop.f32.mrf.mxu1  ;;  %v877_v20 = vsel %vm177_vm2, %v876_v19, -inf }
 0x759   :  { %1324 = vrot.lane.b32.xlu2 %v1051_v14, %s5402_s23  ;;  %1326 = vrot.lane.b32.xlu0 %v5632_v16, %s5402_s23 }
 0x75a   :  { %4638 = vmatpush.xpose.msk.msra.mxu2 %vm151_vm1, %v5632_v16 }
 0x75d   :  { %4639 = vmatmul.msk.f32.vlgmr.msra.gmra.mxu2 %vm151_vm1, %v1051_v14 }
 0x775   :  { %715 = vmax.xlane.f32.xlu1 %v714_v17 }
 0x783   :  { %878 = vmax.xlane.f32.xlu0 %v877_v20 }
 0x7ab   :  { %v1165_v21 = vpop.permute.xlu2 %1164 }
 0x7ac   :  { %4635 = vmatpush.xpose.msk.msra.mxu3 %vm151_vm1, %v1165_v21 }
 0x7b3   :  { %v1325_v24 = vpop.permute.xlu2 %1324 }
 0x7bd   :  { %v1163_v22 = vpop.permute.xlu1 %1162 }
 0x7be   :  { %4636 = vmatmul.msk.f32.vlgmr.msra.gmra.mxu3 %vm151_vm1, %v1163_v22 }
 0x7cb   :  { %v1327_v23 = vpop.permute.xlu0 %1326 }
 0x7cc   :  { %4641 = vmatpush.xpose.msk.msrb.mxu3 %vm151_vm1, %v1327_v23 }
 0x7cf   :  { %4642 = vmatmul.msk.f32.vlgmr.msrb.gmra.mxu3 %vm151_vm1, %v1325_v24 }
 0x7d7   :  { %v1107_v25 = vpop.f32.mrf.mxu3 }
 0x7d8   :  { %v1110_v27 = vmul.f32 0.17677669, %v1107_v25 }
 0x7da   :  { %v1111_v28 = vsel %vm177_vm2, %v1110_v27, -inf }
 0x7db   :  { %1112 = vmax.xlane.f32.xlu2 %v1111_v28 }
 0x7e0   :  { %v1269_v35 = vpop.f32.mrf.mxu2 }
 0x7e1   :  { %v5651_v36 = vmul.f32 0.17677669, %v1269_v35 }
 0x7e3   :  { %v1273_v37 = vsel %vm177_vm2, %v5651_v36, -inf }
 0x7e8   :  { %v716_v29 = vpop.xlane.xlu1 %715 }
 0x7e9   :  { %v717_v30 = vsub.f32 %v713_v58, %v716_v29 }
 0x7eb   :  { %v718_v31 = vmul.f32 1.442695, %v717_v30 }
 0x7ed   :  { %5021 = vpow2.f32 %v718_v31 }
 0x7f3   :  { %v5647_v32 = vpop.eup %5021 }
 0x7f4   :  { %v720_v33 = vsel %vm177_vm2, %v5647_v32, 0.0 }
 0x7f5   :  { %721 = vadd.xlane.f32.xlu0 %v720_v33 }
 0x7f6   :  { %v879_v38 = vpop.xlane.xlu0 %878 }
 0x7f7   :  { %v880_v39 = vsub.f32 %v876_v19, %v879_v38 }
 0x7f9   :  { %v881_v40 = vmul.f32 1.442695, %v880_v39 }
 0x7fb   :  { %5023 = vpow2.f32 %v881_v40 }
 0x7fd   :  { %1274 = vmax.xlane.f32.xlu0 %v1273_v37 }
 0x801   :  { %v5656_v10 = vpop.eup %5023 }
 0x802   :  { %v883_v44 = vsel %vm177_vm2, %v5656_v10, 0.0 }
 0x841   :  { %v1187_v41 = vpop.f32.mrf.mxu3 }
 0x842   :  { %v1190_v42 = vmul.f32 0.17677669, %v1187_v41 }
 0x844   :  { %v1191_v7 = vsel %vm177_vm2, %v1190_v42, -inf }
 0x845   :  { %1192 = vmax.xlane.f32.xlu1 %v1191_v7 }
 0x84d   :  { %884 = vadd.xlane.f32.xlu1 %v883_v44 }
 0x84e   :  { %v1113_v45 = vpop.xlane.xlu2 %1112 }
 0x84f   :  { %v1114_v46 = vsub.f32 %v1110_v27, %v1113_v45 }
 0x851   :  { %v1115_v47 = vmul.f32 1.442695, %v1114_v46 }
 0x852   :  { %v1349_v49 = vpop.f32.mrf.mxu3 }
 0x853   :  { %v1352_v50 = vmul.f32 0.17677669, %v1349_v49  ;;  %5025 = vpow2.f32 %v1115_v47 }
 0x855   :  { %v1353_v51 = vsel %vm177_vm2, %v1352_v50, -inf }
 0x856   :  { %1354 = vmax.xlane.f32.xlu2 %v1353_v51 }
 0x859   :  { %v5661_v52 = vpop.eup %5025 }
 0x85a   :  { %v1117_v53 = vsel %vm177_vm2, %v5661_v52, 0.0 }
 0x85e   :  { %1118 = vadd.xlane.f32.xlu2 %v1117_v53 }
 0x866   :  { %4946 = vrot.lane.b32.xlu1 %v4945_v54, %s5403_s24 }
 0x868   :  { %v722_v57 = vpop.xlane.xlu0 %721 }
 0x869   :  { %5027 = vrcp.f32 %v722_v57  ;;  %v734_v13 = vand.u32 2147483648, %v722_v57  ;;  %vm728_vm5 = vweird.f32 %v722_v57  ;;  %v732_v14 = vand.u32 2147483647, %v722_v57 }
 0x86b   :  { %v735_v20 = vor.u32 1.1754944e-38, %v734_v13  ;;  %vm733_vm7 = vcmp.eq.f32.partialorder %v732_v14, 8.507059e+37 }
 0x86e   :  { %1377 = vrot.lane.b32.xlu1 %v5632_v16, %s5400_s2 }
 0x86f   :  { %v5028_v63 = vpop.eup %5027 }
 0x870   :  { %v724_v43 = vmul.f32 %v5028_v63, %v722_v57  ;;  %vm729_vm4 = vweird.f32 %v5028_v63 }
 0x871   :  { %vm730_vm6 = vmor %vm728_vm5, %vm729_vm4 }
 0x872   :  { %v725_v34 = vsub.f32 1.0, %v724_v43 }
 0x874   :  { %v726_v5 = vmul.f32 %v5028_v63, %v725_v34 }
 0x876   :  { %v727_v9 = vadd.f32 %v5028_v63, %v726_v5 }
 0x878   :  { %v731_v19 = vsel %vm730_vm6, %v5028_v63, %v727_v9 }
 0x879   :  { %v736_v21 = vsel %vm733_vm7, %v735_v20, %v731_v19 }
 0x87a   :  { %v737_v29 = vmul.f32 %v5647_v32, %v736_v21  ;;  %v1275_v32 = vpop.xlane.xlu0 %1274 }
 0x87b   :  { %v1276_v37 = vsub.f32 %v5651_v36, %v1275_v32 }
 0x87d   :  { %v1277_v38 = vmul.f32 1.442695, %v1276_v37 }
 0x8b8   :  { %v1193_v59 = vpop.xlane.xlu1 %1192 }
 0x8b9   :  { %v1194_v60 = vsub.f32 %v1190_v42, %v1193_v59 }
 0x8bb   :  { %v1195_v15 = vmul.f32 1.442695, %v1194_v60 }
 0x8bd   :  { %5029 = vpow2.f32 %v1195_v15 }
 0x8c0   :  { %v885_v6 = vpop.xlane.xlu1 %884 }
 0x8c1   :  { %5031 = vrcp.f32 %v885_v6  ;;  %v897_v24 = vand.u32 2147483648, %v885_v6  ;;  %vm891_vm9 = vweird.f32 %v885_v6  ;;  %v895_v28 = vand.u32 2147483647, %v885_v6 }
 0x8c3   :  { %v5670_v0 = vpop.eup %5029  ;;  %v898_v31 = vor.u32 1.1754944e-38, %v897_v24  ;;  %vm896_vm11 = vcmp.eq.f32.partialorder %v895_v28, 8.507059e+37 }
 0x8c4   :  { %v1197_v26 = vsel %vm177_vm2, %v5670_v0, 0.0 }
 0x8c5   :  { %1198 = vadd.xlane.f32.xlu2 %v1197_v26 }
 0x8c7   :  { %v5032_v2 = vpop.eup %5031 }
 0x8c8   :  { %v887_v8 = vmul.f32 %v5032_v2, %v885_v6  ;;  %vm892_vm8 = vweird.f32 %v5032_v2 }
 0x8c9   :  { %v1355_v1 = vpop.xlane.xlu2 %1354  ;;  %vm893_vm10 = vmor %vm891_vm9, %vm892_vm8 }
 0x8ca   :  { %v1356_v3 = vsub.f32 %v1352_v50, %v1355_v1  ;;  %v888_v11 = vsub.f32 1.0, %v887_v8 }
 0x8cc   :  { %v1357_v4 = vmul.f32 1.442695, %v1356_v3  ;;  %v889_v17 = vmul.f32 %v5032_v2, %v888_v11 }
 0x8ce   :  { %5033 = vpow2.f32 %v1357_v4  ;;  %v890_v22 = vadd.f32 %v5032_v2, %v889_v17 }
 0x8cf   :  { %5035 = vpow2.f32 %v1277_v38 }
 0x8d0   :  { %v894_v30 = vsel %vm893_vm10, %v5032_v2, %v890_v22 }
 0x8d1   :  { %v899_v33 = vsel %vm896_vm11, %v898_v31, %v894_v30  ;;  %v1119_v41 = vpop.xlane.xlu2 %1118 }
 0x8d2   :  { %v900_v35 = vmul.f32 %v5656_v10, %v899_v33  ;;  %5037 = vrcp.f32 %v1119_v41  ;;  %vm1125_vm13 = vweird.f32 %v1119_v41  ;;  %v1129_v45 = vand.u32 2147483647, %v1119_v41 }
 0x8d4   :  { %v5674_v58 = vpop.eup %5033  ;;  %vm1130_vm3 = vcmp.eq.f32.partialorder %v1129_v45, 8.507059e+37 }
 0x8d5   :  { %v1359_v18 = vsel %vm177_vm2, %v5674_v58, 0.0  ;;  %v5689_v39 = vpop.eup %5035 }
 0x8d6   :  { %1360 = vadd.xlane.f32.xlu0 %v1359_v18  ;;  %v1279_v40 = vsel %vm177_vm2, %v5689_v39, 0.0 }
 0x8d8   :  { %v4947_v23 = vpop.permute.xlu1 %4946  ;;  %v5038_v42 = vpop.eup %5037 }
 0x8d9   :  { %v4949_v25 = vunpack.i.h.bf16 %v4947_v23  ;;  %v4948_v27 = vunpack.i.l.bf16 %v4947_v23  ;;  %v1121_v7 = vmul.f32 %v5038_v42, %v1119_v41  ;;  %vm1126_vm12 = vweird.f32 %v5038_v42 }
 0x8da   :  { %vm1127_vm14 = vmor %vm1125_vm13, %vm1126_vm12 }
 0x8db   :  { %759 = vmatpush.msrb.mxu0 %v4948_v27  ;;  %v1122_v10 = vsub.f32 1.0, %v1121_v7 }
 0x8dc   :  { %4607 = vmatmul.msk.f32.vlgmr.msrb.gmra.mxu0 %vm177_vm2, %v737_v29 }
 0x8dd   :  { %922 = vmatpush.msra.mxu0 %v4949_v25  ;;  %1135 = vrot.lane.b32.xlu2 %v5625_v48, %s5401_s4 }
 0x8e0   :  { %v1378_v14 = vpop.permute.xlu1 %1377 }
 0x8e4   :  { %4613 = vmatmul.msk.f32.vlgmr.msra.gmra.mxu0 %vm177_vm2, %v900_v35 }
 0x8e5   :  { %1297 = vrot.lane.b32.xlu2 %v5632_v16, %s5401_s4  ;;  %v1123_v16 = vmul.f32 %v5038_v42, %v1122_v10 }
 0x8e7   :  { %v1124_v44 = vadd.f32 %v5038_v42, %v1123_v16 }
 0x8e9   :  { %v1128_v46 = vsel %vm1127_vm14, %v5038_v42, %v1124_v44 }
 0x8ea   :  { %1215 = vrot.lane.b32.xlu0 %v5625_v48, %s5400_s2  ;;  %v1131_v48 = vand.u32 2147483648, %v1119_v41 }
 0x8ec   :  { %v1132_v47 = vor.u32 1.1754944e-38, %v1131_v48 }
 0x8ee   :  { %v1133_v49 = vsel %vm1130_vm3, %v1132_v47, %v1128_v46 }
 0x8ef   :  { %v1134_v51 = vmul.f32 %v5661_v52, %v1133_v49 }
 0x914   :  { %1280 = vadd.xlane.f32.xlu0 %v1279_v40 }
 0x938   :  { %v1199_v36 = vpop.xlane.xlu2 %1198 }
 0x939   :  { %5039 = vrcp.f32 %v1199_v36  ;;  %v1211_v26 = vand.u32 2147483648, %v1199_v36  ;;  %vm1205_vm5 = vweird.f32 %v1199_v36  ;;  %v1209_v1 = vand.u32 2147483647, %v1199_v36 }
 0x93b   :  { %v1212_v3 = vor.u32 1.1754944e-38, %v1211_v26  ;;  %vm1210_vm7 = vcmp.eq.f32.partialorder %v1209_v1, 8.507059e+37  ;;  %v4888_v1 = vld [vmem:[#allocation10 + $0x30] sm:$0xff] }
 0x93f   :  { %v5040_v53 = vpop.eup %5039 }
 0x940   :  { %v1136_v50 = vpop.permute.xlu2 %1135  ;;  %v1201_v54 = vmul.f32 %v5040_v53, %v1199_v36  ;;  %vm1206_vm4 = vweird.f32 %v5040_v53 }
 0x941   :  { %1156 = vmatpush.msrb.mxu0 %v1136_v50  ;;  %vm1207_vm6 = vmor %vm1205_vm5, %vm1206_vm4 }
 0x942   :  { %4634 = vmatmul.msk.f32.vlgmr.msrb.gmra.mxu0 %vm177_vm2, %v1134_v51  ;;  %v1202_v60 = vsub.f32 1.0, %v1201_v54 }
 0x944   :  { %v1203_v15 = vmul.f32 %v5040_v53, %v1202_v60 }
 0x946   :  { %v1204_v43 = vadd.f32 %v5040_v53, %v1203_v15 }
 0x948   :  { %v1298_v57 = vpop.permute.xlu2 %1297  ;;  %v1208_v52 = vsel %vm1207_vm6, %v5040_v53, %v1204_v43 }
 0x949   :  { %v1361_v59 = vpop.xlane.xlu0 %1360  ;;  %1318 = vmatpush.msra.mxu1 %v1298_v57  ;;  %v1213_v4 = vsel %vm1210_vm7, %v1212_v3, %v1208_v52 }
 0x94a   :  { %5041 = vrcp.f32 %v1361_v59  ;;  %v1373_v8 = vand.u32 2147483648, %v1361_v59  ;;  %vm1367_vm9 = vweird.f32 %v1361_v59  ;;  %v1371_v9 = vand.u32 2147483647, %v1361_v59 }
 0x94b   :  { %v1214_v13 = vmul.f32 %v5670_v0, %v1213_v4 }
 0x94c   :  { %v1374_v18 = vor.u32 1.1754944e-38, %v1373_v8  ;;  %vm1372_vm11 = vcmp.eq.f32.partialorder %v1371_v9, 8.507059e+37 }
 0x950   :  { %v5042_v6 = vpop.eup %5041 }
 0x951   :  { %v1363_v63 = vmul.f32 %v5042_v6, %v1361_v59  ;;  %vm1368_vm8 = vweird.f32 %v5042_v6 }
 0x952   :  { %vm1369_vm10 = vmor %vm1367_vm9, %vm1368_vm8 }
 0x953   :  { %v1364_v34 = vsub.f32 1.0, %v1363_v63  ;;  %v4889_v63 = vld [vmem:[#allocation10 + $0x38] sm:$0xff] }
 0x954   :  { %1524 = vmatpush.bf16.msrb.mxu1 %v4889_v63 }
 0x955   :  { %v1365_v2 = vmul.f32 %v5042_v6, %v1364_v34 }
 0x957   :  { %v1366_v5 = vadd.f32 %v5042_v6, %v1365_v2 }
 0x958   :  { %1525 = vmatpush.bf16.msrb.mxu1 %v4888_v1  ;;  %v4891_v1 = vld [vmem:[#allocation10 + $0x48] sm:$0xff] }
 0x959   :  { %v1370_v17 = vsel %vm1369_vm10, %v5042_v6, %v1366_v5  ;;  %v761_v33 = vpop.f32.mrf.mxu0 }
 0x95a   :  { %v1375_v19 = vsel %vm1372_vm11, %v1374_v18, %v1370_v17 }
 0x95b   :  { %v1376_v20 = vmul.f32 %v5674_v58, %v1375_v19 }
 0x95c   :  { %v1216_v11 = vpop.permute.xlu0 %1215 }
 0x95d   :  { %1236 = vmatpush.msra.mxu0 %v1216_v11 }
 0x95e   :  { %4637 = vmatmul.msk.f32.vlgmr.msra.gmra.mxu0 %vm177_vm2, %v1214_v13 }
 0x95f   :  { %1398 = vmatpush.msrb.mxu0 %v1378_v14 }
 0x961   :  { %v924_v35 = vpop.f32.mrf.mxu0 }
 0x966   :  { %4643 = vmatmul.msk.f32.vlgmr.msrb.gmra.mxu0 %vm177_vm2, %v1376_v20 }
 0x987   :  { %v1281_v21 = vpop.xlane.xlu0 %1280 }
 0x988   :  { %5043 = vrcp.f32 %v1281_v21  ;;  %v1293_v0 = vand.u32 2147483648, %v1281_v21  ;;  %v1291_v27 = vand.u32 2147483647, %v1281_v21  ;;  %vm1287_vm13 = vweird.f32 %v1281_v21 }
 0x98a   :  { %v1294_v29 = vor.u32 1.1754944e-38, %v1293_v0  ;;  %vm1292_vm3 = vcmp.eq.f32.partialorder %v1291_v27, 8.507059e+37 }
 0x98e   :  { %v5044_v22 = vpop.eup %5043 }
 0x98f   :  { %v1283_v23 = vmul.f32 %v5044_v22, %v1281_v21  ;;  %vm1288_vm12 = vweird.f32 %v5044_v22 }
 0x990   :  { %vm1289_vm14 = vmor %vm1287_vm13, %vm1288_vm12 }
 0x991   :  { %v1284_v24 = vsub.f32 1.0, %v1283_v23 }
 0x993   :  { %v1285_v25 = vmul.f32 %v5044_v22, %v1284_v24 }
 0x995   :  { %v1286_v28 = vadd.f32 %v5044_v22, %v1285_v25 }
 0x997   :  { %v1290_v30 = vsel %vm1289_vm14, %v5044_v22, %v1286_v28 }
 0x998   :  { %v1295_v31 = vsel %vm1292_vm3, %v1294_v29, %v1290_v30 }
 0x999   :  { %v1296_v58 = vmul.f32 %v5689_v39, %v1295_v31 }
 0x99b   :  { %4640 = vmatmul.msk.f32.vlgmr.msra.gmra.mxu1 %vm177_vm2, %v1296_v58 }
 0x9bf   :  { %v1158_v32 = vpop.f32.mrf.mxu0 }
 0x9c0   :  { %1161 = vst.msk [vmem:[#allocation2] sm:$0xff] %vm151_vm1, %v1158_v32 }
 0x9db   :  { %v1238_v37 = vpop.f32.mrf.mxu0 }
 0x9dc   :  { %1242 = vrot.lane.b32.xlu1 %v1238_v37, %s5404_s25 }
 0x9e3   :  { %v1400_v38 = vpop.f32.mrf.mxu0 }
 0x9e4   :  { %1404 = vrot.lane.b32.xlu2 %v1400_v38, %s5404_s25 }
 0xa18   :  { %v1320_v40 = vpop.f32.mrf.mxu1 }
 0xa19   :  { %1323 = vst.msk [vmem:[#allocation2 + $0x8] sm:$0xff] %vm151_vm1, %v1320_v40 }
 0xa3e   :  { %v1405_v41 = vpop.permute.xlu2 %1404 }
 0xa3f   :  { %1407 = vst.msk [vmem:[#allocation2 + $0x8] sm:$0xff] %vm312_vm15, %v1405_v41 }
 0xa46   :  { %v1409_v39 = vld [vmem:[#allocation2 + $0x8] sm:$0xff] }
 0xa47   :  { %v1411_v42 = vadd.f32 %v1409_v39, %v5613_v62 }
 0xa49   :  { %v1417_v7 = vsel %vm130_vm0, %v1411_v42, 0.0 }
 0xa4a   :  { %1418 = vadd.xlane.f32.xlu2 %v1417_v7 }
 0xa4e   :  { %v1243_v10 = vpop.permute.xlu1 %1242 }
 0xa4f   :  { %1245 = vst.msk [vmem:[#allocation2] sm:$0xff] %vm312_vm15, %v1243_v10 }
 0xa56   :  { %v1408_v16 = vld [vmem:[#allocation2] sm:$0xff] }
 0xa57   :  { %v1410_v44 = vadd.f32 %v1408_v16, %v5611_v61 }
 0xa59   :  { %v1414_v48 = vsel %vm130_vm0, %v1410_v44, 0.0 }
 0xa5a   :  { %1415 = vadd.xlane.f32.xlu1 %v1414_v48 }
 0xa73   :  { %765 = vrot.lane.b32.xlu1 %v761_v33, %s5404_s25 }
 0xabd   :  { %v1419_v45 = vpop.xlane.xlu2 %1418 }
 0xabe   :  { %v1421_v62 = vmul.f32 %v1419_v45, %v5568_v12 }
 0xac0   :  { %v5718_v50 = vsub.f32 %v1411_v42, %v1421_v62 }
 0xac2   :  { %v1425_v51 = vmul.f32 %v5718_v50, %v5718_v50 }
 0xac4   :  { %v1429_v53 = vsel %vm130_vm0, %v1425_v51, 0.0  ;;  %v4957_v51 = vld [vmem:[#allocation12 + $0x2] ss:$0 sm:$0xff] }
 0xacd   :  { %v1416_v36 = vpop.xlane.xlu1 %1415 }
 0xace   :  { %v1420_v46 = vmul.f32 %v1416_v36, %v5568_v12 }
 0xad0   :  { %v5714_v47 = vsub.f32 %v1410_v44, %v1420_v46 }
 0xad2   :  { %v1424_v49 = vmul.f32 %v5714_v47, %v5714_v47 }
 0xad4   :  { %v1426_v61 = vsel %vm130_vm0, %v1424_v49, 0.0 }
 0xad5   :  { %1427 = vadd.xlane.f32.xlu0 %v1426_v61 }
 0xadd   :  { %1430 = vadd.xlane.f32.xlu0 %v1429_v53 }
 0xae5   :  { %v766_v54 = vpop.permute.xlu1 %765 }
 0xae6   :  { %768 = vst.msk [vmem:[#allocation3] sm:$0xff] %vm312_vm15, %v766_v54 }
 0xaed   :  { %v932_v57 = vld [vmem:[#allocation3] sm:$0xff] }
 0xaee   :  { %v934_v59 = vadd.f32 %v932_v57, %v5518_v55 }
 0xaf0   :  { %v938_v60 = vsel %vm130_vm0, %v934_v59, 0.0 }
 0xaf1   :  { %939 = vadd.xlane.f32.xlu2 %v938_v60  ;;  %928 = vrot.lane.b32.xlu0 %v924_v35, %s5404_s25 }
 0xb48   :  { %v1428_v15 = vpop.xlane.xlu0 %1427 }
 0xb49   :  { %v1432_v6 = vmul.f32 0.032258064, %v1428_v15  ;;  %v4958_v15 = vld [vmem:[#allocation12 + $0x3] ss:$0 sm:$0xff] }
 0xb4b   :  { %5045 = vrsqrt.f32 %v1432_v6  ;;  %vm1441_vm4 = vcmp.eq.f32.partialorder %v1432_v6, inf  ;;  %v1444_v13 = vand.u32 2147483648, %v1432_v6  ;;  %vm1443_vm5 = vcmp.eq.f32.partialorder %v1432_v6, 0.0 }
 0xb50   :  { %v1431_v43 = vpop.xlane.xlu0 %1430 }
 0xb51   :  { %v5046_v26 = vpop.eup %5045  ;;  %v1433_v34 = vmul.f32 0.032258064, %v1431_v43 }
 0xb52   :  { %v1435_v52 = vmul.f32 %v5046_v26, %v1432_v6 }
 0xb53   :  { %5047 = vrsqrt.f32 %v1433_v34  ;;  %vm1453_vm6 = vcmp.eq.f32.partialorder %v1433_v34, inf  ;;  %v1456_v0 = vand.u32 2147483648, %v1433_v34  ;;  %vm1455_vm7 = vcmp.eq.f32.partialorder %v1433_v34, 0.0 }
 0xb54   :  { %v1436_v2 = vmul.f32 %v5046_v26, %v1435_v52  ;;  %v4890_v52 = vld [vmem:[#allocation10 + $0x40] sm:$0xff] }
 0xb56   :  { %v1437_v3 = vmul.f32 0.5, %v1436_v2 }
 0xb58   :  { %v1438_v55 = vsub.f32 1.5, %v1437_v3  ;;  %v4959_v3 = vld [vmem:[#allocation12 + $0x6] ss:$0 sm:$0xff] }
 0xb59   :  { %v5048_v4 = vpop.eup %5047 }
 0xb5a   :  { %v1439_v5 = vmul.f32 %v5046_v26, %v1438_v55  ;;  %v1447_v8 = vmul.f32 %v5048_v4, %v1433_v34 }
 0xb5c   :  { %v1440_v9 = vmul.f32 %v1439_v5, %v1432_v6  ;;  %v1448_v11 = vmul.f32 %v5048_v4, %v1447_v8 }
 0xb5e   :  { %v1442_v14 = vsel %vm1441_vm4, %v1432_v6, %v1440_v9  ;;  %v1449_v17 = vmul.f32 0.5, %v1448_v11  ;;  %vm1569_vm4 = vcmask 523264   ;;  %v4960_v11 = vld [vmem:[#allocation12 + $0x7] ss:$0 sm:$0xff] }
 0xb5f   :  { %v1445_v18 = vsel %vm1443_vm5, %v1444_v13, %v1442_v14 }
 0xb60   :  { %v1458_v19 = vadd.f32 0.001, %v1445_v18  ;;  %v1450_v20 = vsub.f32 1.5, %v1449_v17 }
 0xb62   :  { %5049 = vrcp.f32 %v1458_v19  ;;  %v1451_v21 = vmul.f32 %v5048_v4, %v1450_v20  ;;  %v1471_v39 = vand.u32 2147483648, %v1458_v19  ;;  %vm1465_vm9 = vweird.f32 %v1458_v19 }
 0xb63   :  { %v929_v22 = vpop.permute.xlu0 %928  ;;  %v1469_v7 = vand.u32 2147483647, %v1458_v19 }
 0xb64   :  { %v1452_v23 = vmul.f32 %v1451_v21, %v1433_v34  ;;  %931 = vst.msk [vmem:[#allocation3 + $0x8] sm:$0xff] %vm312_vm15, %v929_v22  ;;  %v940_v24 = vpop.xlane.xlu2 %939  ;;  %v1472_v48 = vor.u32 1.1754944e-38, %v1471_v39  ;;  %v4895_v39 = vld [vmem:[#allocation10 + $0x78] sm:$0xff] }
 0xb65   :  { %v944_v25 = vmul.f32 %v940_v24, %v5568_v12  ;;  %vm1470_vm11 = vcmp.eq.f32.partialorder %v1469_v7, 8.507059e+37  ;;  %1699 = vmatpush.bf16.msra.mxu3 %v4895_v39  ;;  %v4894_v7 = vld [vmem:[#allocation10 + $0x70] sm:$0xff] }
 0xb66   :  { %v1454_v27 = vsel %vm1453_vm6, %v1433_v34, %v1452_v23  ;;  %v4893_v34 = vld [vmem:[#allocation10 + $0x58] sm:$0xff] }
 0xb67   :  { %v1457_v28 = vsel %vm1455_vm7, %v1456_v0, %v1454_v27  ;;  %v5730_v29 = vsub.f32 %v934_v59, %v944_v25  ;;  %1577 = vmatpush.bf16.msra.mxu1 %v4893_v34 }
 0xb68   :  { %v5050_v30 = vpop.eup %5049  ;;  %v1459_v31 = vadd.f32 0.001, %v1457_v28 }
 0xb69   :  { %v948_v58 = vmul.f32 %v5730_v29, %v5730_v29  ;;  %v1461_v33 = vmul.f32 %v5050_v30, %v1458_v19  ;;  %vm1466_vm8 = vweird.f32 %v5050_v30  ;;  %1700 = vmatpush.bf16.msra.mxu3 %v4894_v7 }
 0xb6a   :  { %5051 = vrcp.f32 %v1459_v31  ;;  %vm1467_vm10 = vmor %vm1465_vm9, %vm1466_vm8  ;;  %v1486_v46 = vand.u32 2147483648, %v1459_v31  ;;  %vm1480_vm13 = vweird.f32 %v1459_v31 }
 0xb6b   :  { %v950_v35 = vsel %vm130_vm0, %v948_v58, 0.0  ;;  %v933_v32 = vld [vmem:[#allocation3 + $0x8] sm:$0xff]  ;;  %v1462_v37 = vsub.f32 1.0, %v1461_v33 }
 0xb6c   :  { %951 = vadd.xlane.f32.xlu1 %v950_v35  ;;  %v935_v38 = vadd.f32 %v933_v32, %v5521_v56  ;;  %v1484_v56 = vand.u32 2147483647, %v1459_v31  ;;  %v1487_v53 = vor.u32 1.1754944e-38, %v1486_v46 }
 0xb6d   :  { %v1463_v40 = vmul.f32 %v5050_v30, %v1462_v37 }
 0xb6e   :  { %v941_v41 = vsel %vm130_vm0, %v935_v38, 0.0  ;;  %vm1485_vm3 = vcmp.eq.f32.partialorder %v1484_v56, 8.507059e+37 }
 0xb6f   :  { %942 = vadd.xlane.f32.xlu2 %v941_v41  ;;  %v1464_v42 = vadd.f32 %v5050_v30, %v1463_v40 }
 0xb70   :  { %v5052_v10 = vpop.eup %5051 }
 0xb71   :  { %v1468_v16 = vsel %vm1467_vm10, %v5050_v30, %v1464_v42  ;;  %v1476_v44 = vmul.f32 %v5052_v10, %v1459_v31  ;;  %vm1481_vm12 = vweird.f32 %v5052_v10 }
 0xb72   :  { %v1473_v36 = vsel %vm1470_vm11, %v1472_v48, %v1468_v16  ;;  %vm1482_vm14 = vmor %vm1480_vm13, %vm1481_vm12 }
 0xb73   :  { %v1477_v45 = vsub.f32 1.0, %v1476_v44  ;;  %v1474_v49 = vmul.f32 %v1473_v36, %v5714_v47  ;;  %v4892_v47 = vld [vmem:[#allocation10 + $0x50] sm:$0xff] }
 0xb74   :  { %1578 = vmatpush.bf16.msra.mxu1 %v4892_v47 }
 0xb75   :  { %v1478_v62 = vmul.f32 %v5052_v10, %v1477_v45  ;;  %v1491_v60 = vmul.f32 %v4957_v51, %v1474_v49 }
 0xb77   :  { %v1479_v61 = vadd.f32 %v5052_v10, %v1478_v62  ;;  %v1494_v63 = vadd.f32 %v4958_v15, %v1491_v60 }
 0xb78   :  { %1579 = vmatpush.bf16.msra.mxu1 %v4891_v1 }
 0xb79   :  { %v1483_v54 = vsel %vm1482_vm14, %v5052_v10, %v1479_v61 }
 0xb7a   :  { %v1488_v57 = vsel %vm1485_vm3, %v1487_v53, %v1483_v54 }
 0xb7b   :  { %v1489_v59 = vmul.f32 %v1488_v57, %v5718_v50 }
 0xb7c   :  { %1580 = vmatpush.bf16.msra.mxu1 %v4890_v52 }
 0xb7d   :  { %v1492_v6 = vmul.f32 %v4957_v51, %v1489_v59 }
 0xb7f   :  { %v1495_v43 = vadd.f32 %v4958_v15, %v1492_v6 }
 0xb81   :  { %v1496_v26 = vpack.c.bf16 %v1495_v43, %v1494_v63 }
 0xb83   :  { %4652 = vmatmul.msk.bf16.vlgmr.msrb.gmra.mxu1 %vm130_vm0, %v1496_v26 }
 0xbdf   :  { %v952_v28 = vpop.xlane.xlu1 %951 }
 0xbe0   :  { %v956_v30 = vmul.f32 0.032258064, %v952_v28 }
 0xbe2   :  { %v943_v13 = vpop.xlane.xlu2 %942  ;;  %5053 = vrsqrt.f32 %v956_v30  ;;  %vm965_vm5 = vcmp.eq.f32.partialorder %v956_v30, inf  ;;  %v968_v44 = vand.u32 2147483648, %v956_v30  ;;  %vm967_vm6 = vcmp.eq.f32.partialorder %v956_v30, 0.0 }
 0xbe3   :  { %v945_v17 = vmul.f32 %v943_v13, %v5568_v12 }
 0xbe5   :  { %v5742_v20 = vsub.f32 %v935_v38, %v945_v17 }
 0xbe7   :  { %v949_v24 = vmul.f32 %v5742_v20, %v5742_v20 }
 0xbe8   :  { %v5054_v31 = vpop.eup %5053 }
 0xbe9   :  { %v953_v27 = vsel %vm130_vm0, %v949_v24, 0.0  ;;  %v959_v58 = vmul.f32 %v5054_v31, %v956_v30 }
 0xbeb   :  { %v960_v33 = vmul.f32 %v5054_v31, %v959_v58 }
 0xbed   :  { %v961_v35 = vmul.f32 0.5, %v960_v33 }
 0xbef   :  { %v962_v32 = vsub.f32 1.5, %v961_v35 }
 0xbf1   :  { %v963_v37 = vmul.f32 %v5054_v31, %v962_v32 }
 0xbf3   :  { %v964_v41 = vmul.f32 %v963_v37, %v956_v30  ;;  %v4897_v37 = vld [vmem:[#allocation10 + $0x88] sm:$0xff] }
 0xbf4   :  { %1733 = vmatpush.bf16.msra.mxu0 %v4897_v37  ;;  %v4905_v37 = vld [vmem:[#allocation10 + $0xc8] sm:$0xff] }
 0xbf5   :  { %v966_v16 = vsel %vm965_vm5, %v956_v30, %v964_v41  ;;  %v4962_v30 = vld [vmem:[#allocation12 + $0x9] ss:$0 sm:$0xff] }
 0xbf6   :  { %v969_v46 = vsel %vm967_vm6, %v968_v44, %v966_v16 }
 0xbf7   :  { %v982_v49 = vadd.f32 0.001, %v969_v46 }
 0xbf9   :  { %vm989_vm10 = vweird.f32 %v982_v49 }
 0xc00   :  { %v1527_v2 = vpop.f32.mrf.mxu1 }
 0xc01   :  { %v1528_v55 = vadd.f32 %v4959_v3, %v1527_v2 }
 0xc03   :  { %v1532_v5 = vmax.f32 %v1528_v55, 0.0 }
 0xc08   :  { %v1529_v50 = vpop.f32.mrf.mxu1 }
 0xc09   :  { %v1530_v4 = vadd.f32 %v4959_v3, %v1529_v50  ;;  %v995_v50 = vand.u32 2147483648, %v982_v49 }
 0xc0b   :  { %v1533_v8 = vmax.f32 %v1530_v4, 0.0  ;;  %v993_v4 = vand.u32 2147483647, %v982_v49 }
 0xc0d   :  { %v1534_v9 = vpack.c.bf16 %v1533_v8, %v1532_v5  ;;  %vm994_vm12 = vcmp.eq.f32.partialorder %v993_v4, 8.507059e+37 }
 0xc0f   :  { %4669 = vmatmul.msk.bf16.vlgmr.msra.gmra.mxu1 %vm1569_vm4, %v1534_v9 }
 0xc8c   :  { %v1582_v14 = vpop.f32.mrf.mxu1 }
 0xc8d   :  { %v1583_v18 = vadd.f32 %v4960_v11, %v1582_v14 }
 0xc8f   :  { %v1587_v19 = vadd.f32 %v1583_v18, %v1494_v63 }
 0xc91   :  { %v1591_v21 = vsel %vm130_vm0, %v1587_v19, 0.0 }
 0xc92   :  { %1592 = vadd.xlane.f32.xlu2 %v1591_v21 }
 0xc94   :  { %v1584_v22 = vpop.f32.mrf.mxu1 }
 0xc95   :  { %v1585_v23 = vadd.f32 %v4960_v11, %v1584_v22  ;;  %v996_v11 = vor.u32 1.1754944e-38, %v995_v50 }
 0xc97   :  { %v1588_v0 = vadd.f32 %v1585_v23, %v1495_v43  ;;  %v4961_v23 = vld [vmem:[#allocation12 + $0x8] ss:$0 sm:$0xff] }
 0xc99   :  { %v1594_v25 = vsel %vm130_vm0, %v1588_v0, 0.0 }
 0xc9a   :  { %1595 = vadd.xlane.f32.xlu0 %v1594_v25  ;;  %954 = vadd.xlane.f32.xlu2 %v953_v27 }
 0xd05   :  { %v1593_v38 = vpop.xlane.xlu2 %1592 }
 0xd06   :  { %v1597_v40 = vmul.f32 %v1593_v38, %v5568_v12  ;;  %v4896_v38 = vld [vmem:[#allocation10 + $0x80] sm:$0xff] }
 0xd07   :  { %1734 = vmatpush.bf16.msra.mxu0 %v4896_v38 }
 0xd08   :  { %v5750_v42 = vsub.f32 %v1587_v19, %v1597_v40 }
 0xd0a   :  { %v1601_v10 = vmul.f32 %v5750_v42, %v5750_v42 }
 0xd0c   :  { %v1603_v48 = vsel %vm130_vm0, %v1601_v10, 0.0 }
 0xd0d   :  { %1604 = vadd.xlane.f32.xlu2 %v1603_v48  ;;  %v955_v45 = vpop.xlane.xlu2 %954  ;;  %v1596_v36 = vpop.xlane.xlu0 %1595 }
 0xd0e   :  { %v957_v62 = vmul.f32 0.032258064, %v955_v45  ;;  %v1598_v56 = vmul.f32 %v1596_v36, %v5568_v12 }
 0xd10   :  { %5055 = vrsqrt.f32 %v957_v62  ;;  %v5756_v61 = vsub.f32 %v1588_v0, %v1598_v56  ;;  %vm977_vm7 = vcmp.eq.f32.partialorder %v957_v62, inf  ;;  %v980_v34 = vand.u32 2147483648, %v957_v62 }
 0xd11   :  { %5057 = vrcp.f32 %v982_v49  ;;  %vm979_vm8 = vcmp.eq.f32.partialorder %v957_v62, 0.0 }
 0xd12   :  { %v1602_v51 = vmul.f32 %v5756_v61, %v5756_v61 }
 0xd14   :  { %v1606_v53 = vsel %vm130_vm0, %v1602_v51, 0.0 }
 0xd15   :  { %1607 = vadd.xlane.f32.xlu2 %v1606_v53 }
 0xd16   :  { %v5056_v54 = vpop.eup %5055 }
 0xd17   :  { %v971_v57 = vmul.f32 %v5056_v54, %v957_v62  ;;  %v5058_v60 = vpop.eup %5057 }
 0xd18   :  { %v985_v63 = vmul.f32 %v5058_v60, %v982_v49  ;;  %vm990_vm9 = vweird.f32 %v5058_v60 }
 0xd19   :  { %v972_v59 = vmul.f32 %v5056_v54, %v971_v57  ;;  %vm991_vm11 = vmor %vm989_vm10, %vm990_vm9 }
 0xd1a   :  { %v986_v47 = vsub.f32 1.0, %v985_v63 }
 0xd1b   :  { %v973_v15 = vmul.f32 0.5, %v972_v59 }
 0xd1c   :  { %v987_v3 = vmul.f32 %v5058_v60, %v986_v47 }
 0xd1d   :  { %v974_v6 = vsub.f32 1.5, %v973_v15 }
 0xd1e   :  { %v988_v55 = vadd.f32 %v5058_v60, %v987_v3 }
 0xd1f   :  { %v975_v43 = vmul.f32 %v5056_v54, %v974_v6 }
 0xd20   :  { %v992_v8 = vsel %vm991_vm11, %v5058_v60, %v988_v55 }
 0xd21   :  { %v976_v26 = vmul.f32 %v975_v43, %v957_v62  ;;  %v997_v14 = vsel %vm994_vm12, %v996_v11, %v992_v8 }
 0xd22   :  { %v998_v21 = vmul.f32 %v997_v14, %v5730_v29 }
 0xd23   :  { %v978_v1 = vsel %vm977_vm7, %v957_v62, %v976_v26 }
 0xd24   :  { %v981_v52 = vsel %vm979_vm8, %v980_v34, %v978_v1  ;;  %v1015_v28 = vmul.f32 %v4961_v23, %v998_v21 }
 0xd25   :  { %v983_v2 = vadd.f32 0.001, %v981_v52 }
 0xd26   :  { %v5763_v58 = vadd.f32 %v4962_v30, %v1015_v28 }
 0xd27   :  { %5059 = vrcp.f32 %v983_v2  ;;  %v1010_v17 = vand.u32 2147483648, %v983_v2  ;;  %v1008_v19 = vand.u32 2147483647, %v983_v2  ;;  %vm1004_vm14 = vweird.f32 %v983_v2 }
 0xd29   :  { %v1011_v24 = vor.u32 1.1754944e-38, %v1010_v17  ;;  %vm1009_vm5 = vcmp.eq.f32.partialorder %v1008_v19, 8.507059e+37 }
 0xd2d   :  { %v5060_v5 = vpop.eup %5059 }
 0xd2e   :  { %v1000_v9 = vmul.f32 %v5060_v5, %v983_v2  ;;  %vm1005_vm13 = vweird.f32 %v5060_v5 }
 0xd2f   :  { %vm1006_vm3 = vmor %vm1004_vm14, %vm1005_vm13 }
 0xd30   :  { %v1001_v13 = vsub.f32 1.0, %v1000_v9 }
 0xd32   :  { %v1002_v18 = vmul.f32 %v5060_v5, %v1001_v13 }
 0xd34   :  { %v1003_v22 = vadd.f32 %v5060_v5, %v1002_v18  ;;  %v4963_v18 = vld [vmem:[#allocation12 + $0x4] ss:$0 sm:$0xff] }
 0xd36   :  { %v1007_v0 = vsel %vm1006_vm3, %v5060_v5, %v1003_v22 }
 0xd37   :  { %v1012_v25 = vsel %vm1009_vm5, %v1011_v24, %v1007_v0  ;;  %v4964_v0 = vld [vmem:[#allocation12 + $0x5] ss:$0 sm:$0xff] }
 0xd38   :  { %v1013_v27 = vmul.f32 %v1012_v25, %v5742_v20 }
 0xd3a   :  { %v1016_v31 = vmul.f32 %v4961_v23, %v1013_v27 }
 0xd3c   :  { %v5765_v33 = vadd.f32 %v4962_v30, %v1016_v31 }
 0xd3e   :  { %v1673_v29 = vpack.c.bf16 %v5765_v33, %v5763_v58 }
 0xd40   :  { %4678 = vmatmul.msk.bf16.vlgmr.msra.gmra.mxu3 %vm130_vm0, %v1673_v29 }
 0xd80   :  { %v1605_v35 = vpop.xlane.xlu2 %1604 }
 0xd81   :  { %v1609_v32 = vmul.f32 0.032258064, %v1605_v35 }
 0xd83   :  { %5061 = vrsqrt.f32 %v1609_v32  ;;  %vm1618_vm6 = vcmp.eq.f32.partialorder %v1609_v32, inf  ;;  %v1621_v46 = vand.u32 2147483648, %v1609_v32  ;;  %vm1620_vm7 = vcmp.eq.f32.partialorder %v1609_v32, 0.0 }
 0xd88   :  { %v1608_v20 = vpop.xlane.xlu2 %1607 }
 0xd89   :  { %v5062_v40 = vpop.eup %5061  ;;  %v1610_v39 = vmul.f32 0.032258064, %v1608_v20 }
 0xd8a   :  { %v1612_v41 = vmul.f32 %v5062_v40, %v1609_v32 }
 0xd8b   :  { %5063 = vrsqrt.f32 %v1610_v39  ;;  %vm1630_vm8 = vcmp.eq.f32.partialorder %v1610_v39, inf  ;;  %v1633_v60 = vand.u32 2147483648, %v1610_v39  ;;  %vm1632_vm9 = vcmp.eq.f32.partialorder %v1610_v39, 0.0 }
 0xd8c   :  { %v1613_v7 = vmul.f32 %v5062_v40, %v1612_v41 }
 0xd8e   :  { %v1614_v10 = vmul.f32 0.5, %v1613_v7 }
 0xd90   :  { %v1615_v16 = vsub.f32 1.5, %v1614_v10 }
 0xd91   :  { %v5064_v44 = vpop.eup %5063 }
 0xd92   :  { %v1616_v48 = vmul.f32 %v5062_v40, %v1615_v16  ;;  %v1624_v45 = vmul.f32 %v5064_v44, %v1610_v39  ;;  %v4904_v40 = vld [vmem:[#allocation10 + $0xc0] sm:$0xff] }
 0xd94   :  { %v1617_v36 = vmul.f32 %v1616_v48, %v1609_v32  ;;  %v1625_v62 = vmul.f32 %v5064_v44, %v1624_v45 }
 0xd96   :  { %v1619_v56 = vsel %vm1618_vm6, %v1609_v32, %v1617_v36  ;;  %v1626_v51 = vmul.f32 0.5, %v1625_v62 }
 0xd97   :  { %v1622_v49 = vsel %vm1620_vm7, %v1621_v46, %v1619_v56 }
 0xd98   :  { %v1635_v53 = vadd.f32 0.001, %v1622_v49  ;;  %v1627_v54 = vsub.f32 1.5, %v1626_v51 }
 0xd9a   :  { %5065 = vrcp.f32 %v1635_v53  ;;  %v1628_v57 = vmul.f32 %v5064_v44, %v1627_v54  ;;  %v1648_v52 = vand.u32 2147483648, %v1635_v53  ;;  %vm1642_vm11 = vweird.f32 %v1635_v53 }
 0xd9b   :  { %v1646_v2 = vand.u32 2147483647, %v1635_v53 }
 0xd9c   :  { %v1629_v59 = vmul.f32 %v1628_v57, %v1610_v39  ;;  %v1649_v4 = vor.u32 1.1754944e-38, %v1648_v52 }
 0xd9d   :  { %vm1647_vm13 = vcmp.eq.f32.partialorder %v1646_v2, 8.507059e+37 }
 0xd9e   :  { %v1631_v15 = vsel %vm1630_vm8, %v1610_v39, %v1629_v59 }
 0xd9f   :  { %v1634_v63 = vsel %vm1632_vm9, %v1633_v60, %v1631_v15 }
 0xda0   :  { %v5066_v6 = vpop.eup %5065  ;;  %v1636_v43 = vadd.f32 0.001, %v1634_v63 }
 0xda1   :  { %v1638_v26 = vmul.f32 %v5066_v6, %v1635_v53  ;;  %vm1643_vm10 = vweird.f32 %v5066_v6 }
 0xda2   :  { %5067 = vrcp.f32 %v1636_v43  ;;  %vm1644_vm12 = vmor %vm1642_vm11, %vm1643_vm10  ;;  %v1663_v9 = vand.u32 2147483648, %v1636_v43  ;;  %v1661_v13 = vand.u32 2147483647, %v1636_v43  ;;  %vm1657_vm3 = vweird.f32 %v1636_v43 }
 0xda3   :  { %v1639_v34 = vsub.f32 1.0, %v1638_v26 }
 0xda4   :  { %v1664_v19 = vor.u32 1.1754944e-38, %v1663_v9  ;;  %vm1662_vm6 = vcmp.eq.f32.partialorder %v1661_v13, 8.507059e+37 }
 0xda5   :  { %v1640_v47 = vmul.f32 %v5066_v6, %v1639_v34 }
 0xda7   :  { %v1641_v1 = vadd.f32 %v5066_v6, %v1640_v47 }
 0xda8   :  { %v5068_v3 = vpop.eup %5067 }
 0xda9   :  { %v1645_v55 = vsel %vm1644_vm12, %v5066_v6, %v1641_v1  ;;  %v1653_v50 = vmul.f32 %v5068_v3, %v1636_v43  ;;  %vm1658_vm14 = vweird.f32 %v5068_v3 }
 0xdaa   :  { %v1650_v8 = vsel %vm1647_vm13, %v1649_v4, %v1645_v55  ;;  %vm1659_vm5 = vmor %vm1657_vm3, %vm1658_vm14 }
 0xdab   :  { %v1654_v5 = vsub.f32 1.0, %v1653_v50  ;;  %v1651_v14 = vmul.f32 %v1650_v8, %v5750_v42 }
 0xdad   :  { %v1655_v11 = vmul.f32 %v5068_v3, %v1654_v5  ;;  %v1668_v24 = vmul.f32 %v4963_v18, %v1651_v14 }
 0xdaf   :  { %v1656_v17 = vadd.f32 %v5068_v3, %v1655_v11  ;;  %v5772_v27 = vadd.f32 %v4964_v0, %v1668_v24 }
 0xdb1   :  { %v1660_v21 = vsel %vm1659_vm5, %v5068_v3, %v1656_v17 }
 0xdb2   :  { %v1665_v22 = vsel %vm1662_vm6, %v1664_v19, %v1660_v21 }
 0xdb3   :  { %v1666_v23 = vmul.f32 %v1665_v22, %v5756_v61 }
 0xdb5   :  { %v1669_v25 = vmul.f32 %v4963_v18, %v1666_v23 }
 0xdb7   :  { %v5774_v28 = vadd.f32 %v4964_v0, %v1669_v25 }
 0xdb9   :  { %v1707_v42 = vpack.c.bf16 %v5774_v28, %v5772_v27 }
 0xdbb   :  { %4687 = vmatmul.msk.bf16.vlgmr.msra.gmra.mxu0 %vm130_vm0, %v1707_v42 }
 0xdc3   :  { %v1702_v30 = vpop.f32.mrf.mxu3 }
 0xdc4   :  { %1819 = vrot.lane.b32.xlu0 %v1702_v30, %s5402_s23 }
 0xdcb   :  { %v1704_v61 = vpop.f32.mrf.mxu3 }
 0xe36   :  { %v1820_v32 = vpop.permute.xlu0 %1819 }
 0xe38   :  { %v1736_v31 = vpop.f32.mrf.mxu0 }
 0xe39   :  { %1821 = vrot.lane.b32.xlu2 %v1736_v31, %s5402_s23  ;;  %4688 = vmatpush.xpose.msk.msrb.mxu2 %vm151_vm1, %v1736_v31 }
 0xe3c   :  { %4689 = vmatmul.msk.f32.vlgmr.msrb.gmra.mxu2 %vm151_vm1, %v1702_v30 }
 0xe40   :  { %v5783_v29 = vpop.f32.mrf.mxu0 }
 0xe41   :  { %1981 = vrot.lane.b32.xlu2 %v1704_v61, %s5402_s23  ;;  %1983 = vrot.lane.b32.xlu1 %v5783_v29, %s5402_s23 }
 0xe42   :  { %4694 = vmatpush.xpose.msk.msrb.mxu1 %vm151_vm1, %v5783_v29 }
 0xe45   :  { %4695 = vmatmul.msk.f32.vlgmr.msrb.gmra.mxu1 %vm151_vm1, %v1704_v61 }
 0xe93   :  { %v1822_v35 = vpop.permute.xlu2 %1821 }
 0xe94   :  { %4691 = vmatpush.xpose.msk.msrb.mxu0 %vm151_vm1, %v1822_v35 }
 0xe97   :  { %4692 = vmatmul.msk.f32.vlgmr.msrb.gmra.mxu0 %vm151_vm1, %v1820_v32 }
 0xe9b   :  { %v1982_v20 = vpop.permute.xlu2 %1981 }
 0xeb3   :  { %v1984_v38 = vpop.permute.xlu1 %1983 }
 0xeb4   :  { %4697 = vmatpush.xpose.msk.msra.mxu0 %vm151_vm1, %v1984_v38 }
 0xeb7   :  { %4698 = vmatmul.msk.f32.vlgmr.msra.gmra.mxu0 %vm151_vm1, %v1982_v20 }
 0xeb8   :  { %2351 = vmatpush.bf16.msrb.mxu0 %v4905_v37 }
 0xebc   :  { %2352 = vmatpush.bf16.msrb.mxu0 %v4904_v40 }
 0xebf   :  { %v1764_v41 = vpop.f32.mrf.mxu2  ;;  %4734 = vmatmul.msk.bf16.vlgmr.msrb.gmra.mxu0 %vm130_vm0, %v1707_v42 }
 0xec0   :  { %v1767_v39 = vmul.f32 0.17677669, %v1764_v41 }
 0xec2   :  { %v1768_v7 = vsel %vm177_vm2, %v1767_v39, -inf  ;;  %v1926_v46 = vpop.f32.mrf.mxu1 }
 0xec3   :  { %1769 = vmax.xlane.f32.xlu1 %v1768_v7  ;;  %v1929_v62 = vmul.f32 0.17677669, %v1926_v46 }
 0xec5   :  { %v1930_v56 = vsel %vm177_vm2, %v1929_v62, -inf }
 0xf14   :  { %v1844_v10 = vpop.f32.mrf.mxu0 }
 0xf15   :  { %v1847_v16 = vmul.f32 0.17677669, %v1844_v10 }
 0xf17   :  { %v1848_v44 = vsel %vm177_vm2, %v1847_v16, -inf }
 0xf18   :  { %1849 = vmax.xlane.f32.xlu0 %v1848_v44 }
 0xf34   :  { %v2006_v48 = vpop.f32.mrf.mxu0 }
 0xf35   :  { %v2009_v45 = vmul.f32 0.17677669, %v2006_v48 }
 0xf36   :  { %v1770_v59 = vpop.xlane.xlu1 %1769 }
 0xf37   :  { %v2010_v36 = vsel %vm177_vm2, %v2009_v45, -inf  ;;  %v1771_v6 = vsub.f32 %v1767_v39, %v1770_v59 }
 0xf38   :  { %2011 = vmax.xlane.f32.xlu2 %v2010_v36 }
 0xf39   :  { %v1772_v43 = vmul.f32 1.442695, %v1771_v6 }
 0xf40   :  { %1931 = vmax.xlane.f32.xlu2 %v1930_v56 }
 0xf58   :  { %1872 = vrot.lane.b32.xlu2 %v1736_v31, %s5400_s2 }
 0xf8b   :  { %v1850_v49 = vpop.xlane.xlu0 %1849 }
 0xf8c   :  { %v1851_v51 = vsub.f32 %v1847_v16, %v1850_v49 }
 0xf8e   :  { %v1852_v53 = vmul.f32 1.442695, %v1851_v51 }
 0xf90   :  { %5069 = vpow2.f32 %v1852_v53 }
 0xf96   :  { %v5070_v54 = vpop.eup %5069 }
 0xf97   :  { %v1854_v57 = vsel %vm177_vm2, %v5070_v54, 0.0 }
 0xf98   :  { %1855 = vadd.xlane.f32.xlu0 %v1854_v57 }
 0xfab   :  { %v2012_v60 = vpop.xlane.xlu2 %2011 }
 0xfac   :  { %v2013_v15 = vsub.f32 %v2009_v45, %v2012_v60  ;;  %2034 = vrot.lane.b32.xlu0 %v5783_v29, %s5400_s2 }
 0xfae   :  { %v2014_v63 = vmul.f32 1.442695, %v2013_v15 }
 0xfb0   :  { %5071 = vpow2.f32 %v2014_v63 }
 0xfb1   :  { %5073 = vpow2.f32 %v1772_v43 }
 0xfb3   :  { %v1932_v26 = vpop.xlane.xlu2 %1931 }
 0xfb4   :  { %1792 = vrot.lane.b32.xlu0 %v1736_v31, %s5401_s4  ;;  %v1933_v47 = vsub.f32 %v1929_v62, %v1932_v26 }
 0xfb6   :  { %v5072_v34 = vpop.eup %5071  ;;  %v1934_v52 = vmul.f32 1.442695, %v1933_v47 }
 0xfb7   :  { %v2016_v1 = vsel %vm177_vm2, %v5072_v34, 0.0  ;;  %v5806_v3 = vpop.eup %5073 }
 0xfb8   :  { %2017 = vadd.xlane.f32.xlu1 %v2016_v1  ;;  %5075 = vpow2.f32 %v1934_v52  ;;  %v1774_v55 = vsel %vm177_vm2, %v5806_v3, 0.0 }
 0xfbb   :  { %v1873_v2 = vpop.permute.xlu2 %1872 }
 0xfbc   :  { %1893 = vmatpush.msra.mxu2 %v1873_v2 }
 0xfbe   :  { %v5810_v50 = vpop.eup %5075 }
 0xfbf   :  { %v1936_v4 = vsel %vm177_vm2, %v5810_v50, 0.0 }
 0xfc0   :  { %1775 = vadd.xlane.f32.xlu1 %v1774_v55 }
 0xfc8   :  { %1937 = vadd.xlane.f32.xlu1 %v1936_v4 }
 0xfe1   :  { %1954 = vrot.lane.b32.xlu1 %v5783_v29, %s5401_s4 }
0x100b   :  { %v1856_v5 = vpop.xlane.xlu0 %1855 }
0x100c   :  { %5077 = vrcp.f32 %v1856_v5  ;;  %v1868_v13 = vand.u32 2147483648, %v1856_v5  ;;  %v1866_v17 = vand.u32 2147483647, %v1856_v5  ;;  %vm1862_vm8 = vweird.f32 %v1856_v5 }
0x100e   :  { %v1869_v19 = vor.u32 1.1754944e-38, %v1868_v13  ;;  %vm1867_vm10 = vcmp.eq.f32.partialorder %v1866_v17, 8.507059e+37  ;;  %v5832_v13 = vpop.f32.mrf.mxu0 }
0x1012   :  { %v5078_v8 = vpop.eup %5077 }
0x1013   :  { %v1858_v9 = vmul.f32 %v5078_v8, %v1856_v5  ;;  %vm1863_vm7 = vweird.f32 %v5078_v8 }
0x1014   :  { %vm1864_vm9 = vmor %vm1862_vm8, %vm1863_vm7 }
0x1015   :  { %v1859_v11 = vsub.f32 1.0, %v1858_v9 }
0x1017   :  { %v1860_v14 = vmul.f32 %v5078_v8, %v1859_v11 }
0x1019   :  { %v1861_v18 = vadd.f32 %v5078_v8, %v1860_v14  ;;  %v5836_v14 = vpop.f32.mrf.mxu0 }
0x101b   :  { %v1865_v21 = vsel %vm1864_vm9, %v5078_v8, %v1861_v18 }
0x101c   :  { %v1870_v22 = vsel %vm1867_vm10, %v1869_v19, %v1865_v21 }
0x101d   :  { %v1871_v23 = vmul.f32 %v5070_v54, %v1870_v22 }
0x101e   :  { %v2035_v24 = vpop.permute.xlu0 %2034 }
0x101f   :  { %4693 = vmatmul.msk.f32.vlgmr.msra.gmra.mxu2 %vm177_vm2, %v1871_v23 }
0x1020   :  { %2055 = vmatpush.msrb.mxu2 %v2035_v24 }
0x1026   :  { %v1793_v0 = vpop.permute.xlu0 %1792 }
0x1027   :  { %1813 = vmatpush.msrb.mxu3 %v1793_v0 }
0x102b   :  { %v2018_v25 = vpop.xlane.xlu1 %2017 }
0x102c   :  { %5079 = vrcp.f32 %v2018_v25  ;;  %v2030_v29 = vand.u32 2147483648, %v2018_v25  ;;  %v2028_v32 = vand.u32 2147483647, %v2018_v25  ;;  %vm2024_vm12 = vweird.f32 %v2018_v25 }
0x102e   :  { %v2031_v40 = vor.u32 1.1754944e-38, %v2030_v29  ;;  %vm2029_vm14 = vcmp.eq.f32.partialorder %v2028_v32, 8.507059e+37 }
0x1032   :  { %v5080_v42 = vpop.eup %5079 }
0x1033   :  { %v2020_v30 = vmul.f32 %v5080_v42, %v2018_v25  ;;  %v1776_v31 = vpop.xlane.xlu1 %1775  ;;  %vm2025_vm11 = vweird.f32 %v5080_v42 }
0x1034   :  { %5081 = vrcp.f32 %v1776_v31  ;;  %vm2026_vm13 = vmor %vm2024_vm12, %vm2025_vm11  ;;  %v1788_v44 = vand.u32 2147483648, %v1776_v31  ;;  %v1786_v45 = vand.u32 2147483647, %v1776_v31  ;;  %vm1782_vm5 = vweird.f32 %v1776_v31 }
0x1035   :  { %v2021_v61 = vsub.f32 1.0, %v2020_v30 }
0x1036   :  { %v1789_v62 = vor.u32 1.1754944e-38, %v1788_v44  ;;  %vm1787_vm7 = vcmp.eq.f32.partialorder %v1786_v45, 8.507059e+37  ;;  %v4898_v44 = vld [vmem:[#allocation10 + $0x90] sm:$0xff] }
0x1037   :  { %v2022_v35 = vmul.f32 %v5080_v42, %v2021_v61 }
0x1039   :  { %v2023_v37 = vadd.f32 %v5080_v42, %v2022_v35 }
0x103a   :  { %v5082_v38 = vpop.eup %5081 }
0x103b   :  { %v2027_v20 = vsel %vm2026_vm13, %v5080_v42, %v2023_v37  ;;  %v1778_v41 = vmul.f32 %v5082_v38, %v1776_v31  ;;  %v1938_v39 = vpop.xlane.xlu1 %1937  ;;  %vm1783_vm3 = vweird.f32 %v5082_v38 }
0x103c   :  { %v2032_v7 = vsel %vm2029_vm14, %v2031_v40, %v2027_v20  ;;  %5083 = vrcp.f32 %v1938_v39  ;;  %vm1784_vm6 = vmor %vm1782_vm5, %vm1783_vm3  ;;  %v1950_v60 = vand.u32 2147483648, %v1938_v39  ;;  %vm1944_vm9 = vweird.f32 %v1938_v39 }
0x103d   :  { %v1779_v10 = vsub.f32 1.0, %v1778_v41  ;;  %v2033_v16 = vmul.f32 %v5072_v34, %v2032_v7  ;;  %v1948_v15 = vand.u32 2147483647, %v1938_v39 }
0x103e   :  { %v1951_v63 = vor.u32 1.1754944e-38, %v1950_v60 }
0x103f   :  { %v1780_v48 = vmul.f32 %v5082_v38, %v1779_v10  ;;  %4699 = vmatmul.msk.f32.vlgmr.msrb.gmra.mxu2 %vm177_vm2, %v2033_v16  ;;  %vm1949_vm11 = vcmp.eq.f32.partialorder %v1948_v15, 8.507059e+37  ;;  %v4899_v10 = vld [vmem:[#allocation10 + $0x98] sm:$0xff] }
0x1040   :  { %2181 = vmatpush.bf16.msra.mxu1 %v4899_v10 }
0x1041   :  { %v1781_v36 = vadd.f32 %v5082_v38, %v1780_v48 }
0x1042   :  { %v5084_v46 = vpop.eup %5083 }
0x1043   :  { %v1785_v56 = vsel %vm1784_vm6, %v5082_v38, %v1781_v36  ;;  %v1940_v49 = vmul.f32 %v5084_v46, %v1938_v39  ;;  %vm1945_vm8 = vweird.f32 %v5084_v46 }
0x1044   :  { %v1790_v51 = vsel %vm1787_vm7, %v1789_v62, %v1785_v56  ;;  %vm1946_vm10 = vmor %vm1944_vm9, %vm1945_vm8  ;;  %2182 = vmatpush.bf16.msra.mxu1 %v4898_v44 }
0x1045   :  { %v1941_v53 = vsub.f32 1.0, %v1940_v49  ;;  %v1791_v54 = vmul.f32 %v5806_v3, %v1790_v51 }
0x1047   :  { %v1942_v57 = vmul.f32 %v5084_v46, %v1941_v53  ;;  %4690 = vmatmul.msk.f32.vlgmr.msrb.gmra.mxu3 %vm177_vm2, %v1791_v54 }
0x1049   :  { %v1943_v59 = vadd.f32 %v5084_v46, %v1942_v57 }
0x104b   :  { %v1947_v6 = vsel %vm1946_vm10, %v5084_v46, %v1943_v59 }
0x104c   :  { %v1952_v43 = vsel %vm1949_vm11, %v1951_v63, %v1947_v6 }
0x104d   :  { %v1953_v34 = vmul.f32 %v5810_v50, %v1952_v43 }
0x1053   :  { %v1955_v26 = vpop.permute.xlu1 %1954 }
0x1054   :  { %1975 = vmatpush.msra.mxu3 %v1955_v26 }
0x1055   :  { %4696 = vmatmul.msk.f32.vlgmr.msra.gmra.mxu3 %vm177_vm2, %v1953_v34 }
0x10a2   :  { %v1895_v47 = vpop.f32.mrf.mxu2 }
0x10a3   :  { %1899 = vrot.lane.b32.xlu2 %v1895_v47, %s5404_s25 }
0x10c2   :  { %v2057_v1 = vpop.f32.mrf.mxu2 }
0x10c3   :  { %2061 = vrot.lane.b32.xlu0 %v2057_v1, %s5404_s25 }
0x10ca   :  { %v1815_v52 = vpop.f32.mrf.mxu3 }
0x10cb   :  { %1818 = vst.msk [vmem:[#allocation3] sm:$0xff] %vm151_vm1, %v1815_v52 }
0x10d8   :  { %v1977_v2 = vpop.f32.mrf.mxu3 }
0x10d9   :  { %1980 = vst.msk [vmem:[#allocation3 + $0x8] sm:$0xff] %vm151_vm1, %v1977_v2 }
0x10fd   :  { %v1900_v3 = vpop.permute.xlu2 %1899 }
0x10fe   :  { %1902 = vst.msk [vmem:[#allocation3] sm:$0xff] %vm312_vm15, %v1900_v3 }
0x1105   :  { %v2065_v55 = vld [vmem:[#allocation3] sm:$0xff] }
0x1106   :  { %v2067_v50 = vadd.f32 %v2065_v55, %v5763_v58 }
0x1108   :  { %v2071_v4 = vsel %vm130_vm0, %v2067_v50, 0.0 }
0x1109   :  { %2072 = vadd.xlane.f32.xlu2 %v2071_v4 }
0x1135   :  { %v2062_v5 = vpop.permute.xlu0 %2061 }
0x1136   :  { %2064 = vst.msk [vmem:[#allocation3 + $0x8] sm:$0xff] %vm312_vm15, %v2062_v5 }
0x113d   :  { %v2066_v8 = vld [vmem:[#allocation3 + $0x8] sm:$0xff] }
0x113e   :  { %v2068_v9 = vadd.f32 %v2066_v8, %v5765_v33 }
0x1140   :  { %v2074_v11 = vsel %vm130_vm0, %v2068_v9, 0.0 }
0x1141   :  { %2075 = vadd.xlane.f32.xlu0 %v2074_v11 }
0x1155   :  { %2360 = vrot.lane.b32.xlu0 %v5832_v13, %s5401_s4 }
0x115d   :  { %2523 = vrot.lane.b32.xlu0 %v5836_v14, %s5401_s4 }
0x117c   :  { %v2073_v58 = vpop.xlane.xlu2 %2072 }
0x117d   :  { %v2077_v17 = vmul.f32 %v2073_v58, %v5568_v12 }
0x117f   :  { %v5841_v18 = vsub.f32 %v2067_v50, %v2077_v17  ;;  %v4965_v17 = vld [vmem:[#allocation12 + $0xa] ss:$0 sm:$0xff] }
0x1181   :  { %v2081_v33 = vmul.f32 %v5841_v18, %v5841_v18 }
0x1183   :  { %v2083_v19 = vsel %vm130_vm0, %v2081_v33, 0.0 }
0x1184   :  { %2084 = vadd.xlane.f32.xlu1 %v2083_v19 }
0x11b4   :  { %v2076_v21 = vpop.xlane.xlu0 %2075 }
0x11b5   :  { %v2078_v22 = vmul.f32 %v2076_v21, %v5568_v12 }
0x11b7   :  { %v5847_v23 = vsub.f32 %v2068_v9, %v2078_v22 }
0x11b9   :  { %v2082_v24 = vmul.f32 %v5847_v23, %v5847_v23 }
0x11bb   :  { %v2086_v0 = vsel %vm130_vm0, %v2082_v24, 0.0 }
0x11bc   :  { %2087 = vadd.xlane.f32.xlu2 %v2086_v0  ;;  %v4966_v0 = vld [vmem:[#allocation12 + $0xb] ss:$0 sm:$0xff] }
0x11c7   :  { %v2361_v25 = vpop.permute.xlu0 %2360 }
0x11c8   :  { %4735 = vmatpush.xpose.msk.msra.mxu2 %vm151_vm1, %v2361_v25 }
0x11cb   :  { %4736 = vmatmul.msk.f32.vlgmr.msra.gmra.mxu2 %vm151_vm1, %v5832_v13 }
0x11f7   :  { %v2085_v42 = vpop.xlane.xlu1 %2084 }
0x11f8   :  { %v2089_v30 = vmul.f32 0.032258064, %v2085_v42 }
0x11fa   :  { %5085 = vrsqrt.f32 %v2089_v30  ;;  %vm2098_vm12 = vcmp.eq.f32.partialorder %v2089_v30, inf  ;;  %v2101_v20 = vand.u32 2147483648, %v2089_v30  ;;  %vm2100_vm13 = vcmp.eq.f32.partialorder %v2089_v30, 0.0 }
0x1200   :  { %v5086_v31 = vpop.eup %5085 }
0x1201   :  { %v2092_v61 = vmul.f32 %v5086_v31, %v2089_v30 }
0x1203   :  { %v2093_v29 = vmul.f32 %v5086_v31, %v2092_v61  ;;  %v4903_v61 = vld [vmem:[#allocation10 + $0xb8] sm:$0xff] }
0x1204   :  { %2233 = vmatpush.bf16.msrb.mxu3 %v4903_v61 }
0x1205   :  { %v2094_v35 = vmul.f32 0.5, %v2093_v29 }
0x1207   :  { %v2095_v32 = vsub.f32 1.5, %v2094_v35 }
0x1209   :  { %v2096_v37 = vmul.f32 %v5086_v31, %v2095_v32  ;;  %v4901_v32 = vld [vmem:[#allocation10 + $0xa8] sm:$0xff] }
0x120b   :  { %v2097_v38 = vmul.f32 %v2096_v37, %v2089_v30 }
0x120d   :  { %v2099_v40 = vsel %vm2098_vm12, %v2089_v30, %v2097_v38  ;;  %v4900_v38 = vld [vmem:[#allocation10 + $0xa0] sm:$0xff] }
0x120e   :  { %v2102_v39 = vsel %vm2100_vm13, %v2101_v20, %v2099_v40 }
0x120f   :  { %v2115_v16 = vadd.f32 0.001, %v2102_v39 }
0x1211   :  { %v2128_v43 = vand.u32 2147483648, %v2115_v16  ;;  %vm2122_vm6 = vweird.f32 %v2115_v16  ;;  %v2126_v34 = vand.u32 2147483647, %v2115_v16 }
0x1213   :  { %v2129_v55 = vor.u32 1.1754944e-38, %v2128_v43  ;;  %vm2127_vm8 = vcmp.eq.f32.partialorder %v2126_v34, 8.507059e+37 }
0x122f   :  { %v2088_v41 = vpop.xlane.xlu2 %2087 }
0x1230   :  { %v2090_v7 = vmul.f32 0.032258064, %v2088_v41  ;;  %v4967_v41 = vld [vmem:[#allocation12 + $0xe] ss:$0 sm:$0xff] }
0x1232   :  { %5087 = vrsqrt.f32 %v2090_v7  ;;  %vm2110_vm14 = vcmp.eq.f32.partialorder %v2090_v7, inf  ;;  %v2113_v54 = vand.u32 2147483648, %v2090_v7  ;;  %vm2112_vm3 = vcmp.eq.f32.partialorder %v2090_v7, 0.0 }
0x1233   :  { %5089 = vrcp.f32 %v2115_v16 }
0x1238   :  { %v5088_v48 = vpop.eup %5087 }
0x1239   :  { %v2104_v45 = vmul.f32 %v5088_v48, %v2090_v7  ;;  %v5090_v46 = vpop.eup %5089 }
0x123a   :  { %v2118_v49 = vmul.f32 %v5090_v46, %v2115_v16  ;;  %vm2123_vm5 = vweird.f32 %v5090_v46 }
0x123b   :  { %v2105_v36 = vmul.f32 %v5088_v48, %v2104_v45  ;;  %vm2124_vm7 = vmor %vm2122_vm6, %vm2123_vm5  ;;  %v4968_v45 = vld [vmem:[#allocation12 + $0xf] ss:$0 sm:$0xff] }
0x123c   :  { %v2119_v57 = vsub.f32 1.0, %v2118_v49 }
0x123d   :  { %v2106_v62 = vmul.f32 0.5, %v2105_v36 }
0x123e   :  { %v2120_v6 = vmul.f32 %v5090_v46, %v2119_v57 }
0x123f   :  { %v2107_v56 = vsub.f32 1.5, %v2106_v62 }
0x1240   :  { %v2121_v63 = vadd.f32 %v5090_v46, %v2120_v6 }
0x1241   :  { %v2108_v51 = vmul.f32 %v5088_v48, %v2107_v56 }
0x1242   :  { %v2125_v52 = vsel %vm2124_vm7, %v5090_v46, %v2121_v63 }
0x1243   :  { %v2109_v53 = vmul.f32 %v2108_v51, %v2090_v7  ;;  %v2130_v4 = vsel %vm2127_vm8, %v2129_v55, %v2125_v52 }
0x1244   :  { %v2131_v11 = vmul.f32 %v2130_v4, %v5841_v18  ;;  %v4902_v18 = vld [vmem:[#allocation10 + $0xb0] sm:$0xff] }
0x1245   :  { %v2111_v59 = vsel %vm2110_vm14, %v2090_v7, %v2109_v53  ;;  %2234 = vmatpush.bf16.msrb.mxu3 %v4902_v18 }
0x1246   :  { %v2114_v60 = vsel %vm2112_vm3, %v2113_v54, %v2111_v59  ;;  %v2148_v24 = vmul.f32 %v4965_v17, %v2131_v11 }
0x1247   :  { %v2116_v15 = vadd.f32 0.001, %v2114_v60 }
0x1248   :  { %v2151_v42 = vadd.f32 %v4966_v0, %v2148_v24 }
0x1249   :  { %5091 = vrcp.f32 %v2116_v15  ;;  %v2143_v5 = vand.u32 2147483648, %v2116_v15  ;;  %v2141_v9 = vand.u32 2147483647, %v2116_v15  ;;  %vm2137_vm10 = vweird.f32 %v2116_v15  ;;  %2235 = vmatpush.bf16.msrb.mxu3 %v4901_v32  ;;  %v4906_v32 = vld [vmem:[#allocation10 + $0x120] sm:$0xff] }
0x124b   :  { %v2144_v33 = vor.u32 1.1754944e-38, %v2143_v5  ;;  %vm2142_vm12 = vcmp.eq.f32.partialorder %v2141_v9, 8.507059e+37 }
0x124d   :  { %2236 = vmatpush.bf16.msrb.mxu3 %v4900_v38 }
0x124e   :  { %v2383_v26 = vpop.f32.mrf.mxu2 }
0x124f   :  { %v5092_v47 = vpop.eup %5091  ;;  %v2386_v1 = vmul.f32 0.17677669, %v2383_v26 }
0x1250   :  { %v2133_v2 = vmul.f32 %v5092_v47, %v2116_v15  ;;  %vm2138_vm9 = vweird.f32 %v5092_v47 }
0x1251   :  { %v2387_v3 = vsel %vm177_vm2, %v2386_v1, -inf  ;;  %vm2139_vm11 = vmor %vm2137_vm10, %vm2138_vm9 }
0x1252   :  { %2388 = vmax.xlane.f32.xlu2 %v2387_v3  ;;  %v2134_v50 = vsub.f32 1.0, %v2133_v2 }
0x1254   :  { %v2135_v8 = vmul.f32 %v5092_v47, %v2134_v50 }
0x1256   :  { %v2136_v58 = vadd.f32 %v5092_v47, %v2135_v8 }
0x1258   :  { %v2140_v19 = vsel %vm2139_vm11, %v5092_v47, %v2136_v58 }
0x1259   :  { %v2145_v21 = vsel %vm2142_vm12, %v2144_v33, %v2140_v19  ;;  %v2524_v33 = vpop.permute.xlu0 %2523 }
0x125a   :  { %v2146_v22 = vmul.f32 %v2145_v21, %v5847_v23 }
0x125c   :  { %v2149_v25 = vmul.f32 %v4965_v17, %v2146_v22 }
0x125e   :  { %v2152_v30 = vadd.f32 %v4966_v0, %v2149_v25 }
0x1260   :  { %v2153_v31 = vpack.c.bf16 %v2152_v30, %v2151_v42 }
0x1262   :  { %4708 = vmatmul.msk.bf16.vlgmr.msra.gmra.mxu1 %vm130_vm0, %v2153_v31 }
0x12c5   :  { %v2389_v29 = vpop.xlane.xlu2 %2388 }
0x12c6   :  { %v2390_v35 = vsub.f32 %v2386_v1, %v2389_v29  ;;  %v4907_v29 = vld [vmem:[#allocation10 + $0x128] sm:$0xff] }
0x12c8   :  { %v2391_v37 = vmul.f32 1.442695, %v2390_v35 }
0x12ca   :  { %5093 = vpow2.f32 %v2391_v37 }
0x12d0   :  { %v5094_v23 = vpop.eup %5093 }
0x12d1   :  { %v2393_v40 = vsel %vm177_vm2, %v5094_v23, 0.0 }
0x12d2   :  { %2394 = vadd.xlane.f32.xlu2 %v2393_v40 }
0x12df   :  { %v2184_v20 = vpop.f32.mrf.mxu1 }
0x12e0   :  { %v2185_v39 = vadd.f32 %v4967_v41, %v2184_v20 }
0x12e2   :  { %v2189_v16 = vmax.f32 %v2185_v39, 0.0 }
0x12e7   :  { %v2186_v7 = vpop.f32.mrf.mxu1 }
0x12e8   :  { %v2187_v10 = vadd.f32 %v4967_v41, %v2186_v7 }
0x12ea   :  { %v2190_v44 = vmax.f32 %v2187_v10, 0.0 }
0x12ec   :  { %v2191_v48 = vpack.c.bf16 %v2190_v44, %v2189_v16 }
0x12ee   :  { %4725 = vmatmul.msk.bf16.vlgmr.msrb.gmra.mxu3 %vm1569_vm4, %v2191_v48 }
0x1345   :  { %v2395_v57 = vpop.xlane.xlu2 %2394 }
0x1346   :  { %5095 = vrcp.f32 %v2395_v57  ;;  %v2407_v50 = vand.u32 2147483648, %v2395_v57  ;;  %vm2401_vm14 = vweird.f32 %v2395_v57  ;;  %v2405_v5 = vand.u32 2147483647, %v2395_v57 }
0x1348   :  { %v2408_v9 = vor.u32 1.1754944e-38, %v2407_v50  ;;  %vm2406_vm5 = vcmp.eq.f32.partialorder %v2405_v5, 8.507059e+37 }
0x134c   :  { %v5096_v59 = vpop.eup %5095 }
0x134d   :  { %v2397_v6 = vmul.f32 %v5096_v59, %v2395_v57  ;;  %vm2402_vm13 = vweird.f32 %v5096_v59 }
0x134e   :  { %vm2403_vm3 = vmor %vm2401_vm14, %vm2402_vm13 }
0x134f   :  { %v2398_v26 = vsub.f32 1.0, %v2397_v6 }
0x1351   :  { %v2399_v52 = vmul.f32 %v5096_v59, %v2398_v26 }
0x1353   :  { %v2400_v55 = vadd.f32 %v5096_v59, %v2399_v52 }
0x1355   :  { %v2404_v8 = vsel %vm2403_vm3, %v5096_v59, %v2400_v55 }
0x1356   :  { %v2409_v11 = vsel %vm2406_vm5, %v2408_v9, %v2404_v8 }
0x1357   :  { %v2410_v17 = vmul.f32 %v5094_v23, %v2409_v11  ;;  %v4969_v11 = vld [vmem:[#allocation12 + $0xc] ss:$0 sm:$0xff] }
0x1371   :  { %v2238_v36 = vpop.f32.mrf.mxu3 }
0x1372   :  { %v2239_v46 = vadd.f32 %v4968_v45, %v2238_v36 }
0x1374   :  { %v2243_v62 = vadd.f32 %v2239_v46, %v2151_v42 }
0x1376   :  { %v2247_v56 = vsel %vm130_vm0, %v2243_v62, 0.0 }
0x1377   :  { %2248 = vadd.xlane.f32.xlu1 %v2247_v56 }
0x1379   :  { %v2240_v49 = vpop.f32.mrf.mxu3 }
0x137a   :  { %v2241_v51 = vadd.f32 %v4968_v45, %v2240_v49 }
0x137c   :  { %v2244_v53 = vadd.f32 %v2241_v51, %v2152_v30 }
0x137e   :  { %v2250_v54 = vsel %vm130_vm0, %v2244_v53, 0.0 }
0x137f   :  { %2251 = vadd.xlane.f32.xlu2 %v2250_v54 }
0x1390   :  { %2411 = vrot.lane.b32.xlu1 %v5832_v13, %s5395_s9 }
0x1398   :  { %2603 = vrot.lane.b32.xlu1 %v5836_v14, %s5400_s2 }
0x13a0   :  { %2438 = vrot.lane.b32.xlu1 %v5832_v13, %s5402_s23 }
0x13a8   :  { %2601 = vrot.lane.b32.xlu1 %v5836_v14, %s5402_s23 }
0x13b0   :  { %2574 = vrot.lane.b32.xlu1 %v5836_v14, %s5395_s9 }
0x13ea   :  { %v2249_v60 = vpop.xlane.xlu1 %2248 }
0x13eb   :  { %v2253_v15 = vmul.f32 %v2249_v60, %v5568_v12 }
0x13ed   :  { %v5874_v63 = vsub.f32 %v2243_v62, %v2253_v15 }
0x13ef   :  { %v2257_v43 = vmul.f32 %v5874_v63, %v5874_v63 }
0x13f1   :  { %v2259_v34 = vsel %vm130_vm0, %v2257_v43, 0.0 }
0x13f2   :  { %2260 = vadd.xlane.f32.xlu2 %v2259_v34  ;;  %v2252_v47 = vpop.xlane.xlu2 %2251 }
0x13f3   :  { %v2254_v1 = vmul.f32 %v2252_v47, %v5568_v12 }
0x13f5   :  { %v5880_v2 = vsub.f32 %v2244_v53, %v2254_v1 }
0x13f7   :  { %v2258_v3 = vmul.f32 %v5880_v2, %v5880_v2 }
0x13f9   :  { %v2262_v4 = vsel %vm130_vm0, %v2258_v3, 0.0 }
0x13fa   :  { %2263 = vadd.xlane.f32.xlu0 %v2262_v4 }
0x1402   :  { %v2412_v58 = vpop.permute.xlu1 %2411 }
0x1403   :  { %2432 = vmatpush.msrb.mxu2 %v2412_v58 }
0x1404   :  { %4737 = vmatmul.msk.f32.vlgmr.msrb.gmra.mxu2 %vm177_vm2, %v2410_v17 }
0x1405   :  { %4741 = vmatpush.xpose.msk.msra.mxu2 %vm151_vm1, %v2524_v33 }
0x1409   :  { %2799 = vmatpush.bf16.msrb.mxu2 %v4907_v29 }
0x140a   :  { %v2604_v19 = vpop.permute.xlu1 %2603 }
0x140b   :  { %4744 = vmatpush.xpose.msk.msra.mxu3 %vm151_vm1, %v2604_v19 }
0x140c   :  { %4742 = vmatmul.msk.f32.vlgmr.msra.gmra.mxu2 %vm151_vm1, %v5836_v14 }
0x140d   :  { %2800 = vmatpush.bf16.msrb.mxu2 %v4906_v32 }
0x1412   :  { %v5890_v21 = vpop.permute.xlu1 %2438 }
0x141a   :  { %v2602_v22 = vpop.permute.xlu1 %2601 }
0x141b   :  { %4745 = vmatmul.msk.f32.vlgmr.msra.gmra.mxu3 %vm151_vm1, %v2602_v22 }
0x1465   :  { %v2261_v24 = vpop.xlane.xlu2 %2260 }
0x1466   :  { %v2265_v0 = vmul.f32 0.032258064, %v2261_v24  ;;  %v4970_v24 = vld [vmem:[#allocation12 + $0xd] ss:$0 sm:$0xff] }
0x1468   :  { %5097 = vrsqrt.f32 %v2265_v0  ;;  %vm2274_vm6 = vcmp.eq.f32.partialorder %v2265_v0, inf  ;;  %v2277_v41 = vand.u32 2147483648, %v2265_v0  ;;  %vm2276_vm7 = vcmp.eq.f32.partialorder %v2265_v0, 0.0 }
0x146d   :  { %v2264_v25 = vpop.xlane.xlu0 %2263 }
0x146e   :  { %v5098_v42 = vpop.eup %5097  ;;  %v2266_v30 = vmul.f32 0.032258064, %v2264_v25 }
0x146f   :  { %v2268_v31 = vmul.f32 %v5098_v42, %v2265_v0 }
0x1470   :  { %5099 = vrsqrt.f32 %v2266_v30  ;;  %vm2286_vm8 = vcmp.eq.f32.partialorder %v2266_v30, inf  ;;  %v2289_v36 = vand.u32 2147483648, %v2266_v30  ;;  %vm2288_vm9 = vcmp.eq.f32.partialorder %v2266_v30, 0.0 }
0x1471   :  { %v2269_v61 = vmul.f32 %v5098_v42, %v2268_v31 }
0x1473   :  { %v2270_v18 = vmul.f32 0.5, %v2269_v61 }
0x1475   :  { %v2271_v35 = vsub.f32 1.5, %v2270_v18  ;;  %v2575_v18 = vpop.permute.xlu1 %2574 }
0x1476   :  { %v5100_v37 = vpop.eup %5099 }
0x1477   :  { %v2272_v38 = vmul.f32 %v5098_v42, %v2271_v35  ;;  %v2280_v23 = vmul.f32 %v5100_v37, %v2266_v30 }
0x1479   :  { %v2273_v40 = vmul.f32 %v2272_v38, %v2265_v0  ;;  %v2281_v20 = vmul.f32 %v5100_v37, %v2280_v23 }
0x147b   :  { %v2275_v39 = vsel %vm2274_vm6, %v2265_v0, %v2273_v40  ;;  %v2282_v7 = vmul.f32 0.5, %v2281_v20 }
0x147c   :  { %v2278_v10 = vsel %vm2276_vm7, %v2277_v41, %v2275_v39 }
0x147d   :  { %v2291_v16 = vadd.f32 0.001, %v2278_v10  ;;  %v2283_v44 = vsub.f32 1.5, %v2282_v7 }
0x147f   :  { %5101 = vrcp.f32 %v2291_v16  ;;  %v2284_v48 = vmul.f32 %v5100_v37, %v2283_v44  ;;  %v2304_v59 = vand.u32 2147483648, %v2291_v16  ;;  %vm2298_vm11 = vweird.f32 %v2291_v16 }
0x1480   :  { %v2302_v15 = vand.u32 2147483647, %v2291_v16 }
0x1481   :  { %v2285_v45 = vmul.f32 %v2284_v48, %v2266_v30  ;;  %v2305_v47 = vor.u32 1.1754944e-38, %v2304_v59 }
0x1482   :  { %vm2303_vm13 = vcmp.eq.f32.partialorder %v2302_v15, 8.507059e+37 }
0x1483   :  { %v2287_v46 = vsel %vm2286_vm8, %v2266_v30, %v2285_v45 }
0x1484   :  { %v2290_v62 = vsel %vm2288_vm9, %v2289_v36, %v2287_v46 }
0x1485   :  { %v5102_v56 = vpop.eup %5101  ;;  %v2292_v49 = vadd.f32 0.001, %v2290_v62 }
0x1486   :  { %v2294_v51 = vmul.f32 %v5102_v56, %v2291_v16  ;;  %vm2299_vm10 = vweird.f32 %v5102_v56 }
0x1487   :  { %5103 = vrcp.f32 %v2292_v49  ;;  %v2434_v53 = vpop.f32.mrf.mxu2  ;;  %vm2300_vm12 = vmor %vm2298_vm11, %vm2299_vm10  ;;  %v2319_v55 = vand.u32 2147483648, %v2292_v49  ;;  %v2317_v5 = vand.u32 2147483647, %v2292_v49  ;;  %vm2313_vm3 = vweird.f32 %v2292_v49 }
0x1488   :  { %2437 = vst.msk [vmem:[#allocation2] sm:$0xff] %vm151_vm1, %v2434_v53  ;;  %v2295_v54 = vsub.f32 1.0, %v2294_v51 }
0x1489   :  { %v2320_v58 = vor.u32 1.1754944e-38, %v2319_v55  ;;  %vm2318_vm6 = vcmp.eq.f32.partialorder %v2317_v5, 8.507059e+37 }
0x148a   :  { %v2296_v57 = vmul.f32 %v5102_v56, %v2295_v54 }
0x148c   :  { %v2297_v60 = vadd.f32 %v5102_v56, %v2296_v57 }
0x148d   :  { %v5104_v6 = vpop.eup %5103 }
0x148e   :  { %v2301_v43 = vsel %vm2300_vm12, %v5102_v56, %v2297_v60  ;;  %v2309_v26 = vmul.f32 %v5104_v6, %v2292_v49  ;;  %vm2314_vm14 = vweird.f32 %v5104_v6 }
0x148f   :  { %v2546_v34 = vpop.f32.mrf.mxu2  ;;  %v2306_v3 = vsel %vm2303_vm13, %v2305_v47, %v2301_v43  ;;  %vm2315_vm5 = vmor %vm2313_vm3, %vm2314_vm14 }
0x1490   :  { %v2549_v1 = vmul.f32 0.17677669, %v2546_v34  ;;  %v2310_v52 = vsub.f32 1.0, %v2309_v26  ;;  %v2307_v8 = vmul.f32 %v2306_v3, %v5874_v63 }
0x1492   :  { %v2550_v50 = vsel %vm177_vm2, %v2549_v1, -inf  ;;  %v2311_v4 = vmul.f32 %v5104_v6, %v2310_v52  ;;  %v2324_v22 = vmul.f32 %v4969_v11, %v2307_v8 }
0x1493   :  { %2551 = vmax.xlane.f32.xlu2 %v2550_v50 }
0x1494   :  { %v2312_v9 = vadd.f32 %v5104_v6, %v2311_v4  ;;  %v5897_v25 = vadd.f32 %v4970_v24, %v2324_v22 }
0x1496   :  { %v2316_v17 = vsel %vm2315_vm5, %v5104_v6, %v2312_v9 }
0x1497   :  { %v2321_v33 = vsel %vm2318_vm6, %v2320_v58, %v2316_v17 }
0x1498   :  { %v2322_v19 = vmul.f32 %v2321_v33, %v5880_v2 }
0x149a   :  { %v2325_v0 = vmul.f32 %v4969_v11, %v2322_v19 }
0x149c   :  { %v5899_v42 = vadd.f32 %v4970_v24, %v2325_v0 }
0x149e   :  { %v5903_v63 = vpack.c.bf16 %v5899_v42, %v5897_v25  ;;  %v2626_v37 = vpop.f32.mrf.mxu3 }
0x149f   :  { %v2629_v38 = vmul.f32 0.17677669, %v2626_v37 }
0x14a0   :  { %4755 = vmatmul.msk.bf16.vlgmr.msrb.gmra.mxu2 %vm130_vm0, %v5903_v63 }
0x14a1   :  { %v2630_v23 = vsel %vm177_vm2, %v2629_v38, -inf }
0x14ab   :  { %2440 = vrot.lane.b32.xlu2 %v5832_v13, %s5400_s2 }
0x1506   :  { %v2552_v30 = vpop.xlane.xlu2 %2551 }
0x1507   :  { %v2553_v31 = vsub.f32 %v2549_v1, %v2552_v30 }
0x1509   :  { %v2554_v2 = vmul.f32 1.442695, %v2553_v31 }
0x150b   :  { %5105 = vpow2.f32 %v2554_v2 }
0x150e   :  { %v2441_v61 = vpop.permute.xlu2 %2440 }
0x150f   :  { %4738 = vmatpush.xpose.msk.msrb.mxu1 %vm151_vm1, %v2441_v61 }
0x1511   :  { %v5106_v29 = vpop.eup %5105 }
0x1512   :  { %4739 = vmatmul.msk.f32.vlgmr.msrb.gmra.mxu1 %vm151_vm1, %v5890_v21  ;;  %v2556_v35 = vsel %vm177_vm2, %v5106_v29, 0.0 }
0x1513   :  { %2595 = vmatpush.msra.mxu1 %v2575_v18  ;;  %2557 = vadd.xlane.f32.xlu2 %v2556_v35 }
0x1523   :  { %v5913_v32 = vpop.f32.mrf.mxu2 }
0x1524   :  { %2808 = vrot.lane.b32.xlu0 %v5913_v32, %s5401_s4 }
0x152b   :  { %v5929_v3 = vpop.f32.mrf.mxu2 }
0x154e   :  { %2631 = vmax.xlane.f32.xlu0 %v2630_v23 }
0x1586   :  { %v2558_v40 = vpop.xlane.xlu2 %2557 }
0x1587   :  { %5107 = vrcp.f32 %v2558_v40  ;;  %v2570_v10 = vand.u32 2147483648, %v2558_v40  ;;  %v2568_v44 = vand.u32 2147483647, %v2558_v40  ;;  %vm2564_vm8 = vweird.f32 %v2558_v40 }
0x1589   :  { %v2571_v36 = vor.u32 1.1754944e-38, %v2570_v10  ;;  %vm2569_vm10 = vcmp.eq.f32.partialorder %v2568_v44, 8.507059e+37 }
0x158d   :  { %v5108_v20 = vpop.eup %5107 }
0x158e   :  { %v2560_v41 = vmul.f32 %v5108_v20, %v2558_v40  ;;  %vm2565_vm7 = vweird.f32 %v5108_v20 }
0x158f   :  { %v2463_v39 = vpop.f32.mrf.mxu1  ;;  %vm2566_vm9 = vmor %vm2564_vm8, %vm2565_vm7 }
0x1590   :  { %v2561_v7 = vsub.f32 1.0, %v2560_v41  ;;  %v2466_v21 = vmul.f32 0.17677669, %v2463_v39 }
0x1592   :  { %v2562_v16 = vmul.f32 %v5108_v20, %v2561_v7  ;;  %v2467_v48 = vsel %vm177_vm2, %v2466_v21, -inf }
0x1593   :  { %2468 = vmax.xlane.f32.xlu1 %v2467_v48 }
0x1594   :  { %v2563_v45 = vadd.f32 %v5108_v20, %v2562_v16 }
0x1596   :  { %v2567_v46 = vsel %vm2566_vm9, %v5108_v20, %v2563_v45  ;;  %v2809_v62 = vpop.permute.xlu0 %2808 }
0x1597   :  { %v2572_v56 = vsel %vm2569_vm10, %v2571_v36, %v2567_v46  ;;  %4756 = vmatpush.xpose.msk.msrb.mxu1 %vm151_vm1, %v2809_v62 }
0x1598   :  { %v2573_v49 = vmul.f32 %v5106_v29, %v2572_v56 }
0x159a   :  { %4743 = vmatmul.msk.f32.vlgmr.msra.gmra.mxu1 %vm177_vm2, %v2573_v49 }
0x15a2   :  { %4757 = vmatmul.msk.f32.vlgmr.msrb.gmra.mxu1 %vm151_vm1, %v5913_v32 }
0x15c1   :  { %v2632_v51 = vpop.xlane.xlu0 %2631 }
0x15c2   :  { %v2633_v57 = vsub.f32 %v2629_v38, %v2632_v51 }
0x15c4   :  { %v2634_v60 = vmul.f32 1.442695, %v2633_v57 }
0x1606   :  { %v2469_v53 = vpop.xlane.xlu1 %2468 }
0x1607   :  { %v2470_v54 = vsub.f32 %v2466_v21, %v2469_v53 }
0x1609   :  { %v2471_v59 = vmul.f32 1.442695, %v2470_v54 }
0x160b   :  { %5109 = vpow2.f32 %v2471_v59 }
0x160c   :  { %5111 = vpow2.f32 %v2634_v60 }
0x1611   :  { %v5110_v15 = vpop.eup %5109 }
0x1612   :  { %v2473_v6 = vsel %vm177_vm2, %v5110_v15, 0.0  ;;  %v5112_v43 = vpop.eup %5111 }
0x1613   :  { %2474 = vadd.xlane.f32.xlu2 %v2473_v6  ;;  %v2636_v34 = vsel %vm177_vm2, %v5112_v43, 0.0 }
0x1617   :  { %v2597_v26 = vpop.f32.mrf.mxu1 }
0x1618   :  { %2600 = vst.msk [vmem:[#allocation2 + $0x8] sm:$0xff] %vm151_vm1, %v2597_v26 }
0x161b   :  { %2637 = vadd.xlane.f32.xlu2 %v2636_v34 }
0x161f   :  { %v2831_v47 = vpop.f32.mrf.mxu1 }
0x1620   :  { %v2834_v1 = vmul.f32 0.17677669, %v2831_v47 }
0x1622   :  { %v2835_v52 = vsel %vm177_vm2, %v2834_v1, -inf }
0x1623   :  { %2836 = vmax.xlane.f32.xlu1 %v2835_v52 }
0x1633   :  { %2491 = vrot.lane.b32.xlu2 %v5832_v13, %s5403_s24 }
0x163b   :  { %2971 = vrot.lane.b32.xlu2 %v5929_v3, %s5401_s4 }
0x163c   :  { %2654 = vrot.lane.b32.xlu1 %v5836_v14, %s5403_s24 }
0x1686   :  { %v2475_v55 = vpop.xlane.xlu2 %2474 }
0x1687   :  { %5113 = vrcp.f32 %v2475_v55  ;;  %v2487_v9 = vand.u32 2147483648, %v2475_v55  ;;  %v2485_v58 = vand.u32 2147483647, %v2475_v55  ;;  %vm2481_vm12 = vweird.f32 %v2475_v55 }
0x1689   :  { %v2488_v33 = vor.u32 1.1754944e-38, %v2487_v9  ;;  %vm2486_vm14 = vcmp.eq.f32.partialorder %v2485_v58, 8.507059e+37 }
0x168d   :  { %v5114_v50 = vpop.eup %5113 }
0x168e   :  { %v2477_v4 = vmul.f32 %v5114_v50, %v2475_v55  ;;  %v2638_v5 = vpop.xlane.xlu2 %2637  ;;  %vm2482_vm11 = vweird.f32 %v5114_v50 }
0x168f   :  { %5115 = vrcp.f32 %v2638_v5  ;;  %vm2483_vm13 = vmor %vm2481_vm12, %vm2482_vm11  ;;  %v2650_v38 = vand.u32 2147483648, %v2638_v5  ;;  %vm2644_vm5 = vweird.f32 %v2638_v5  ;;  %v2648_v23 = vand.u32 2147483647, %v2638_v5 }
0x1690   :  { %v2478_v8 = vsub.f32 1.0, %v2477_v4 }
0x1691   :  { %v2651_v20 = vor.u32 1.1754944e-38, %v2650_v38  ;;  %vm2649_vm7 = vcmp.eq.f32.partialorder %v2648_v23, 8.507059e+37  ;;  %v4909_v23 = vld [vmem:[#allocation10 + $0xd8] sm:$0xff] }
0x1692   :  { %v2479_v11 = vmul.f32 %v5114_v50, %v2478_v8 }
0x1694   :  { %v2480_v13 = vadd.f32 %v5114_v50, %v2479_v11 }
0x1695   :  { %v5116_v17 = vpop.eup %5115 }
0x1696   :  { %v2484_v19 = vsel %vm2483_vm13, %v5114_v50, %v2480_v13  ;;  %v2837_v22 = vpop.xlane.xlu1 %2836  ;;  %v2492_v14 = vpop.permute.xlu2 %2491  ;;  %v2640_v30 = vmul.f32 %v5116_v17, %v2638_v5  ;;  %vm2645_vm3 = vweird.f32 %v5116_v17 }
0x1697   :  { %v2489_v24 = vsel %vm2486_vm14, %v2488_v33, %v2484_v19  ;;  %v2838_v0 = vsub.f32 %v2834_v1, %v2837_v22  ;;  %2512 = vmatpush.msra.mxu0 %v2492_v14  ;;  %vm2646_vm6 = vmor %vm2644_vm5, %vm2645_vm3 }
0x1698   :  { %v2490_v31 = vmul.f32 %v5110_v15, %v2489_v24  ;;  %v2641_v61 = vsub.f32 1.0, %v2640_v30 }
0x1699   :  { %v2839_v2 = vmul.f32 1.442695, %v2838_v0 }
0x169a   :  { %4740 = vmatmul.msk.f32.vlgmr.msra.gmra.mxu0 %vm177_vm2, %v2490_v31  ;;  %v2642_v18 = vmul.f32 %v5116_v17, %v2641_v61 }
0x169b   :  { %5117 = vpow2.f32 %v2839_v2 }
0x169c   :  { %v2643_v37 = vadd.f32 %v5116_v17, %v2642_v18 }
0x169e   :  { %v2647_v40 = vsel %vm2646_vm6, %v5116_v17, %v2643_v37  ;;  %v2972_v57 = vpop.permute.xlu2 %2971 }
0x169f   :  { %v2652_v41 = vsel %vm2649_vm7, %v2651_v20, %v2647_v40 }
0x16a0   :  { %v2653_v7 = vmul.f32 %v5112_v43, %v2652_v41 }
0x16a1   :  { %v5118_v29 = vpop.eup %5117 }
0x16a2   :  { %v2841_v35 = vsel %vm177_vm2, %v5118_v29, 0.0 }
0x16a3   :  { %2842 = vadd.xlane.f32.xlu0 %v2841_v35 }
0x16ae   :  { %v2655_v39 = vpop.permute.xlu1 %2654 }
0x16af   :  { %2675 = vmatpush.msrb.mxu0 %v2655_v39 }
0x16b0   :  { %4746 = vmatmul.msk.f32.vlgmr.msrb.gmra.mxu0 %vm177_vm2, %v2653_v7  ;;  %v4908_v7 = vld [vmem:[#allocation10 + $0xd0] sm:$0xff] }
0x16b7   :  { %2859 = vrot.lane.b32.xlu0 %v5913_v32, %s5395_s9 }
0x1716   :  { %v2843_v21 = vpop.xlane.xlu0 %2842 }
0x1717   :  { %5119 = vrcp.f32 %v2843_v21  ;;  %v2514_v10 = vpop.f32.mrf.mxu0  ;;  %v2855_v45 = vand.u32 2147483648, %v2843_v21  ;;  %v2853_v46 = vand.u32 2147483647, %v2843_v21  ;;  %vm2849_vm9 = vweird.f32 %v2843_v21 }
0x1718   :  { %2518 = vrot.lane.b32.xlu1 %v2514_v10, %s5404_s25 }
0x1719   :  { %v2856_v56 = vor.u32 1.1754944e-38, %v2855_v45  ;;  %vm2854_vm11 = vcmp.eq.f32.partialorder %v2853_v46, 8.507059e+37 }
0x171d   :  { %v5120_v16 = vpop.eup %5119 }
0x171e   :  { %v2845_v44 = vmul.f32 %v5120_v16, %v2843_v21  ;;  %vm2850_vm8 = vweird.f32 %v5120_v16 }
0x171f   :  { %vm2851_vm10 = vmor %vm2849_vm9, %vm2850_vm8 }
0x1720   :  { %v2846_v48 = vsub.f32 1.0, %v2845_v44 }
0x1722   :  { %v2847_v36 = vmul.f32 %v5120_v16, %v2846_v48 }
0x1724   :  { %v2848_v62 = vadd.f32 %v5120_v16, %v2847_v36 }
0x1726   :  { %v2852_v49 = vsel %vm2851_vm10, %v5120_v16, %v2848_v62 }
0x1727   :  { %v2857_v51 = vsel %vm2854_vm11, %v2856_v56, %v2852_v49 }
0x1728   :  { %v2858_v53 = vmul.f32 %v5118_v29, %v2857_v51 }
0x1729   :  { %v2860_v54 = vpop.permute.xlu0 %2859 }
0x172a   :  { %2880 = vmatpush.msrb.mxu3 %v2860_v54 }
0x172b   :  { %4758 = vmatmul.msk.f32.vlgmr.msrb.gmra.mxu3 %vm177_vm2, %v2858_v53 }
0x172c   :  { %4762 = vmatpush.xpose.msk.msra.mxu3 %vm151_vm1, %v2972_v57 }
0x172d   :  { %v2677_v59 = vpop.f32.mrf.mxu0 }
0x172e   :  { %2681 = vrot.lane.b32.xlu2 %v2677_v59, %s5404_s25 }
0x1730   :  { %3247 = vmatpush.bf16.msrb.mxu3 %v4909_v23 }
0x1733   :  { %4763 = vmatmul.msk.f32.vlgmr.msra.gmra.mxu3 %vm151_vm1, %v5929_v3 }
0x1734   :  { %3248 = vmatpush.bf16.msrb.mxu3 %v4908_v7 }
0x1788   :  { %v2682_v60 = vpop.permute.xlu2 %2681 }
0x1789   :  { %2684 = vst.msk [vmem:[#allocation2 + $0x8] sm:$0xff] %vm312_vm15, %v2682_v60 }
0x178a   :  { %v2519_v15 = vpop.permute.xlu1 %2518 }
0x178b   :  { %2521 = vst.msk [vmem:[#allocation2] sm:$0xff] %vm312_vm15, %v2519_v15 }
0x1790   :  { %v2686_v6 = vld [vmem:[#allocation2 + $0x8] sm:$0xff] }
0x1791   :  { %v2688_v43 = vadd.f32 %v2686_v6, %v5774_v28 }
0x1792   :  { %v2685_v26 = vld [vmem:[#allocation2] sm:$0xff] }
0x1793   :  { %v2694_v34 = vsel %vm130_vm0, %v2688_v43, 0.0  ;;  %v2687_v47 = vadd.f32 %v2685_v26, %v5772_v27 }
0x1794   :  { %2695 = vadd.xlane.f32.xlu0 %v2694_v34 }
0x1795   :  { %v2691_v1 = vsel %vm130_vm0, %v2687_v47, 0.0 }
0x1796   :  { %2692 = vadd.xlane.f32.xlu1 %v2691_v1 }
0x17ae   :  { %v2882_v52 = vpop.f32.mrf.mxu3 }
0x17af   :  { %2885 = vst.msk [vmem:[#allocation3] sm:$0xff] %vm151_vm1, %v2882_v52 }
0x17b6   :  { %v2994_v55 = vpop.f32.mrf.mxu3 }
0x17b7   :  { %v2997_v50 = vmul.f32 0.17677669, %v2994_v55 }
0x17b9   :  { %v2998_v4 = vsel %vm177_vm2, %v2997_v50, -inf }
0x17ba   :  { %2999 = vmax.xlane.f32.xlu2 %v2998_v4 }
0x1807   :  { %v2696_v5 = vpop.xlane.xlu0 %2695 }
0x1808   :  { %v2698_v28 = vmul.f32 %v2696_v5, %v5568_v12 }
0x1809   :  { %v2693_v8 = vpop.xlane.xlu1 %2692 }
0x180a   :  { %v5955_v9 = vsub.f32 %v2688_v43, %v2698_v28  ;;  %v2697_v27 = vmul.f32 %v2693_v8, %v5568_v12 }
0x180c   :  { %v5958_v11 = vsub.f32 %v2687_v47, %v2697_v27  ;;  %v2702_v58 = vmul.f32 %v5955_v9, %v5955_v9 }
0x180e   :  { %v2706_v13 = vsel %vm130_vm0, %v2702_v58, 0.0  ;;  %v2701_v17 = vmul.f32 %v5958_v11, %v5958_v11 }
0x180f   :  { %2707 = vadd.xlane.f32.xlu0 %v2706_v13 }
0x1810   :  { %v2703_v33 = vsel %vm130_vm0, %v2701_v17, 0.0 }
0x1811   :  { %2704 = vadd.xlane.f32.xlu1 %v2703_v33 }
0x1823   :  { %2886 = vrot.lane.b32.xlu0 %v5913_v32, %s5402_s23 }
0x182a   :  { %2888 = vrot.lane.b32.xlu1 %v5913_v32, %s5400_s2 }
0x182b   :  { %3051 = vrot.lane.b32.xlu0 %v5929_v3, %s5400_s2 }
0x182d   :  { %v3000_v19 = vpop.xlane.xlu2 %2999 }
0x182e   :  { %v3001_v22 = vsub.f32 %v2997_v50, %v3000_v19  ;;  %v4971_v19 = vld [vmem:[#allocation12 + $0x10] ss:$0 sm:$0xff] }
0x1830   :  { %v3002_v14 = vmul.f32 1.442695, %v3001_v22 }
0x1832   :  { %5121 = vpow2.f32 %v3002_v14  ;;  %3049 = vrot.lane.b32.xlu1 %v5929_v3, %s5402_s23 }
0x1838   :  { %v5974_v24 = vpop.eup %5121 }
0x1839   :  { %v3004_v0 = vsel %vm177_vm2, %v5974_v24, 0.0 }
0x183a   :  { %3005 = vadd.xlane.f32.xlu2 %v3004_v0 }
0x1852   :  { %3022 = vrot.lane.b32.xlu2 %v5929_v3, %s5395_s9  ;;  %s4550_s9 = sshll.u32 %s5407_s5, 4  ;;  %s4551_s9 = int_to_ptr.vmem [resolvable:$true] %s4550_s9 }
0x1882   :  { %v2708_v30 = vpop.xlane.xlu0 %2707 }
0x1883   :  { %v2710_v31 = vmul.f32 0.032258064, %v2708_v30 }
0x1884   :  { %v2705_v2 = vpop.xlane.xlu1 %2704 }
0x1885   :  { %5123 = vrsqrt.f32 %v2710_v31  ;;  %v2709_v61 = vmul.f32 0.032258064, %v2705_v2  ;;  %vm2730_vm12 = vcmp.eq.f32.partialorder %v2710_v31, inf  ;;  %v2733_v48 = vand.u32 2147483648, %v2710_v31  ;;  %v4972_v2 = vld [vmem:[#allocation12 + $0x11] ss:$0 sm:$0xff] }
0x1886   :  { %vm2732_vm13 = vcmp.eq.f32.partialorder %v2710_v31, 0.0 }
0x1887   :  { %5125 = vrsqrt.f32 %v2709_v61  ;;  %vm2718_vm14 = vcmp.eq.f32.partialorder %v2709_v61, inf  ;;  %v2721_v49 = vand.u32 2147483648, %v2709_v61  ;;  %vm2720_vm3 = vcmp.eq.f32.partialorder %v2709_v61, 0.0 }
0x188b   :  { %v5124_v18 = vpop.eup %5123 }
0x188c   :  { %v2724_v29 = vmul.f32 %v5124_v18, %v2710_v31 }
0x188d   :  { %v5126_v35 = vpop.eup %5125 }
0x188e   :  { %v2725_v37 = vmul.f32 %v5124_v18, %v2724_v29  ;;  %v2712_v38 = vmul.f32 %v5126_v35, %v2709_v61 }
0x1890   :  { %v2726_v40 = vmul.f32 0.5, %v2725_v37  ;;  %v2713_v20 = vmul.f32 %v5126_v35, %v2712_v38 }
0x1892   :  { %v2727_v41 = vsub.f32 1.5, %v2726_v40  ;;  %v2714_v39 = vmul.f32 0.5, %v2713_v20  ;;  %v4910_v20 = vld [vmem:[#allocation10 + $0xe0] sm:$0xff] }
0x1894   :  { %v2728_v21 = vmul.f32 %v5124_v18, %v2727_v41  ;;  %v2715_v10 = vsub.f32 1.5, %v2714_v39  ;;  %v4911_v18 = vld [vmem:[#allocation10 + $0xe8] sm:$0xff] }
0x1895   :  { %v2887_v16 = vpop.permute.xlu0 %2886 }
0x1896   :  { %v2729_v44 = vmul.f32 %v2728_v21, %v2710_v31  ;;  %v2716_v45 = vmul.f32 %v5126_v35, %v2715_v10 }
0x1898   :  { %v2731_v36 = vsel %vm2730_vm12, %v2710_v31, %v2729_v44  ;;  %v2717_v62 = vmul.f32 %v2716_v45, %v2709_v61 }
0x1899   :  { %v2734_v46 = vsel %vm2732_vm13, %v2733_v48, %v2731_v36 }
0x189a   :  { %v2736_v56 = vadd.f32 0.001, %v2734_v46  ;;  %v2719_v51 = vsel %vm2718_vm14, %v2709_v61, %v2717_v62 }
0x189b   :  { %v2722_v53 = vsel %vm2720_vm3, %v2721_v49, %v2719_v51 }
0x189c   :  { %5127 = vrcp.f32 %v2736_v56  ;;  %v2889_v54 = vpop.permute.xlu1 %2888  ;;  %v2735_v57 = vadd.f32 0.001, %v2722_v53  ;;  %v2763_v47 = vand.u32 2147483648, %v2736_v56  ;;  %v2761_v52 = vand.u32 2147483647, %v2736_v56 }
0x189d   :  { %4759 = vmatpush.xpose.msk.msra.mxu0 %vm151_vm1, %v2889_v54  ;;  %v3052_v59 = vpop.permute.xlu0 %3051  ;;  %vm2757_vm6 = vweird.f32 %v2736_v56 }
0x189e   :  { %4765 = vmatpush.xpose.msk.msra.mxu2 %vm151_vm1, %v3052_v59  ;;  %5129 = vrcp.f32 %v2735_v57  ;;  %v2748_v5 = vand.u32 2147483648, %v2735_v57  ;;  %v2764_v28 = vor.u32 1.1754944e-38, %v2763_v47  ;;  %v2746_v8 = vand.u32 2147483647, %v2735_v57 }
0x189f   :  { %vm2762_vm9 = vcmp.eq.f32.partialorder %v2761_v52, 8.507059e+37  ;;  %vm2742_vm10 = vweird.f32 %v2735_v57 }
0x18a0   :  { %4760 = vmatmul.msk.f32.vlgmr.msra.gmra.mxu0 %vm151_vm1, %v2887_v16  ;;  %v2749_v22 = vor.u32 1.1754944e-38, %v2748_v5  ;;  %vm2747_vm12 = vcmp.eq.f32.partialorder %v2746_v8, 8.507059e+37 }
0x18a2   :  { %v5128_v60 = vpop.eup %5127 }
0x18a3   :  { %v2753_v15 = vmul.f32 %v5128_v60, %v2736_v56  ;;  %vm2758_vm5 = vweird.f32 %v5128_v60 }
0x18a4   :  { %v3050_v6 = vpop.permute.xlu1 %3049  ;;  %v5130_v43 = vpop.eup %5129  ;;  %vm2759_vm7 = vmor %vm2757_vm6, %vm2758_vm5 }
0x18a5   :  { %4766 = vmatmul.msk.f32.vlgmr.msra.gmra.mxu2 %vm151_vm1, %v3050_v6  ;;  %v2754_v26 = vsub.f32 1.0, %v2753_v15  ;;  %v2738_v34 = vmul.f32 %v5130_v43, %v2735_v57  ;;  %vm2743_vm8 = vweird.f32 %v5130_v43 }
0x18a6   :  { %vm2744_vm11 = vmor %vm2742_vm10, %vm2743_vm8 }
0x18a7   :  { %v2755_v1 = vmul.f32 %v5128_v60, %v2754_v26  ;;  %v2739_v55 = vsub.f32 1.0, %v2738_v34 }
0x18a9   :  { %v2756_v50 = vadd.f32 %v5128_v60, %v2755_v1  ;;  %v2740_v4 = vmul.f32 %v5130_v43, %v2739_v55 }
0x18ab   :  { %v2760_v27 = vsel %vm2759_vm7, %v5128_v60, %v2756_v50  ;;  %v2741_v58 = vadd.f32 %v5130_v43, %v2740_v4 }
0x18ac   :  { %v2765_v13 = vsel %vm2762_vm9, %v2764_v28, %v2760_v27 }
0x18ad   :  { %v3006_v17 = vpop.xlane.xlu2 %3005  ;;  %v2766_v33 = vmul.f32 %v2765_v13, %v5955_v9  ;;  %v2745_v14 = vsel %vm2744_vm11, %v5130_v43, %v2741_v58 }
0x18ae   :  { %5131 = vrcp.f32 %v3006_v17  ;;  %v2750_v0 = vsel %vm2747_vm12, %v2749_v22, %v2745_v14  ;;  %v3018_v41 = vand.u32 2147483648, %v3006_v17  ;;  %v3016_v39 = vand.u32 2147483647, %v3006_v17 }
0x18af   :  { %v2751_v30 = vmul.f32 %v2750_v0, %v5958_v11  ;;  %v2769_v31 = vmul.f32 %v4971_v19, %v2766_v33  ;;  %vm3012_vm14 = vweird.f32 %v3006_v17 }
0x18b0   :  { %v3019_v21 = vor.u32 1.1754944e-38, %v3018_v41  ;;  %vm3017_vm5 = vcmp.eq.f32.partialorder %v3016_v39, 8.507059e+37 }
0x18b1   :  { %v2768_v61 = vmul.f32 %v4971_v19, %v2751_v30  ;;  %v5988_v23 = vadd.f32 %v4972_v2, %v2769_v31 }
0x18b3   :  { %v5986_v38 = vadd.f32 %v4972_v2, %v2768_v61  ;;  %v4950_v61 = vpack.i.bf16 %v5929_v3, %v5913_v32 }
0x18b4   :  { %v5132_v29 = vpop.eup %5131 }
0x18b5   :  { %v3008_v35 = vmul.f32 %v5132_v29, %v3006_v17  ;;  %v3023_v37 = vpop.permute.xlu2 %3022  ;;  %v3221_v40 = vpack.c.bf16 %v5988_v23, %v5986_v38  ;;  %vm3013_vm13 = vweird.f32 %v5132_v29 }
0x18b6   :  { %3043 = vmatpush.msrb.mxu0 %v3023_v37  ;;  %vm3014_vm3 = vmor %vm3012_vm14, %vm3013_vm13 }
0x18b7   :  { %v3009_v9 = vsub.f32 1.0, %v3008_v35  ;;  %4776 = vmatmul.msk.bf16.vlgmr.msrb.gmra.mxu3 %vm130_vm0, %v3221_v40 }
0x18b8   :  { %3277 = vmatpush.bf16.msra.mxu0 %v4911_v18 }
0x18b9   :  { %v3010_v11 = vmul.f32 %v5132_v29, %v3009_v9 }
0x18bb   :  { %v3011_v7 = vadd.f32 %v5132_v29, %v3010_v11 }
0x18bc   :  { %3278 = vmatpush.bf16.msra.mxu0 %v4910_v20 }
0x18bd   :  { %v3015_v10 = vsel %vm3014_vm3, %v5132_v29, %v3011_v7 }
0x18be   :  { %v3020_v16 = vsel %vm3017_vm5, %v3019_v21, %v3015_v10 }
0x18bf   :  { %v3021_v44 = vmul.f32 %v5974_v24, %v3020_v16 }
0x18c1   :  { %4764 = vmatmul.msk.f32.vlgmr.msrb.gmra.mxu0 %vm177_vm2, %v3021_v44 }
0x18c9   :  { %4785 = vmatmul.msk.bf16.vlgmr.msra.gmra.mxu0 %vm130_vm0, %v5903_v63 }
0x191d   :  { %v2911_v48 = vpop.f32.mrf.mxu0 }
0x191e   :  { %v2914_v63 = vmul.f32 0.17677669, %v2911_v48 }
0x1920   :  { %v2915_v56 = vsel %vm177_vm2, %v2914_v63, -inf }
0x1928   :  { %v3074_v49 = vpop.f32.mrf.mxu2 }
0x1929   :  { %v3077_v51 = vmul.f32 0.17677669, %v3074_v49 }
0x192b   :  { %v3078_v53 = vsel %vm177_vm2, %v3077_v51, -inf }
0x193a   :  { %v3250_v45 = vpop.f32.mrf.mxu3 }
0x193b   :  { %3363 = vrot.lane.b32.xlu0 %v3250_v45, %s5402_s23 }
0x193e   :  { %v3045_v36 = vpop.f32.mrf.mxu0 }
0x193f   :  { %3048 = vst.msk [vmem:[#allocation3 + $0x8] sm:$0xff] %vm151_vm1, %v3045_v36 }
0x1942   :  { %v3252_v24 = vpop.f32.mrf.mxu3 }
0x1946   :  { %v5999_v46 = vpop.f32.mrf.mxu0 }
0x1947   :  { %3365 = vrot.lane.b32.xlu2 %v5999_v46, %s5402_s23  ;;  %4786 = vmatpush.xpose.msk.msrb.mxu2 %vm151_vm1, %v5999_v46 }
0x194a   :  { %4787 = vmatmul.msk.f32.vlgmr.msrb.gmra.mxu2 %vm151_vm1, %v3250_v45 }
0x194e   :  { %v6006_v62 = vpop.f32.mrf.mxu0 }
0x194f   :  { %3525 = vrot.lane.b32.xlu2 %v3252_v24, %s5402_s23  ;;  %3527 = vrot.lane.b32.xlu1 %v6006_v62, %s5402_s23 }
0x1950   :  { %4792 = vmatpush.xpose.msk.msra.mxu3 %vm151_vm1, %v6006_v62 }
0x1953   :  { %4793 = vmatmul.msk.f32.vlgmr.msra.gmra.mxu3 %vm151_vm1, %v3252_v24 }
0x1965   :  { %2916 = vmax.xlane.f32.xlu0 %v2915_v56 }
0x1979   :  { %3079 = vmax.xlane.f32.xlu1 %v3078_v53 }
0x19a1   :  { %v3366_v54 = vpop.permute.xlu2 %3365 }
0x19a2   :  { %4789 = vmatpush.xpose.msk.msra.mxu2 %vm151_vm1, %v3366_v54 }
0x19a9   :  { %v3526_v60 = vpop.permute.xlu2 %3525 }
0x19ad   :  { %v3364_v57 = vpop.permute.xlu0 %3363 }
0x19ae   :  { %4790 = vmatmul.msk.f32.vlgmr.msra.gmra.mxu2 %vm151_vm1, %v3364_v57 }
0x19c1   :  { %v3528_v59 = vpop.permute.xlu1 %3527 }
0x19c2   :  { %4795 = vmatpush.xpose.msk.msrb.mxu2 %vm151_vm1, %v3528_v59 }
0x19c5   :  { %4796 = vmatmul.msk.f32.vlgmr.msrb.gmra.mxu2 %vm151_vm1, %v3526_v60 }
0x19cd   :  { %v3308_v15 = vpop.f32.mrf.mxu2 }
0x19ce   :  { %v3311_v6 = vmul.f32 0.17677669, %v3308_v15 }
0x19d0   :  { %v3312_v43 = vsel %vm177_vm2, %v3311_v6, -inf }
0x19d1   :  { %3313 = vmax.xlane.f32.xlu2 %v3312_v43 }
0x19d6   :  { %v3470_v55 = vpop.f32.mrf.mxu3 }
0x19d7   :  { %v3473_v50 = vmul.f32 0.17677669, %v3470_v55 }
0x19d8   :  { %v2917_v26 = vpop.xlane.xlu0 %2916 }
0x19d9   :  { %v2918_v34 = vsub.f32 %v2914_v63, %v2917_v26  ;;  %v3474_v4 = vsel %vm177_vm2, %v3473_v50, -inf }
0x19db   :  { %v2919_v47 = vmul.f32 1.442695, %v2918_v34 }
0x19dd   :  { %5133 = vpow2.f32 %v2919_v47 }
0x19e3   :  { %v6021_v1 = vpop.eup %5133 }
0x19e4   :  { %v2921_v52 = vsel %vm177_vm2, %v6021_v1, 0.0 }
0x19e5   :  { %2922 = vadd.xlane.f32.xlu2 %v2921_v52 }
0x19ec   :  { %v3080_v5 = vpop.xlane.xlu1 %3079 }
0x19ed   :  { %3475 = vmax.xlane.f32.xlu2 %v3474_v4  ;;  %v3081_v28 = vsub.f32 %v3077_v51, %v3080_v5 }
0x19ef   :  { %v3082_v8 = vmul.f32 1.442695, %v3081_v28 }
0x19f1   :  { %5135 = vpow2.f32 %v3082_v8 }
0x19f7   :  { %v6027_v17 = vpop.eup %5135 }
0x19f8   :  { %v3084_v33 = vsel %vm177_vm2, %v6027_v17, 0.0 }
0x1a31   :  { %v3388_v27 = vpop.f32.mrf.mxu2 }
0x1a32   :  { %v3391_v58 = vmul.f32 0.17677669, %v3388_v27 }
0x1a34   :  { %v3392_v13 = vsel %vm177_vm2, %v3391_v58, -inf }
0x1a35   :  { %3393 = vmax.xlane.f32.xlu0 %v3392_v13 }
0x1a3d   :  { %3085 = vadd.xlane.f32.xlu0 %v3084_v33 }
0x1a44   :  { %v3314_v19 = vpop.xlane.xlu2 %3313 }
0x1a45   :  { %v3315_v22 = vsub.f32 %v3311_v6, %v3314_v19 }
0x1a47   :  { %v3316_v14 = vmul.f32 1.442695, %v3315_v22 }
0x1a48   :  { %v3550_v0 = vpop.f32.mrf.mxu2 }
0x1a49   :  { %v3553_v30 = vmul.f32 0.17677669, %v3550_v0  ;;  %5137 = vpow2.f32 %v3316_v14 }
0x1a4b   :  { %v3554_v31 = vsel %vm177_vm2, %v3553_v30, -inf }
0x1a4c   :  { %3555 = vmax.xlane.f32.xlu1 %v3554_v31 }
0x1a4f   :  { %v6032_v2 = vpop.eup %5137 }
0x1a50   :  { %v3318_v18 = vsel %vm177_vm2, %v6032_v2, 0.0 }
0x1a51   :  { %4951 = vrot.lane.b32.xlu0 %v4950_v61, %s5403_s24 }
0x1a54   :  { %3319 = vadd.xlane.f32.xlu1 %v3318_v18 }
0x1a58   :  { %v2923_v29 = vpop.xlane.xlu2 %2922 }
0x1a59   :  { %3578 = vrot.lane.b32.xlu0 %v6006_v62, %s5400_s2  ;;  %v2935_v63 = vand.u32 2147483648, %v2923_v29  ;;  %vm2929_vm7 = vweird.f32 %v2923_v29  ;;  %v2933_v56 = vand.u32 2147483647, %v2923_v29 }
0x1a5b   :  { %v2936_v57 = vor.u32 1.1754944e-38, %v2935_v63  ;;  %vm2934_vm9 = vcmp.eq.f32.partialorder %v2933_v56, 8.507059e+37 }
0x1a60   :  { %v3476_v35 = vpop.xlane.xlu2 %3475 }
0x1a61   :  { %v3477_v37 = vsub.f32 %v3473_v50, %v3476_v35 }
0x1a63   :  { %v3478_v9 = vmul.f32 1.442695, %v3477_v37 }
0x1a65   :  { %5139 = vpow2.f32 %v3478_v9 }
0x1a66   :  { %5141 = vrcp.f32 %v2923_v29 }
0x1a6b   :  { %v6041_v40 = vpop.eup %5139 }
0x1a6c   :  { %v3480_v20 = vsel %vm177_vm2, %v6041_v40, 0.0  ;;  %v5142_v11 = vpop.eup %5141 }
0x1a6d   :  { %v2925_v39 = vmul.f32 %v5142_v11, %v2923_v29  ;;  %vm2930_vm6 = vweird.f32 %v5142_v11 }
0x1a6e   :  { %vm2931_vm8 = vmor %vm2929_vm7, %vm2930_vm6 }
0x1a6f   :  { %v2926_v10 = vsub.f32 1.0, %v2925_v39 }
0x1a71   :  { %v2927_v48 = vmul.f32 %v5142_v11, %v2926_v10 }
0x1a73   :  { %v2928_v36 = vadd.f32 %v5142_v11, %v2927_v48 }
0x1a75   :  { %v2932_v53 = vsel %vm2931_vm8, %v5142_v11, %v2928_v36 }
0x1a76   :  { %v2937_v60 = vsel %vm2934_vm9, %v2936_v57, %v2932_v53 }
0x1a77   :  { %v2938_v52 = vmul.f32 %v6021_v1, %v2937_v60 }
0x1a83   :  { %3481 = vadd.xlane.f32.xlu0 %v3480_v20 }
0x1aa8   :  { %v3394_v32 = vpop.xlane.xlu0 %3393 }
0x1aa9   :  { %v3395_v3 = vsub.f32 %v3391_v58, %v3394_v32 }
0x1aab   :  { %v3396_v41 = vmul.f32 1.442695, %v3395_v3 }
0x1aad   :  { %5143 = vpow2.f32 %v3396_v41 }
0x1ab0   :  { %v3086_v7 = vpop.xlane.xlu0 %3085 }
0x1ab1   :  { %5145 = vrcp.f32 %v3086_v7  ;;  %v3098_v43 = vand.u32 2147483648, %v3086_v7  ;;  %vm3092_vm11 = vweird.f32 %v3086_v7  ;;  %v3096_v47 = vand.u32 2147483647, %v3086_v7 }
0x1ab3   :  { %v6045_v21 = vpop.eup %5143  ;;  %v3099_v4 = vor.u32 1.1754944e-38, %v3098_v43  ;;  %vm3097_vm13 = vcmp.eq.f32.partialorder %v3096_v47, 8.507059e+37 }
0x1ab4   :  { %v3398_v16 = vsel %vm177_vm2, %v6045_v21, 0.0 }
0x1ab5   :  { %3399 = vadd.xlane.f32.xlu1 %v3398_v16 }
0x1ab7   :  { %v5146_v44 = vpop.eup %5145 }
0x1ab8   :  { %v3088_v45 = vmul.f32 %v5146_v44, %v3086_v7  ;;  %vm3093_vm10 = vweird.f32 %v5146_v44 }
0x1ab9   :  { %vm3094_vm12 = vmor %vm3092_vm11, %vm3093_vm10 }
0x1aba   :  { %v3089_v24 = vsub.f32 1.0, %v3088_v45 }
0x1abc   :  { %v3090_v54 = vmul.f32 %v5146_v44, %v3089_v24 }
0x1abe   :  { %v3091_v15 = vadd.f32 %v5146_v44, %v3090_v54 }
0x1abf   :  { %v3556_v49 = vpop.xlane.xlu1 %3555 }
0x1ac0   :  { %v3557_v51 = vsub.f32 %v3553_v30, %v3556_v49  ;;  %v3095_v55 = vsel %vm3094_vm12, %v5146_v44, %v3091_v15 }
0x1ac1   :  { %v3100_v28 = vsel %vm3097_vm13, %v3099_v4, %v3095_v55 }
0x1ac2   :  { %v3558_v59 = vmul.f32 1.442695, %v3557_v51  ;;  %v3101_v8 = vmul.f32 %v6027_v17, %v3100_v28 }
0x1ac3   :  { %v4952_v6 = vpop.permute.xlu0 %4951 }
0x1ac4   :  { %5147 = vpow2.f32 %v3558_v59  ;;  %v4954_v26 = vunpack.i.h.bf16 %v4952_v6  ;;  %v4953_v34 = vunpack.i.l.bf16 %v4952_v6 }
0x1ac6   :  { %2960 = vmatpush.msra.mxu1 %v4953_v34 }
0x1ac7   :  { %4761 = vmatmul.msk.f32.vlgmr.msra.gmra.mxu1 %vm177_vm2, %v2938_v52  ;;  %v3320_v27 = vpop.xlane.xlu1 %3319 }
0x1ac8   :  { %3123 = vmatpush.msrb.mxu1 %v4954_v26  ;;  %5149 = vrcp.f32 %v3320_v27  ;;  %vm3326_vm3 = vweird.f32 %v3320_v27  ;;  %v3330_v29 = vand.u32 2147483647, %v3320_v27 }
0x1aca   :  { %v6051_v50 = vpop.eup %5147  ;;  %vm3331_vm6 = vcmp.eq.f32.partialorder %v3330_v29, 8.507059e+37 }
0x1acb   :  { %v3560_v5 = vsel %vm177_vm2, %v6051_v50, 0.0  ;;  %v3579_v1 = vpop.permute.xlu0 %3578 }
0x1acc   :  { %3561 = vadd.xlane.f32.xlu2 %v3560_v5 }
0x1ace   :  { %3336 = vrot.lane.b32.xlu1 %v5999_v46, %s5401_s4  ;;  %v5150_v13 = vpop.eup %5149 }
0x1acf   :  { %4767 = vmatmul.msk.f32.vlgmr.msrb.gmra.mxu1 %vm177_vm2, %v3101_v8  ;;  %v3322_v17 = vmul.f32 %v5150_v13, %v3320_v27  ;;  %vm3327_vm14 = vweird.f32 %v5150_v13 }
0x1ad0   :  { %vm3328_vm5 = vmor %vm3326_vm3, %vm3327_vm14 }
0x1ad1   :  { %v3323_v22 = vsub.f32 1.0, %v3322_v17 }
0x1ad3   :  { %v3324_v0 = vmul.f32 %v5150_v13, %v3323_v22 }
0x1ad5   :  { %v3325_v61 = vadd.f32 %v5150_v13, %v3324_v0 }
0x1ad6   :  { %3498 = vrot.lane.b32.xlu1 %v6006_v62, %s5401_s4 }
0x1ad7   :  { %v3329_v35 = vsel %vm3328_vm5, %v5150_v13, %v3325_v61 }
0x1ae4   :  { %3416 = vrot.lane.b32.xlu2 %v5999_v46, %s5400_s2  ;;  %v3332_v46 = vand.u32 2147483648, %v3320_v27 }
0x1ae6   :  { %v3333_v20 = vor.u32 1.1754944e-38, %v3332_v46 }
0x1ae8   :  { %v3334_v32 = vsel %vm3331_vm6, %v3333_v20, %v3329_v35 }
0x1ae9   :  { %v3335_v45 = vmul.f32 %v6032_v2, %v3334_v32 }
0x1af6   :  { %v3482_v58 = vpop.xlane.xlu0 %3481 }
0x1af7   :  { %5151 = vrcp.f32 %v3482_v58  ;;  %vm3488_vm9 = vweird.f32 %v3482_v58  ;;  %v3494_v39 = vand.u32 2147483648, %v3482_v58  ;;  %v3492_v16 = vand.u32 2147483647, %v3482_v58 }
0x1af9   :  { %v3495_v63 = vor.u32 1.1754944e-38, %v3494_v39  ;;  %vm3493_vm13 = vcmp.eq.f32.partialorder %v3492_v16, 8.507059e+37 }
0x1afd   :  { %v5152_v19 = vpop.eup %5151 }
0x1afe   :  { %v3484_v30 = vmul.f32 %v5152_v19, %v3482_v58  ;;  %vm3489_vm7 = vweird.f32 %v5152_v19 }
0x1aff   :  { %vm6063_vm10 = vmor %vm3488_vm9, %vm3489_vm7 }
0x1b00   :  { %v3485_v62 = vsub.f32 1.0, %v3484_v30 }
0x1b02   :  { %v3486_v37 = vmul.f32 %v5152_v19, %v3485_v62 }
0x1b04   :  { %v3487_v41 = vadd.f32 %v5152_v19, %v3486_v37 }
0x1b06   :  { %v3491_v36 = vsel %vm6063_vm10, %v5152_v19, %v3487_v41 }
0x1b07   :  { %v3496_v51 = vsel %vm3493_vm13, %v3495_v63, %v3491_v36  ;;  %v4913_v36 = vld [vmem:[#allocation10 + $0xf8] sm:$0xff]  ;;  %v4912_v63 = vld [vmem:[#allocation10 + $0xf0] sm:$0xff] }
0x1b08   :  { %v3497_v6 = vmul.f32 %v6041_v40, %v3496_v51  ;;  %3725 = vmatpush.bf16.msrb.mxu3 %v4913_v36 }
0x1b0c   :  { %3726 = vmatpush.bf16.msrb.mxu3 %v4912_v63 }
0x1b28   :  { %v3400_v33 = vpop.xlane.xlu1 %3399 }
0x1b29   :  { %5153 = vrcp.f32 %v3400_v33  ;;  %v3412_v7 = vand.u32 2147483648, %v3400_v33  ;;  %vm3406_vm11 = vweird.f32 %v3400_v33  ;;  %v3410_v44 = vand.u32 2147483647, %v3400_v33 }
0x1b2b   :  { %v3413_v56 = vor.u32 1.1754944e-38, %v3412_v7  ;;  %vm3411_vm14 = vcmp.eq.f32.partialorder %v3410_v44, 8.507059e+37 }
0x1b2f   :  { %v5154_v14 = vpop.eup %5153 }
0x1b30   :  { %v3402_v31 = vmul.f32 %v5154_v14, %v3400_v33  ;;  %vm3407_vm8 = vweird.f32 %v5154_v14 }
0x1b31   :  { %vm3408_vm12 = vmor %vm3406_vm11, %vm3407_vm8 }
0x1b32   :  { %v3403_v18 = vsub.f32 1.0, %v3402_v31 }
0x1b34   :  { %v3404_v9 = vmul.f32 %v5154_v14, %v3403_v18 }
0x1b36   :  { %v3405_v11 = vadd.f32 %v5154_v14, %v3404_v9 }
0x1b38   :  { %v3409_v24 = vsel %vm3408_vm12, %v5154_v14, %v3405_v11 }
0x1b39   :  { %v3414_v53 = vsel %vm3411_vm14, %v3413_v56, %v3409_v24 }
0x1b3a   :  { %v3415_v15 = vmul.f32 %v6045_v21, %v3414_v53 }
0x1b3f   :  { %v3562_v3 = vpop.xlane.xlu2 %3561 }
0x1b40   :  { %5155 = vrcp.f32 %v3562_v3  ;;  %v3337_v48 = vpop.permute.xlu1 %3336  ;;  %v3574_v2 = vand.u32 2147483648, %v3562_v3  ;;  %v3572_v26 = vand.u32 2147483647, %v3562_v3  ;;  %vm3568_vm5 = vweird.f32 %v3562_v3 }
0x1b41   :  { %3357 = vmatpush.msra.mxu1 %v3337_v48 }
0x1b42   :  { %4788 = vmatmul.msk.f32.vlgmr.msra.gmra.mxu1 %vm177_vm2, %v3335_v45  ;;  %v3575_v47 = vor.u32 1.1754944e-38, %v3574_v2  ;;  %vm3573_vm7 = vcmp.eq.f32.partialorder %v3572_v26, 8.507059e+37 }
0x1b44   :  { %v2962_v40 = vpop.f32.mrf.mxu1 }
0x1b46   :  { %v5156_v49 = vpop.eup %5155 }
0x1b47   :  { %v3564_v54 = vmul.f32 %v5156_v49, %v3562_v3  ;;  %v3417_v57 = vpop.permute.xlu2 %3416  ;;  %vm3569_vm3 = vweird.f32 %v5156_v49 }
0x1b48   :  { %3437 = vmatpush.msrb.mxu1 %v3417_v57  ;;  %v3499_v60 = vpop.permute.xlu1 %3498  ;;  %vm3570_vm6 = vmor %vm3568_vm5, %vm3569_vm3 }
0x1b49   :  { %v3565_v59 = vsub.f32 1.0, %v3564_v54  ;;  %3519 = vmatpush.msrb.mxu0 %v3499_v60 }
0x1b4a   :  { %3599 = vmatpush.msra.mxu1 %v3579_v1  ;;  %4794 = vmatmul.msk.f32.vlgmr.msrb.gmra.mxu0 %vm177_vm2, %v3497_v6 }
0x1b4b   :  { %v3566_v43 = vmul.f32 %v5156_v49, %v3565_v59  ;;  %4791 = vmatmul.msk.f32.vlgmr.msrb.gmra.mxu1 %vm177_vm2, %v3415_v15 }
0x1b4c   :  { %v3125_v21 = vpop.f32.mrf.mxu1 }
0x1b4d   :  { %v3567_v34 = vadd.f32 %v5156_v49, %v3566_v43 }
0x1b4f   :  { %v3571_v52 = vsel %vm3570_vm6, %v5156_v49, %v3567_v34 }
0x1b50   :  { %v3576_v55 = vsel %vm3573_vm7, %v3575_v47, %v3571_v52 }
0x1b51   :  { %v3577_v4 = vmul.f32 %v6051_v50, %v3576_v55 }
0x1b53   :  { %4797 = vmatmul.msk.f32.vlgmr.msra.gmra.mxu1 %vm177_vm2, %v3577_v4 }
0x1bbf   :  { %v3359_v5 = vpop.f32.mrf.mxu1 }
0x1bc0   :  { %3362 = vst.msk [vmem:[#allocation2] sm:$0xff] %vm151_vm1, %v3359_v5 }
0x1bc7   :  { %v3521_v8 = vpop.f32.mrf.mxu0 }
0x1bc8   :  { %v3439_v28 = vpop.f32.mrf.mxu1  ;;  %3524 = vst.msk [vmem:[#allocation2 + $0x8] sm:$0xff] %vm151_vm1, %v3521_v8 }
0x1bc9   :  { %3443 = vrot.lane.b32.xlu2 %v3439_v28, %s5404_s25 }
0x1bd0   :  { %v3601_v1 = vpop.f32.mrf.mxu1 }
0x1bd1   :  { %3605 = vrot.lane.b32.xlu1 %v3601_v1, %s5404_s25 }
0x1c23   :  { %v3444_v27 = vpop.permute.xlu2 %3443 }
0x1c24   :  { %3446 = vst.msk [vmem:[#allocation2] sm:$0xff] %vm312_vm15, %v3444_v27 }
0x1c2b   :  { %v3609_v50 = vld [vmem:[#allocation2] sm:$0xff] }
0x1c2c   :  { %v3611_v58 = vadd.f32 %v3609_v50, %v5986_v38 }
0x1c2e   :  { %v3615_v13 = vsel %vm130_vm0, %v3611_v58, 0.0 }
0x1c2f   :  { %3616 = vadd.xlane.f32.xlu2 %v3615_v13 }
0x1c43   :  { %v3606_v33 = vpop.permute.xlu1 %3605 }
0x1c44   :  { %3608 = vst.msk [vmem:[#allocation2 + $0x8] sm:$0xff] %vm312_vm15, %v3606_v33 }
0x1c47   :  { %3129 = vrot.lane.b32.xlu2 %v3125_v21, %s5404_s25 }
0x1c4b   :  { %v3610_v17 = vld [vmem:[#allocation2 + $0x8] sm:$0xff] }
0x1c4c   :  { %v3612_v19 = vadd.f32 %v3610_v17, %v5988_v23 }
0x1c4e   :  { %v3618_v22 = vsel %vm130_vm0, %v3612_v19, 0.0 }
0x1c4f   :  { %3619 = vadd.xlane.f32.xlu1 %v3618_v22 }
0x1ca2   :  { %v3617_v14 = vpop.xlane.xlu2 %3616 }
0x1ca3   :  { %v3621_v0 = vmul.f32 %v3617_v14, %v5568_v12 }
0x1ca5   :  { %v6089_v30 = vsub.f32 %v3611_v58, %v3621_v0 }
0x1ca7   :  { %v3625_v38 = vmul.f32 %v6089_v30, %v6089_v30 }
0x1ca9   :  { %v3627_v31 = vsel %vm130_vm0, %v3625_v38, 0.0  ;;  %v4973_v38 = vld [vmem:[#allocation12 + $0x12] ss:$0 sm:$0xff] }
0x1caa   :  { %3628 = vadd.xlane.f32.xlu0 %v3627_v31  ;;  %v3130_v61 = vpop.permute.xlu2 %3129 }
0x1cab   :  { %3132 = vst.msk [vmem:[#allocation3 + $0x8] sm:$0xff] %vm312_vm15, %v3130_v61 }
0x1cb2   :  { %v3134_v5 = vld [vmem:[#allocation3 + $0x8] sm:$0xff] }
0x1cb3   :  { %v3136_v50 = vadd.f32 %v3134_v5, %v5899_v42 }
0x1cb5   :  { %v3142_v22 = vsel %vm130_vm0, %v3136_v50, 0.0 }
0x1cc2   :  { %v3620_v62 = vpop.xlane.xlu1 %3619 }
0x1cc3   :  { %v3622_v23 = vmul.f32 %v3620_v62, %v5568_v12 }
0x1cc5   :  { %v6096_v18 = vsub.f32 %v3612_v19, %v3622_v23 }
0x1cc7   :  { %v3626_v46 = vmul.f32 %v6096_v18, %v6096_v18 }
0x1cc9   :  { %v3630_v29 = vsel %vm130_vm0, %v3626_v46, 0.0  ;;  %v4974_v46 = vld [vmem:[#allocation12 + $0x13] ss:$0 sm:$0xff] }
0x1cca   :  { %3631 = vadd.xlane.f32.xlu0 %v3630_v29 }
0x1cde   :  { %2966 = vrot.lane.b32.xlu0 %v2962_v40, %s5404_s25 }
0x1d1d   :  { %v3629_v35 = vpop.xlane.xlu0 %3628 }
0x1d1e   :  { %v3633_v37 = vmul.f32 0.032258064, %v3629_v35 }
0x1d20   :  { %5157 = vrsqrt.f32 %v3633_v37  ;;  %vm3642_vm8 = vcmp.eq.f32.partialorder %v3633_v37, inf  ;;  %v3645_v10 = vand.u32 2147483648, %v3633_v37  ;;  %vm3644_vm9 = vcmp.eq.f32.partialorder %v3633_v37, 0.0 }
0x1d26   :  { %v5158_v9 = vpop.eup %5157 }
0x1d27   :  { %v3636_v20 = vmul.f32 %v5158_v9, %v3633_v37 }
0x1d29   :  { %v3637_v32 = vmul.f32 %v5158_v9, %v3636_v20 }
0x1d2b   :  { %v3638_v3 = vmul.f32 0.5, %v3637_v32 }
0x1d2d   :  { %v3639_v41 = vsub.f32 1.5, %v3638_v3  ;;  %v4917_v3 = vld [vmem:[#allocation10 + $0x118] sm:$0xff] }
0x1d2e   :  { %3777 = vmatpush.bf16.msra.mxu0 %v4917_v3 }
0x1d2f   :  { %v3640_v11 = vmul.f32 %v5158_v9, %v3639_v41 }
0x1d31   :  { %v3641_v39 = vmul.f32 %v3640_v11, %v3633_v37  ;;  %v4916_v11 = vld [vmem:[#allocation10 + $0x110] sm:$0xff] }
0x1d32   :  { %3778 = vmatpush.bf16.msra.mxu0 %v4916_v11 }
0x1d33   :  { %v3643_v7 = vsel %vm3642_vm8, %v3633_v37, %v3641_v39 }
0x1d34   :  { %v3646_v44 = vsel %vm3644_vm9, %v3645_v10, %v3643_v7 }
0x1d35   :  { %v3659_v45 = vadd.f32 0.001, %v3646_v44 }
0x1d37   :  { %v3672_v21 = vand.u32 2147483648, %v3659_v45  ;;  %vm3666_vm13 = vweird.f32 %v3659_v45  ;;  %v3670_v28 = vand.u32 2147483647, %v3659_v45 }
0x1d39   :  { %v3673_v58 = vor.u32 1.1754944e-38, %v3672_v21  ;;  %vm3671_vm3 = vcmp.eq.f32.partialorder %v3670_v28, 8.507059e+37 }
0x1d3d   :  { %v3632_v16 = vpop.xlane.xlu0 %3631 }
0x1d3e   :  { %v3634_v48 = vmul.f32 0.032258064, %v3632_v16  ;;  %v4915_v16 = vld [vmem:[#allocation10 + $0x108] sm:$0xff] }
0x1d3f   :  { %3779 = vmatpush.bf16.msra.mxu0 %v4915_v16 }
0x1d40   :  { %5159 = vrsqrt.f32 %v3634_v48  ;;  %vm3654_vm10 = vcmp.eq.f32.partialorder %v3634_v48, inf  ;;  %v3657_v15 = vand.u32 2147483648, %v3634_v48  ;;  %vm3656_vm11 = vcmp.eq.f32.partialorder %v3634_v48, 0.0 }
0x1d41   :  { %5161 = vrcp.f32 %v3659_v45 }
0x1d46   :  { %v5160_v24 = vpop.eup %5159 }
0x1d47   :  { %v3648_v56 = vmul.f32 %v5160_v24, %v3634_v48  ;;  %v5162_v51 = vpop.eup %5161 }
0x1d48   :  { %v3662_v57 = vmul.f32 %v5162_v51, %v3659_v45  ;;  %vm3667_vm12 = vweird.f32 %v5162_v51  ;;  %v4914_v45 = vld [vmem:[#allocation10 + $0x100] sm:$0xff] }
0x1d49   :  { %v3649_v49 = vmul.f32 %v5160_v24, %v3648_v56  ;;  %vm3668_vm14 = vmor %vm3666_vm13, %vm3667_vm12  ;;  %3780 = vmatpush.bf16.msra.mxu0 %v4914_v45 }
0x1d4a   :  { %v3663_v6 = vsub.f32 1.0, %v3662_v57 }
0x1d4b   :  { %v3650_v53 = vmul.f32 0.5, %v3649_v49 }
0x1d4c   :  { %v3664_v47 = vmul.f32 %v5162_v51, %v3663_v6 }
0x1d4d   :  { %v3651_v54 = vsub.f32 1.5, %v3650_v53 }
0x1d4e   :  { %v3665_v4 = vadd.f32 %v5162_v51, %v3664_v47 }
0x1d4f   :  { %v3652_v59 = vmul.f32 %v5160_v24, %v3651_v54  ;;  %v4975_v24 = vld [vmem:[#allocation12 + $0x16] ss:$0 sm:$0xff] }
0x1d50   :  { %v2967_v2 = vpop.permute.xlu0 %2966  ;;  %v3669_v1 = vsel %vm3668_vm14, %v5162_v51, %v3665_v4 }
0x1d51   :  { %v3653_v60 = vmul.f32 %v3652_v59, %v3634_v48  ;;  %2969 = vst.msk [vmem:[#allocation3] sm:$0xff] %vm312_vm15, %v2967_v2  ;;  %v3674_v33 = vsel %vm3671_vm3, %v3673_v58, %v3669_v1  ;;  %v4919_v2 = vld [vmem:[#allocation10 + $0x138] sm:$0xff]  ;;  %v4918_v58 = vld [vmem:[#allocation10 + $0x130] sm:$0xff] }
0x1d52   :  { %v3675_v14 = vmul.f32 %v3674_v33, %v6089_v30  ;;  %3899 = vmatpush.bf16.msra.mxu2 %v4919_v2 }
0x1d53   :  { %v3655_v43 = vsel %vm3654_vm10, %v3634_v48, %v3653_v60 }
0x1d54   :  { %v3658_v26 = vsel %vm3656_vm11, %v3657_v15, %v3655_v43  ;;  %v3692_v23 = vmul.f32 %v4973_v38, %v3675_v14 }
0x1d55   :  { %v3660_v34 = vadd.f32 0.001, %v3658_v26 }
0x1d56   :  { %v6109_v35 = vadd.f32 %v4974_v46, %v3692_v23  ;;  %3900 = vmatpush.bf16.msra.mxu2 %v4918_v58 }
0x1d57   :  { %5163 = vrcp.f32 %v3660_v34  ;;  %v3685_v19 = vand.u32 2147483647, %v3660_v34  ;;  %vm3681_vm6 = vweird.f32 %v3660_v34 }
0x1d58   :  { %v3133_v52 = vld [vmem:[#allocation3] sm:$0xff] }
0x1d59   :  { %v3135_v55 = vadd.f32 %v3133_v52, %v5897_v25  ;;  %v3687_v25 = vand.u32 2147483648, %v3660_v34  ;;  %vm3686_vm8 = vcmp.eq.f32.partialorder %v3685_v19, 8.507059e+37 }
0x1d5b   :  { %v3139_v40 = vsel %vm130_vm0, %v3135_v55, 0.0  ;;  %v3688_v31 = vor.u32 1.1754944e-38, %v3687_v25 }
0x1d5c   :  { %3140 = vadd.xlane.f32.xlu1 %v3139_v40 }
0x1d5d   :  { %v5164_v8 = vpop.eup %5163 }
0x1d5e   :  { %v3677_v27 = vmul.f32 %v5164_v8, %v3660_v34  ;;  %vm3682_vm5 = vweird.f32 %v5164_v8 }
0x1d5f   :  { %vm3683_vm7 = vmor %vm3681_vm6, %vm3682_vm5 }
0x1d60   :  { %v3678_v13 = vsub.f32 1.0, %v3677_v27 }
0x1d62   :  { %v3679_v17 = vmul.f32 %v5164_v8, %v3678_v13 }
0x1d64   :  { %3143 = vadd.xlane.f32.xlu1 %v3142_v22  ;;  %v3680_v0 = vadd.f32 %v5164_v8, %v3679_v17 }
0x1d66   :  { %v3684_v61 = vsel %vm3683_vm7, %v5164_v8, %v3680_v0 }
0x1d67   :  { %v3689_v42 = vsel %vm3686_vm8, %v3688_v31, %v3684_v61 }
0x1d68   :  { %v3690_v62 = vmul.f32 %v3689_v42, %v6096_v18 }
0x1d6a   :  { %v3693_v29 = vmul.f32 %v4973_v38, %v3690_v62 }
0x1d6c   :  { %v6111_v37 = vadd.f32 %v4974_v46, %v3693_v29 }
0x1d6e   :  { %v3697_v30 = vpack.c.bf16 %v6111_v37, %v6109_v35 }
0x1d70   :  { %4806 = vmatmul.msk.bf16.vlgmr.msrb.gmra.mxu3 %vm130_vm0, %v3697_v30 }
0x1dcf   :  { %v3141_v9 = vpop.xlane.xlu1 %3140 }
0x1dd0   :  { %v3145_v20 = vmul.f32 %v3141_v9, %v5568_v12 }
0x1dd2   :  { %v6117_v32 = vsub.f32 %v3135_v55, %v3145_v20 }
0x1dd4   :  { %v3149_v18 = vmul.f32 %v6117_v32, %v6117_v32 }
0x1dd6   :  { %v3151_v41 = vsel %vm130_vm0, %v3149_v18, 0.0 }
0x1dd7   :  { %3152 = vadd.xlane.f32.xlu1 %v3151_v41  ;;  %v3144_v39 = vpop.xlane.xlu1 %3143 }
0x1dd8   :  { %v3146_v7 = vmul.f32 %v3144_v39, %v5568_v12 }
0x1dda   :  { %v6123_v10 = vsub.f32 %v3136_v50, %v3146_v7  ;;  %v4977_v7 = vld [vmem:[#allocation12 + $0x18] ss:$0 sm:$0xff] }
0x1ddc   :  { %v3150_v44 = vmul.f32 %v6123_v10, %v6123_v10 }
0x1dde   :  { %v3154_v48 = vsel %vm130_vm0, %v3150_v44, 0.0 }
0x1ddf   :  { %3155 = vadd.xlane.f32.xlu1 %v3154_v48  ;;  %v4976_v48 = vld [vmem:[#allocation12 + $0x17] ss:$0 sm:$0xff] }
0x1df3   :  { %v3728_v36 = vpop.f32.mrf.mxu3 }
0x1df4   :  { %v3729_v63 = vadd.f32 %v4975_v24, %v3728_v36 }
0x1df6   :  { %v3733_v51 = vmax.f32 %v3729_v63, 0.0  ;;  %v4978_v63 = vld [vmem:[#allocation12 + $0x19] ss:$0 sm:$0xff] }
0x1dfb   :  { %v3730_v56 = vpop.f32.mrf.mxu3 }
0x1dfc   :  { %v3731_v49 = vadd.f32 %v4975_v24, %v3730_v56 }
0x1dfe   :  { %v3734_v53 = vmax.f32 %v3731_v49, 0.0 }
0x1e00   :  { %v3735_v54 = vpack.c.bf16 %v3734_v53, %v3733_v51 }
0x1e02   :  { %4823 = vmatmul.msk.bf16.vlgmr.msra.gmra.mxu0 %vm1569_vm4, %v3735_v54 }
0x1e4a   :  { %v3153_v57 = vpop.xlane.xlu1 %3152 }
0x1e4b   :  { %v3157_v59 = vmul.f32 0.032258064, %v3153_v57 }
0x1e4d   :  { %5165 = vrsqrt.f32 %v3157_v59  ;;  %vm3166_vm9 = vcmp.eq.f32.partialorder %v3157_v59, inf  ;;  %v3169_v5 = vand.u32 2147483648, %v3157_v59  ;;  %vm3168_vm10 = vcmp.eq.f32.partialorder %v3157_v59, 0.0 }
0x1e52   :  { %v3156_v60 = vpop.xlane.xlu1 %3155 }
0x1e53   :  { %v5166_v15 = vpop.eup %5165  ;;  %v3158_v6 = vmul.f32 0.032258064, %v3156_v60 }
0x1e54   :  { %v3160_v43 = vmul.f32 %v5166_v15, %v3157_v59 }
0x1e55   :  { %5167 = vrsqrt.f32 %v3158_v6  ;;  %vm3178_vm11 = vcmp.eq.f32.partialorder %v3158_v6, inf  ;;  %v3181_v25 = vand.u32 2147483648, %v3158_v6  ;;  %vm3180_vm12 = vcmp.eq.f32.partialorder %v3158_v6, 0.0 }
0x1e56   :  { %v3161_v26 = vmul.f32 %v5166_v15, %v3160_v43 }
0x1e58   :  { %v3162_v34 = vmul.f32 0.5, %v3161_v26 }
0x1e5a   :  { %v3163_v47 = vsub.f32 1.5, %v3162_v34 }
0x1e5b   :  { %v5168_v52 = vpop.eup %5167 }
0x1e5c   :  { %v3164_v55 = vmul.f32 %v5166_v15, %v3163_v47  ;;  %v3172_v4 = vmul.f32 %v5168_v52, %v3158_v6 }
0x1e5e   :  { %v3165_v40 = vmul.f32 %v3164_v55, %v3157_v59  ;;  %v3173_v21 = vmul.f32 %v5168_v52, %v3172_v4 }
0x1e60   :  { %v3167_v28 = vsel %vm3166_vm9, %v3157_v59, %v3165_v40  ;;  %v3174_v8 = vmul.f32 0.5, %v3173_v21 }
0x1e61   :  { %v3170_v1 = vsel %vm3168_vm10, %v3169_v5, %v3167_v28 }
0x1e62   :  { %v3183_v27 = vadd.f32 0.001, %v3170_v1  ;;  %v3175_v50 = vsub.f32 1.5, %v3174_v8  ;;  %v4921_v8 = vld [vmem:[#allocation10 + $0x148] sm:$0xff]  ;;  %v4920_v1 = vld [vmem:[#allocation10 + $0x140] sm:$0xff] }
0x1e63   :  { %3933 = vmatpush.bf16.msrb.mxu1 %v4921_v8 }
0x1e64   :  { %5169 = vrcp.f32 %v3183_v27  ;;  %v3176_v13 = vmul.f32 %v5168_v52, %v3175_v50  ;;  %v3196_v61 = vand.u32 2147483648, %v3183_v27  ;;  %vm3190_vm14 = vweird.f32 %v3183_v27 }
0x1e65   :  { %v3194_v62 = vand.u32 2147483647, %v3183_v27 }
0x1e66   :  { %v3177_v33 = vmul.f32 %v3176_v13, %v3158_v6  ;;  %v3197_v30 = vor.u32 1.1754944e-38, %v3196_v61 }
0x1e67   :  { %vm3195_vm5 = vcmp.eq.f32.partialorder %v3194_v62, 8.507059e+37  ;;  %3934 = vmatpush.bf16.msrb.mxu1 %v4920_v1 }
0x1e68   :  { %v3179_v17 = vsel %vm3178_vm11, %v3158_v6, %v3177_v33 }
0x1e69   :  { %v3182_v19 = vsel %vm3180_vm12, %v3181_v25, %v3179_v17 }
0x1e6a   :  { %v5170_v22 = vpop.eup %5169  ;;  %v3184_v14 = vadd.f32 0.001, %v3182_v19 }
0x1e6b   :  { %v3186_v0 = vmul.f32 %v5170_v22, %v3183_v27  ;;  %vm3191_vm13 = vweird.f32 %v5170_v22 }
0x1e6c   :  { %5171 = vrcp.f32 %v3184_v14  ;;  %vm3192_vm3 = vmor %vm3190_vm14, %vm3191_vm13  ;;  %v3211_v3 = vand.u32 2147483648, %v3184_v14  ;;  %v3209_v41 = vand.u32 2147483647, %v3184_v14  ;;  %vm3205_vm7 = vweird.f32 %v3184_v14 }
0x1e6d   :  { %v3187_v38 = vsub.f32 1.0, %v3186_v0 }
0x1e6e   :  { %v3212_v16 = vor.u32 1.1754944e-38, %v3211_v3  ;;  %vm3210_vm9 = vcmp.eq.f32.partialorder %v3209_v41, 8.507059e+37 }
0x1e6f   :  { %v3188_v31 = vmul.f32 %v5170_v22, %v3187_v38 }
0x1e71   :  { %v3189_v42 = vadd.f32 %v5170_v22, %v3188_v31 }
0x1e72   :  { %v5172_v23 = vpop.eup %5171 }
0x1e73   :  { %v3193_v46 = vsel %vm3192_vm3, %v5170_v22, %v3189_v42  ;;  %v3201_v29 = vmul.f32 %v5172_v23, %v3184_v14  ;;  %vm3206_vm6 = vweird.f32 %v5172_v23 }
0x1e74   :  { %v3198_v20 = vsel %vm3195_vm5, %v3197_v30, %v3193_v46  ;;  %vm3207_vm8 = vmor %vm3205_vm7, %vm3206_vm6 }
0x1e75   :  { %v3202_v9 = vsub.f32 1.0, %v3201_v29  ;;  %v3199_v11 = vmul.f32 %v3198_v20, %v6117_v32 }
0x1e77   :  { %v3203_v18 = vmul.f32 %v5172_v23, %v3202_v9  ;;  %v3216_v24 = vmul.f32 %v4977_v7, %v3199_v11 }
0x1e79   :  { %v3204_v39 = vadd.f32 %v5172_v23, %v3203_v18  ;;  %v6131_v53 = vadd.f32 %v4978_v63, %v3216_v24 }
0x1e7b   :  { %v3208_v44 = vsel %vm3207_vm8, %v5172_v23, %v3204_v39 }
0x1e7c   :  { %v3213_v45 = vsel %vm3210_vm9, %v3212_v16, %v3208_v44 }
0x1e7d   :  { %v3214_v36 = vmul.f32 %v3213_v45, %v6123_v10 }
0x1e7f   :  { %v3782_v56 = vpop.f32.mrf.mxu0  ;;  %v3217_v49 = vmul.f32 %v4977_v7, %v3214_v36 }
0x1e80   :  { %v3783_v51 = vadd.f32 %v4976_v48, %v3782_v56  ;;  %v4979_v56 = vld [vmem:[#allocation12 + $0x14] ss:$0 sm:$0xff] }
0x1e81   :  { %v6133_v54 = vadd.f32 %v4978_v63, %v3217_v49 }
0x1e82   :  { %v3787_v32 = vadd.f32 %v3783_v51, %v6109_v35 }
0x1e83   :  { %v3873_v57 = vpack.c.bf16 %v6133_v54, %v6131_v53 }
0x1e84   :  { %v3791_v59 = vsel %vm130_vm0, %v3787_v32, 0.0 }
0x1e85   :  { %3792 = vadd.xlane.f32.xlu0 %v3791_v59  ;;  %4832 = vmatmul.msk.bf16.vlgmr.msra.gmra.mxu2 %vm130_vm0, %v3873_v57  ;;  %v4980_v57 = vld [vmem:[#allocation12 + $0x15] ss:$0 sm:$0xff] }
0x1e87   :  { %v3784_v10 = vpop.f32.mrf.mxu0 }
0x1e88   :  { %v3785_v2 = vadd.f32 %v4976_v48, %v3784_v10 }
0x1e8a   :  { %v3788_v60 = vadd.f32 %v3785_v2, %v6111_v37 }
0x1e8c   :  { %v3794_v15 = vsel %vm130_vm0, %v3788_v60, 0.0 }
0x1e8d   :  { %3795 = vadd.xlane.f32.xlu2 %v3794_v15 }
0x1ef8   :  { %v3793_v6 = vpop.xlane.xlu0 %3792 }
0x1ef9   :  { %v3797_v43 = vmul.f32 %v3793_v6, %v5568_v12 }
0x1efb   :  { %v6143_v26 = vsub.f32 %v3787_v32, %v3797_v43 }
0x1efd   :  { %v3801_v35 = vmul.f32 %v6143_v26, %v6143_v26 }
0x1eff   :  { %v3803_v34 = vsel %vm130_vm0, %v3801_v35, 0.0 }
0x1f00   :  { %v3796_v47 = vpop.xlane.xlu2 %3795  ;;  %3804 = vadd.xlane.f32.xlu1 %v3803_v34 }
0x1f01   :  { %v3798_v52 = vmul.f32 %v3796_v47, %v5568_v12 }
0x1f03   :  { %v6149_v55 = vsub.f32 %v3788_v60, %v3798_v52 }
0x1f05   :  { %v3802_v37 = vmul.f32 %v6149_v55, %v6149_v55 }
0x1f07   :  { %v3806_v4 = vsel %vm130_vm0, %v3802_v37, 0.0 }
0x1f08   :  { %3807 = vadd.xlane.f32.xlu1 %v3806_v4  ;;  %v6154_v40 = vpop.f32.mrf.mxu2 }
0x1f09   :  { %4019 = vrot.lane.b32.xlu0 %v6154_v40, %s5402_s23 }
0x1f10   :  { %v6158_v21 = vpop.f32.mrf.mxu2 }
0x1f11   :  { %4181 = vrot.lane.b32.xlu0 %v6158_v21, %s5402_s23 }
0x1f73   :  { %v3805_v5 = vpop.xlane.xlu1 %3804 }
0x1f74   :  { %v3809_v28 = vmul.f32 0.032258064, %v3805_v5 }
0x1f76   :  { %5173 = vrsqrt.f32 %v3809_v28  ;;  %vm3818_vm10 = vcmp.eq.f32.partialorder %v3809_v28, inf  ;;  %v3821_v31 = vand.u32 2147483648, %v3809_v28  ;;  %vm3820_vm11 = vcmp.eq.f32.partialorder %v3809_v28, 0.0 }
0x1f7b   :  { %v3808_v27 = vpop.xlane.xlu1 %3807 }
0x1f7c   :  { %v5174_v50 = vpop.eup %5173  ;;  %v3810_v58 = vmul.f32 0.032258064, %v3808_v27 }
0x1f7d   :  { %v3812_v13 = vmul.f32 %v5174_v50, %v3809_v28 }
0x1f7e   :  { %5175 = vrsqrt.f32 %v3810_v58  ;;  %vm3830_vm12 = vcmp.eq.f32.partialorder %v3810_v58, inf  ;;  %v3833_v9 = vand.u32 2147483648, %v3810_v58  ;;  %vm3832_vm13 = vcmp.eq.f32.partialorder %v3810_v58, 0.0 }
0x1f7f   :  { %v3813_v33 = vmul.f32 %v5174_v50, %v3812_v13 }
0x1f81   :  { %v3814_v25 = vmul.f32 0.5, %v3813_v33 }
0x1f83   :  { %v3815_v17 = vsub.f32 1.5, %v3814_v25 }
0x1f84   :  { %v5176_v19 = vpop.eup %5175 }
0x1f85   :  { %v3816_v22 = vmul.f32 %v5174_v50, %v3815_v17  ;;  %v3824_v14 = vmul.f32 %v5176_v19, %v3810_v58 }
0x1f87   :  { %v3817_v0 = vmul.f32 %v3816_v22, %v3809_v28  ;;  %v3825_v38 = vmul.f32 %v5176_v19, %v3824_v14 }
0x1f89   :  { %v3819_v61 = vsel %vm3818_vm10, %v3809_v28, %v3817_v0  ;;  %v3826_v42 = vmul.f32 0.5, %v3825_v38  ;;  %v4020_v28 = vpop.permute.xlu0 %4019 }
0x1f8a   :  { %v3822_v62 = vsel %vm3820_vm11, %v3821_v31, %v3819_v61 }
0x1f8b   :  { %v3835_v23 = vadd.f32 0.001, %v3822_v62  ;;  %v3827_v46 = vsub.f32 1.5, %v3826_v42 }
0x1f8d   :  { %5177 = vrcp.f32 %v3835_v23  ;;  %v3828_v29 = vmul.f32 %v5176_v19, %v3827_v46  ;;  %v3848_v7 = vand.u32 2147483648, %v3835_v23  ;;  %v3846_v44 = vand.u32 2147483647, %v3835_v23 }
0x1f8e   :  { %vm3842_vm3 = vweird.f32 %v3835_v23 }
0x1f8f   :  { %v3829_v30 = vmul.f32 %v3828_v29, %v3810_v58  ;;  %v3849_v36 = vor.u32 1.1754944e-38, %v3848_v7  ;;  %vm3847_vm6 = vcmp.eq.f32.partialorder %v3846_v44, 8.507059e+37 }
0x1f91   :  { %v3831_v20 = vsel %vm3830_vm12, %v3810_v58, %v3829_v30  ;;  %v4182_v1 = vpop.permute.xlu0 %4181 }
0x1f92   :  { %v3834_v3 = vsel %vm3832_vm13, %v3833_v9, %v3831_v20 }
0x1f93   :  { %v5178_v18 = vpop.eup %5177  ;;  %v3836_v41 = vadd.f32 0.001, %v3834_v3 }
0x1f94   :  { %v3838_v11 = vmul.f32 %v5178_v18, %v3835_v23  ;;  %vm3843_vm14 = vweird.f32 %v5178_v18 }
0x1f95   :  { %5179 = vrcp.f32 %v3836_v41  ;;  %vm3844_vm5 = vmor %vm3842_vm3, %vm3843_vm14  ;;  %v3863_v59 = vand.u32 2147483648, %v3836_v41  ;;  %v3861_v2 = vand.u32 2147483647, %v3836_v41  ;;  %vm3857_vm8 = vweird.f32 %v3836_v41 }
0x1f96   :  { %v3839_v39 = vsub.f32 1.0, %v3838_v11 }
0x1f97   :  { %v3864_v43 = vor.u32 1.1754944e-38, %v3863_v59  ;;  %vm3862_vm10 = vcmp.eq.f32.partialorder %v3861_v2, 8.507059e+37 }
0x1f98   :  { %v3840_v16 = vmul.f32 %v5178_v18, %v3839_v39 }
0x1f9a   :  { %v3841_v48 = vadd.f32 %v5178_v18, %v3840_v16 }
0x1f9b   :  { %v5180_v45 = vpop.eup %5179 }
0x1f9c   :  { %v3845_v24 = vsel %vm3844_vm5, %v5178_v18, %v3841_v48  ;;  %v3853_v63 = vmul.f32 %v5180_v45, %v3836_v41  ;;  %vm3858_vm7 = vweird.f32 %v5180_v45 }
0x1f9d   :  { %v3850_v49 = vsel %vm3847_vm6, %v3849_v36, %v3845_v24  ;;  %vm3859_vm9 = vmor %vm3857_vm8, %vm3858_vm7 }
0x1f9e   :  { %v3851_v51 = vmul.f32 %v3850_v49, %v6143_v26  ;;  %v3854_v32 = vsub.f32 1.0, %v3853_v63 }
0x1fa0   :  { %v3855_v10 = vmul.f32 %v5180_v45, %v3854_v32  ;;  %v3868_v60 = vmul.f32 %v4979_v56, %v3851_v51 }
0x1fa2   :  { %v3856_v15 = vadd.f32 %v5180_v45, %v3855_v10  ;;  %v3871_v6 = vadd.f32 %v4980_v57, %v3868_v60 }
0x1fa4   :  { %v3860_v35 = vsel %vm3859_vm9, %v5180_v45, %v3856_v15  ;;  %4529 = vst.msk [vmem:[#allocation13] sm:$0xff] %vm130_vm0, %v3871_v6 }
0x1fa5   :  { %v3865_v34 = vsel %vm3862_vm10, %v3864_v43, %v3860_v35 }
0x1fa6   :  { %v3866_v47 = vmul.f32 %v3865_v34, %v6149_v55 }
0x1fa8   :  { %v3869_v26 = vmul.f32 %v4979_v56, %v3866_v47 }
0x1faa   :  { %v3872_v52 = vadd.f32 %v4980_v57, %v3869_v26 }
0x1fac   :  { %v3907_v37 = vpack.c.bf16 %v3872_v52, %v3871_v6  ;;  %4530 = vst.msk [vmem:[#allocation13 + $0x8] sm:$0xff] %vm130_vm0, %v3872_v52 }
0x1fad   :  { %4545 = dma.vmem_to_hbm [thread:$0]  %s4538_s8, 256, %s4540_s28, [#allocation6], %s5392_s29, %s5392_s29, %s5393_s30  }
0x1fae   :  { %4841 = vmatmul.msk.bf16.vlgmr.msrb.gmra.mxu1 %vm130_vm0, %v3907_v37 }
0x202b   :  { %v6167_v4 = vpop.f32.mrf.mxu1 }
0x202c   :  { %4021 = vrot.lane.b32.xlu1 %v6167_v4, %s5402_s23  ;;  %4842 = vmatpush.xpose.msk.msra.mxu3 %vm151_vm1, %v6167_v4 }
0x202f   :  { %4843 = vmatmul.msk.f32.vlgmr.msra.gmra.mxu3 %vm151_vm1, %v6154_v40 }
0x2033   :  { %v3938_v5 = vpop.f32.mrf.mxu1 }
0x2034   :  { %4183 = vrot.lane.b32.xlu2 %v3938_v5, %s5402_s23  ;;  %4848 = vmatpush.xpose.msk.msrb.mxu0 %vm151_vm1, %v3938_v5 }
0x2037   :  { %4849 = vmatmul.msk.f32.vlgmr.msrb.gmra.mxu0 %vm151_vm1, %v6158_v21 }
0x208e   :  { %v4184_v8 = vpop.permute.xlu2 %4183 }
0x209e   :  { %v4022_v55 = vpop.permute.xlu1 %4021 }
0x209f   :  { %4845 = vmatpush.xpose.msk.msra.mxu1 %vm151_vm1, %v4022_v55 }
0x20a2   :  { %4846 = vmatmul.msk.f32.vlgmr.msra.gmra.mxu1 %vm151_vm1, %v4020_v28 }
0x20a3   :  { %4851 = vmatpush.xpose.msk.msrb.mxu1 %vm151_vm1, %v4184_v8 }
0x20aa   :  { %4852 = vmatmul.msk.f32.vlgmr.msrb.gmra.mxu1 %vm151_vm1, %v4182_v1 }
0x20b2   :  { %v3964_v40 = vpop.f32.mrf.mxu3 }
0x20b3   :  { %v3967_v27 = vmul.f32 0.17677669, %v3964_v40 }
0x20b4   :  { %v4126_v33 = vpop.f32.mrf.mxu0 }
0x20b5   :  { %v3968_v50 = vsel %vm177_vm2, %v3967_v27, -inf  ;;  %v4129_v25 = vmul.f32 0.17677669, %v4126_v33 }
0x20b6   :  { %3969 = vmax.xlane.f32.xlu0 %v3968_v50 }
0x20b7   :  { %v4130_v38 = vsel %vm177_vm2, %v4129_v25, -inf }
0x211f   :  { %v4044_v58 = vpop.f32.mrf.mxu1 }
0x2120   :  { %v4047_v13 = vmul.f32 0.17677669, %v4044_v58 }
0x2122   :  { %v4048_v21 = vsel %vm177_vm2, %v4047_v13, -inf }
0x2123   :  { %4049 = vmax.xlane.f32.xlu1 %v4048_v21 }
0x2127   :  { %v4206_v17 = vpop.f32.mrf.mxu1 }
0x2128   :  { %v4209_v19 = vmul.f32 0.17677669, %v4206_v17 }
0x2129   :  { %v3970_v22 = vpop.xlane.xlu0 %3969 }
0x212a   :  { %v3971_v14 = vsub.f32 %v3967_v27, %v3970_v22  ;;  %v4210_v0 = vsel %vm177_vm2, %v4209_v19, -inf }
0x212b   :  { %4211 = vmax.xlane.f32.xlu2 %v4210_v0  ;;  %4131 = vmax.xlane.f32.xlu1 %v4130_v38 }
0x212c   :  { %v3972_v31 = vmul.f32 1.442695, %v3971_v14 }
0x212e   :  { %5181 = vpow2.f32 %v3972_v31 }
0x2134   :  { %v6187_v61 = vpop.eup %5181 }
0x2135   :  { %v3974_v42 = vsel %vm177_vm2, %v6187_v61, 0.0 }
0x2136   :  { %3975 = vadd.xlane.f32.xlu0 %v3974_v42 }
0x2144   :  { %4072 = vrot.lane.b32.xlu1 %v6167_v4, %s5400_s2 }
0x214c   :  { %4154 = vrot.lane.b32.xlu1 %v3938_v5, %s5401_s4 }
0x2196   :  { %v4050_v62 = vpop.xlane.xlu1 %4049 }
0x2197   :  { %v4051_v23 = vsub.f32 %v4047_v13, %v4050_v62 }
0x2199   :  { %v4052_v46 = vmul.f32 1.442695, %v4051_v23 }
0x219b   :  { %5183 = vpow2.f32 %v4052_v46 }
0x219e   :  { %v4212_v29 = vpop.xlane.xlu2 %4211  ;;  %v4132_v9 = vpop.xlane.xlu1 %4131 }
0x219f   :  { %v4213_v30 = vsub.f32 %v4209_v19, %v4212_v29  ;;  %v4133_v18 = vsub.f32 %v4129_v25, %v4132_v9 }
0x21a1   :  { %v5184_v20 = vpop.eup %5183  ;;  %v4214_v3 = vmul.f32 1.442695, %v4213_v30  ;;  %v4134_v11 = vmul.f32 1.442695, %v4133_v18 }
0x21a2   :  { %v4054_v41 = vsel %vm177_vm2, %v5184_v20, 0.0 }
0x21a3   :  { %5185 = vpow2.f32 %v4214_v3  ;;  %4055 = vadd.xlane.f32.xlu2 %v4054_v41 }
0x21a4   :  { %5187 = vpow2.f32 %v4134_v11 }
0x21a9   :  { %v5186_v39 = vpop.eup %5185  ;;  %v3976_v36 = vpop.xlane.xlu0 %3975 }
0x21aa   :  { %v4216_v7 = vsel %vm177_vm2, %v5186_v39, 0.0  ;;  %v6196_v16 = vpop.eup %5187  ;;  %v3988_v21 = vand.u32 2147483648, %v3976_v36  ;;  %vm3982_vm9 = vweird.f32 %v3976_v36  ;;  %v3986_v17 = vand.u32 2147483647, %v3976_v36 }
0x21ab   :  { %4217 = vadd.xlane.f32.xlu0 %v4216_v7  ;;  %v4136_v44 = vsel %vm177_vm2, %v6196_v16, 0.0 }
0x21ac   :  { %v3989_v14 = vor.u32 1.1754944e-38, %v3988_v21 }
0x21b3   :  { %4137 = vadd.xlane.f32.xlu0 %v4136_v44 }
0x21b6   :  { %v4073_v48 = vpop.permute.xlu1 %4072 }
0x21b7   :  { %4093 = vmatpush.msrb.mxu3 %v4073_v48 }
0x21bb   :  { %4234 = vrot.lane.b32.xlu2 %v3938_v5, %s5400_s2 }
0x21be   :  { %v4155_v46 = vpop.permute.xlu1 %4154 }
0x21c7   :  { %3992 = vrot.lane.b32.xlu0 %v6167_v4, %s5401_s4 }
0x2216   :  { %v4056_v45 = vpop.xlane.xlu2 %4055 }
0x2217   :  { %5189 = vrcp.f32 %v4056_v45  ;;  %v4068_v57 = vand.u32 2147483648, %v4056_v45  ;;  %v4066_v10 = vand.u32 2147483647, %v4056_v45  ;;  %vm4062_vm12 = vweird.f32 %v4056_v45 }
0x2218   :  { %5191 = vrcp.f32 %v3976_v36 }
0x2219   :  { %v4069_v15 = vor.u32 1.1754944e-38, %v4068_v57  ;;  %vm4067_vm14 = vcmp.eq.f32.partialorder %v4066_v10, 8.507059e+37 }
0x221d   :  { %v5190_v24 = vpop.eup %5189 }
0x221e   :  { %v4058_v63 = vmul.f32 %v5190_v24, %v4056_v45  ;;  %v4235_v56 = vpop.permute.xlu2 %4234  ;;  %v4218_v49 = vpop.xlane.xlu0 %4217  ;;  %vm4063_vm11 = vweird.f32 %v5190_v24 }
0x221f   :  { %4255 = vmatpush.msra.mxu3 %v4235_v56  ;;  %5193 = vrcp.f32 %v4218_v49  ;;  %v5192_v32 = vpop.eup %5191  ;;  %vm4064_vm13 = vmor %vm4062_vm12, %vm4063_vm11  ;;  %v4230_v4 = vand.u32 2147483648, %v4218_v49  ;;  %v4228_v55 = vand.u32 2147483647, %v4218_v49  ;;  %vm4224_vm5 = vweird.f32 %v4218_v49 }
0x2220   :  { %v4059_v51 = vsub.f32 1.0, %v4058_v63  ;;  %v3978_v2 = vmul.f32 %v5192_v32, %v3976_v36  ;;  %vm3983_vm8 = vweird.f32 %v5192_v32  ;;  %vm3987_vm11 = vcmp.eq.f32.partialorder %v3986_v17, 8.507059e+37 }
0x2221   :  { %v4231_v40 = vor.u32 1.1754944e-38, %v4230_v4  ;;  %vm4229_vm7 = vcmp.eq.f32.partialorder %v4228_v55, 8.507059e+37  ;;  %vm3984_vm10 = vmor %vm3982_vm9, %vm3983_vm8 }
0x2222   :  { %v4060_v59 = vmul.f32 %v5190_v24, %v4059_v51  ;;  %v3979_v26 = vsub.f32 1.0, %v3978_v2 }
0x2224   :  { %v4061_v60 = vadd.f32 %v5190_v24, %v4060_v59  ;;  %v3980_v28 = vmul.f32 %v5192_v32, %v3979_v26  ;;  %v4923_v26 = vld [vmem:[#allocation10 + $0x158] sm:$0xff] }
0x2225   :  { %v5194_v6 = vpop.eup %5193  ;;  %4381 = vmatpush.bf16.msra.mxu0 %v4923_v26 }
0x2226   :  { %v4065_v43 = vsel %vm4064_vm13, %v5190_v24, %v4061_v60  ;;  %v4220_v34 = vmul.f32 %v5194_v6, %v4218_v49  ;;  %v4138_v47 = vpop.xlane.xlu0 %4137  ;;  %vm4225_vm3 = vweird.f32 %v5194_v6  ;;  %v3981_v58 = vadd.f32 %v5192_v32, %v3980_v28 }
0x2227   :  { %v4070_v35 = vsel %vm4067_vm14, %v4069_v15, %v4065_v43  ;;  %5195 = vrcp.f32 %v4138_v47  ;;  %vm4226_vm6 = vmor %vm4224_vm5, %vm4225_vm3  ;;  %v4150_v31 = vand.u32 2147483648, %v4138_v47  ;;  %vm4144_vm13 = vweird.f32 %v4138_v47 }
0x2228   :  { %v4071_v52 = vmul.f32 %v5184_v20, %v4070_v35  ;;  %v4221_v37 = vsub.f32 1.0, %v4220_v34  ;;  %v3985_v19 = vsel %vm3984_vm10, %v5192_v32, %v3981_v58  ;;  %v4148_v42 = vand.u32 2147483647, %v4138_v47 }
0x2229   :  { %v3990_v0 = vsel %vm3987_vm11, %v3989_v14, %v3985_v19  ;;  %v4151_v30 = vor.u32 1.1754944e-38, %v4150_v31 }
0x222a   :  { %4847 = vmatmul.msk.f32.vlgmr.msrb.gmra.mxu3 %vm177_vm2, %v4071_v52  ;;  %v4222_v5 = vmul.f32 %v5194_v6, %v4221_v37  ;;  %v3991_v23 = vmul.f32 %v6187_v61, %v3990_v0  ;;  %vm4149_vm3 = vcmp.eq.f32.partialorder %v4148_v42, 8.507059e+37  ;;  %v4922_v52 = vld [vmem:[#allocation10 + $0x150] sm:$0xff] }
0x222b   :  { %4382 = vmatpush.bf16.msra.mxu0 %v4922_v52 }
0x222c   :  { %v4223_v8 = vadd.f32 %v5194_v6, %v4222_v5 }
0x222d   :  { %v5196_v1 = vpop.eup %5195 }
0x222e   :  { %v4227_v27 = vsel %vm4226_vm6, %v5194_v6, %v4223_v8  ;;  %v4140_v50 = vmul.f32 %v5196_v1, %v4138_v47  ;;  %vm4145_vm12 = vweird.f32 %v5196_v1 }
0x222f   :  { %v4232_v13 = vsel %vm4229_vm7, %v4231_v40, %v4227_v27  ;;  %vm4146_vm14 = vmor %vm4144_vm13, %vm4145_vm12 }
0x2230   :  { %v4233_v33 = vmul.f32 %v5186_v39, %v4232_v13  ;;  %v4141_v25 = vsub.f32 1.0, %v4140_v50 }
0x2232   :  { %4853 = vmatmul.msk.f32.vlgmr.msra.gmra.mxu3 %vm177_vm2, %v4233_v33  ;;  %v4142_v22 = vmul.f32 %v5196_v1, %v4141_v25 }
0x2234   :  { %v4143_v38 = vadd.f32 %v5196_v1, %v4142_v22 }
0x2236   :  { %v4147_v29 = vsel %vm4146_vm14, %v5196_v1, %v4143_v38 }
0x2237   :  { %v4152_v9 = vsel %vm4149_vm3, %v4151_v30, %v4147_v29 }
0x2238   :  { %v4153_v20 = vmul.f32 %v6196_v16, %v4152_v9 }
0x2239   :  { %v3993_v62 = vpop.permute.xlu0 %3992 }
0x223a   :  { %4013 = vmatpush.msrb.mxu2 %v3993_v62 }
0x223b   :  { %4844 = vmatmul.msk.f32.vlgmr.msrb.gmra.mxu2 %vm177_vm2, %v3991_v23 }
0x223c   :  { %4175 = vmatpush.msra.mxu2 %v4155_v46 }
0x2243   :  { %4850 = vmatmul.msk.f32.vlgmr.msra.gmra.mxu2 %vm177_vm2, %v4153_v20 }
0x22ad   :  { %v4095_v3 = vpop.f32.mrf.mxu3 }
0x22ae   :  { %4099 = vrot.lane.b32.xlu2 %v4095_v3, %s5404_s25 }
0x22b5   :  { %v4257_v18 = vpop.f32.mrf.mxu3 }
0x22b6   :  { %4261 = vrot.lane.b32.xlu1 %v4257_v18, %s5404_s25 }
0x22be   :  { %v4015_v61 = vpop.f32.mrf.mxu2 }
0x22bf   :  { %4018 = vst.msk [vmem:[#allocation3] sm:$0xff] %vm151_vm1, %v4015_v61 }
0x22c6   :  { %v4177_v41 = vpop.f32.mrf.mxu2 }
0x22c7   :  { %4180 = vst.msk [vmem:[#allocation3 + $0x8] sm:$0xff] %vm151_vm1, %v4177_v41 }
0x2308   :  { %v4100_v11 = vpop.permute.xlu2 %4099 }
0x2309   :  { %4102 = vst.msk [vmem:[#allocation3] sm:$0xff] %vm312_vm15, %v4100_v11 }
0x2310   :  { %v4265_v39 = vld [vmem:[#allocation3] sm:$0xff] }
0x2311   :  { %v4267_v7 = vadd.f32 %v4265_v39, %v6131_v53  ;;  %v4981_v39 = vld [vmem:[#allocation12 + $0x1a] ss:$0 sm:$0xff] }
0x2313   :  { %v4271_v16 = vsel %vm130_vm0, %v4267_v7, 0.0 }
0x2314   :  { %4272 = vadd.xlane.f32.xlu2 %v4271_v16 }
0x2328   :  { %v4262_v44 = vpop.permute.xlu1 %4261 }
0x2329   :  { %4264 = vst.msk [vmem:[#allocation3 + $0x8] sm:$0xff] %vm312_vm15, %v4262_v44 }
0x2330   :  { %v4266_v48 = vld [vmem:[#allocation3 + $0x8] sm:$0xff] }
0x2331   :  { %v4268_v45 = vadd.f32 %v4266_v48, %v6133_v54 }
0x2333   :  { %v4274_v36 = vsel %vm130_vm0, %v4268_v45, 0.0 }
0x2334   :  { %4275 = vadd.xlane.f32.xlu1 %v4274_v36  ;;  %v4982_v36 = vld [vmem:[#allocation12 + $0x1b] ss:$0 sm:$0xff] }
0x2387   :  { %v4273_v24 = vpop.xlane.xlu2 %4272 }
0x2388   :  { %v4277_v63 = vmul.f32 %v4273_v24, %v5568_v12 }
0x238a   :  { %v6220_v56 = vsub.f32 %v4267_v7, %v4277_v63 }
0x238c   :  { %v4281_v53 = vmul.f32 %v6220_v56, %v6220_v56 }
0x238e   :  { %v4283_v49 = vsel %vm130_vm0, %v4281_v53, 0.0 }
0x238f   :  { %4284 = vadd.xlane.f32.xlu0 %v4283_v49 }
0x23a7   :  { %v4276_v51 = vpop.xlane.xlu1 %4275 }
0x23a8   :  { %v4278_v32 = vmul.f32 %v4276_v51, %v5568_v12  ;;  %v4927_v51 = vld [vmem:[#allocation10 + $0x178] sm:$0xff] }
0x23a9   :  { %4433 = vmatpush.bf16.msrb.mxu2 %v4927_v51 }
0x23aa   :  { %v6226_v57 = vsub.f32 %v4268_v45, %v4278_v32  ;;  %v4925_v32 = vld [vmem:[#allocation10 + $0x168] sm:$0xff] }
0x23ac   :  { %v4282_v54 = vmul.f32 %v6226_v57, %v6226_v57 }
0x23ae   :  { %v4286_v59 = vsel %vm130_vm0, %v4282_v54, 0.0  ;;  %v4924_v54 = vld [vmem:[#allocation10 + $0x160] sm:$0xff] }
0x23af   :  { %4287 = vadd.xlane.f32.xlu2 %v4286_v59 }
0x2402   :  { %v4285_v10 = vpop.xlane.xlu0 %4284 }
0x2403   :  { %v4289_v2 = vmul.f32 0.032258064, %v4285_v10  ;;  %v4983_v10 = vld [vmem:[#allocation12 + $0x1e] ss:$0 sm:$0xff] }
0x2405   :  { %5197 = vrsqrt.f32 %v4289_v2  ;;  %vm4298_vm1 = vcmp.eq.f32.partialorder %v4289_v2, inf  ;;  %v4301_v4 = vand.u32 2147483648, %v4289_v2  ;;  %vm4300_vm2 = vcmp.eq.f32.partialorder %v4289_v2, 0.0 }
0x240b   :  { %v5198_v60 = vpop.eup %5197 }
0x240c   :  { %v4292_v15 = vmul.f32 %v5198_v60, %v4289_v2 }
0x240e   :  { %v4293_v6 = vmul.f32 %v5198_v60, %v4292_v15 }
0x2410   :  { %v4294_v43 = vmul.f32 0.5, %v4293_v6 }
0x2412   :  { %v4295_v35 = vsub.f32 1.5, %v4294_v43 }
0x2414   :  { %v4296_v34 = vmul.f32 %v5198_v60, %v4295_v35  ;;  %v4984_v35 = vld [vmem:[#allocation12 + $0x1f] ss:$0 sm:$0xff] }
0x2416   :  { %v4297_v47 = vmul.f32 %v4296_v34, %v4289_v2 }
0x2418   :  { %v4299_v37 = vsel %vm4298_vm1, %v4289_v2, %v4297_v47 }
0x2419   :  { %v4302_v55 = vsel %vm4300_vm2, %v4301_v4, %v4299_v37 }
0x241a   :  { %v4315_v8 = vadd.f32 0.001, %v4302_v55 }
0x241c   :  { %v4328_v42 = vand.u32 2147483648, %v4315_v8  ;;  %vm4322_vm7 = vweird.f32 %v4315_v8  ;;  %v4326_v62 = vand.u32 2147483647, %v4315_v8 }
0x241e   :  { %v4329_v30 = vor.u32 1.1754944e-38, %v4328_v42  ;;  %vm4327_vm9 = vcmp.eq.f32.partialorder %v4326_v62, 8.507059e+37 }
0x2422   :  { %v4288_v5 = vpop.xlane.xlu2 %4287 }
0x2423   :  { %v4290_v28 = vmul.f32 0.032258064, %v4288_v5 }
0x2425   :  { %5199 = vrsqrt.f32 %v4290_v28  ;;  %vm4310_vm15 = vcmp.eq.f32.partialorder %v4290_v28, inf  ;;  %v4313_v17 = vand.u32 2147483648, %v4290_v28  ;;  %vm4312_vm5 = vcmp.eq.f32.partialorder %v4290_v28, 0.0 }
0x2426   :  { %5201 = vrcp.f32 %v4315_v8 }
0x242b   :  { %v5200_v1 = vpop.eup %5199 }
0x242c   :  { %v4304_v40 = vmul.f32 %v5200_v1, %v4290_v28  ;;  %v5202_v50 = vpop.eup %5201 }
0x242d   :  { %v4318_v21 = vmul.f32 %v5202_v50, %v4315_v8  ;;  %vm4323_vm6 = vweird.f32 %v5202_v50 }
0x242e   :  { %v4305_v27 = vmul.f32 %v5200_v1, %v4304_v40  ;;  %vm4324_vm8 = vmor %vm4322_vm7, %vm4323_vm6 }
0x242f   :  { %v4319_v19 = vsub.f32 1.0, %v4318_v21 }
0x2430   :  { %v4306_v58 = vmul.f32 0.5, %v4305_v27 }
0x2431   :  { %v4320_v38 = vmul.f32 %v5202_v50, %v4319_v19 }
0x2432   :  { %v4307_v13 = vsub.f32 1.5, %v4306_v58 }
0x2433   :  { %v4321_v31 = vadd.f32 %v5202_v50, %v4320_v38 }
0x2434   :  { %v4308_v33 = vmul.f32 %v5200_v1, %v4307_v13 }
0x2435   :  { %v4325_v46 = vsel %vm4324_vm8, %v5202_v50, %v4321_v31 }
0x2436   :  { %v4309_v25 = vmul.f32 %v4308_v33, %v4290_v28  ;;  %v4330_v20 = vsel %vm4327_vm9, %v4329_v30, %v4325_v46 }
0x2437   :  { %v4331_v41 = vmul.f32 %v4330_v20, %v6220_v56  ;;  %v4926_v56 = vld [vmem:[#allocation10 + $0x170] sm:$0xff] }
0x2438   :  { %v4311_v22 = vsel %vm4310_vm15, %v4290_v28, %v4309_v25  ;;  %4434 = vmatpush.bf16.msrb.mxu2 %v4926_v56 }
0x2439   :  { %v4314_v14 = vsel %vm4312_vm5, %v4313_v17, %v4311_v22  ;;  %v4348_v45 = vmul.f32 %v4981_v39, %v4331_v41 }
0x243a   :  { %v4316_v0 = vadd.f32 0.001, %v4314_v14 }
0x243b   :  { %v4351_v63 = vadd.f32 %v4982_v36, %v4348_v45 }
0x243c   :  { %5203 = vrcp.f32 %v4316_v0  ;;  %v4343_v3 = vand.u32 2147483648, %v4316_v0  ;;  %v4341_v61 = vand.u32 2147483647, %v4316_v0  ;;  %vm4337_vm11 = vweird.f32 %v4316_v0  ;;  %4435 = vmatpush.bf16.msrb.mxu2 %v4925_v32 }
0x243e   :  { %v4344_v7 = vor.u32 1.1754944e-38, %v4343_v3  ;;  %vm4342_vm13 = vcmp.eq.f32.partialorder %v4341_v61, 8.507059e+37 }
0x2440   :  { %4436 = vmatpush.bf16.msrb.mxu2 %v4924_v54 }
0x2442   :  { %v5204_v23 = vpop.eup %5203 }
0x2443   :  { %v4333_v29 = vmul.f32 %v5204_v23, %v4316_v0  ;;  %vm4338_vm10 = vweird.f32 %v5204_v23 }
0x2444   :  { %vm4339_vm12 = vmor %vm4337_vm11, %vm4338_vm10 }
0x2445   :  { %v4334_v9 = vsub.f32 1.0, %v4333_v29 }
0x2447   :  { %v4335_v18 = vmul.f32 %v5204_v23, %v4334_v9 }
0x2449   :  { %v4336_v11 = vadd.f32 %v5204_v23, %v4335_v18 }
0x244b   :  { %v4340_v16 = vsel %vm4339_vm12, %v5204_v23, %v4336_v11 }
0x244c   :  { %v4345_v44 = vsel %vm4342_vm13, %v4344_v7, %v4340_v16 }
0x244d   :  { %v4346_v48 = vmul.f32 %v4345_v44, %v6226_v57 }
0x244f   :  { %v4349_v24 = vmul.f32 %v4981_v39, %v4346_v48 }
0x2451   :  { %v4352_v53 = vadd.f32 %v4982_v36, %v4349_v24 }
0x2453   :  { %v4353_v49 = vpack.c.bf16 %v4352_v53, %v4351_v63 }
0x2455   :  { %4862 = vmatmul.msk.bf16.vlgmr.msra.gmra.mxu0 %vm130_vm0, %v4353_v49 }
0x24d2   :  { %v4384_v59 = vpop.f32.mrf.mxu0 }
0x24d3   :  { %v4385_v2 = vadd.f32 %v4983_v10, %v4384_v59  ;;  %v4985_v59 = vld [vmem:[#allocation12 + $0x1c] ss:$0 sm:$0xff] }
0x24d5   :  { %v4389_v15 = vmax.f32 %v4385_v2, 0.0 }
0x24da   :  { %v4386_v57 = vpop.f32.mrf.mxu0 }
0x24db   :  { %v4387_v60 = vadd.f32 %v4983_v10, %v4386_v57 }
0x24dd   :  { %v4390_v6 = vmax.f32 %v4387_v60, 0.0  ;;  %v4986_v60 = vld [vmem:[#allocation12 + $0x1d] ss:$0 sm:$0xff] }
0x24df   :  { %v4391_v43 = vpack.c.bf16 %v4390_v6, %v4389_v15 }
0x24e1   :  { %4879 = vmatmul.msk.bf16.vlgmr.msrb.gmra.mxu2 %vm1569_vm4, %v4391_v43 }
0x2564   :  { %v4438_v34 = vpop.f32.mrf.mxu2 }
0x2565   :  { %v4439_v47 = vadd.f32 %v4984_v35, %v4438_v34 }
0x2567   :  { %v4443_v26 = vadd.f32 %v4439_v47, %v4351_v63 }
0x2569   :  { %v4447_v52 = vsel %vm130_vm0, %v4443_v26, 0.0 }
0x256a   :  { %4448 = vadd.xlane.f32.xlu1 %v4447_v52 }
0x256c   :  { %v4440_v37 = vpop.f32.mrf.mxu2 }
0x256d   :  { %v4441_v4 = vadd.f32 %v4984_v35, %v4440_v37 }
0x256f   :  { %v4444_v5 = vadd.f32 %v4441_v4, %v4352_v53 }
0x2571   :  { %v4450_v55 = vsel %vm130_vm0, %v4444_v5, 0.0 }
0x2572   :  { %4451 = vadd.xlane.f32.xlu0 %v4450_v55 }
0x25dd   :  { %v4449_v28 = vpop.xlane.xlu1 %4448 }
0x25de   :  { %v4453_v8 = vmul.f32 %v4449_v28, %v5568_v12 }
0x25e0   :  { %v6238_v1 = vsub.f32 %v4443_v26, %v4453_v8 }
0x25e2   :  { %v4457_v40 = vmul.f32 %v6238_v1, %v6238_v1 }
0x25e4   :  { %v4459_v27 = vsel %vm130_vm0, %v4457_v40, 0.0 }
0x25e5   :  { %v4452_v50 = vpop.xlane.xlu0 %4451  ;;  %4460 = vadd.xlane.f32.xlu2 %v4459_v27 }
0x25e6   :  { %v4454_v58 = vmul.f32 %v4452_v50, %v5568_v12 }
0x25e8   :  { %v6244_v13 = vsub.f32 %v4444_v5, %v4454_v58 }
0x25ea   :  { %v4458_v21 = vmul.f32 %v6244_v13, %v6244_v13 }
0x25ec   :  { %v4462_v33 = vsel %vm130_vm0, %v4458_v21, 0.0 }
0x25ed   :  { %4463 = vadd.xlane.f32.xlu1 %v4462_v33 }
0x2658   :  { %v4461_v12 = vpop.xlane.xlu2 %4460 }
0x2659   :  { %v4465_v25 = vmul.f32 0.032258064, %v4461_v12 }
0x265b   :  { %5205 = vrsqrt.f32 %v4465_v25  ;;  %vm4474_vm4 = vcmp.eq.f32.partialorder %v4465_v25, inf  ;;  %v4477_v30 = vand.u32 2147483648, %v4465_v25  ;;  %vm4476_vm14 = vcmp.eq.f32.partialorder %v4465_v25, 0.0 }
0x2660   :  { %v4464_v17 = vpop.xlane.xlu1 %4463 }
0x2661   :  { %v5206_v19 = vpop.eup %5205  ;;  %v4466_v22 = vmul.f32 0.032258064, %v4464_v17 }
0x2662   :  { %v4468_v14 = vmul.f32 %v5206_v19, %v4465_v25 }
0x2663   :  { %5207 = vrsqrt.f32 %v4466_v22  ;;  %vm4486_vm3 = vcmp.eq.f32.partialorder %v4466_v22, inf  ;;  %v4489_v39 = vand.u32 2147483648, %v4466_v22  ;;  %vm4488_vm1 = vcmp.eq.f32.partialorder %v4466_v22, 0.0 }
0x2664   :  { %v4469_v0 = vmul.f32 %v5206_v19, %v4468_v14 }
0x2666   :  { %v4470_v38 = vmul.f32 0.5, %v4469_v0 }
0x2668   :  { %v4471_v31 = vsub.f32 1.5, %v4470_v38 }
0x2669   :  { %v5208_v42 = vpop.eup %5207 }
0x266a   :  { %v4472_v62 = vmul.f32 %v5206_v19, %v4471_v31  ;;  %v4480_v23 = vmul.f32 %v5208_v42, %v4466_v22 }
0x266c   :  { %v4473_v46 = vmul.f32 %v4472_v62, %v4465_v25  ;;  %v4481_v29 = vmul.f32 %v5208_v42, %v4480_v23 }
0x266e   :  { %v4475_v9 = vsel %vm4474_vm4, %v4465_v25, %v4473_v46  ;;  %v4482_v20 = vmul.f32 0.5, %v4481_v29 }
0x266f   :  { %v4478_v3 = vsel %vm4476_vm14, %v4477_v30, %v4475_v9 }
0x2670   :  { %v4491_v18 = vadd.f32 0.001, %v4478_v3  ;;  %v4483_v61 = vsub.f32 1.5, %v4482_v20 }
0x2672   :  { %5209 = vrcp.f32 %v4491_v18  ;;  %v4484_v41 = vmul.f32 %v5208_v42, %v4483_v61  ;;  %v4504_v24 = vand.u32 2147483648, %v4491_v18  ;;  %v4502_v53 = vand.u32 2147483647, %v4491_v18 }
0x2673   :  { %vm4498_vm15 = vweird.f32 %v4491_v18 }
0x2674   :  { %v4485_v11 = vmul.f32 %v4484_v41, %v4466_v22  ;;  %v4505_v56 = vor.u32 1.1754944e-38, %v4504_v24  ;;  %vm4503_vm6 = vcmp.eq.f32.partialorder %v4502_v53, 8.507059e+37 }
0x2676   :  { %v4487_v7 = vsel %vm4486_vm3, %v4466_v22, %v4485_v11 }
0x2677   :  { %v4490_v16 = vsel %vm4488_vm1, %v4489_v39, %v4487_v7 }
0x2678   :  { %v5210_v44 = vpop.eup %5209  ;;  %v4492_v48 = vadd.f32 0.001, %v4490_v16 }
0x2679   :  { %v4494_v45 = vmul.f32 %v5210_v44, %v4491_v18  ;;  %vm4499_vm2 = vweird.f32 %v5210_v44 }
0x267a   :  { %5211 = vrcp.f32 %v4492_v48  ;;  %vm4500_vm5 = vmor %vm4498_vm15, %vm4499_vm2  ;;  %v4519_v15 = vand.u32 2147483648, %v4492_v48  ;;  %v4517_v43 = vand.u32 2147483647, %v4492_v48  ;;  %vm4513_vm8 = vweird.f32 %v4492_v48 }
0x267b   :  { %v4495_v36 = vsub.f32 1.0, %v4494_v45 }
0x267c   :  { %v4520_v26 = vor.u32 1.1754944e-38, %v4519_v15  ;;  %vm4518_vm10 = vcmp.eq.f32.partialorder %v4517_v43, 8.507059e+37 }
0x267d   :  { %v4496_v63 = vmul.f32 %v5210_v44, %v4495_v36 }
0x267f   :  { %v4497_v49 = vadd.f32 %v5210_v44, %v4496_v63 }
0x2680   :  { %v5212_v51 = vpop.eup %5211 }
0x2681   :  { %v4501_v32 = vsel %vm4500_vm5, %v5210_v44, %v4497_v49  ;;  %v4509_v54 = vmul.f32 %v5212_v51, %v4492_v48  ;;  %vm4514_vm7 = vweird.f32 %v5212_v51 }
0x2682   :  { %v4506_v10 = vsel %vm4503_vm6, %v4505_v56, %v4501_v32  ;;  %vm4515_vm9 = vmor %vm4513_vm8, %vm4514_vm7 }
0x2683   :  { %v4507_v2 = vmul.f32 %v4506_v10, %v6238_v1  ;;  %v4510_v57 = vsub.f32 1.0, %v4509_v54 }
0x2685   :  { %v4511_v6 = vmul.f32 %v5212_v51, %v4510_v57  ;;  %v4524_v35 = vmul.f32 %v4985_v59, %v4507_v2 }
0x2687   :  { %v4512_v34 = vadd.f32 %v5212_v51, %v4511_v6  ;;  %v4527_v47 = vadd.f32 %v4986_v60, %v4524_v35 }
0x2689   :  { %v4516_v52 = vsel %vm4515_vm9, %v5212_v51, %v4512_v34  ;;  %4531 = vst.msk [vmem:[#allocation14] sm:$0xff] %vm130_vm0, %v4527_v47 }
0x268a   :  { %v4521_v37 = vsel %vm4518_vm10, %v4520_v26, %v4516_v52 }
0x268b   :  { %v4522_v4 = vmul.f32 %v4521_v37, %v6244_v13 }
0x268d   :  { %v4525_v5 = vmul.f32 %v4985_v59, %v4522_v4 }
0x268f   :  { %v4528_v55 = vadd.f32 %v4986_v60, %v4525_v5 }
0x2691   :  { %4532 = vst.msk [vmem:[#allocation14 + $0x8] sm:$0xff] %vm130_vm0, %v4528_v55 }
0x2692   :  { %4558 = dma.vmem_to_hbm [thread:$0]  %s4551_s9, 256, %s4553_s11, [#allocation15], %s5392_s29, %s5392_s29, %s5393_s30  }
0x2693   :  { %5387 = dma.done.wait [#allocation6], 256  }
0x2694   :  { %5388 = vsyncadd [#allocation6], 4294967040 }
0x2695   :  { %5389 = dma.done.wait [#allocation15], 256  }
0x2696   :  { %5390 = vsyncadd [#allocation15], 4294967040 }
0x2697   :  { %4567 = vsyncpa [#allocation5], 1 }
0x2698   :  { %4568 = vsyncpa [#allocation8], 1 }
0x2699   :  { %4569 = vsyncpa [#allocation11], 1 }
0x269a   :  { %4570 = vsyncpa [#allocation6], 1 }
0x269b   :  { %4571 = vsyncpa [#allocation15], 1 }

</bundles_post_ra>
